<compile_context>
chip_gen: v5e
topology: v5e:2x2
jax: 0.10.0
libtpu: 0.0.40
codegen_flags: <defaults>
</compile_context>

<pallas_src>
import functools

import jax
import jax.numpy as jnp
from jax.experimental import pallas as pl
from jax.experimental.pallas import tpu as pltpu


def _sigmoid(x):
    # exp on the EUP; approx reciprocal also on the EUP (frees the VALU in the epilogue).
    return pl.reciprocal(1.0 + jnp.exp(-x), approx=True)


def _zero_border(ref):
    """Zero only the 1-pixel spatial border of a (NB, H+2, W+2, C) VMEM scratch.

    The interior is fully overwritten every grid step, so this is O(perimeter) work and
    is safe under megacore ("parallel") grid partitioning (no cross-step state).
    """
    nb, hp, wp, c = ref.shape
    zrow = jnp.zeros((nb, 1, wp, c), ref.dtype)
    ref[:, 0:1, :, :] = zrow
    ref[:, hp - 1:hp, :, :] = zrow
    zcol = jnp.zeros((nb, hp, 1, c), ref.dtype)
    ref[:, :, 0:1, :] = zcol
    ref[:, :, wp - 1:wp, :] = zcol


def _im2col_3x3(patch_ref, padded_ref, Ho, Wo):
    """patch[(n,ho,wo), t*C:(t+1)*C] = padded[n, ho+kh, wo+kw, :],  t = 3*kh + kw."""
    nb = padded_ref.shape[0]
    c = padded_ref.shape[-1]
    m = nb * Ho * Wo
    for t in range(9):
        kh, kw = divmod(t, 3)
        tap = padded_ref[:, kh:kh + Ho, kw:kw + Wo, :].reshape(m, c)
        patch_ref[:, t * c:(t + 1) * c] = tap


def _im2col_3x3_phases(patch_ref, phases_ref, Ho, Wo, stride):
    """Strided (stride>1) conv1 patch from the phase-de-interleaved padded input.

    phases_ref: (NB, stride*stride, Hph, Wph, C); phase (py, px) at index py*stride+px
    holds padded_x[py::stride, px::stride], so tap (kh, kw) is a contiguous slice of
    phase (kh % stride, kw % stride) at offset (kh // stride, kw // stride).
    """
    nb = phases_ref.shape[0]
    c = phases_ref.shape[-1]
    m = nb * Ho * Wo
    for t in range(9):
        kh, kw = divmod(t, 3)
        pidx = (kh % stride) * stride + (kw % stride)
        dh, dw = kh // stride, kw // stride
        tap = phases_ref[:, pidx, dh:dh + Ho, dw:dw + Wo, :].reshape(m, c)
        patch_ref[:, t * c:(t + 1) * c] = tap


# -----------------------------------------------------------------------------
# Fused BasicBlock kernel (one grid step == NB batch elements)
# -----------------------------------------------------------------------------
def _basic_block_kernel(*refs, stride, projection, Ho, Wo):
    if projection:
        a_ref, w1_ref, b1_ref, w2_ref, b2_ref, wsc_ref, bsc_ref, o_ref = refs[:8]
        scratch = refs[8:]
    else:
        a_ref, w1_ref, b1_ref, w2_ref, b2_ref, o_ref = refs[:6]
        wsc_ref = bsc_ref = None
        scratch = refs[6:]
    if stride == 1:
        xpad_ref, p1_ref, y1pad_ref, p2_ref = scratch
    else:
        xpad_ref = None
        p1_ref, y1pad_ref, p2_ref = scratch

    nb = o_ref.shape[0]
    planes = o_ref.shape[-1]
    m = nb * Ho * Wo

    # ---- stage 1: conv1 (3x3, stride s) + bn1 (folded) + sigmoid ---------------------
    if stride == 1:
        # in-kernel zero padding; interior overwritten every step, border only re-zeroed
        _zero_border(xpad_ref)
        xpad_ref[:, 1:Ho + 1, 1:Wo + 1, :] = a_ref[...].astype(xpad_ref.dtype)
        _im2col_3x3(p1_ref, xpad_ref, Ho, Wo)
    else:
        _im2col_3x3_phases(p1_ref, a_ref, Ho, Wo, stride)

    acc1 = jnp.dot(p1_ref[...], w1_ref[...], preferred_element_type=jnp.float32)
    y1 = _sigmoid(acc1 + b1_ref[...])                                 # (m, planes) f32

    # ---- stage 2: conv2 (3x3, stride 1) + bn2 (folded) -------------------------------
    _zero_border(y1pad_ref)
    y1pad_ref[:, 1:Ho + 1, 1:Wo + 1, :] = (
        y1.reshape(nb, Ho, Wo, planes).astype(y1pad_ref.dtype))
    _im2col_3x3(p2_ref, y1pad_ref, Ho, Wo)
    acc2 = jnp.dot(p2_ref[...], w2_ref[...], preferred_element_type=jnp.float32)
    acc2 = acc2 + b2_ref[...]

    # ---- shortcut (+ folded BN), residual add, final sigmoid --------------------------
    if projection:
        cin = a_ref.shape[-1]
        if stride == 1:
            r = a_ref[...].reshape(m, cin).astype(jnp.bfloat16)
        else:
            # residual = x[s*ho, s*wo] = padded[1+s*ho, 1+s*wo] = phase (1,1)[ho, wo]
            r = a_ref[:, stride + 1, 0:Ho, 0:Wo, :].reshape(m, cin)
        acc2 = acc2 + jnp.dot(r, wsc_ref[...], preferred_element_type=jnp.float32)
        acc2 = acc2 + bsc_ref[...]
    else:
        acc2 = acc2 + a_ref[...].reshape(m, planes)                   # identity, f32
    o_ref[...] = _sigmoid(acc2).reshape(nb, Ho, Wo, planes).astype(o_ref.dtype)


# -----------------------------------------------------------------------------
# BN folding (inference mode), tiling heuristics, and the pallas_call wrapper
# -----------------------------------------------------------------------------
def _fold_bn_into_conv(w_oihw, bn, eps):
    """bn(conv(x)) == im2col(x) @ w_folded + bias  (inference-mode BatchNorm).

    # TODO(synk): BatchNorm is folded with running statistics (eval mode); training-mode
    # batch statistics (a cross-batch reduction) are not implemented.
    """
    gamma, beta, mean, var = (t.astype(jnp.float32) for t in bn)
    scale = gamma * jax.lax.rsqrt(var + eps)                              # [Cout]
    w = jnp.transpose(w_oihw.astype(jnp.float32), (2, 3, 1, 0)) * scale   # [KH,KW,Cin,Cout]
    kh, kw, cin, cout = w.shape
    wf = w.reshape(kh * kw * cin, cout)
    bias = (beta - mean * scale).reshape(1, cout)
    return wf, bias


def _vmem_limit_bytes():
    """Per-generation VMEM limit: ~3/4 of physical, capped (v7x 64 MiB, v5e/v6e 128)."""
    cap = 64 * 1024 * 1024
    try:
        cap = int(getattr(pltpu.get_tpu_info(), "vmem_capacity_bytes", cap))
    except Exception:
        pass
    return max(32 * 1024 * 1024, min((cap * 3) // 4, 96 * 1024 * 1024))


def _choose_batch_tile(n, per_image_bytes, fixed_bytes, budget_bytes, rows_per_image):
    """Largest divisor of n whose per-step footprint fits the budget; stop growing once
    the matmul M dimension (NB*Ho*Wo) is comfortably MXU-filling so the grid keeps
    several steps for pipelining / megacore sharding."""
    nb = 1
    for d in range(2, n + 1):
        if n % d:
            continue
        if fixed_bytes + d * per_image_bytes > budget_bytes:
            break
        nb = d
        if d * rows_per_image >= 512:
            break
    return nb


def basic_block_forward_nhwc(x_nhwc, params, *, stride=1, eps=1e-5):
    """Fused BasicBlock forward; activations are NHWC float32 in and out."""
    x = x_nhwc.astype(jnp.float32)
    n, h, w, cin = x.shape
    planes = params["conv1_w"].shape[0]
    ho = (h - 1) // stride + 1
    wo = (w - 1) // stride + 1
    projection = (stride != 1) or (cin != planes)

    w1, b1 = _fold_bn_into_conv(params["conv1_w"], params["bn1"], eps)
    w2, b2 = _fold_bn_into_conv(params["conv2_w"], params["bn2"], eps)
    w1 = w1.astype(jnp.bfloat16)     # cast AFTER the BN fold (keeps the fold exact)
    w2 = w2.astype(jnp.bfloat16)

    if stride == 1:
        a = x                                            # zero-padded inside the kernel
        a_tail = (h, w, cin)
        a_bytes = h * w * cin * 4
    else:
        # Pad once and de-interleave into stride*stride phase images so the in-kernel
        # 3x3 tap extraction only needs contiguous (unstrided) slices: ~1x input traffic
        # instead of a 2.25x HBM im2col.
        # TODO(synk): a fully in-kernel strided gather (pl.ds with stride on the W axis)
        # would remove this remaining piece of XLA-side glue.
        xp = jnp.pad(x, ((0, 0), (1, 1), (1, 1), (0, 0))).astype(jnp.bfloat16)
        hph = -(-(h + 2) // stride)
        wph = -(-(w + 2) // stride)
        phases = []
        for py in range(stride):
            for px in range(stride):
                ph = xp[:, py::stride, px::stride, :]
                ph = jnp.pad(ph, ((0, 0), (0, hph - ph.shape[1]),
                                  (0, wph - ph.shape[2]), (0, 0)))
                phases.append(ph)
        a = jnp.stack(phases, axis=1)                    # (N, s*s, hph, wph, cin) bf16
        a_tail = (stride * stride, hph, wph, cin)
        a_bytes = stride * stride * hph * wph * cin * 2

    inputs = [a, w1, b1, w2, b2]
    weight_specs = [
        pl.BlockSpec(w1.shape, lambda i: (0, 0)),
        pl.BlockSpec(b1.shape, lambda i: (0, 0)),
        pl.BlockSpec(w2.shape, lambda i: (0, 0)),
        pl.BlockSpec(b2.shape, lambda i: (0, 0)),
    ]
    weight_bytes = w1.size * 2 + b1.size * 4 + w2.size * 2 + b2.size * 4
    if projection:
        wsc, bsc = _fold_bn_into_conv(params["sc_w"], params["bn_sc"], eps)
        wsc = wsc.astype(jnp.bfloat16)
        inputs += [wsc, bsc]
        weight_specs += [pl.BlockSpec(wsc.shape, lambda i: (0, 0)),
                         pl.BlockSpec(bsc.shape, lambda i: (0, 0))]
        weight_bytes += wsc.size * 2 + bsc.size * 4

    # --- pick NB (batch tile) against a per-generation VMEM budget --------------------
    out_img_bytes = ho * wo * planes * 4
    scratch_img_bytes = 2 * (ho * wo * 9 * cin + (ho + 2) * (wo + 2) * planes
                             + ho * wo * 9 * planes)
    if stride == 1:
        scratch_img_bytes += 2 * (h + 2) * (w + 2) * cin
    per_image_bytes = 2 * a_bytes + 2 * out_img_bytes + scratch_img_bytes
    vmem_limit = _vmem_limit_bytes()
    nb = _choose_batch_tile(n, per_image_bytes, 2 * weight_bytes + (2 << 20),
                            vmem_limit // 2, ho * wo)
    m = nb * ho * wo

    in_specs = [pl.BlockSpec((nb,) + a_tail,
                             lambda i: (i,) + (0,) * len(a_tail))] + weight_specs

    scratch_shapes = []
    if stride == 1:
        scratch_shapes.append(pltpu.VMEM((nb, h + 2, w + 2, cin), jnp.bfloat16))
    scratch_shapes += [
        pltpu.VMEM((m, 9 * cin), jnp.bfloat16),                   # conv1 im2col patch
        pltpu.VMEM((nb, ho + 2, wo + 2, planes), jnp.bfloat16),   # conv1 out, 0-padded
        pltpu.VMEM((m, 9 * planes), jnp.bfloat16),                # conv2 im2col patch
    ]

    kernel = functools.partial(_basic_block_kernel, stride=stride,
                               projection=projection, Ho=ho, Wo=wo)
    return pl.pallas_call(
        kernel,
        out_shape=jax.ShapeDtypeStruct((n, ho, wo, planes), jnp.float32),
        grid=(n // nb,),
        in_specs=in_specs,
        out_specs=pl.BlockSpec((nb, ho, wo, planes), lambda i: (i, 0, 0, 0)),
        scratch_shapes=scratch_shapes,
        compiler_params=pltpu.CompilerParams(
            dimension_semantics=("parallel",),
            vmem_limit_bytes=vmem_limit),
    )(*inputs)


def basic_block_forward(x_nchw, params, *, stride=1, eps=1e-5):
    """PyTorch-layout (NCHW) entry point. Prefer chaining blocks with the NHWC variant
    so the layout transposes are paid once per network, not once per block."""
    x = jnp.transpose(x_nchw, (0, 2, 3, 1))
    y = basic_block_forward_nhwc(x, params, stride=stride, eps=eps)
    return jnp.transpose(y, (0, 3, 1, 2))


# -----------------------------------------------------------------------------
# Pure-JAX reference (inference-mode BN) and synthetic parameters
# -----------------------------------------------------------------------------
def basic_block_reference(x_nchw, params, *, stride=1, eps=1e-5):
    hp = jax.lax.Precision.HIGHEST

    def conv(x, w, s, pad):
        return jax.lax.conv_general_dilated(
            x, w, window_strides=(s, s), padding=pad,
            dimension_numbers=("NCHW", "OIHW", "NCHW"), precision=hp)

    def bn(x, p):
        g, b, m, v = p
        g = g.reshape(1, -1, 1, 1); b = b.reshape(1, -1, 1, 1)
        m = m.reshape(1, -1, 1, 1); v = v.reshape(1, -1, 1, 1)
        return (x - m) * jax.lax.rsqrt(v + eps) * g + b

    out = jax.nn.sigmoid(bn(conv(x_nchw, params["conv1_w"], stride, [(1, 1), (1, 1)]),
                            params["bn1"]))
    out = bn(conv(out, params["conv2_w"], 1, [(1, 1), (1, 1)]), params["bn2"])
    if "sc_w" in params:
        out = out + bn(conv(x_nchw, params["sc_w"], stride, [(0, 0), (0, 0)]),
                       params["bn_sc"])
    else:
        out = out + x_nchw
    return jax.nn.sigmoid(out)


def init_basic_block_params(key, in_planes, planes, stride=1):
    """Synthetic params, PyTorch layouts: conv [Cout, Cin, KH, KW];
    BatchNorm as (gamma, beta, running_mean, running_var), eps = 1e-5."""
    ks = jax.random.split(key, 6)

    def conv_w(k, cout, cin, ksz):
        fan_in = cin * ksz * ksz
        return jax.random.normal(k, (cout, cin, ksz, ksz), jnp.float32) / jnp.sqrt(float(fan_in))

    def bn_p(k, c):
        k1, k2, k3, k4 = jax.random.split(k, 4)
        return (1.0 + 0.1 * jax.random.normal(k1, (c,), jnp.float32),    # gamma
                0.1 * jax.random.normal(k2, (c,), jnp.float32),          # beta
                0.1 * jax.random.normal(k3, (c,), jnp.float32),          # running_mean
                0.5 + jax.random.uniform(k4, (c,), jnp.float32))         # running_var > 0

    params = {
        "conv1_w": conv_w(ks[0], planes, in_planes, 3),
        "bn1": bn_p(ks[1], planes),
        "conv2_w": conv_w(ks[2], planes, planes, 3),
        "bn2": bn_p(ks[3], planes),
    }
    if stride != 1 or in_planes != planes:
        params["sc_w"] = conv_w(ks[4], planes, in_planes, 1)
        params["bn_sc"] = bn_p(ks[5], planes)
    return params


if __name__ == "__main__":
    key = jax.random.PRNGKey(0)
    kx, kp1, kp2 = jax.random.split(key, 3)

    N, CIN, H, W = 2, 4, 16, 16
    PLANES = 8

    # Block 1: stride 2 + channel change -> 1x1 projection shortcut path.
    # Block 2: stride 1, same channels   -> identity shortcut path.
    p1 = init_basic_block_params(kp1, CIN, PLANES, stride=2)
    p2 = init_basic_block_params(kp2, PLANES, PLANES, stride=1)
    x = jax.random.normal(kx, (N, CIN, H, W), jnp.float32)

    @jax.jit
    def fwd(x, p1, p2):
        # NCHW -> NHWC once, chain the blocks in NHWC (hoisted transposes), back once.
        h = jnp.transpose(x, (0, 2, 3, 1))
        h = basic_block_forward_nhwc(h, p1, stride=2)
        h = basic_block_forward_nhwc(h, p2, stride=1)
        return jnp.transpose(h, (0, 3, 1, 2))

    out = jax.block_until_ready(fwd(x, p1, p2))
    assert out.shape == (N, PLANES, H // 2, W // 2), out.shape
    assert out.dtype == jnp.float32

    # Validate against a pure-JAX/XLA f32 reference of the same (inference-mode) blocks.
    # Tolerance accounts for bf16 matmul inputs (f32 accumulation) in the kernel.
    ref = basic_block_reference(basic_block_reference(x, p1, stride=2), p2, stride=1)
    err = float(jnp.max(jnp.abs(out - ref)))
    assert err < 2e-2, f"max abs error vs reference: {err}"

    print("KERNEL_OK")
</pallas_src>

<mosaic_0001>
module attributes {stable_mosaic.version = 11 : i64} {
  func.func @_basic_block_kernel(%arg0: i32, %arg1: memref<2x4x9x9x4xbf16, #tpu.memory_space<vmem>>, %arg2: memref<36x8xbf16, #tpu.memory_space<vmem>>, %arg3: memref<1x8xf32, #tpu.memory_space<vmem>>, %arg4: memref<72x8xbf16, #tpu.memory_space<vmem>>, %arg5: memref<1x8xf32, #tpu.memory_space<vmem>>, %arg6: memref<4x8xbf16, #tpu.memory_space<vmem>>, %arg7: memref<1x8xf32, #tpu.memory_space<vmem>>, %arg8: memref<2x8x8x8xf32, #tpu.memory_space<vmem>>, %arg9: memref<128x36xbf16, #tpu.memory_space<vmem>>, %arg10: memref<2x10x10x8xbf16, #tpu.memory_space<vmem>>, %arg11: memref<128x72xbf16, #tpu.memory_space<vmem>>) attributes {dimension_semantics = [#tpu.dimension_semantics<parallel>], iteration_bounds = array<i64: 1>, scalar_prefetch = 0 : i64, scratch_operands = 3 : i64, tpu.core_type = #tpu.core_type<tc>, window_params = [{transform_indices = @transform_0, window_bounds = array<i64: 2, 4, 9, 9, 4>}, {pipeline_mode = #tpu.pipeline_mode<synchronous>, transform_indices = @transform_1, window_bounds = array<i64: 36, 8>}, {pipeline_mode = #tpu.pipeline_mode<synchronous>, transform_indices = @transform_2, window_bounds = array<i64: 1, 8>}, {pipeline_mode = #tpu.pipeline_mode<synchronous>, transform_indices = @transform_3, window_bounds = array<i64: 72, 8>}, {pipeline_mode = #tpu.pipeline_mode<synchronous>, transform_indices = @transform_4, window_bounds = array<i64: 1, 8>}, {pipeline_mode = #tpu.pipeline_mode<synchronous>, transform_indices = @transform_5, window_bounds = array<i64: 4, 8>}, {pipeline_mode = #tpu.pipeline_mode<synchronous>, transform_indices = @transform_6, window_bounds = array<i64: 1, 8>}, {transform_indices = @transform_7, window_bounds = array<i64: 2, 8, 8, 8>}]} {
    %c0 = arith.constant 0 : index
    %c0_0 = arith.constant 0 : index
    %c0_1 = arith.constant 0 : index
    %c0_2 = arith.constant 0 : index
    %c0_3 = arith.constant 0 : index
    %0 = vector.load %arg1[%c0, %c0_0, %c0_1, %c0_2, %c0_3] : memref<2x4x9x9x4xbf16, #tpu.memory_space<vmem>>, vector<2x1x8x8x4xbf16>
    %1 = vector.shape_cast %0 : vector<2x1x8x8x4xbf16> to vector<2x8x8x4xbf16>
    %2 = vector.shape_cast %1 : vector<2x8x8x4xbf16> to vector<128x4xbf16>
    %c0_4 = arith.constant 0 : index
    %c0_5 = arith.constant 0 : index
    %3 = vector.load %arg9[%c0_4, %c0_5] : memref<128x36xbf16, #tpu.memory_space<vmem>>, vector<128x4xbf16>
    tpu.vector_store %arg9[%c0_4, %c0_5], %2 {strides = array<i32>} : memref<128x36xbf16, #tpu.memory_space<vmem>>, vector<128x4xbf16>,
    %c0_6 = arith.constant 0 : index
    %c1 = arith.constant 1 : index
    %c0_7 = arith.constant 0 : index
    %c0_8 = arith.constant 0 : index
    %c0_9 = arith.constant 0 : index
    %4 = vector.load %arg1[%c0_6, %c1, %c0_7, %c0_8, %c0_9] : memref<2x4x9x9x4xbf16, #tpu.memory_space<vmem>>, vector<2x1x8x8x4xbf16>
    %5 = vector.shape_cast %4 : vector<2x1x8x8x4xbf16> to vector<2x8x8x4xbf16>
    %6 = vector.shape_cast %5 : vector<2x8x8x4xbf16> to vector<128x4xbf16>
    %c0_10 = arith.constant 0 : index
    %c4 = arith.constant 4 : index
    %7 = vector.load %arg9[%c0_10, %c4] : memref<128x36xbf16, #tpu.memory_space<vmem>>, vector<128x4xbf16>
    tpu.vector_store %arg9[%c0_10, %c4], %6 {strides = array<i32>} : memref<128x36xbf16, #tpu.memory_space<vmem>>, vector<128x4xbf16>,
    %c0_11 = arith.constant 0 : index
    %c0_12 = arith.constant 0 : index
    %c0_13 = arith.constant 0 : index
    %c1_14 = arith.constant 1 : index
    %c0_15 = arith.constant 0 : index
    %8 = vector.load %arg1[%c0_11, %c0_12, %c0_13, %c1_14, %c0_15] : memref<2x4x9x9x4xbf16, #tpu.memory_space<vmem>>, vector<2x1x8x8x4xbf16>
    %9 = vector.shape_cast %8 : vector<2x1x8x8x4xbf16> to vector<2x8x8x4xbf16>
    %10 = vector.shape_cast %9 : vector<2x8x8x4xbf16> to vector<128x4xbf16>
    %c0_16 = arith.constant 0 : index
    %c8 = arith.constant 8 : index
    %11 = vector.load %arg9[%c0_16, %c8] : memref<128x36xbf16, #tpu.memory_space<vmem>>, vector<128x4xbf16>
    tpu.vector_store %arg9[%c0_16, %c8], %10 {strides = array<i32>} : memref<128x36xbf16, #tpu.memory_space<vmem>>, vector<128x4xbf16>,
    %c0_17 = arith.constant 0 : index
    %c2 = arith.constant 2 : index
    %c0_18 = arith.constant 0 : index
    %c0_19 = arith.constant 0 : index
    %c0_20 = arith.constant 0 : index
    %12 = vector.load %arg1[%c0_17, %c2, %c0_18, %c0_19, %c0_20] : memref<2x4x9x9x4xbf16, #tpu.memory_space<vmem>>, vector<2x1x8x8x4xbf16>
    %13 = vector.shape_cast %12 : vector<2x1x8x8x4xbf16> to vector<2x8x8x4xbf16>
    %14 = vector.shape_cast %13 : vector<2x8x8x4xbf16> to vector<128x4xbf16>
    %c0_21 = arith.constant 0 : index
    %c12 = arith.constant 12 : index
    %15 = vector.load %arg9[%c0_21, %c12] : memref<128x36xbf16, #tpu.memory_space<vmem>>, vector<128x4xbf16>
    tpu.vector_store %arg9[%c0_21, %c12], %14 {strides = array<i32>} : memref<128x36xbf16, #tpu.memory_space<vmem>>, vector<128x4xbf16>,
    %c0_22 = arith.constant 0 : index
    %c3 = arith.constant 3 : index
    %c0_23 = arith.constant 0 : index
    %c0_24 = arith.constant 0 : index
    %c0_25 = arith.constant 0 : index
    %16 = vector.load %arg1[%c0_22, %c3, %c0_23, %c0_24, %c0_25] : memref<2x4x9x9x4xbf16, #tpu.memory_space<vmem>>, vector<2x1x8x8x4xbf16>
    %17 = vector.shape_cast %16 : vector<2x1x8x8x4xbf16> to vector<2x8x8x4xbf16>
    %18 = vector.shape_cast %17 : vector<2x8x8x4xbf16> to vector<128x4xbf16>
    %c0_26 = arith.constant 0 : index
    %c16 = arith.constant 16 : index
    %19 = vector.load %arg9[%c0_26, %c16] : memref<128x36xbf16, #tpu.memory_space<vmem>>, vector<128x4xbf16>
    tpu.vector_store %arg9[%c0_26, %c16], %18 {strides = array<i32>} : memref<128x36xbf16, #tpu.memory_space<vmem>>, vector<128x4xbf16>,
    %c0_27 = arith.constant 0 : index
    %c2_28 = arith.constant 2 : index
    %c0_29 = arith.constant 0 : index
    %c1_30 = arith.constant 1 : index
    %c0_31 = arith.constant 0 : index
    %20 = vector.load %arg1[%c0_27, %c2_28, %c0_29, %c1_30, %c0_31] : memref<2x4x9x9x4xbf16, #tpu.memory_space<vmem>>, vector<2x1x8x8x4xbf16>
    %21 = vector.shape_cast %20 : vector<2x1x8x8x4xbf16> to vector<2x8x8x4xbf16>
    %22 = vector.shape_cast %21 : vector<2x8x8x4xbf16> to vector<128x4xbf16>
    %c0_32 = arith.constant 0 : index
    %c20 = arith.constant 20 : index
    %23 = vector.load %arg9[%c0_32, %c20] : memref<128x36xbf16, #tpu.memory_space<vmem>>, vector<128x4xbf16>
    tpu.vector_store %arg9[%c0_32, %c20], %22 {strides = array<i32>} : memref<128x36xbf16, #tpu.memory_space<vmem>>, vector<128x4xbf16>,
    %c0_33 = arith.constant 0 : index
    %c0_34 = arith.constant 0 : index
    %c1_35 = arith.constant 1 : index
    %c0_36 = arith.constant 0 : index
    %c0_37 = arith.constant 0 : index
    %24 = vector.load %arg1[%c0_33, %c0_34, %c1_35, %c0_36, %c0_37] : memref<2x4x9x9x4xbf16, #tpu.memory_space<vmem>>, vector<2x1x8x8x4xbf16>
    %25 = vector.shape_cast %24 : vector<2x1x8x8x4xbf16> to vector<2x8x8x4xbf16>
    %26 = vector.shape_cast %25 : vector<2x8x8x4xbf16> to vector<128x4xbf16>
    %c0_38 = arith.constant 0 : index
    %c24 = arith.constant 24 : index
    %27 = vector.load %arg9[%c0_38, %c24] : memref<128x36xbf16, #tpu.memory_space<vmem>>, vector<128x4xbf16>
    tpu.vector_store %arg9[%c0_38, %c24], %26 {strides = array<i32>} : memref<128x36xbf16, #tpu.memory_space<vmem>>, vector<128x4xbf16>,
    %c0_39 = arith.constant 0 : index
    %c1_40 = arith.constant 1 : index
    %c1_41 = arith.constant 1 : index
    %c0_42 = arith.constant 0 : index
    %c0_43 = arith.constant 0 : index
    %28 = vector.load %arg1[%c0_39, %c1_40, %c1_41, %c0_42, %c0_43] : memref<2x4x9x9x4xbf16, #tpu.memory_space<vmem>>, vector<2x1x8x8x4xbf16>
    %29 = vector.shape_cast %28 : vector<2x1x8x8x4xbf16> to vector<2x8x8x4xbf16>
    %30 = vector.shape_cast %29 : vector<2x8x8x4xbf16> to vector<128x4xbf16>
    %c0_44 = arith.constant 0 : index
    %c28 = arith.constant 28 : index
    %31 = vector.load %arg9[%c0_44, %c28] : memref<128x36xbf16, #tpu.memory_space<vmem>>, vector<128x4xbf16>
    tpu.vector_store %arg9[%c0_44, %c28], %30 {strides = array<i32>} : memref<128x36xbf16, #tpu.memory_space<vmem>>, vector<128x4xbf16>,
    %c0_45 = arith.constant 0 : index
    %c0_46 = arith.constant 0 : index
    %c1_47 = arith.constant 1 : index
    %c1_48 = arith.constant 1 : index
    %c0_49 = arith.constant 0 : index
    %32 = vector.load %arg1[%c0_45, %c0_46, %c1_47, %c1_48, %c0_49] : memref<2x4x9x9x4xbf16, #tpu.memory_space<vmem>>, vector<2x1x8x8x4xbf16>
    %33 = vector.shape_cast %32 : vector<2x1x8x8x4xbf16> to vector<2x8x8x4xbf16>
    %34 = vector.shape_cast %33 : vector<2x8x8x4xbf16> to vector<128x4xbf16>
    %c0_50 = arith.constant 0 : index
    %c32 = arith.constant 32 : index
    %35 = vector.load %arg9[%c0_50, %c32] : memref<128x36xbf16, #tpu.memory_space<vmem>>, vector<128x4xbf16>
    tpu.vector_store %arg9[%c0_50, %c32], %34 {strides = array<i32>} : memref<128x36xbf16, #tpu.memory_space<vmem>>, vector<128x4xbf16>,
    %c0_51 = arith.constant 0 : index
    %c0_52 = arith.constant 0 : index
    %36 = vector.load %arg9[%c0_51, %c0_52] : memref<128x36xbf16, #tpu.memory_space<vmem>>, vector<128x36xbf16>
    %c0_53 = arith.constant 0 : index
    %c0_54 = arith.constant 0 : index
    %37 = vector.load %arg2[%c0_53, %c0_54] : memref<36x8xbf16, #tpu.memory_space<vmem>>, vector<36x8xbf16>
    %cst = arith.constant dense<0.000000e+00> : vector<128x8xf32>
    %38 = tpu.matmul %36, %37, %cst {dimension_numbers = #tpu.dot_dimension_numbers<[1], [0], [0], [1], [0, 0, 1, 1], [], []>} : vector<128x36xbf16>, vector<36x8xbf16>, vector<128x8xf32> -> vector<128x8xf32>
    %c0_55 = arith.constant 0 : index
    %c0_56 = arith.constant 0 : index
    %39 = vector.load %arg3[%c0_55, %c0_56] : memref<1x8xf32, #tpu.memory_space<vmem>>, vector<1x8xf32>
    %40 = vector.broadcast %39 : vector<1x8xf32> to vector<128x8xf32>
    %41 = arith.addf %38, %40 : vector<128x8xf32>
    %cst_57 = arith.constant 0.000000e+00 : f32
    %42 = vector.broadcast %cst_57 : f32 to vector<128x8xf32>
    %43 = arith.subf %42, %41 : vector<128x8xf32>
    %44 = math.exp %43 : vector<128x8xf32>
    %cst_58 = arith.constant 1.000000e+00 : f32
    %45 = vector.broadcast %cst_58 : f32 to vector<128x8xf32>
    %46 = arith.addf %45, %44 : vector<128x8xf32>
    %47 = tpu.reciprocal %46 {approx = true} : vector<128x8xf32> -> vector<128x8xf32>
    %cst_59 = arith.constant 0.000000e+00 : bf16
    %48 = vector.broadcast %cst_59 : bf16 to vector<2x1x10x8xbf16>
    %c0_60 = arith.constant 0 : index
    %c0_61 = arith.constant 0 : index
    %c0_62 = arith.constant 0 : index
    %c0_63 = arith.constant 0 : index
    %49 = vector.load %arg10[%c0_60, %c0_61, %c0_62, %c0_63] : memref<2x10x10x8xbf16, #tpu.memory_space<vmem>>, vector<2x1x10x8xbf16>
    tpu.vector_store %arg10[%c0_60, %c0_61, %c0_62, %c0_63], %48 {strides = array<i32>} : memref<2x10x10x8xbf16, #tpu.memory_space<vmem>>, vector<2x1x10x8xbf16>,
    %c0_64 = arith.constant 0 : index
    %c9 = arith.constant 9 : index
    %c0_65 = arith.constant 0 : index
    %c0_66 = arith.constant 0 : index
    %50 = vector.load %arg10[%c0_64, %c9, %c0_65, %c0_66] : memref<2x10x10x8xbf16, #tpu.memory_space<vmem>>, vector<2x1x10x8xbf16>
    tpu.vector_store %arg10[%c0_64, %c9, %c0_65, %c0_66], %48 {strides = array<i32>} : memref<2x10x10x8xbf16, #tpu.memory_space<vmem>>, vector<2x1x10x8xbf16>,
    %cst_67 = arith.constant 0.000000e+00 : bf16
    %51 = vector.broadcast %cst_67 : bf16 to vector<2x10x1x8xbf16>
    %c0_68 = arith.constant 0 : index
    %c0_69 = arith.constant 0 : index
    %c0_70 = arith.constant 0 : index
    %c0_71 = arith.constant 0 : index
    %52 = vector.load %arg10[%c0_68, %c0_69, %c0_70, %c0_71] : memref<2x10x10x8xbf16, #tpu.memory_space<vmem>>, vector<2x10x1x8xbf16>
    tpu.vector_store %arg10[%c0_68, %c0_69, %c0_70, %c0_71], %51 {strides = array<i32>} : memref<2x10x10x8xbf16, #tpu.memory_space<vmem>>, vector<2x10x1x8xbf16>,
    %c0_72 = arith.constant 0 : index
    %c0_73 = arith.constant 0 : index
    %c9_74 = arith.constant 9 : index
    %c0_75 = arith.constant 0 : index
    %53 = vector.load %arg10[%c0_72, %c0_73, %c9_74, %c0_75] : memref<2x10x10x8xbf16, #tpu.memory_space<vmem>>, vector<2x10x1x8xbf16>
    tpu.vector_store %arg10[%c0_72, %c0_73, %c9_74, %c0_75], %51 {strides = array<i32>} : memref<2x10x10x8xbf16, #tpu.memory_space<vmem>>, vector<2x10x1x8xbf16>,
    %54 = vector.shape_cast %47 : vector<128x8xf32> to vector<2x8x8x8xf32>
    %55 = arith.truncf %54 : vector<2x8x8x8xf32> to vector<2x8x8x8xbf16>
    %c0_76 = arith.constant 0 : index
    %c1_77 = arith.constant 1 : index
    %c1_78 = arith.constant 1 : index
    %c0_79 = arith.constant 0 : index
    %56 = vector.load %arg10[%c0_76, %c1_77, %c1_78, %c0_79] : memref<2x10x10x8xbf16, #tpu.memory_space<vmem>>, vector<2x8x8x8xbf16>
    tpu.vector_store %arg10[%c0_76, %c1_77, %c1_78, %c0_79], %55 {strides = array<i32>} : memref<2x10x10x8xbf16, #tpu.memory_space<vmem>>, vector<2x8x8x8xbf16>,
    %c0_80 = arith.constant 0 : index
    %c0_81 = arith.constant 0 : index
    %c0_82 = arith.constant 0 : index
    %c0_83 = arith.constant 0 : index
    %57 = vector.load %arg10[%c0_80, %c0_81, %c0_82, %c0_83] : memref<2x10x10x8xbf16, #tpu.memory_space<vmem>>, vector<2x8x8x8xbf16>
    %58 = vector.shape_cast %57 : vector<2x8x8x8xbf16> to vector<128x8xbf16>
    %c0_84 = arith.constant 0 : index
    %c0_85 = arith.constant 0 : index
    %59 = vector.load %arg11[%c0_84, %c0_85] : memref<128x72xbf16, #tpu.memory_space<vmem>>, vector<128x8xbf16>
    tpu.vector_store %arg11[%c0_84, %c0_85], %58 {strides = array<i32>} : memref<128x72xbf16, #tpu.memory_space<vmem>>, vector<128x8xbf16>,
    %c0_86 = arith.constant 0 : index
    %c0_87 = arith.constant 0 : index
    %c1_88 = arith.constant 1 : index
    %c0_89 = arith.constant 0 : index
    %60 = vector.load %arg10[%c0_86, %c0_87, %c1_88, %c0_89] : memref<2x10x10x8xbf16, #tpu.memory_space<vmem>>, vector<2x8x8x8xbf16>
    %61 = vector.shape_cast %60 : vector<2x8x8x8xbf16> to vector<128x8xbf16>
    %c0_90 = arith.constant 0 : index
    %c8_91 = arith.constant 8 : index
    %62 = vector.load %arg11[%c0_90, %c8_91] : memref<128x72xbf16, #tpu.memory_space<vmem>>, vector<128x8xbf16>
    tpu.vector_store %arg11[%c0_90, %c8_91], %61 {strides = array<i32>} : memref<128x72xbf16, #tpu.memory_space<vmem>>, vector<128x8xbf16>,
    %c0_92 = arith.constant 0 : index
    %c0_93 = arith.constant 0 : index
    %c2_94 = arith.constant 2 : index
    %c0_95 = arith.constant 0 : index
    %63 = vector.load %arg10[%c0_92, %c0_93, %c2_94, %c0_95] : memref<2x10x10x8xbf16, #tpu.memory_space<vmem>>, vector<2x8x8x8xbf16>
    %64 = vector.shape_cast %63 : vector<2x8x8x8xbf16> to vector<128x8xbf16>
    %c0_96 = arith.constant 0 : index
    %c16_97 = arith.constant 16 : index
    %65 = vector.load %arg11[%c0_96, %c16_97] : memref<128x72xbf16, #tpu.memory_space<vmem>>, vector<128x8xbf16>
    tpu.vector_store %arg11[%c0_96, %c16_97], %64 {strides = array<i32>} : memref<128x72xbf16, #tpu.memory_space<vmem>>, vector<128x8xbf16>,
    %c0_98 = arith.constant 0 : index
    %c1_99 = arith.constant 1 : index
    %c0_100 = arith.constant 0 : index
    %c0_101 = arith.constant 0 : index
    %66 = vector.load %arg10[%c0_98, %c1_99, %c0_100, %c0_101] : memref<2x10x10x8xbf16, #tpu.memory_space<vmem>>, vector<2x8x8x8xbf16>
    %67 = vector.shape_cast %66 : vector<2x8x8x8xbf16> to vector<128x8xbf16>
    %c0_102 = arith.constant 0 : index
    %c24_103 = arith.constant 24 : index
    %68 = vector.load %arg11[%c0_102, %c24_103] : memref<128x72xbf16, #tpu.memory_space<vmem>>, vector<128x8xbf16>
    tpu.vector_store %arg11[%c0_102, %c24_103], %67 {strides = array<i32>} : memref<128x72xbf16, #tpu.memory_space<vmem>>, vector<128x8xbf16>,
    %c0_104 = arith.constant 0 : index
    %c1_105 = arith.constant 1 : index
    %c1_106 = arith.constant 1 : index
    %c0_107 = arith.constant 0 : index
    %69 = vector.load %arg10[%c0_104, %c1_105, %c1_106, %c0_107] : memref<2x10x10x8xbf16, #tpu.memory_space<vmem>>, vector<2x8x8x8xbf16>
    %70 = vector.shape_cast %69 : vector<2x8x8x8xbf16> to vector<128x8xbf16>
    %c0_108 = arith.constant 0 : index
    %c32_109 = arith.constant 32 : index
    %71 = vector.load %arg11[%c0_108, %c32_109] : memref<128x72xbf16, #tpu.memory_space<vmem>>, vector<128x8xbf16>
    tpu.vector_store %arg11[%c0_108, %c32_109], %70 {strides = array<i32>} : memref<128x72xbf16, #tpu.memory_space<vmem>>, vector<128x8xbf16>,
    %c0_110 = arith.constant 0 : index
    %c1_111 = arith.constant 1 : index
    %c2_112 = arith.constant 2 : index
    %c0_113 = arith.constant 0 : index
    %72 = vector.load %arg10[%c0_110, %c1_111, %c2_112, %c0_113] : memref<2x10x10x8xbf16, #tpu.memory_space<vmem>>, vector<2x8x8x8xbf16>
    %73 = vector.shape_cast %72 : vector<2x8x8x8xbf16> to vector<128x8xbf16>
    %c0_114 = arith.constant 0 : index
    %c40 = arith.constant 40 : index
    %74 = vector.load %arg11[%c0_114, %c40] : memref<128x72xbf16, #tpu.memory_space<vmem>>, vector<128x8xbf16>
    tpu.vector_store %arg11[%c0_114, %c40], %73 {strides = array<i32>} : memref<128x72xbf16, #tpu.memory_space<vmem>>, vector<128x8xbf16>,
    %c0_115 = arith.constant 0 : index
    %c2_116 = arith.constant 2 : index
    %c0_117 = arith.constant 0 : index
    %c0_118 = arith.constant 0 : index
    %75 = vector.load %arg10[%c0_115, %c2_116, %c0_117, %c0_118] : memref<2x10x10x8xbf16, #tpu.memory_space<vmem>>, vector<2x8x8x8xbf16>
    %76 = vector.shape_cast %75 : vector<2x8x8x8xbf16> to vector<128x8xbf16>
    %c0_119 = arith.constant 0 : index
    %c48 = arith.constant 48 : index
    %77 = vector.load %arg11[%c0_119, %c48] : memref<128x72xbf16, #tpu.memory_space<vmem>>, vector<128x8xbf16>
    tpu.vector_store %arg11[%c0_119, %c48], %76 {strides = array<i32>} : memref<128x72xbf16, #tpu.memory_space<vmem>>, vector<128x8xbf16>,
    %c0_120 = arith.constant 0 : index
    %c2_121 = arith.constant 2 : index
    %c1_122 = arith.constant 1 : index
    %c0_123 = arith.constant 0 : index
    %78 = vector.load %arg10[%c0_120, %c2_121, %c1_122, %c0_123] : memref<2x10x10x8xbf16, #tpu.memory_space<vmem>>, vector<2x8x8x8xbf16>
    %79 = vector.shape_cast %78 : vector<2x8x8x8xbf16> to vector<128x8xbf16>
    %c0_124 = arith.constant 0 : index
    %c56 = arith.constant 56 : index
    %80 = vector.load %arg11[%c0_124, %c56] : memref<128x72xbf16, #tpu.memory_space<vmem>>, vector<128x8xbf16>
    tpu.vector_store %arg11[%c0_124, %c56], %79 {strides = array<i32>} : memref<128x72xbf16, #tpu.memory_space<vmem>>, vector<128x8xbf16>,
    %c0_125 = arith.constant 0 : index
    %c2_126 = arith.constant 2 : index
    %c2_127 = arith.constant 2 : index
    %c0_128 = arith.constant 0 : index
    %81 = vector.load %arg10[%c0_125, %c2_126, %c2_127, %c0_128] : memref<2x10x10x8xbf16, #tpu.memory_space<vmem>>, vector<2x8x8x8xbf16>
    %82 = vector.shape_cast %81 : vector<2x8x8x8xbf16> to vector<128x8xbf16>
    %c0_129 = arith.constant 0 : index
    %c64 = arith.constant 64 : index
    %83 = vector.load %arg11[%c0_129, %c64] : memref<128x72xbf16, #tpu.memory_space<vmem>>, vector<128x8xbf16>
    tpu.vector_store %arg11[%c0_129, %c64], %82 {strides = array<i32>} : memref<128x72xbf16, #tpu.memory_space<vmem>>, vector<128x8xbf16>,
    %c0_130 = arith.constant 0 : index
    %c0_131 = arith.constant 0 : index
    %84 = vector.load %arg11[%c0_130, %c0_131] : memref<128x72xbf16, #tpu.memory_space<vmem>>, vector<128x72xbf16>
    %c0_132 = arith.constant 0 : index
    %c0_133 = arith.constant 0 : index
    %85 = vector.load %arg4[%c0_132, %c0_133] : memref<72x8xbf16, #tpu.memory_space<vmem>>, vector<72x8xbf16>
    %cst_134 = arith.constant dense<0.000000e+00> : vector<128x8xf32>
    %86 = tpu.matmul %84, %85, %cst_134 {dimension_numbers = #tpu.dot_dimension_numbers<[1], [0], [0], [1], [0, 0, 1, 1], [], []>} : vector<128x72xbf16>, vector<72x8xbf16>, vector<128x8xf32> -> vector<128x8xf32>
    %c0_135 = arith.constant 0 : index
    %c0_136 = arith.constant 0 : index
    %87 = vector.load %arg5[%c0_135, %c0_136] : memref<1x8xf32, #tpu.memory_space<vmem>>, vector<1x8xf32>
    %88 = vector.broadcast %87 : vector<1x8xf32> to vector<128x8xf32>
    %89 = arith.addf %86, %88 : vector<128x8xf32>
    %c0_137 = arith.constant 0 : index
    %c3_138 = arith.constant 3 : index
    %c0_139 = arith.constant 0 : index
    %c0_140 = arith.constant 0 : index
    %c0_141 = arith.constant 0 : index
    %90 = vector.load %arg1[%c0_137, %c3_138, %c0_139, %c0_140, %c0_141] : memref<2x4x9x9x4xbf16, #tpu.memory_space<vmem>>, vector<2x1x8x8x4xbf16>
    %91 = vector.shape_cast %90 : vector<2x1x8x8x4xbf16> to vector<2x8x8x4xbf16>
    %92 = vector.shape_cast %91 : vector<2x8x8x4xbf16> to vector<128x4xbf16>
    %c0_142 = arith.constant 0 : index
    %c0_143 = arith.constant 0 : index
    %93 = vector.load %arg6[%c0_142, %c0_143] : memref<4x8xbf16, #tpu.memory_space<vmem>>, vector<4x8xbf16>
    %cst_144 = arith.constant dense<0.000000e+00> : vector<128x8xf32>
    %94 = tpu.matmul %92, %93, %cst_144 {dimension_numbers = #tpu.dot_dimension_numbers<[1], [0], [0], [1], [0, 0, 1, 1], [], []>} : vector<128x4xbf16>, vector<4x8xbf16>, vector<128x8xf32> -> vector<128x8xf32>
    %95 = arith.addf %89, %94 : vector<128x8xf32>
    %c0_145 = arith.constant 0 : index
    %c0_146 = arith.constant 0 : index
    %96 = vector.load %arg7[%c0_145, %c0_146] : memref<1x8xf32, #tpu.memory_space<vmem>>, vector<1x8xf32>
    %97 = vector.broadcast %96 : vector<1x8xf32> to vector<128x8xf32>
    %98 = arith.addf %95, %97 : vector<128x8xf32>
    %cst_147 = arith.constant 0.000000e+00 : f32
    %99 = vector.broadcast %cst_147 : f32 to vector<128x8xf32>
    %100 = arith.subf %99, %98 : vector<128x8xf32>
    %101 = math.exp %100 : vector<128x8xf32>
    %cst_148 = arith.constant 1.000000e+00 : f32
    %102 = vector.broadcast %cst_148 : f32 to vector<128x8xf32>
    %103 = arith.addf %102, %101 : vector<128x8xf32>
    %104 = tpu.reciprocal %103 {approx = true} : vector<128x8xf32> -> vector<128x8xf32>
    %105 = vector.shape_cast %104 : vector<128x8xf32> to vector<2x8x8x8xf32>
    %c0_149 = arith.constant 0 : index
    %c0_150 = arith.constant 0 : index
    %c0_151 = arith.constant 0 : index
    %c0_152 = arith.constant 0 : index
    %106 = vector.load %arg8[%c0_149, %c0_150, %c0_151, %c0_152] : memref<2x8x8x8xf32, #tpu.memory_space<vmem>>, vector<2x8x8x8xf32>
    tpu.vector_store %arg8[%c0_149, %c0_150, %c0_151, %c0_152], %105 {strides = array<i32>} : memref<2x8x8x8xf32, #tpu.memory_space<vmem>>, vector<2x8x8x8xf32>,
    return
  }
  func.func @transform_0(%arg0: i32) -> (i32, i32, i32, i32, i32) {
    %c0_i32 = arith.constant 0 : i32
    %c0_i32_0 = arith.constant 0 : i32
    %c0_i32_1 = arith.constant 0 : i32
    %c0_i32_2 = arith.constant 0 : i32
    %c0_i32_3 = arith.constant 0 : i32
    return %arg0, %c0_i32, %c0_i32_0, %c0_i32_1, %c0_i32_2 : i32, i32, i32, i32, i32
  }
  func.func @transform_1(%arg0: i32) -> (i32, i32) {
    %c0_i32 = arith.constant 0 : i32
    %c0_i32_0 = arith.constant 0 : i32
    %c0_i32_1 = arith.constant 0 : i32
    return %c0_i32, %c0_i32_0 : i32, i32
  }
  func.func @transform_2(%arg0: i32) -> (i32, i32) {
    %c0_i32 = arith.constant 0 : i32
    %c0_i32_0 = arith.constant 0 : i32
    %c0_i32_1 = arith.constant 0 : i32
    return %c0_i32, %c0_i32_0 : i32, i32
  }
  func.func @transform_3(%arg0: i32) -> (i32, i32) {
    %c0_i32 = arith.constant 0 : i32
    %c0_i32_0 = arith.constant 0 : i32
    %c0_i32_1 = arith.constant 0 : i32
    return %c0_i32, %c0_i32_0 : i32, i32
  }
  func.func @transform_4(%arg0: i32) -> (i32, i32) {
    %c0_i32 = arith.constant 0 : i32
    %c0_i32_0 = arith.constant 0 : i32
    %c0_i32_1 = arith.constant 0 : i32
    return %c0_i32, %c0_i32_0 : i32, i32
  }
  func.func @transform_5(%arg0: i32) -> (i32, i32) {
    %c0_i32 = arith.constant 0 : i32
    %c0_i32_0 = arith.constant 0 : i32
    %c0_i32_1 = arith.constant 0 : i32
    return %c0_i32, %c0_i32_0 : i32, i32
  }
  func.func @transform_6(%arg0: i32) -> (i32, i32) {
    %c0_i32 = arith.constant 0 : i32
    %c0_i32_0 = arith.constant 0 : i32
    %c0_i32_1 = arith.constant 0 : i32
    return %c0_i32, %c0_i32_0 : i32, i32
  }
  func.func @transform_7(%arg0: i32) -> (i32, i32, i32, i32) {
    %c0_i32 = arith.constant 0 : i32
    %c0_i32_0 = arith.constant 0 : i32
    %c0_i32_1 = arith.constant 0 : i32
    %c0_i32_2 = arith.constant 0 : i32
    return %arg0, %c0_i32, %c0_i32_0, %c0_i32_1 : i32, i32, i32, i32
  }
}

module attributes {stable_mosaic.version = 11 : i64} {
  func.func @_basic_block_kernel(%arg0: i32, %arg1: memref<2x8x8x8xf32, #tpu.memory_space<vmem>>, %arg2: memref<72x8xbf16, #tpu.memory_space<vmem>>, %arg3: memref<1x8xf32, #tpu.memory_space<vmem>>, %arg4: memref<72x8xbf16, #tpu.memory_space<vmem>>, %arg5: memref<1x8xf32, #tpu.memory_space<vmem>>, %arg6: memref<2x8x8x8xf32, #tpu.memory_space<vmem>>, %arg7: memref<2x10x10x8xbf16, #tpu.memory_space<vmem>>, %arg8: memref<128x72xbf16, #tpu.memory_space<vmem>>, %arg9: memref<2x10x10x8xbf16, #tpu.memory_space<vmem>>, %arg10: memref<128x72xbf16, #tpu.memory_space<vmem>>) attributes {dimension_semantics = [#tpu.dimension_semantics<parallel>], iteration_bounds = array<i64: 1>, scalar_prefetch = 0 : i64, scratch_operands = 4 : i64, tpu.core_type = #tpu.core_type<tc>, window_params = [{transform_indices = @transform_0, window_bounds = array<i64: 2, 8, 8, 8>}, {pipeline_mode = #tpu.pipeline_mode<synchronous>, transform_indices = @transform_1, window_bounds = array<i64: 72, 8>}, {pipeline_mode = #tpu.pipeline_mode<synchronous>, transform_indices = @transform_2, window_bounds = array<i64: 1, 8>}, {pipeline_mode = #tpu.pipeline_mode<synchronous>, transform_indices = @transform_3, window_bounds = array<i64: 72, 8>}, {pipeline_mode = #tpu.pipeline_mode<synchronous>, transform_indices = @transform_4, window_bounds = array<i64: 1, 8>}, {transform_indices = @transform_5, window_bounds = array<i64: 2, 8, 8, 8>}]} {
    %cst = arith.constant 0.000000e+00 : bf16
    %0 = vector.broadcast %cst : bf16 to vector<2x1x10x8xbf16>
    %c0 = arith.constant 0 : index
    %c0_0 = arith.constant 0 : index
    %c0_1 = arith.constant 0 : index
    %c0_2 = arith.constant 0 : index
    %1 = vector.load %arg7[%c0, %c0_0, %c0_1, %c0_2] : memref<2x10x10x8xbf16, #tpu.memory_space<vmem>>, vector<2x1x10x8xbf16>
    tpu.vector_store %arg7[%c0, %c0_0, %c0_1, %c0_2], %0 {strides = array<i32>} : memref<2x10x10x8xbf16, #tpu.memory_space<vmem>>, vector<2x1x10x8xbf16>,
    %c0_3 = arith.constant 0 : index
    %c9 = arith.constant 9 : index
    %c0_4 = arith.constant 0 : index
    %c0_5 = arith.constant 0 : index
    %2 = vector.load %arg7[%c0_3, %c9, %c0_4, %c0_5] : memref<2x10x10x8xbf16, #tpu.memory_space<vmem>>, vector<2x1x10x8xbf16>
    tpu.vector_store %arg7[%c0_3, %c9, %c0_4, %c0_5], %0 {strides = array<i32>} : memref<2x10x10x8xbf16, #tpu.memory_space<vmem>>, vector<2x1x10x8xbf16>,
    %cst_6 = arith.constant 0.000000e+00 : bf16
    %3 = vector.broadcast %cst_6 : bf16 to vector<2x10x1x8xbf16>
    %c0_7 = arith.constant 0 : index
    %c0_8 = arith.constant 0 : index
    %c0_9 = arith.constant 0 : index
    %c0_10 = arith.constant 0 : index
    %4 = vector.load %arg7[%c0_7, %c0_8, %c0_9, %c0_10] : memref<2x10x10x8xbf16, #tpu.memory_space<vmem>>, vector<2x10x1x8xbf16>
    tpu.vector_store %arg7[%c0_7, %c0_8, %c0_9, %c0_10], %3 {strides = array<i32>} : memref<2x10x10x8xbf16, #tpu.memory_space<vmem>>, vector<2x10x1x8xbf16>,
    %c0_11 = arith.constant 0 : index
    %c0_12 = arith.constant 0 : index
    %c9_13 = arith.constant 9 : index
    %c0_14 = arith.constant 0 : index
    %5 = vector.load %arg7[%c0_11, %c0_12, %c9_13, %c0_14] : memref<2x10x10x8xbf16, #tpu.memory_space<vmem>>, vector<2x10x1x8xbf16>
    tpu.vector_store %arg7[%c0_11, %c0_12, %c9_13, %c0_14], %3 {strides = array<i32>} : memref<2x10x10x8xbf16, #tpu.memory_space<vmem>>, vector<2x10x1x8xbf16>,
    %c0_15 = arith.constant 0 : index
    %c0_16 = arith.constant 0 : index
    %c0_17 = arith.constant 0 : index
    %c0_18 = arith.constant 0 : index
    %6 = vector.load %arg1[%c0_15, %c0_16, %c0_17, %c0_18] : memref<2x8x8x8xf32, #tpu.memory_space<vmem>>, vector<2x8x8x8xf32>
    %7 = arith.truncf %6 : vector<2x8x8x8xf32> to vector<2x8x8x8xbf16>
    %c0_19 = arith.constant 0 : index
    %c1 = arith.constant 1 : index
    %c1_20 = arith.constant 1 : index
    %c0_21 = arith.constant 0 : index
    %8 = vector.load %arg7[%c0_19, %c1, %c1_20, %c0_21] : memref<2x10x10x8xbf16, #tpu.memory_space<vmem>>, vector<2x8x8x8xbf16>
    tpu.vector_store %arg7[%c0_19, %c1, %c1_20, %c0_21], %7 {strides = array<i32>} : memref<2x10x10x8xbf16, #tpu.memory_space<vmem>>, vector<2x8x8x8xbf16>,
    %c0_22 = arith.constant 0 : index
    %c0_23 = arith.constant 0 : index
    %c0_24 = arith.constant 0 : index
    %c0_25 = arith.constant 0 : index
    %9 = vector.load %arg7[%c0_22, %c0_23, %c0_24, %c0_25] : memref<2x10x10x8xbf16, #tpu.memory_space<vmem>>, vector<2x8x8x8xbf16>
    %10 = vector.shape_cast %9 : vector<2x8x8x8xbf16> to vector<128x8xbf16>
    %c0_26 = arith.constant 0 : index
    %c0_27 = arith.constant 0 : index
    %11 = vector.load %arg8[%c0_26, %c0_27] : memref<128x72xbf16, #tpu.memory_space<vmem>>, vector<128x8xbf16>
    tpu.vector_store %arg8[%c0_26, %c0_27], %10 {strides = array<i32>} : memref<128x72xbf16, #tpu.memory_space<vmem>>, vector<128x8xbf16>,
    %c0_28 = arith.constant 0 : index
    %c0_29 = arith.constant 0 : index
    %c1_30 = arith.constant 1 : index
    %c0_31 = arith.constant 0 : index
    %12 = vector.load %arg7[%c0_28, %c0_29, %c1_30, %c0_31] : memref<2x10x10x8xbf16, #tpu.memory_space<vmem>>, vector<2x8x8x8xbf16>
    %13 = vector.shape_cast %12 : vector<2x8x8x8xbf16> to vector<128x8xbf16>
    %c0_32 = arith.constant 0 : index
    %c8 = arith.constant 8 : index
    %14 = vector.load %arg8[%c0_32, %c8] : memref<128x72xbf16, #tpu.memory_space<vmem>>, vector<128x8xbf16>
    tpu.vector_store %arg8[%c0_32, %c8], %13 {strides = array<i32>} : memref<128x72xbf16, #tpu.memory_space<vmem>>, vector<128x8xbf16>,
    %c0_33 = arith.constant 0 : index
    %c0_34 = arith.constant 0 : index
    %c2 = arith.constant 2 : index
    %c0_35 = arith.constant 0 : index
    %15 = vector.load %arg7[%c0_33, %c0_34, %c2, %c0_35] : memref<2x10x10x8xbf16, #tpu.memory_space<vmem>>, vector<2x8x8x8xbf16>
    %16 = vector.shape_cast %15 : vector<2x8x8x8xbf16> to vector<128x8xbf16>
    %c0_36 = arith.constant 0 : index
    %c16 = arith.constant 16 : index
    %17 = vector.load %arg8[%c0_36, %c16] : memref<128x72xbf16, #tpu.memory_space<vmem>>, vector<128x8xbf16>
    tpu.vector_store %arg8[%c0_36, %c16], %16 {strides = array<i32>} : memref<128x72xbf16, #tpu.memory_space<vmem>>, vector<128x8xbf16>,
    %c0_37 = arith.constant 0 : index
    %c1_38 = arith.constant 1 : index
    %c0_39 = arith.constant 0 : index
    %c0_40 = arith.constant 0 : index
    %18 = vector.load %arg7[%c0_37, %c1_38, %c0_39, %c0_40] : memref<2x10x10x8xbf16, #tpu.memory_space<vmem>>, vector<2x8x8x8xbf16>
    %19 = vector.shape_cast %18 : vector<2x8x8x8xbf16> to vector<128x8xbf16>
    %c0_41 = arith.constant 0 : index
    %c24 = arith.constant 24 : index
    %20 = vector.load %arg8[%c0_41, %c24] : memref<128x72xbf16, #tpu.memory_space<vmem>>, vector<128x8xbf16>
    tpu.vector_store %arg8[%c0_41, %c24], %19 {strides = array<i32>} : memref<128x72xbf16, #tpu.memory_space<vmem>>, vector<128x8xbf16>,
    %c0_42 = arith.constant 0 : index
    %c1_43 = arith.constant 1 : index
    %c1_44 = arith.constant 1 : index
    %c0_45 = arith.constant 0 : index
    %21 = vector.load %arg7[%c0_42, %c1_43, %c1_44, %c0_45] : memref<2x10x10x8xbf16, #tpu.memory_space<vmem>>, vector<2x8x8x8xbf16>
    %22 = vector.shape_cast %21 : vector<2x8x8x8xbf16> to vector<128x8xbf16>
    %c0_46 = arith.constant 0 : index
    %c32 = arith.constant 32 : index
    %23 = vector.load %arg8[%c0_46, %c32] : memref<128x72xbf16, #tpu.memory_space<vmem>>, vector<128x8xbf16>
    tpu.vector_store %arg8[%c0_46, %c32], %22 {strides = array<i32>} : memref<128x72xbf16, #tpu.memory_space<vmem>>, vector<128x8xbf16>,
    %c0_47 = arith.constant 0 : index
    %c1_48 = arith.constant 1 : index
    %c2_49 = arith.constant 2 : index
    %c0_50 = arith.constant 0 : index
    %24 = vector.load %arg7[%c0_47, %c1_48, %c2_49, %c0_50] : memref<2x10x10x8xbf16, #tpu.memory_space<vmem>>, vector<2x8x8x8xbf16>
    %25 = vector.shape_cast %24 : vector<2x8x8x8xbf16> to vector<128x8xbf16>
    %c0_51 = arith.constant 0 : index
    %c40 = arith.constant 40 : index
    %26 = vector.load %arg8[%c0_51, %c40] : memref<128x72xbf16, #tpu.memory_space<vmem>>, vector<128x8xbf16>
    tpu.vector_store %arg8[%c0_51, %c40], %25 {strides = array<i32>} : memref<128x72xbf16, #tpu.memory_space<vmem>>, vector<128x8xbf16>,
    %c0_52 = arith.constant 0 : index
    %c2_53 = arith.constant 2 : index
    %c0_54 = arith.constant 0 : index
    %c0_55 = arith.constant 0 : index
    %27 = vector.load %arg7[%c0_52, %c2_53, %c0_54, %c0_55] : memref<2x10x10x8xbf16, #tpu.memory_space<vmem>>, vector<2x8x8x8xbf16>
    %28 = vector.shape_cast %27 : vector<2x8x8x8xbf16> to vector<128x8xbf16>
    %c0_56 = arith.constant 0 : index
    %c48 = arith.constant 48 : index
    %29 = vector.load %arg8[%c0_56, %c48] : memref<128x72xbf16, #tpu.memory_space<vmem>>, vector<128x8xbf16>
    tpu.vector_store %arg8[%c0_56, %c48], %28 {strides = array<i32>} : memref<128x72xbf16, #tpu.memory_space<vmem>>, vector<128x8xbf16>,
    %c0_57 = arith.constant 0 : index
    %c2_58 = arith.constant 2 : index
    %c1_59 = arith.constant 1 : index
    %c0_60 = arith.constant 0 : index
    %30 = vector.load %arg7[%c0_57, %c2_58, %c1_59, %c0_60] : memref<2x10x10x8xbf16, #tpu.memory_space<vmem>>, vector<2x8x8x8xbf16>
    %31 = vector.shape_cast %30 : vector<2x8x8x8xbf16> to vector<128x8xbf16>
    %c0_61 = arith.constant 0 : index
    %c56 = arith.constant 56 : index
    %32 = vector.load %arg8[%c0_61, %c56] : memref<128x72xbf16, #tpu.memory_space<vmem>>, vector<128x8xbf16>
    tpu.vector_store %arg8[%c0_61, %c56], %31 {strides = array<i32>} : memref<128x72xbf16, #tpu.memory_space<vmem>>, vector<128x8xbf16>,
    %c0_62 = arith.constant 0 : index
    %c2_63 = arith.constant 2 : index
    %c2_64 = arith.constant 2 : index
    %c0_65 = arith.constant 0 : index
    %33 = vector.load %arg7[%c0_62, %c2_63, %c2_64, %c0_65] : memref<2x10x10x8xbf16, #tpu.memory_space<vmem>>, vector<2x8x8x8xbf16>
    %34 = vector.shape_cast %33 : vector<2x8x8x8xbf16> to vector<128x8xbf16>
    %c0_66 = arith.constant 0 : index
    %c64 = arith.constant 64 : index
    %35 = vector.load %arg8[%c0_66, %c64] : memref<128x72xbf16, #tpu.memory_space<vmem>>, vector<128x8xbf16>
    tpu.vector_store %arg8[%c0_66, %c64], %34 {strides = array<i32>} : memref<128x72xbf16, #tpu.memory_space<vmem>>, vector<128x8xbf16>,
    %c0_67 = arith.constant 0 : index
    %c0_68 = arith.constant 0 : index
    %36 = vector.load %arg8[%c0_67, %c0_68] : memref<128x72xbf16, #tpu.memory_space<vmem>>, vector<128x72xbf16>
    %c0_69 = arith.constant 0 : index
    %c0_70 = arith.constant 0 : index
    %37 = vector.load %arg2[%c0_69, %c0_70] : memref<72x8xbf16, #tpu.memory_space<vmem>>, vector<72x8xbf16>
    %cst_71 = arith.constant dense<0.000000e+00> : vector<128x8xf32>
    %38 = tpu.matmul %36, %37, %cst_71 {dimension_numbers = #tpu.dot_dimension_numbers<[1], [0], [0], [1], [0, 0, 1, 1], [], []>} : vector<128x72xbf16>, vector<72x8xbf16>, vector<128x8xf32> -> vector<128x8xf32>
    %c0_72 = arith.constant 0 : index
    %c0_73 = arith.constant 0 : index
    %39 = vector.load %arg3[%c0_72, %c0_73] : memref<1x8xf32, #tpu.memory_space<vmem>>, vector<1x8xf32>
    %40 = vector.broadcast %39 : vector<1x8xf32> to vector<128x8xf32>
    %41 = arith.addf %38, %40 : vector<128x8xf32>
    %cst_74 = arith.constant 0.000000e+00 : f32
    %42 = vector.broadcast %cst_74 : f32 to vector<128x8xf32>
    %43 = arith.subf %42, %41 : vector<128x8xf32>
    %44 = math.exp %43 : vector<128x8xf32>
    %cst_75 = arith.constant 1.000000e+00 : f32
    %45 = vector.broadcast %cst_75 : f32 to vector<128x8xf32>
    %46 = arith.addf %45, %44 : vector<128x8xf32>
    %47 = tpu.reciprocal %46 {approx = true} : vector<128x8xf32> -> vector<128x8xf32>
    %cst_76 = arith.constant 0.000000e+00 : bf16
    %48 = vector.broadcast %cst_76 : bf16 to vector<2x1x10x8xbf16>
    %c0_77 = arith.constant 0 : index
    %c0_78 = arith.constant 0 : index
    %c0_79 = arith.constant 0 : index
    %c0_80 = arith.constant 0 : index
    %49 = vector.load %arg9[%c0_77, %c0_78, %c0_79, %c0_80] : memref<2x10x10x8xbf16, #tpu.memory_space<vmem>>, vector<2x1x10x8xbf16>
    tpu.vector_store %arg9[%c0_77, %c0_78, %c0_79, %c0_80], %48 {strides = array<i32>} : memref<2x10x10x8xbf16, #tpu.memory_space<vmem>>, vector<2x1x10x8xbf16>,
    %c0_81 = arith.constant 0 : index
    %c9_82 = arith.constant 9 : index
    %c0_83 = arith.constant 0 : index
    %c0_84 = arith.constant 0 : index
    %50 = vector.load %arg9[%c0_81, %c9_82, %c0_83, %c0_84] : memref<2x10x10x8xbf16, #tpu.memory_space<vmem>>, vector<2x1x10x8xbf16>
    tpu.vector_store %arg9[%c0_81, %c9_82, %c0_83, %c0_84], %48 {strides = array<i32>} : memref<2x10x10x8xbf16, #tpu.memory_space<vmem>>, vector<2x1x10x8xbf16>,
    %cst_85 = arith.constant 0.000000e+00 : bf16
    %51 = vector.broadcast %cst_85 : bf16 to vector<2x10x1x8xbf16>
    %c0_86 = arith.constant 0 : index
    %c0_87 = arith.constant 0 : index
    %c0_88 = arith.constant 0 : index
    %c0_89 = arith.constant 0 : index
    %52 = vector.load %arg9[%c0_86, %c0_87, %c0_88, %c0_89] : memref<2x10x10x8xbf16, #tpu.memory_space<vmem>>, vector<2x10x1x8xbf16>
    tpu.vector_store %arg9[%c0_86, %c0_87, %c0_88, %c0_89], %51 {strides = array<i32>} : memref<2x10x10x8xbf16, #tpu.memory_space<vmem>>, vector<2x10x1x8xbf16>,
    %c0_90 = arith.constant 0 : index
    %c0_91 = arith.constant 0 : index
    %c9_92 = arith.constant 9 : index
    %c0_93 = arith.constant 0 : index
    %53 = vector.load %arg9[%c0_90, %c0_91, %c9_92, %c0_93] : memref<2x10x10x8xbf16, #tpu.memory_space<vmem>>, vector<2x10x1x8xbf16>
    tpu.vector_store %arg9[%c0_90, %c0_91, %c9_92, %c0_93], %51 {strides = array<i32>} : memref<2x10x10x8xbf16, #tpu.memory_space<vmem>>, vector<2x10x1x8xbf16>,
    %54 = vector.shape_cast %47 : vector<128x8xf32> to vector<2x8x8x8xf32>
    %55 = arith.truncf %54 : vector<2x8x8x8xf32> to vector<2x8x8x8xbf16>
    %c0_94 = arith.constant 0 : index
    %c1_95 = arith.constant 1 : index
    %c1_96 = arith.constant 1 : index
    %c0_97 = arith.constant 0 : index
    %56 = vector.load %arg9[%c0_94, %c1_95, %c1_96, %c0_97] : memref<2x10x10x8xbf16, #tpu.memory_space<vmem>>, vector<2x8x8x8xbf16>
    tpu.vector_store %arg9[%c0_94, %c1_95, %c1_96, %c0_97], %55 {strides = array<i32>} : memref<2x10x10x8xbf16, #tpu.memory_space<vmem>>, vector<2x8x8x8xbf16>,
    %c0_98 = arith.constant 0 : index
    %c0_99 = arith.constant 0 : index
    %c0_100 = arith.constant 0 : index
    %c0_101 = arith.constant 0 : index
    %57 = vector.load %arg9[%c0_98, %c0_99, %c0_100, %c0_101] : memref<2x10x10x8xbf16, #tpu.memory_space<vmem>>, vector<2x8x8x8xbf16>
    %58 = vector.shape_cast %57 : vector<2x8x8x8xbf16> to vector<128x8xbf16>
    %c0_102 = arith.constant 0 : index
    %c0_103 = arith.constant 0 : index
    %59 = vector.load %arg10[%c0_102, %c0_103] : memref<128x72xbf16, #tpu.memory_space<vmem>>, vector<128x8xbf16>
    tpu.vector_store %arg10[%c0_102, %c0_103], %58 {strides = array<i32>} : memref<128x72xbf16, #tpu.memory_space<vmem>>, vector<128x8xbf16>,
    %c0_104 = arith.constant 0 : index
    %c0_105 = arith.constant 0 : index
    %c1_106 = arith.constant 1 : index
    %c0_107 = arith.constant 0 : index
    %60 = vector.load %arg9[%c0_104, %c0_105, %c1_106, %c0_107] : memref<2x10x10x8xbf16, #tpu.memory_space<vmem>>, vector<2x8x8x8xbf16>
    %61 = vector.shape_cast %60 : vector<2x8x8x8xbf16> to vector<128x8xbf16>
    %c0_108 = arith.constant 0 : index
    %c8_109 = arith.constant 8 : index
    %62 = vector.load %arg10[%c0_108, %c8_109] : memref<128x72xbf16, #tpu.memory_space<vmem>>, vector<128x8xbf16>
    tpu.vector_store %arg10[%c0_108, %c8_109], %61 {strides = array<i32>} : memref<128x72xbf16, #tpu.memory_space<vmem>>, vector<128x8xbf16>,
    %c0_110 = arith.constant 0 : index
    %c0_111 = arith.constant 0 : index
    %c2_112 = arith.constant 2 : index
    %c0_113 = arith.constant 0 : index
    %63 = vector.load %arg9[%c0_110, %c0_111, %c2_112, %c0_113] : memref<2x10x10x8xbf16, #tpu.memory_space<vmem>>, vector<2x8x8x8xbf16>
    %64 = vector.shape_cast %63 : vector<2x8x8x8xbf16> to vector<128x8xbf16>
    %c0_114 = arith.constant 0 : index
    %c16_115 = arith.constant 16 : index
    %65 = vector.load %arg10[%c0_114, %c16_115] : memref<128x72xbf16, #tpu.memory_space<vmem>>, vector<128x8xbf16>
    tpu.vector_store %arg10[%c0_114, %c16_115], %64 {strides = array<i32>} : memref<128x72xbf16, #tpu.memory_space<vmem>>, vector<128x8xbf16>,
    %c0_116 = arith.constant 0 : index
    %c1_117 = arith.constant 1 : index
    %c0_118 = arith.constant 0 : index
    %c0_119 = arith.constant 0 : index
    %66 = vector.load %arg9[%c0_116, %c1_117, %c0_118, %c0_119] : memref<2x10x10x8xbf16, #tpu.memory_space<vmem>>, vector<2x8x8x8xbf16>
    %67 = vector.shape_cast %66 : vector<2x8x8x8xbf16> to vector<128x8xbf16>
    %c0_120 = arith.constant 0 : index
    %c24_121 = arith.constant 24 : index
    %68 = vector.load %arg10[%c0_120, %c24_121] : memref<128x72xbf16, #tpu.memory_space<vmem>>, vector<128x8xbf16>
    tpu.vector_store %arg10[%c0_120, %c24_121], %67 {strides = array<i32>} : memref<128x72xbf16, #tpu.memory_space<vmem>>, vector<128x8xbf16>,
    %c0_122 = arith.constant 0 : index
    %c1_123 = arith.constant 1 : index
    %c1_124 = arith.constant 1 : index
    %c0_125 = arith.constant 0 : index
    %69 = vector.load %arg9[%c0_122, %c1_123, %c1_124, %c0_125] : memref<2x10x10x8xbf16, #tpu.memory_space<vmem>>, vector<2x8x8x8xbf16>
    %70 = vector.shape_cast %69 : vector<2x8x8x8xbf16> to vector<128x8xbf16>
    %c0_126 = arith.constant 0 : index
    %c32_127 = arith.constant 32 : index
    %71 = vector.load %arg10[%c0_126, %c32_127] : memref<128x72xbf16, #tpu.memory_space<vmem>>, vector<128x8xbf16>
    tpu.vector_store %arg10[%c0_126, %c32_127], %70 {strides = array<i32>} : memref<128x72xbf16, #tpu.memory_space<vmem>>, vector<128x8xbf16>,
    %c0_128 = arith.constant 0 : index
    %c1_129 = arith.constant 1 : index
    %c2_130 = arith.constant 2 : index
    %c0_131 = arith.constant 0 : index
    %72 = vector.load %arg9[%c0_128, %c1_129, %c2_130, %c0_131] : memref<2x10x10x8xbf16, #tpu.memory_space<vmem>>, vector<2x8x8x8xbf16>
    %73 = vector.shape_cast %72 : vector<2x8x8x8xbf16> to vector<128x8xbf16>
    %c0_132 = arith.constant 0 : index
    %c40_133 = arith.constant 40 : index
    %74 = vector.load %arg10[%c0_132, %c40_133] : memref<128x72xbf16, #tpu.memory_space<vmem>>, vector<128x8xbf16>
    tpu.vector_store %arg10[%c0_132, %c40_133], %73 {strides = array<i32>} : memref<128x72xbf16, #tpu.memory_space<vmem>>, vector<128x8xbf16>,
    %c0_134 = arith.constant 0 : index
    %c2_135 = arith.constant 2 : index
    %c0_136 = arith.constant 0 : index
    %c0_137 = arith.constant 0 : index
    %75 = vector.load %arg9[%c0_134, %c2_135, %c0_136, %c0_137] : memref<2x10x10x8xbf16, #tpu.memory_space<vmem>>, vector<2x8x8x8xbf16>
    %76 = vector.shape_cast %75 : vector<2x8x8x8xbf16> to vector<128x8xbf16>
    %c0_138 = arith.constant 0 : index
    %c48_139 = arith.constant 48 : index
    %77 = vector.load %arg10[%c0_138, %c48_139] : memref<128x72xbf16, #tpu.memory_space<vmem>>, vector<128x8xbf16>
    tpu.vector_store %arg10[%c0_138, %c48_139], %76 {strides = array<i32>} : memref<128x72xbf16, #tpu.memory_space<vmem>>, vector<128x8xbf16>,
    %c0_140 = arith.constant 0 : index
    %c2_141 = arith.constant 2 : index
    %c1_142 = arith.constant 1 : index
    %c0_143 = arith.constant 0 : index
    %78 = vector.load %arg9[%c0_140, %c2_141, %c1_142, %c0_143] : memref<2x10x10x8xbf16, #tpu.memory_space<vmem>>, vector<2x8x8x8xbf16>
    %79 = vector.shape_cast %78 : vector<2x8x8x8xbf16> to vector<128x8xbf16>
    %c0_144 = arith.constant 0 : index
    %c56_145 = arith.constant 56 : index
    %80 = vector.load %arg10[%c0_144, %c56_145] : memref<128x72xbf16, #tpu.memory_space<vmem>>, vector<128x8xbf16>
    tpu.vector_store %arg10[%c0_144, %c56_145], %79 {strides = array<i32>} : memref<128x72xbf16, #tpu.memory_space<vmem>>, vector<128x8xbf16>,
    %c0_146 = arith.constant 0 : index
    %c2_147 = arith.constant 2 : index
    %c2_148 = arith.constant 2 : index
    %c0_149 = arith.constant 0 : index
    %81 = vector.load %arg9[%c0_146, %c2_147, %c2_148, %c0_149] : memref<2x10x10x8xbf16, #tpu.memory_space<vmem>>, vector<2x8x8x8xbf16>
    %82 = vector.shape_cast %81 : vector<2x8x8x8xbf16> to vector<128x8xbf16>
    %c0_150 = arith.constant 0 : index
    %c64_151 = arith.constant 64 : index
    %83 = vector.load %arg10[%c0_150, %c64_151] : memref<128x72xbf16, #tpu.memory_space<vmem>>, vector<128x8xbf16>
    tpu.vector_store %arg10[%c0_150, %c64_151], %82 {strides = array<i32>} : memref<128x72xbf16, #tpu.memory_space<vmem>>, vector<128x8xbf16>,
    %c0_152 = arith.constant 0 : index
    %c0_153 = arith.constant 0 : index
    %84 = vector.load %arg10[%c0_152, %c0_153] : memref<128x72xbf16, #tpu.memory_space<vmem>>, vector<128x72xbf16>
    %c0_154 = arith.constant 0 : index
    %c0_155 = arith.constant 0 : index
    %85 = vector.load %arg4[%c0_154, %c0_155] : memref<72x8xbf16, #tpu.memory_space<vmem>>, vector<72x8xbf16>
    %cst_156 = arith.constant dense<0.000000e+00> : vector<128x8xf32>
    %86 = tpu.matmul %84, %85, %cst_156 {dimension_numbers = #tpu.dot_dimension_numbers<[1], [0], [0], [1], [0, 0, 1, 1], [], []>} : vector<128x72xbf16>, vector<72x8xbf16>, vector<128x8xf32> -> vector<128x8xf32>
    %c0_157 = arith.constant 0 : index
    %c0_158 = arith.constant 0 : index
    %87 = vector.load %arg5[%c0_157, %c0_158] : memref<1x8xf32, #tpu.memory_space<vmem>>, vector<1x8xf32>
    %88 = vector.broadcast %87 : vector<1x8xf32> to vector<128x8xf32>
    %89 = arith.addf %86, %88 : vector<128x8xf32>
    %c0_159 = arith.constant 0 : index
    %c0_160 = arith.constant 0 : index
    %c0_161 = arith.constant 0 : index
    %c0_162 = arith.constant 0 : index
    %90 = vector.load %arg1[%c0_159, %c0_160, %c0_161, %c0_162] : memref<2x8x8x8xf32, #tpu.memory_space<vmem>>, vector<2x8x8x8xf32>
    %91 = vector.shape_cast %90 : vector<2x8x8x8xf32> to vector<128x8xf32>
    %92 = arith.addf %89, %91 : vector<128x8xf32>
    %cst_163 = arith.constant 0.000000e+00 : f32
    %93 = vector.broadcast %cst_163 : f32 to vector<128x8xf32>
    %94 = arith.subf %93, %92 : vector<128x8xf32>
    %95 = math.exp %94 : vector<128x8xf32>
    %cst_164 = arith.constant 1.000000e+00 : f32
    %96 = vector.broadcast %cst_164 : f32 to vector<128x8xf32>
    %97 = arith.addf %96, %95 : vector<128x8xf32>
    %98 = tpu.reciprocal %97 {approx = true} : vector<128x8xf32> -> vector<128x8xf32>
    %99 = vector.shape_cast %98 : vector<128x8xf32> to vector<2x8x8x8xf32>
    %c0_165 = arith.constant 0 : index
    %c0_166 = arith.constant 0 : index
    %c0_167 = arith.constant 0 : index
    %c0_168 = arith.constant 0 : index
    %100 = vector.load %arg6[%c0_165, %c0_166, %c0_167, %c0_168] : memref<2x8x8x8xf32, #tpu.memory_space<vmem>>, vector<2x8x8x8xf32>
    tpu.vector_store %arg6[%c0_165, %c0_166, %c0_167, %c0_168], %99 {strides = array<i32>} : memref<2x8x8x8xf32, #tpu.memory_space<vmem>>, vector<2x8x8x8xf32>,
    return
  }
  func.func @transform_0(%arg0: i32) -> (i32, i32, i32, i32) {
    %c0_i32 = arith.constant 0 : i32
    %c0_i32_0 = arith.constant 0 : i32
    %c0_i32_1 = arith.constant 0 : i32
    %c0_i32_2 = arith.constant 0 : i32
    return %arg0, %c0_i32, %c0_i32_0, %c0_i32_1 : i32, i32, i32, i32
  }
  func.func @transform_1(%arg0: i32) -> (i32, i32) {
    %c0_i32 = arith.constant 0 : i32
    %c0_i32_0 = arith.constant 0 : i32
    %c0_i32_1 = arith.constant 0 : i32
    return %c0_i32, %c0_i32_0 : i32, i32
  }
  func.func @transform_2(%arg0: i32) -> (i32, i32) {
    %c0_i32 = arith.constant 0 : i32
    %c0_i32_0 = arith.constant 0 : i32
    %c0_i32_1 = arith.constant 0 : i32
    return %c0_i32, %c0_i32_0 : i32, i32
  }
  func.func @transform_3(%arg0: i32) -> (i32, i32) {
    %c0_i32 = arith.constant 0 : i32
    %c0_i32_0 = arith.constant 0 : i32
    %c0_i32_1 = arith.constant 0 : i32
    return %c0_i32, %c0_i32_0 : i32, i32
  }
  func.func @transform_4(%arg0: i32) -> (i32, i32) {
    %c0_i32 = arith.constant 0 : i32
    %c0_i32_0 = arith.constant 0 : i32
    %c0_i32_1 = arith.constant 0 : i32
    return %c0_i32, %c0_i32_0 : i32, i32
  }
  func.func @transform_5(%arg0: i32) -> (i32, i32, i32, i32) {
    %c0_i32 = arith.constant 0 : i32
    %c0_i32_0 = arith.constant 0 : i32
    %c0_i32_1 = arith.constant 0 : i32
    %c0_i32_2 = arith.constant 0 : i32
    return %arg0, %c0_i32, %c0_i32_0, %c0_i32_1 : i32, i32, i32, i32
  }
}

</mosaic_0001>

<bundles_post_ra>
// kernel: fwd.2
= control target key start
LH: loop header
LB: loop body
LE: loop exit
PB: predicated region body
PF: predicated region fallthrough
CT: control target
= control target key end

     0   :  { %s4918_s28 = smov 4   ;;  %vm190_vm0 = vsmask.f32 3328  ;;  %vm191_vm1 = vsmask.f32 7440  ;;  %s4919_s20 = smov 8   ;;  %s6815_s0 = inlined_call_operand.vmem [shape: bf16[2,4,9,9,4], index: 0, kind: input, shape index: {}]   ;;  %s6816_s1 = inlined_call_operand.vmem [shape: bf16[36,8], index: 1, kind: input, shape index: {}]   ;;  %s6817_s2 = inlined_call_operand.vmem [shape: f32[1,8], index: 2, kind: input, shape index: {}]   ;;  %s6818_s3 = inlined_call_operand.vmem [shape: bf16[72,8], index: 3, kind: input, shape index: {}]   ;;  %s6819_s5 = inlined_call_operand.vmem [shape: bf16[4,8], index: 5, kind: input, shape index: {}]   ;;  %s6820_s4 = inlined_call_operand.vmem [shape: f32[1,8], index: 4, kind: input, shape index: {}]   ;;  %s6821_s6 = inlined_call_operand.vmem [shape: f32[1,8], index: 6, kind: input, shape index: {}]   ;;  %s6822_s7 = inlined_call_operand.vmem [shape: f32[2,8,8,8], index: 7, kind: output, shape index: {}]  }
   0x1   :  { %v4384_v0 = vld [vmem:[%s6815_s0 + $0x58] sm:$0xf]  ;;  %v4382_v1 = vld [vmem:[%s6815_s0 + $0x48] sm:$0xf]  ;;  %v4385_v3 = vld [vmem:[%s6815_s0 + $0x60] sm:$0xf] }
   0x2   :  { %97 = vrot.lane.b32.xlu1 %v4384_v0, %s4918_s28  ;;  %93 = vrot.lane.b32.xlu0 %v4382_v1, %s4918_s28  ;;  %v4386_v2 = vld [vmem:[%s6815_s0 + $0x68] sm:$0xf]  ;;  %v4383_v4 = vld [vmem:[%s6815_s0 + $0x50] sm:$0xf]  ;;  %vm5061_vm2 = vmor %vm190_vm0, %vm191_vm1  ;;  %vm43_vm3 = vcmask 27648   ;;  %s4920_s16 = smov 12  }
   0x3   :  { %101 = vrot.lane.b32.xlu2 %v4386_v2, %s4918_s28  ;;  %v4387_v5 = vld [vmem:[%s6815_s0 + $0x70] sm:$0xf]  ;;  %v4389_v6 = vld [vmem:[%s6815_s0 + $0x80] sm:$0xf]  ;;  %v4388_v7 = vld [vmem:[%s6815_s0 + $0x78] sm:$0xf] }
   0x4   :  { %v4390_v8 = vld [vmem:[%s6815_s0 + $0x168] sm:$0xf]  ;;  %v158_v9 = vld [vmem:[%s6815_s0] sm:$0xf]  ;;  %v4392_v10 = vld [vmem:[%s6815_s0 + $0x178] sm:$0xf] }
   0x5   :  { %v4391_v11 = vld [vmem:[%s6815_s0 + $0x170] sm:$0xf]  ;;  %v194_v12 = vshrl.u32 %v158_v9, 16  ;;  %v197_v13 = vshll.u32 %v158_v9, 16  ;;  %v164_v14 = vld [vmem:[%s6815_s0 + $0x18] sm:$0xf] }
   0x6   :  { %v162_v15 = vld [vmem:[%s6815_s0 + $0x10] sm:$0xf]  ;;  %v160_v16 = vld [vmem:[%s6815_s0 + $0x8] sm:$0xf]  ;;  %v4393_v17 = vld [vmem:[%s6815_s0 + $0x180] sm:$0xf] }
   0x7   :  { %v208_v18 = vshrl.u32 %v160_v16, 16  ;;  %v196_v19 = vrot.slane %v194_v12, 4  ;;  %v199_v20 = vrot.slane %v197_v13, 5  ;;  %v236_v21 = vshrl.u32 %v164_v14, 16  ;;  %v159_v22 = vld [vmem:[%s6815_s0 + $0x4] sm:$0x1] }
   0x8   :  { %v239_v23 = vshll.u32 %v164_v14, 16  ;;  %v222_v24 = vshrl.u32 %v162_v15, 16  ;;  %v225_v25 = vshll.u32 %v162_v15, 16  ;;  %v211_v26 = vshll.u32 %v160_v16, 16  ;;  %v4395_v27 = vld [vmem:[%s6815_s0 + $0x190] sm:$0xf] }
   0x9   :  { %v210_v28 = vrot.slane %v208_v18, 4  ;;  %v4394_v30 = vld [vmem:[%s6815_s0 + $0x188] sm:$0xf]  ;;  %v200_v31 = vor.u32 %v199_v20, %v196_v19  ;;  %v203_v32 = vshll.u32 %v159_v22, 16  ;;  %v161_v33 = vld [vmem:[%s6815_s0 + $0xc] sm:$0x1] }
   0xa   :  { %99 = vrot.lane.b32.xlu1 %v4385_v3, %s4918_s28  ;;  %95 = vrot.lane.b32.xlu0 %v4383_v4, %s4918_s28  ;;  %v213_v29 = vrot.slane %v211_v26, 5  ;;  %v165_v34 = vld [vmem:[%s6815_s0 + $0x1c] sm:$0x1]  ;;  %v238_v35 = vrot.slane %v236_v21, 4  ;;  %v241_v36 = vrot.slane %v239_v23, 5  ;;  %v224_v37 = vrot.slane %v222_v24, 4 }
   0xb   :  { %103 = vrot.lane.b32.xlu2 %v4387_v5, %s4918_s28  ;;  %v227_v38 = vrot.slane %v225_v25, 5  ;;  %v163_v39 = vld [vmem:[%s6815_s0 + $0x14] sm:$0x1]  ;;  %v166_v40 = vld [vmem:[%s6815_s0 + $0x20] sm:$0xf]  ;;  %v217_v44 = vshll.u32 %v161_v33, 16 }
   0xc   :  { %v170_v41 = vld [vmem:[%s6815_s0 + $0x30] sm:$0xf]  ;;  %v4396_v42 = vld [vmem:[%s6815_s0 + $0x198] sm:$0xf]  ;;  %v214_v43 = vor.u32 %v213_v29, %v210_v28  ;;  %v250_v45 = vshrl.u32 %v166_v40, 16  ;;  %v201_v46 = vrot.slane %v200_v31, 4  ;;  %v242_v50 = vor.u32 %v241_v36, %v238_v35 }
   0xd   :  { %v205_v47 = vrot.slane %v203_v32, 5  ;;  %v245_v48 = vshll.u32 %v165_v34, 16  ;;  %v228_v51 = vor.u32 %v227_v38, %v224_v37  ;;  %v231_v52 = vshll.u32 %v163_v39, 16  ;;  %v168_v53 = vld [vmem:[%s6815_s0 + $0x28] sm:$0xf]  ;;  %s4921_s15 = smov 16  }
   0xe   :  { %v253_v54 = vshll.u32 %v166_v40, 16  ;;  %v278_v55 = vshrl.u32 %v170_v41, 16  ;;  %v281_v56 = vshll.u32 %v170_v41, 16  ;;  %v215_v57 = vrot.slane %v214_v43, 4  ;;  %v4397_v62 = vld [vmem:[%s6815_s0 + $0x1a0] sm:$0xf] }
   0xf   :  { %v219_v58 = vrot.slane %v217_v44, 5  ;;  %v252_v59 = vrot.slane %v250_v45, 4  ;;  %v206_v61 = vsel %vm5061_vm2, %v201_v46, %v205_v47  ;;  %v264_v63 = vshrl.u32 %v168_v53, 16  ;;  %v167_v1 = vld [vmem:[%s6815_s0 + $0x24] sm:$0x1]  ;;  %s4922_s18 = smov 20  }
  0x10   :  { %v255_v60 = vrot.slane %v253_v54, 5  ;;  %v267_v0 = vshll.u32 %v168_v53, 16  ;;  %v243_v2 = vrot.slane %v242_v50, 4  ;;  %v247_v3 = vrot.slane %v245_v48, 5  ;;  %v174_v9 = vld [vmem:[%s6815_s0 + $0x120] sm:$0xf] }
  0x11   :  { %v229_v4 = vrot.slane %v228_v51, 4  ;;  %v233_v5 = vrot.slane %v231_v52, 5  ;;  %v220_v12 = vsel %vm5061_vm2, %v215_v57, %v219_v58  ;;  %v259_v14 = vshll.u32 %v167_v1, 16  ;;  %v169_v20 = vld [vmem:[%s6815_s0 + $0x2c] sm:$0x1]  ;;  %s4923_s30 = smov 24  }
  0x12   :  { %107 = vrot.lane.b32.xlu1 %v4389_v6, %s4918_s28  ;;  %105 = vrot.lane.b32.xlu0 %v4388_v7, %s4918_s28  ;;  %v176_v6 = vld [vmem:[%s6815_s0 + $0x128] sm:$0xf]  ;;  %v280_v7 = vrot.slane %v278_v55, 4  ;;  %v256_v13 = vor.u32 %v255_v60, %v252_v59  ;;  %v266_v16 = vrot.slane %v264_v63, 4  ;;  %v306_v21 = vshrl.u32 %v174_v9, 16  ;;  %s4924_s12 = smov 28  }
  0x13   :  { %109 = vrot.lane.b32.xlu2 %v4390_v8, %s4918_s28  ;;  %v283_v8 = vrot.slane %v281_v56, 5  ;;  %v320_v18 = vshrl.u32 %v176_v6, 16  ;;  %v323_v19 = vshll.u32 %v176_v6, 16  ;;  %v309_v22 = vshll.u32 %v174_v9, 16  ;;  %v173_v31 = vld [vmem:[%s6815_s0 + $0x3c] sm:$0x1] }
  0x14   :  { %v248_v24 = vsel %vm5061_vm2, %v243_v2, %v247_v3  ;;  %v234_v25 = vsel %vm5061_vm2, %v229_v4, %v233_v5  ;;  %v257_v29 = vrot.slane %v256_v13, 4  ;;  %v273_v34 = vshll.u32 %v169_v20, 16  ;;  %v177_v37 = vld [vmem:[%s6815_s0 + $0x12c] sm:$0x1]  ;;  %v175_v38 = vld [vmem:[%s6815_s0 + $0x124] sm:$0x1] }
  0x15   :  { %v284_v28 = vor.u32 %v283_v8, %v280_v7  ;;  %v322_v35 = vrot.slane %v320_v18, 4  ;;  %v325_v36 = vrot.slane %v323_v19, 5  ;;  %v308_v39 = vrot.slane %v306_v21, 4  ;;  %v178_v45 = vld [vmem:[%s6815_s0 + $0x130] sm:$0xf]  ;;  %s4925_s22 = smov 32  }
  0x16   :  { %v311_v40 = vrot.slane %v309_v22, 5  ;;  %v301_v44 = vshll.u32 %v173_v31, 16  ;;  %v180_v47 = vld [vmem:[%s6815_s0 + $0x138] sm:$0xf]  ;;  %v334_v50 = vshrl.u32 %v178_v45, 16  ;;  %v337_v51 = vshll.u32 %v178_v45, 16 }
  0x17   :  { %v285_v46 = vrot.slane %v284_v28, 4  ;;  %v275_v53 = vrot.slane %v273_v34, 5  ;;  %v326_v54 = vor.u32 %v325_v36, %v322_v35  ;;  %v329_v55 = vshll.u32 %v177_v37, 16  ;;  %v179_v5 = vld [vmem:[%s6815_s0 + $0x134] sm:$0x1]  ;;  %s4928_s9 = smov 48  }
  0x18   :  { %v312_v56 = vor.u32 %v311_v40, %v308_v39  ;;  %v315_v57 = vshll.u32 %v175_v38, 16  ;;  %v348_v60 = vshrl.u32 %v180_v47, 16  ;;  %v303_v63 = vrot.slane %v301_v44, 5  ;;  %v183_v9 = vld [vmem:[%s6815_s0 + $0x144] sm:$0x1]  ;;  %s4929_s10 = smov 56  }
  0x19   :  { %v339_v1 = vrot.slane %v337_v51, 5  ;;  %v331_v4 = vrot.slane %v329_v55, 5  ;;  %v327_v6 = vrot.slane %v326_v54, 4  ;;  %v343_v18 = vshll.u32 %v179_v5, 16  ;;  %v185_v37 = vld [vmem:[%s6815_s0 + $0x14c] sm:$0x1] }
  0x1a   :  { %113 = vrot.lane.b32.xlu1 %v4392_v10, %s4918_s28  ;;  %111 = vrot.lane.b32.xlu0 %v4391_v11, %s4918_s28  ;;  %v172_v10 = vld [vmem:[%s6815_s0 + $0x38] sm:$0xf]  ;;  %v171_v11 = vld [vmem:[%s6815_s0 + $0x34] sm:$0x1]  ;;  %v313_v7 = vrot.slane %v312_v56, 4  ;;  %v317_v8 = vrot.slane %v315_v57, 5 }
  0x1b   :  { %115 = vrot.lane.b32.xlu2 %v4393_v17, %s4918_s28  ;;  %v292_v15 = vshrl.u32 %v172_v10, 16  ;;  %v269_v17 = vrot.slane %v267_v0, 5  ;;  %v295_v23 = vshll.u32 %v172_v10, 16  ;;  %v287_v26 = vshll.u32 %v171_v11, 16  ;;  %v187_v51 = vld [vmem:[%s6815_s0 + $0x154] sm:$0x1] }
  0x1c   :  { %v336_v0 = vrot.slane %v334_v50, 4  ;;  %v332_v21 = vsel %vm5061_vm2, %v327_v6, %v331_v4  ;;  %v318_v22 = vsel %vm5061_vm2, %v313_v7, %v317_v8  ;;  %v385_v44 = vshll.u32 %v185_v37, 16  ;;  %v189_v50 = vld [vmem:[%s6815_s0 + $0x15c] sm:$0x1]  ;;  %v29_v4 = vld [vmem:[%s6815_s0 + $0x10] sm:$0xf] }
  0x1d   :  { %v297_v32 = vrot.slane %v295_v23, 5  ;;  %v270_v33 = vor.u32 %v269_v17, %v266_v16  ;;  %v289_v41 = vrot.slane %v287_v26, 5  ;;  %v181_v16 = vld [vmem:[%s6815_s0 + $0x13c] sm:$0x1]  ;;  %v188_v23 = vld [vmem:[%s6815_s0 + $0x158] sm:$0xf] }
  0x1e   :  { %v340_v17 = vor.u32 %v339_v1, %v336_v0  ;;  %v371_v26 = vshll.u32 %v183_v9, 16  ;;  %v357_v28 = vshll.u32 %v181_v16, 16  ;;  %v407_v34 = vshll.u32 %v188_v23, 16  ;;  %v27_v5 = vld [vmem:[%s6815_s0] sm:$0xf]  ;;  %s4930_s11 = smov 64  }
  0x1f   :  { %v271_v52 = vrot.slane %v270_v33, 4  ;;  %v290_v2 = vsel %vm5061_vm2, %v285_v46, %v289_v41  ;;  %v404_v33 = vshrl.u32 %v188_v23, 16  ;;  %v387_v55 = vrot.slane %v385_v44, 5  ;;  %46 = vst.msk [vmem:[#allocation2 + $0x8] sm:$0xf] %vm43_vm3, %v29_v4 }
  0x20   :  { %v373_v39 = vrot.slane %v371_v26, 5  ;;  %v359_v40 = vrot.slane %v357_v28, 5  ;;  %v409_v46 = vrot.slane %v407_v34, 5  ;;  %v413_v57 = vshll.u32 %v189_v50, 16  ;;  %44 = vst.msk [vmem:[#allocation2] sm:$0xf] %vm43_vm3, %v27_v5 }
  0x21   :  { %v276_v3 = vsel %vm5061_vm2, %v271_v52, %v275_v53  ;;  %v406_v45 = vrot.slane %v404_v33, 4  ;;  %v31_v6 = vld [vmem:[%s6815_s0 + $0x20] sm:$0xf]  ;;  %v4399_v8 = vld [vmem:[%s6815_s0 + $0x98] sm:$0xf]  ;;  %vm141_vm4 = vcmask 60448  }
  0x22   :  { %119 = vrot.lane.b32.xlu1 %v4395_v27, %s4918_s28  ;;  %117 = vrot.lane.b32.xlu0 %v4394_v30, %s4918_s28  ;;  %v294_v27 = vrot.slane %v292_v15, 4  ;;  %v261_v30 = vrot.slane %v259_v14, 5  ;;  %v184_v15 = vld [vmem:[%s6815_s0 + $0x148] sm:$0xf]  ;;  %v4400_v7 = vld [vmem:[%s6815_s0 + $0xa0] sm:$0xf] }
  0x23   :  { %121 = vrot.lane.b32.xlu2 %v4396_v42, %s4918_s28  ;;  %v182_v42 = vld [vmem:[%s6815_s0 + $0x140] sm:$0xf]  ;;  %v376_v19 = vshrl.u32 %v184_v15, 16  ;;  %v379_v20 = vshll.u32 %v184_v15, 16  ;;  %v410_v56 = vor.u32 %v409_v46, %v406_v45  ;;  %48 = vst.msk [vmem:[#allocation2 + $0x10] sm:$0xf] %vm43_vm3, %v31_v6 }
  0x24   :  { %v298_v43 = vor.u32 %v297_v32, %v294_v27  ;;  %v262_v48 = vsel %vm5061_vm2, %v257_v29, %v261_v30  ;;  %v362_v58 = vshrl.u32 %v182_v42, 16  ;;  %v365_v59 = vshll.u32 %v182_v42, 16  ;;  %v4401_v9 = vld [vmem:[%s6815_s0 + $0xa8] sm:$0xf]  ;;  %v4404_v16 = vld [vmem:[%s6815_s0 + $0xc0] sm:$0xf] }
  0x25   :  { %v341_v29 = vrot.slane %v340_v17, 4  ;;  %v345_v30 = vrot.slane %v343_v18, 5  ;;  %v378_v31 = vrot.slane %v376_v19, 4  ;;  %v381_v32 = vrot.slane %v379_v20, 5  ;;  %v34_v17 = vld [vmem:[%s6815_s0 + $0x38] sm:$0xf] }
  0x26   :  { %v364_v10 = vrot.slane %v362_v58, 4  ;;  %v367_v11 = vrot.slane %v365_v59, 5  ;;  %v399_v59 = vshll.u32 %v187_v51, 16  ;;  %v33_v18 = vld [vmem:[%s6815_s0 + $0x30] sm:$0xf]  ;;  %vm465_vm5 = vcmask 93248  }
  0x27   :  { %v346_v42 = vsel %vm5061_vm2, %v341_v29, %v345_v30  ;;  %51 = vst.msk [vmem:[#allocation2 + $0x1c] sm:$0xf] %vm43_vm3, %v34_v17  ;;  %v35_v19 = vld [vmem:[%s6815_s0 + $0x120] sm:$0xf]  ;;  %v4406_v20 = vld [vmem:[%s6815_s0 + $0x1b0] sm:$0xf] }
  0x28   :  { %v401_v0 = vrot.slane %v399_v59, 5  ;;  %50 = vst.msk [vmem:[#allocation2 + $0x18] sm:$0xf] %vm43_vm3, %v33_v18  ;;  %v4407_v23 = vld [vmem:[%s6815_s0 + $0x1b8] sm:$0xf]  ;;  %vm563_vm6 = vcmask 126048  }
  0x29   :  { %52 = vst.msk [vmem:[#allocation2 + $0x20] sm:$0xf] %vm43_vm3, %v35_v19  ;;  %v38_v26 = vld [vmem:[%s6815_s0 + $0x138] sm:$0xf]  ;;  %v4408_v28 = vld [vmem:[%s6815_s0 + $0x1c0] sm:$0xf] }
  0x2a   :  { %417 = vrot.lane.b32.xlu1 %v206_v61, %s4919_s20  ;;  %123 = vrot.lane.b32.xlu0 %v4397_v62, %s4918_s28  ;;  %v351_v61 = vshll.u32 %v180_v47, 16  ;;  %v299_v62 = vrot.slane %v298_v43, 4  ;;  %v382_v43 = vor.u32 %v381_v32, %v378_v31  ;;  %55 = vst.msk [vmem:[#allocation2 + $0x2c] sm:$0xf] %vm43_vm3, %v38_v26  ;;  %v4410_v30 = vld [vmem:[%s6815_s0 + $0x1d0] sm:$0xf] }
  0x2b   :  { %419 = vrot.lane.b32.xlu2 %v220_v12, %s4919_s20  ;;  %v350_v12 = vrot.slane %v348_v60, 4  ;;  %v40_v33 = vld [vmem:[%s6815_s0 + $0x148] sm:$0xf]  ;;  %v4412_v34 = vld [vmem:[%s6815_s0 + $0x1e0] sm:$0xf]  ;;  %vm661_vm7 = vcmask 158848  }
  0x2c   :  { %v353_v13 = vrot.slane %v351_v61, 5  ;;  %v304_v14 = vsel %vm5061_vm2, %v299_v62, %v303_v63  ;;  %v383_v54 = vrot.slane %v382_v43, 4  ;;  %v411_v61 = vrot.slane %v410_v56, 4  ;;  %57 = vst.msk [vmem:[#allocation2 + $0x34] sm:$0xf] %vm43_vm3, %v40_v33 }
  0x2d   :  { %v415_v62 = vrot.slane %v413_v57, 5  ;;  %v4415_v43 = vld [vmem:[%s6815_s0 + $0xe0] sm:$0xf]  ;;  %v4414_v44 = vld [vmem:[%s6815_s0 + $0xd8] sm:$0xf]  ;;  %vm982_vm8 = vcmask 191648  }
  0x2e   :  { %v354_v27 = vor.u32 %v353_v13, %v350_v12  ;;  %v388_v60 = vsel %vm5061_vm2, %v383_v54, %v387_v55  ;;  %v4403_v12 = vld [vmem:[%s6815_s0 + $0xb8] sm:$0xf]  ;;  %v32_v13 = vld [vmem:[%s6815_s0 + $0x28] sm:$0xf]  ;;  %v4417_v51 = vld [vmem:[%s6815_s0 + $0xf0] sm:$0xf] }
  0x2f   :  { %v416_v1 = vsel %vm5061_vm2, %v411_v61, %v415_v62  ;;  %49 = vst.msk [vmem:[#allocation2 + $0x14] sm:$0xf] %vm43_vm3, %v32_v13  ;;  %v4416_v46 = vld [vmem:[%s6815_s0 + $0xe8] sm:$0xf]  ;;  %v4418_v50 = vld [vmem:[%s6815_s0 + $0xf8] sm:$0xf] }
  0x30   :  { %v355_v41 = vrot.slane %v354_v27, 4  ;;  %v4409_v27 = vld [vmem:[%s6815_s0 + $0x1c8] sm:$0xf]  ;;  %v4421_v56 = vld [vmem:[%s6815_s0 + $0x110] sm:$0xf]  ;;  %vm1621_vm9 = vcmask 1041408  }
  0x31   :  { %v4420_v57 = vld [vmem:[%s6815_s0 + $0x108] sm:$0xf]  ;;  %v4422_v59 = vld [vmem:[%s6815_s0 + $0x1f8] sm:$0xf]  ;;  %v4425_v6 = vld [vmem:[%s6815_s0 + $0x210] sm:$0xf] }
  0x32   :  { %423 = vrot.lane.b32.xlu1 %v248_v24, %s4919_s20  ;;  %421 = vrot.lane.b32.xlu0 %v234_v25, %s4919_s20  ;;  %v186_v24 = vld [vmem:[%s6815_s0 + $0x150] sm:$0xf]  ;;  %v368_v25 = vor.u32 %v367_v11, %v364_v10  ;;  %v360_v53 = vsel %vm5061_vm2, %v355_v41, %v359_v40  ;;  %v30_v10 = vld [vmem:[%s6815_s0 + $0x18] sm:$0xf]  ;;  %vm1080_vm10 = vcmask 224448   ;;  %vm1178_vm11 = vcmask 257248  }
  0x33   :  { %425 = vrot.lane.b32.xlu2 %v262_v48, %s4919_s20  ;;  %v390_v35 = vshrl.u32 %v186_v24, 16  ;;  %v393_v36 = vshll.u32 %v186_v24, 16  ;;  %v28_v11 = vld [vmem:[%s6815_s0 + $0x8] sm:$0xf]  ;;  %47 = vst.msk [vmem:[#allocation2 + $0xc] sm:$0xf] %vm43_vm3, %v30_v10 }
  0x34   :  { %v369_v38 = vrot.slane %v368_v25, 4  ;;  %45 = vst.msk [vmem:[#allocation2 + $0x4] sm:$0xf] %vm43_vm3, %v28_v11  ;;  %v37_v24 = vld [vmem:[%s6815_s0 + $0x130] sm:$0xf]  ;;  %vm1499_vm12 = vcmask 290048  }
  0x35   :  { %v392_v47 = vrot.slane %v390_v35, 4  ;;  %v395_v48 = vrot.slane %v393_v36, 5  ;;  %v36_v25 = vld [vmem:[%s6815_s0 + $0x128] sm:$0xf]  ;;  %54 = vst.msk [vmem:[#allocation2 + $0x28] sm:$0xf] %vm43_vm3, %v37_v24 }
  0x36   :  { %v374_v52 = vsel %vm5061_vm2, %v369_v38, %v373_v39  ;;  %53 = vst.msk [vmem:[#allocation2 + $0x24] sm:$0xf] %vm43_vm3, %v36_v25  ;;  %v39_v35 = vld [vmem:[%s6815_s0 + $0x140] sm:$0xf]  ;;  %v4411_v36 = vld [vmem:[%s6815_s0 + $0x1d8] sm:$0xf] }
  0x37   :  { %v396_v58 = vor.u32 %v395_v48, %v392_v47  ;;  %v41_v38 = vld [vmem:[%s6815_s0 + $0x150] sm:$0xf]  ;;  %56 = vst.msk [vmem:[#allocation2 + $0x30] sm:$0xf] %vm43_vm3, %v39_v35  ;;  %v4413_v39 = vld [vmem:[%s6815_s0 + $0x1e8] sm:$0xf] }
  0x38   :  { %58 = vst.msk [vmem:[#allocation2 + $0x38] sm:$0xf] %vm43_vm3, %v41_v38  ;;  %v4433_v24 = vld [vmem:[%s6815_s0 + $0x9c] sm:$0x1]  ;;  %v4437_v38 = vld [vmem:[%s6815_s0 + $0xac] sm:$0x1] }
  0x39   :  { %v397_v63 = vrot.slane %v396_v58, 4  ;;  %vm1596_vm13 = vcmask 293888   ;;  %vm1756_vm14 = vcmask 57344   ;;  %vm1766_vm15 = vsmask.f32 256 }
  0x3a   :  { %429 = vrot.lane.b32.xlu1 %v290_v2, %s4919_s20  ;;  %427 = vrot.lane.b32.xlu0 %v276_v3, %s4919_s20  ;;  %v4398_v3 = vld [vmem:[%s6815_s0 + $0x90] sm:$0xf]  ;;  %vm5934_vm0 = vmand %vm1756_vm14, %vm1766_vm15  ;;  %vm1828_vm1 = vsmask.f32 7938  ;;  %vm4168_vm15 = vcmask 31744  }
  0x3b   :  { %431 = vrot.lane.b32.xlu2 %v304_v14, %s4919_s20  ;;  %v402_v2 = vsel %vm5061_vm2, %v397_v63, %v401_v0  ;;  %v4402_v14 = vld [vmem:[%s6815_s0 + $0xb0] sm:$0xf] }
  0x42   :  { %435 = vrot.lane.b32.xlu1 %v332_v21, %s4919_s20  ;;  %433 = vrot.lane.b32.xlu0 %v318_v22, %s4919_s20  ;;  %v4405_v21 = vld [vmem:[%s6815_s0 + $0xc8] sm:$0xf] }
  0x43   :  { %437 = vrot.lane.b32.xlu2 %v346_v42, %s4919_s20  ;;  %v42_v42 = vld [vmem:[%s6815_s0 + $0x158] sm:$0xf] }
  0x44   :  { %59 = vst.msk [vmem:[#allocation2 + $0x3c] sm:$0xf] %vm43_vm3, %v42_v42  ;;  %vm5943_vm3 = vmand %vm1756_vm14, %vm1828_vm1 }
  0x4a   :  { %441 = vrot.lane.b32.xlu1 %v374_v52, %s4919_s20  ;;  %439 = vrot.lane.b32.xlu0 %v360_v53, %s4919_s20  ;;  %v4419_v53 = vld [vmem:[%s6815_s0 + $0x100] sm:$0xf] }
  0x4b   :  { %443 = vrot.lane.b32.xlu2 %v388_v60, %s4919_s20  ;;  %v4430_v60 = vld [vmem:[%s6815_s0 + $0x90] sm:$0xf] }
  0x4c   :  { %v711_v63 = vshrl.u32 %v4430_v60, 16  ;;  %v714_v0 = vshll.u32 %v4430_v60, 16 }
  0x4e   :  { %v713_v4 = vrot.slane %v711_v63, 4  ;;  %v716_v5 = vrot.slane %v714_v0, 5 }
  0x50   :  { %v717_v17 = vor.u32 %v716_v5, %v713_v4  ;;  %v4462_v4 = vld [vmem:[%s6815_s0 + $0x8] sm:$0xf]  ;;  %v4497_v5 = vld [vmem:[%s6815_s0 + $0x14] sm:$0x1] }
  0x52   :  { %447 = vrot.lane.b32.xlu1 %v416_v1, %s4919_s20  ;;  %445 = vrot.lane.b32.xlu0 %v402_v2, %s4919_s20  ;;  %v4424_v1 = vld [vmem:[%s6815_s0 + $0x208] sm:$0xf]  ;;  %v4423_v2 = vld [vmem:[%s6815_s0 + $0x200] sm:$0xf] }
  0x53   :  { %515 = vrot.lane.b32.xlu2 %v4398_v3, %s4920_s16 }
  0x5a   :  { %519 = vrot.lane.b32.xlu1 %v4400_v7, %s4920_s16  ;;  %517 = vrot.lane.b32.xlu0 %v4399_v8, %s4920_s16  ;;  %v4431_v7 = vld [vmem:[%s6815_s0 + $0x94] sm:$0x1]  ;;  %v4436_v8 = vld [vmem:[%s6815_s0 + $0xa8] sm:$0xf] }
  0x5b   :  { %521 = vrot.lane.b32.xlu2 %v4401_v9, %s4920_s16  ;;  %v4432_v9 = vld [vmem:[%s6815_s0 + $0x98] sm:$0xf]  ;;  %v720_v18 = vshll.u32 %v4431_v7, 16  ;;  %v753_v19 = vshrl.u32 %v4436_v8, 16 }
  0x5c   :  { %v725_v13 = vshrl.u32 %v4432_v9, 16 }
  0x5d   :  { %v102_v15 = vpop.permute.xlu2 %101 }
  0x5e   :  { %146 = vst.msk [vmem:[#allocation2 + $0x10] sm:$0xf] %vm141_vm4, %v102_v15  ;;  %v4427_v15 = vld [vmem:[%s6815_s0 + $0x220] sm:$0xf]  ;;  %v727_v25 = vrot.slane %v725_v13, 4 }
  0x5f   :  { %v4478_v13 = vld [vmem:[%s6815_s0 + $0x50] sm:$0xf] }
  0x62   :  { %525 = vrot.lane.b32.xlu1 %v4403_v12, %s4920_s16  ;;  %523 = vrot.lane.b32.xlu0 %v4402_v14, %s4920_s16  ;;  %v4434_v12 = vld [vmem:[%s6815_s0 + $0xa0] sm:$0xf]  ;;  %v728_v14 = vshll.u32 %v4432_v9, 16 }
  0x63   :  { %527 = vrot.lane.b32.xlu2 %v4404_v16, %s4920_s16  ;;  %v4426_v16 = vld [vmem:[%s6815_s0 + $0x218] sm:$0xf] }
  0x64   :  { %v730_v26 = vrot.slane %v728_v14, 5  ;;  %v4463_v14 = vld [vmem:[%s6815_s0 + $0x10] sm:$0xf] }
  0x65   :  { %v104_v22 = vpop.permute.xlu2 %103 }
  0x66   :  { %147 = vst.msk [vmem:[#allocation2 + $0x14] sm:$0xf] %vm141_vm4, %v104_v22  ;;  %v742_v22 = vshll.u32 %v4434_v12, 16 }
  0x68   :  { %v744_v35 = vrot.slane %v742_v22, 5 }
  0x6a   :  { %531 = vrot.lane.b32.xlu1 %v4406_v20, %s4920_s16  ;;  %529 = vrot.lane.b32.xlu0 %v4405_v21, %s4920_s16  ;;  %v756_v20 = vshll.u32 %v4436_v8, 16  ;;  %v739_v21 = vshrl.u32 %v4434_v12, 16  ;;  %v1251_v12 = vshll.u32 %v4497_v5, 16 }
  0x6b   :  { %533 = vrot.lane.b32.xlu2 %v4407_v23, %s4920_s16 }
  0x6c   :  { %v758_v33 = vrot.slane %v756_v20, 5  ;;  %v4479_v20 = vld [vmem:[%s6815_s0 + $0x58] sm:$0xf] }
  0x6d   :  { %v110_v29 = vpop.permute.xlu2 %109 }
  0x6e   :  { %150 = vst.msk [vmem:[#allocation2 + $0x20] sm:$0xf] %vm141_vm4, %v110_v29  ;;  %v4428_v29 = vld [vmem:[%s6815_s0 + $0x228] sm:$0xf] }
  0x72   :  { %537 = vrot.lane.b32.xlu1 %v4409_v27, %s4920_s16  ;;  %535 = vrot.lane.b32.xlu0 %v4408_v28, %s4920_s16  ;;  %v718_v27 = vrot.slane %v717_v17, 4  ;;  %v722_v28 = vrot.slane %v720_v18, 5 }
  0x73   :  { %539 = vrot.lane.b32.xlu2 %v4410_v30, %s4920_s16  ;;  %v731_v30 = vor.u32 %v730_v26, %v727_v25 }
  0x74   :  { %v98_v31 = vpop.permute.xlu1 %97  ;;  %v94_v32 = vpop.permute.xlu0 %93 }
  0x75   :  { %144 = vst.msk [vmem:[#allocation2 + $0x8] sm:$0xf] %vm141_vm4, %v98_v31  ;;  %v116_v37 = vpop.permute.xlu2 %115  ;;  %v734_v31 = vshll.u32 %v4433_v24, 16  ;;  %v4498_v24 = vld [vmem:[%s6815_s0 + $0x18] sm:$0xf] }
  0x76   :  { %142 = vst.msk [vmem:[#allocation2] sm:$0xf] %vm141_vm4, %v94_v32  ;;  %v755_v32 = vrot.slane %v753_v19, 4  ;;  %v1253_v19 = vrot.slane %v1251_v12, 5 }
  0x77   :  { %153 = vst.msk [vmem:[#allocation2 + $0x2c] sm:$0xf] %vm141_vm4, %v116_v37  ;;  %v736_v42 = vrot.slane %v734_v31, 5 }
  0x7a   :  { %543 = vrot.lane.b32.xlu1 %v4412_v34, %s4920_s16  ;;  %541 = vrot.lane.b32.xlu0 %v4411_v36, %s4920_s16  ;;  %v741_v34 = vrot.slane %v739_v21, 4 }
  0x7b   :  { %545 = vrot.lane.b32.xlu2 %v4413_v39, %s4920_s16  ;;  %v4435_v39 = vld [vmem:[%s6815_s0 + $0xa4] sm:$0x1] }
  0x7c   :  { %v100_v40 = vpop.permute.xlu1 %99  ;;  %v96_v41 = vpop.permute.xlu0 %95 }
  0x7d   :  { %145 = vst.msk [vmem:[#allocation2 + $0xc] sm:$0xf] %vm141_vm4, %v100_v40  ;;  %v122_v45 = vpop.permute.xlu2 %121  ;;  %v723_v40 = vsel %vm5061_vm2, %v718_v27, %v722_v28 }
  0x7e   :  { %143 = vst.msk [vmem:[#allocation2 + $0x4] sm:$0xf] %vm141_vm4, %v96_v41  ;;  %v732_v41 = vrot.slane %v731_v30, 4  ;;  %v1259_v30 = vshll.u32 %v4498_v24, 16 }
  0x7f   :  { %156 = vst.msk [vmem:[#allocation2 + $0x38] sm:$0xf] %vm141_vm4, %v122_v45  ;;  %v762_v45 = vshll.u32 %v4437_v38, 16  ;;  %v4464_v38 = vld [vmem:[%s6815_s0 + $0x18] sm:$0xf] }
  0x82   :  { %615 = vrot.lane.b32.xlu1 %v4415_v43, %s4921_s15  ;;  %613 = vrot.lane.b32.xlu0 %v4414_v44, %s4921_s15  ;;  %v4429_v43 = vld [vmem:[%s6815_s0 + $0x230] sm:$0xf]  ;;  %v759_v44 = vor.u32 %v758_v33, %v755_v32 }
  0x83   :  { %617 = vrot.lane.b32.xlu2 %v4416_v46, %s4921_s15  ;;  %v745_v46 = vor.u32 %v744_v35, %v741_v34 }
  0x84   :  { %v108_v47 = vpop.permute.xlu1 %107  ;;  %v106_v48 = vpop.permute.xlu0 %105 }
  0x85   :  { %149 = vst.msk [vmem:[#allocation2 + $0x1c] sm:$0xf] %vm141_vm4, %v108_v47  ;;  %v420_v52 = vpop.permute.xlu2 %419  ;;  %v748_v47 = vshll.u32 %v4435_v39, 16  ;;  %v4501_v39 = vld [vmem:[%s6815_s0 + $0x24] sm:$0x1] }
  0x86   :  { %148 = vst.msk [vmem:[#allocation2 + $0x18] sm:$0xf] %vm141_vm4, %v106_v48 }
  0x87   :  { %467 = vst.msk [vmem:[#allocation2 + $0x4] sm:$0xf] %vm465_vm5, %v420_v52  ;;  %v764_v52 = vrot.slane %v762_v45, 5 }
  0x8a   :  { %621 = vrot.lane.b32.xlu1 %v4418_v50, %s4921_s15  ;;  %619 = vrot.lane.b32.xlu0 %v4417_v51, %s4921_s15  ;;  %v737_v50 = vsel %vm5061_vm2, %v732_v41, %v736_v42  ;;  %v760_v51 = vrot.slane %v759_v44, 4  ;;  %v4438_v41 = vld [vmem:[%s6815_s0 + $0xb0] sm:$0xf]  ;;  %v4440_v44 = vld [vmem:[%s6815_s0 + $0xb8] sm:$0xf] }
  0x8b   :  { %623 = vrot.lane.b32.xlu2 %v4419_v53, %s4921_s15  ;;  %v746_v53 = vrot.slane %v745_v46, 4  ;;  %v767_v45 = vshrl.u32 %v4438_v41, 16  ;;  %v770_v46 = vshll.u32 %v4438_v41, 16  ;;  %v4505_v41 = vld [vmem:[%s6815_s0 + $0x34] sm:$0x1] }
  0x8c   :  { %v114_v54 = vpop.permute.xlu1 %113  ;;  %v112_v55 = vpop.permute.xlu0 %111 }
  0x8d   :  { %152 = vst.msk [vmem:[#allocation2 + $0x28] sm:$0xf] %vm141_vm4, %v114_v54  ;;  %v426_v58 = vpop.permute.xlu2 %425  ;;  %v750_v54 = vrot.slane %v748_v47, 5  ;;  %v4480_v47 = vld [vmem:[%s6815_s0 + $0x60] sm:$0xf] }
  0x8e   :  { %151 = vst.msk [vmem:[#allocation2 + $0x24] sm:$0xf] %vm141_vm4, %v112_v55  ;;  %v4496_v55 = vld [vmem:[%s6815_s0 + $0x10] sm:$0xf] }
  0x8f   :  { %470 = vst.msk [vmem:[#allocation2 + $0x10] sm:$0xf] %vm465_vm5, %v426_v58  ;;  %v4494_v58 = vld [vmem:[%s6815_s0 + $0x8] sm:$0xf]  ;;  %v1245_v60 = vshll.u32 %v4496_v55, 16 }
  0x90   :  { %v1228_v63 = vshrl.u32 %v4494_v58, 16  ;;  %v1231_v0 = vshll.u32 %v4494_v58, 16  ;;  %v769_v58 = vrot.slane %v767_v45, 4 }
  0x92   :  { %627 = vrot.lane.b32.xlu1 %v4421_v56, %s4921_s15  ;;  %625 = vrot.lane.b32.xlu0 %v4420_v57, %s4921_s15  ;;  %v1233_v7 = vrot.slane %v1231_v0, 5 }
  0x93   :  { %629 = vrot.lane.b32.xlu2 %v4422_v59, %s4921_s15  ;;  %v1242_v59 = vshrl.u32 %v4496_v55, 16  ;;  %v784_v55 = vshll.u32 %v4440_v44, 16 }
  0x94   :  { %v120_v61 = vpop.permute.xlu1 %119  ;;  %v118_v62 = vpop.permute.xlu0 %117 }
  0x95   :  { %155 = vst.msk [vmem:[#allocation2 + $0x34] sm:$0xf] %vm141_vm4, %v120_v61  ;;  %v432_v3 = vpop.permute.xlu2 %431  ;;  %v765_v61 = vsel %vm5061_vm2, %v760_v51, %v764_v52  ;;  %v1279_v51 = vshll.u32 %v4501_v39, 16 }
  0x96   :  { %154 = vst.msk [vmem:[#allocation2 + $0x30] sm:$0xf] %vm141_vm4, %v118_v62  ;;  %v751_v62 = vsel %vm5061_vm2, %v746_v53, %v750_v54  ;;  %v781_v54 = vshrl.u32 %v4440_v44, 16 }
  0x97   :  { %473 = vst.msk [vmem:[#allocation2 + $0x1c] sm:$0xf] %vm465_vm5, %v432_v3  ;;  %v1247_v3 = vrot.slane %v1245_v60, 5 }
  0x9a   :  { %633 = vrot.lane.b32.xlu1 %v4424_v1, %s4921_s15  ;;  %631 = vrot.lane.b32.xlu0 %v4423_v2, %s4921_s15  ;;  %v1244_v2 = vrot.slane %v1242_v59, 4  ;;  %v772_v59 = vrot.slane %v770_v46, 5  ;;  %v4444_v46 = vld [vmem:[%s6815_s0 + $0xc8] sm:$0xf] }
  0x9b   :  { %635 = vrot.lane.b32.xlu2 %v4425_v6, %s4921_s15  ;;  %v1230_v6 = vrot.slane %v1228_v63, 4 }
  0x9c   :  { %v418_v10 = vpop.permute.xlu1 %417  ;;  %v124_v11 = vpop.permute.xlu0 %123  ;;  %v773_v63 = vor.u32 %v772_v59, %v769_v58  ;;  %v809_v58 = vshrl.u32 %v4444_v46, 16  ;;  %v812_v59 = vshll.u32 %v4444_v46, 16 }
  0x9d   :  { %466 = vst.msk [vmem:[#allocation2] sm:$0xf] %vm465_vm5, %v418_v10  ;;  %v438_v23 = vpop.permute.xlu2 %437  ;;  %v4495_v10 = vld [vmem:[%s6815_s0 + $0xc] sm:$0x1] }
  0x9e   :  { %157 = vst.msk [vmem:[#allocation2 + $0x3c] sm:$0xf] %vm141_vm4, %v124_v11  ;;  %v1248_v11 = vor.u32 %v1247_v3, %v1244_v2  ;;  %v783_v3 = vrot.slane %v781_v54, 4  ;;  %vm1754_vm4 = vcmask 60416  }
  0x9f   :  { %476 = vst.msk [vmem:[#allocation2 + $0x28] sm:$0xf] %vm465_vm5, %v438_v23  ;;  %v4500_v23 = vld [vmem:[%s6815_s0 + $0x20] sm:$0xf] }
  0xa0   :  { %v1249_v18 = vrot.slane %v1248_v11, 4  ;;  %v1270_v27 = vshrl.u32 %v4500_v23, 16  ;;  %v1273_v28 = vshll.u32 %v4500_v23, 16 }
  0xa2   :  { %639 = vrot.lane.b32.xlu1 %v4427_v15, %s4921_s15  ;;  %637 = vrot.lane.b32.xlu0 %v4426_v16, %s4921_s15  ;;  %v1234_v15 = vor.u32 %v1233_v7, %v1230_v6  ;;  %v1237_v16 = vshll.u32 %v4495_v10, 16  ;;  %v1254_v31 = vsel %vm5061_vm2, %v1249_v18, %v1253_v19  ;;  %v1272_v34 = vrot.slane %v1270_v27, 4  ;;  %v4441_v7 = vld [vmem:[%s6815_s0 + $0xbc] sm:$0x1]  ;;  %v4502_v19 = vld [vmem:[%s6815_s0 + $0x28] sm:$0xf] }
  0xa3   :  { %641 = vrot.lane.b32.xlu2 %v4428_v29, %s4921_s15  ;;  %v1256_v29 = vshrl.u32 %v4498_v24, 16  ;;  %v1275_v35 = vrot.slane %v1273_v28, 5  ;;  %v1284_v23 = vshrl.u32 %v4502_v19, 16  ;;  %v1287_v24 = vshll.u32 %v4502_v19, 16  ;;  %v4466_v27 = vld [vmem:[%s6815_s0 + $0x28] sm:$0xf] }
  0xa4   :  { %v424_v36 = vpop.permute.xlu1 %423  ;;  %v422_v37 = vpop.permute.xlu0 %421  ;;  %v1235_v21 = vrot.slane %v1234_v15, 4  ;;  %v1239_v22 = vrot.slane %v1237_v16, 5  ;;  %v4442_v15 = vld [vmem:[%s6815_s0 + $0xc0] sm:$0xf]  ;;  %v4448_v19 = vld [vmem:[%s6815_s0 + $0x1b8] sm:$0xf] }
  0xa5   :  { %469 = vst.msk [vmem:[#allocation2 + $0xc] sm:$0xf] %vm465_vm5, %v424_v36  ;;  %v444_v48 = vpop.permute.xlu2 %443  ;;  %v1258_v36 = vrot.slane %v1256_v29, 4  ;;  %v1286_v28 = vrot.slane %v1284_v23, 4  ;;  %v4446_v23 = vld [vmem:[%s6815_s0 + $0x1b0] sm:$0xf] }
  0xa6   :  { %468 = vst.msk [vmem:[#allocation2 + $0x8] sm:$0xf] %vm465_vm5, %v422_v37  ;;  %v1240_v32 = vsel %vm5061_vm2, %v1235_v21, %v1239_v22  ;;  %v1261_v37 = vrot.slane %v1259_v30, 5  ;;  %v4504_v22 = vld [vmem:[%s6815_s0 + $0x30] sm:$0xf] }
  0xa7   :  { %479 = vst.msk [vmem:[#allocation2 + $0x34] sm:$0xf] %vm465_vm5, %v444_v48  ;;  %v4465_v48 = vld [vmem:[%s6815_s0 + $0x20] sm:$0xf]  ;;  %v1298_v30 = vshrl.u32 %v4504_v22, 16 }
  0xa8   :  { %v1262_v52 = vor.u32 %v1261_v37, %v1258_v36  ;;  %v4467_v37 = vld [vmem:[%s6815_s0 + $0x30] sm:$0xf] }
  0xaa   :  { %934 = vrot.lane.b32.xlu1 %v723_v40, %s4922_s18  ;;  %643 = vrot.lane.b32.xlu0 %v4429_v43, %s4921_s15  ;;  %v4499_v40 = vld [vmem:[%s6815_s0 + $0x1c] sm:$0x1] }
  0xab   :  { %936 = vrot.lane.b32.xlu2 %v737_v50, %s4922_s18  ;;  %v1276_v50 = vor.u32 %v1275_v35, %v1272_v34  ;;  %v1265_v53 = vshll.u32 %v4499_v40, 16  ;;  %v1289_v34 = vrot.slane %v1287_v24, 5  ;;  %v4443_v40 = vld [vmem:[%s6815_s0 + $0xc4] sm:$0x1] }
  0xac   :  { %v430_v56 = vpop.permute.xlu1 %429  ;;  %v428_v57 = vpop.permute.xlu0 %427 }
  0xad   :  { %472 = vst.msk [vmem:[#allocation2 + $0x18] sm:$0xf] %vm465_vm5, %v430_v56  ;;  %v516_v1 = vpop.permute.xlu2 %515  ;;  %v1277_v60 = vrot.slane %v1276_v50, 4  ;;  %v1267_v2 = vrot.slane %v1265_v53, 5 }
  0xae   :  { %471 = vst.msk [vmem:[#allocation2 + $0x14] sm:$0xf] %vm465_vm5, %v428_v57  ;;  %v4439_v57 = vld [vmem:[%s6815_s0 + $0xb4] sm:$0x1] }
  0xaf   :  { %564 = vst.msk [vmem:[#allocation2] sm:$0xf] %vm563_vm6, %v516_v1  ;;  %v776_v0 = vshll.u32 %v4439_v57, 16  ;;  %v1263_v1 = vrot.slane %v1262_v52, 4  ;;  %v1307_v52 = vshll.u32 %v4505_v41, 16 }
  0xb0   :  { %v4445_v57 = vld [vmem:[%s6815_s0 + $0xcc] sm:$0x1] }
  0xb1   :  { %v1268_v11 = vsel %vm5061_vm2, %v1263_v1, %v1267_v2 }
  0xb2   :  { %940 = vrot.lane.b32.xlu1 %v765_v61, %s4922_s18  ;;  %938 = vrot.lane.b32.xlu0 %v751_v62, %s4922_s18  ;;  %v1281_v61 = vrot.slane %v1279_v51, 5  ;;  %v4481_v62 = vld [vmem:[%s6815_s0 + $0x68] sm:$0xf]  ;;  %v804_v51 = vshll.u32 %v4443_v40, 16  ;;  %v4484_v40 = vld [vmem:[%s6815_s0 + $0x80] sm:$0xf] }
  0xb3   :  { %1032 = vrot.lane.b32.xlu2 %v4462_v4, %s4923_s30  ;;  %v786_v4 = vrot.slane %v784_v55, 5 }
  0xb4   :  { %v436_v8 = vpop.permute.xlu1 %435  ;;  %v434_v9 = vpop.permute.xlu0 %433  ;;  %v1282_v10 = vsel %vm5061_vm2, %v1277_v60, %v1281_v61  ;;  %v811_v60 = vrot.slane %v809_v58, 4  ;;  %v814_v61 = vrot.slane %v812_v59, 5  ;;  %v806_v1 = vrot.slane %v804_v51, 5  ;;  %v4447_v51 = vld [vmem:[%s6815_s0 + $0x1b4] sm:$0x1] }
  0xb5   :  { %475 = vst.msk [vmem:[#allocation2 + $0x24] sm:$0xf] %vm465_vm5, %v436_v8  ;;  %v522_v17 = vpop.permute.xlu2 %521  ;;  %v774_v8 = vrot.slane %v773_v63, 4  ;;  %v787_v12 = vor.u32 %v786_v4, %v783_v3  ;;  %v1309_v3 = vrot.slane %v1307_v52, 5  ;;  %v4506_v4 = vld [vmem:[%s6815_s0 + $0x38] sm:$0xf] }
  0xb6   :  { %474 = vst.msk [vmem:[#allocation2 + $0x20] sm:$0xf] %vm465_vm5, %v434_v9  ;;  %v778_v9 = vrot.slane %v776_v0, 5  ;;  %v818_v0 = vshll.u32 %v4445_v57, 16  ;;  %v832_v59 = vshll.u32 %v4447_v51, 16 }
  0xb7   :  { %567 = vst.msk [vmem:[#allocation2 + $0xc] sm:$0xf] %vm563_vm6, %v522_v17  ;;  %v788_v17 = vrot.slane %v787_v12, 4 }
  0xb8   :  { %v779_v16 = vsel %vm5061_vm2, %v774_v8, %v778_v9  ;;  %v1312_v8 = vshrl.u32 %v4506_v4, 16  ;;  %v1315_v9 = vshll.u32 %v4506_v4, 16 }
  0xba   :  { %1130 = vrot.lane.b32.xlu1 %v4478_v13, %s4924_s12  ;;  %1034 = vrot.lane.b32.xlu0 %v4463_v14, %s4923_s30  ;;  %v790_v13 = vshll.u32 %v4441_v7, 16 }
  0xbb   :  { %1132 = vrot.lane.b32.xlu2 %v4479_v20, %s4924_s12 }
  0xbc   :  { %v442_v25 = vpop.permute.xlu1 %441  ;;  %v440_v26 = vpop.permute.xlu0 %439  ;;  %v792_v18 = vrot.slane %v790_v13, 5 }
  0xbd   :  { %478 = vst.msk [vmem:[#allocation2 + $0x30] sm:$0xf] %vm465_vm5, %v442_v25  ;;  %v528_v33 = vpop.permute.xlu2 %527  ;;  %v795_v25 = vshrl.u32 %v4442_v15, 16 }
  0xbe   :  { %477 = vst.msk [vmem:[#allocation2 + $0x2c] sm:$0xf] %vm465_vm5, %v440_v26  ;;  %v798_v26 = vshll.u32 %v4442_v15, 16  ;;  %v793_v29 = vsel %vm5061_vm2, %v788_v17, %v792_v18  ;;  %v1314_v15 = vrot.slane %v1312_v8, 4  ;;  %v4507_v18 = vld [vmem:[%s6815_s0 + $0x3c] sm:$0x1] }
  0xbf   :  { %570 = vst.msk [vmem:[#allocation2 + $0x18] sm:$0xf] %vm563_vm6, %v528_v33  ;;  %v4503_v33 = vld [vmem:[%s6815_s0 + $0x2c] sm:$0x1]  ;;  %v797_v35 = vrot.slane %v795_v25, 4 }
  0xc0   :  { %v800_v36 = vrot.slane %v798_v26, 5  ;;  %v1293_v39 = vshll.u32 %v4503_v33, 16  ;;  %v4469_v26 = vld [vmem:[%s6815_s0 + $0x40] sm:$0xf]  ;;  %v826_v33 = vshll.u32 %v4446_v23, 16 }
  0xc2   :  { %1453 = vrot.lane.b32.xlu1 %v1254_v31, %s4925_s22  ;;  %1451 = vrot.lane.b32.xlu0 %v1240_v32, %s4925_s22  ;;  %v1301_v31 = vshll.u32 %v4504_v22, 16  ;;  %v801_v50 = vor.u32 %v800_v36, %v797_v35  ;;  %v1295_v54 = vrot.slane %v1293_v39, 5  ;;  %v4509_v35 = vld [vmem:[%s6815_s0 + $0x44] sm:$0x1]  ;;  %v828_v46 = vrot.slane %v826_v33, 5 }
  0xc3   :  { %1036 = vrot.lane.b32.xlu2 %v4464_v38, %s4923_s30  ;;  %v1290_v38 = vor.u32 %v1289_v34, %v1286_v28 }
  0xc4   :  { %v448_v42 = vpop.permute.xlu1 %447  ;;  %v446_v43 = vpop.permute.xlu0 %445 }
  0xc5   :  { %481 = vst.msk [vmem:[#allocation2 + $0x3c] sm:$0xf] %vm465_vm5, %v448_v42  ;;  %v534_v56 = vpop.permute.xlu2 %533  ;;  %v1300_v42 = vrot.slane %v1298_v30, 4  ;;  %v1291_v53 = vrot.slane %v1290_v38, 4  ;;  %v837_v30 = vshrl.u32 %v4448_v19, 16 }
  0xc6   :  { %480 = vst.msk [vmem:[#allocation2 + $0x38] sm:$0xf] %vm465_vm5, %v446_v43  ;;  %v1303_v43 = vrot.slane %v1301_v31, 5  ;;  %v840_v31 = vshll.u32 %v4448_v19, 16  ;;  %vm5998_vm5 = vmand %vm1754_vm4, %vm1828_vm1  ;;  %vm3406_vm1 = vcmask 454016  }
  0xc7   :  { %573 = vst.msk [vmem:[#allocation2 + $0x24] sm:$0xf] %vm563_vm6, %v534_v56  ;;  %v1296_v63 = vsel %vm5061_vm2, %v1291_v53, %v1295_v54 }
  0xc8   :  { %v1304_v55 = vor.u32 %v1303_v43, %v1300_v42  ;;  %v1335_v42 = vshll.u32 %v4509_v35, 16  ;;  %v839_v43 = vrot.slane %v837_v30, 4  ;;  %v4455_v35 = vld [vmem:[%s6815_s0 + $0x1d4] sm:$0x1] }
  0xca   :  { %1134 = vrot.lane.b32.xlu1 %v4480_v47, %s4924_s12  ;;  %1038 = vrot.lane.b32.xlu0 %v4465_v48, %s4923_s30  ;;  %v4483_v47 = vld [vmem:[%s6815_s0 + $0x78] sm:$0xf]  ;;  %v4482_v48 = vld [vmem:[%s6815_s0 + $0x70] sm:$0xf]  ;;  %v1305_v2 = vrot.slane %v1304_v55, 4  ;;  %v1337_v54 = vrot.slane %v1335_v42, 5 }
  0xcb   :  { %1136 = vrot.lane.b32.xlu2 %v4481_v62, %s4924_s12  ;;  %v802_v62 = vrot.slane %v801_v50, 4  ;;  %v4449_v50 = vld [vmem:[%s6815_s0 + $0x1bc] sm:$0x1]  ;;  %v4485_v55 = vld [vmem:[%s6815_s0 + $0x88] sm:$0xf] }
  0xcc   :  { %v520_v5 = vpop.permute.xlu1 %519  ;;  %v518_v6 = vpop.permute.xlu0 %517  ;;  %v1310_v13 = vsel %vm5061_vm2, %v1305_v2, %v1309_v3  ;;  %v846_v57 = vshll.u32 %v4449_v50, 16  ;;  %v4512_v2 = vld [vmem:[%s6815_s0 + $0x130] sm:$0xf] }
  0xcd   :  { %566 = vst.msk [vmem:[#allocation2 + $0x8] sm:$0xf] %vm563_vm6, %v520_v5  ;;  %v540_v14 = vpop.permute.xlu2 %539  ;;  %v815_v5 = vor.u32 %v814_v61, %v811_v60  ;;  %v807_v12 = vsel %vm5061_vm2, %v802_v62, %v806_v1  ;;  %v834_v1 = vrot.slane %v832_v59, 5 }
  0xce   :  { %565 = vst.msk [vmem:[#allocation2 + $0x4] sm:$0xf] %vm563_vm6, %v518_v6 }
  0xcf   :  { %576 = vst.msk [vmem:[#allocation2 + $0x30] sm:$0xf] %vm563_vm6, %v540_v14 }
  0xd2   :  { %1457 = vrot.lane.b32.xlu1 %v1282_v10, %s4925_s22  ;;  %1455 = vrot.lane.b32.xlu0 %v1268_v11, %s4925_s22  ;;  %v816_v10 = vrot.slane %v815_v5, 4  ;;  %v820_v11 = vrot.slane %v818_v0, 5  ;;  %v4510_v5 = vld [vmem:[%s6815_s0 + $0x128] sm:$0xf] }
  0xd3   :  { %942 = vrot.lane.b32.xlu2 %v779_v16, %s4922_s18  ;;  %v1317_v16 = vrot.slane %v1315_v9, 5 }
  0xd4   :  { %v526_v20 = vpop.permute.xlu1 %525  ;;  %v524_v21 = vpop.permute.xlu0 %523  ;;  %v821_v17 = vsel %vm5061_vm2, %v816_v10, %v820_v11  ;;  %v1340_v10 = vshrl.u32 %v4510_v5, 16  ;;  %v1343_v11 = vshll.u32 %v4510_v5, 16  ;;  %v4520_v5 = vld [vmem:[%s6815_s0 + $0x150] sm:$0xf] }
  0xd5   :  { %569 = vst.msk [vmem:[#allocation2 + $0x14] sm:$0xf] %vm563_vm6, %v526_v20  ;;  %v546_v32 = vpop.permute.xlu2 %545  ;;  %v4508_v20 = vld [vmem:[%s6815_s0 + $0x40] sm:$0xf]  ;;  %v1318_v28 = vor.u32 %v1317_v16, %v1314_v15  ;;  %v4456_v16 = vld [vmem:[%s6815_s0 + $0x1d8] sm:$0xf] }
  0xd6   :  { %568 = vst.msk [vmem:[#allocation2 + $0x10] sm:$0xf] %vm563_vm6, %v524_v21  ;;  %v1326_v24 = vshrl.u32 %v4508_v20, 16  ;;  %v1329_v25 = vshll.u32 %v4508_v20, 16  ;;  %v1342_v19 = vrot.slane %v1340_v10, 4  ;;  %v1345_v20 = vrot.slane %v1343_v11, 5 }
  0xd7   :  { %579 = vst.msk [vmem:[#allocation2 + $0x3c] sm:$0xf] %vm563_vm6, %v546_v32  ;;  %v823_v32 = vshrl.u32 %v4446_v23, 16  ;;  %v1319_v38 = vrot.slane %v1318_v28, 4  ;;  %v893_v28 = vshrl.u32 %v4456_v16, 16 }
  0xd8   :  { %v1328_v36 = vrot.slane %v1326_v24, 4  ;;  %v1346_v33 = vor.u32 %v1345_v20, %v1342_v19  ;;  %v4475_v19 = vld [vmem:[%s6815_s0 + $0x150] sm:$0xf] }
  0xda   :  { %1040 = vrot.lane.b32.xlu1 %v4466_v27, %s4923_s30  ;;  %944 = vrot.lane.b32.xlu0 %v793_v29, %s4922_s18  ;;  %v4468_v27 = vld [vmem:[%s6815_s0 + $0x38] sm:$0xf]  ;;  %v1321_v29 = vshll.u32 %v4507_v18, 16  ;;  %v4511_v18 = vld [vmem:[%s6815_s0 + $0x12c] sm:$0x1] }
  0xdb   :  { %1042 = vrot.lane.b32.xlu2 %v4467_v37, %s4923_s30  ;;  %v1331_v37 = vrot.slane %v1329_v25, 5 }
  0xdc   :  { %v532_v44 = vpop.permute.xlu1 %531  ;;  %v530_v45 = vpop.permute.xlu0 %529  ;;  %v1323_v39 = vrot.slane %v1321_v29, 5 }
  0xdd   :  { %572 = vst.msk [vmem:[#allocation2 + $0x20] sm:$0xf] %vm563_vm6, %v532_v44  ;;  %v618_v56 = vpop.permute.xlu2 %617  ;;  %v1332_v41 = vor.u32 %v1331_v37, %v1328_v36  ;;  %v842_v44 = vrot.slane %v840_v31, 5  ;;  %v1349_v31 = vshll.u32 %v4511_v18, 16 }
  0xde   :  { %571 = vst.msk [vmem:[#allocation2 + $0x1c] sm:$0xf] %vm563_vm6, %v530_v45  ;;  %v825_v45 = vrot.slane %v823_v32, 4  ;;  %v1324_v52 = vsel %vm5061_vm2, %v1319_v38, %v1323_v39  ;;  %v896_v32 = vshll.u32 %v4456_v16, 16  ;;  %v895_v38 = vrot.slane %v893_v28, 4 }
  0xdf   :  { %664 = vst.msk [vmem:[#allocation2 + $0x8] sm:$0xf] %vm661_vm7, %v618_v56  ;;  %v1333_v53 = vrot.slane %v1332_v41, 4  ;;  %v843_v56 = vor.u32 %v842_v44, %v839_v43  ;;  %v4457_v39 = vld [vmem:[%s6815_s0 + $0x1dc] sm:$0x1]  ;;  %v888_v43 = vshll.u32 %v4455_v35, 16 }
  0xe0   :  { %v829_v58 = vor.u32 %v828_v46, %v825_v45  ;;  %v4487_v41 = vld [vmem:[%s6815_s0 + $0x178] sm:$0xf]  ;;  %v1347_v46 = vrot.slane %v1346_v33, 4  ;;  %v902_v51 = vshll.u32 %v4457_v39, 16  ;;  %v4519_v16 = vld [vmem:[%s6815_s0 + $0x14c] sm:$0x1] }
  0xe1   :  { %v1338_v61 = vsel %vm5061_vm2, %v1333_v53, %v1337_v54  ;;  %v844_v62 = vrot.slane %v843_v56, 4  ;;  %v890_v54 = vrot.slane %v888_v43, 5  ;;  %v4491_v33 = vld [vmem:[%s6815_s0 + $0x198] sm:$0xf] }
  0xe2   :  { %1140 = vrot.lane.b32.xlu1 %v4483_v47, %s4924_s12  ;;  %1138 = vrot.lane.b32.xlu0 %v4482_v48, %s4924_s12  ;;  %v830_v0 = vrot.slane %v829_v58, 4 }
  0xe3   :  { %1459 = vrot.lane.b32.xlu2 %v1296_v63, %s4925_s22  ;;  %v848_v63 = vrot.slane %v846_v57, 5 }
  0xe4   :  { %v538_v6 = vpop.permute.xlu1 %537  ;;  %v536_v7 = vpop.permute.xlu0 %535  ;;  %v835_v9 = vsel %vm5061_vm2, %v830_v0, %v834_v1  ;;  %v4450_v0 = vld [vmem:[%s6815_s0 + $0x1c0] sm:$0xf] }
  0xe5   :  { %575 = vst.msk [vmem:[#allocation2 + $0x2c] sm:$0xf] %vm563_vm6, %v538_v6  ;;  %v624_v14 = vpop.permute.xlu2 %623  ;;  %v1354_v6 = vshrl.u32 %v4512_v2, 16  ;;  %v849_v8 = vsel %vm5061_vm2, %v844_v62, %v848_v63  ;;  %v904_v62 = vrot.slane %v902_v51, 5  ;;  %v851_v10 = vshrl.u32 %v4450_v0, 16 }
  0xe6   :  { %574 = vst.msk [vmem:[#allocation2 + $0x28] sm:$0xf] %vm563_vm6, %v536_v7  ;;  %v1357_v7 = vshll.u32 %v4512_v2, 16  ;;  %v4518_v2 = vld [vmem:[%s6815_s0 + $0x148] sm:$0xf]  ;;  %v854_v11 = vshll.u32 %v4450_v0, 16 }
  0xe7   :  { %667 = vst.msk [vmem:[#allocation2 + $0x14] sm:$0xf] %vm661_vm7, %v624_v14  ;;  %v1356_v14 = vrot.slane %v1354_v6, 4  ;;  %v1396_v6 = vshrl.u32 %v4518_v2, 16  ;;  %v4460_v0 = vld [vmem:[%s6815_s0 + $0x1e8] sm:$0xf] }
  0xe8   :  { %v1359_v15 = vrot.slane %v1357_v7, 5  ;;  %v1399_v7 = vshll.u32 %v4518_v2, 16 }
  0xea   :  { %946 = vrot.lane.b32.xlu1 %v807_v12, %s4922_s18  ;;  %1461 = vrot.lane.b32.xlu0 %v1310_v13, %s4925_s22  ;;  %v4513_v13 = vld [vmem:[%s6815_s0 + $0x134] sm:$0x1]  ;;  %v1360_v29 = vor.u32 %v1359_v15, %v1356_v14  ;;  %v1413_v14 = vshll.u32 %v4520_v5, 16  ;;  %v1401_v18 = vrot.slane %v1399_v7, 5 }
  0xeb   :  { %948 = vrot.lane.b32.xlu2 %v821_v17, %s4922_s18  ;;  %v4470_v17 = vld [vmem:[%s6815_s0 + $0x128] sm:$0xf]  ;;  %v1363_v30 = vshll.u32 %v4513_v13, 16  ;;  %v1410_v13 = vshrl.u32 %v4520_v5, 16  ;;  %v4516_v5 = vld [vmem:[%s6815_s0 + $0x140] sm:$0xf] }
  0xec   :  { %v544_v21 = vpop.permute.xlu1 %543  ;;  %v542_v22 = vpop.permute.xlu0 %541  ;;  %v1361_v44 = vrot.slane %v1360_v29, 4 }
  0xed   :  { %578 = vst.msk [vmem:[#allocation2 + $0x38] sm:$0xf] %vm563_vm6, %v544_v21  ;;  %v630_v34 = vpop.permute.xlu2 %629  ;;  %v4454_v21 = vld [vmem:[%s6815_s0 + $0x1d0] sm:$0xf]  ;;  %v1365_v45 = vrot.slane %v1363_v30, 5 }
  0xee   :  { %577 = vst.msk [vmem:[#allocation2 + $0x34] sm:$0xf] %vm563_vm6, %v542_v22  ;;  %v879_v24 = vshrl.u32 %v4454_v21, 16  ;;  %v882_v25 = vshll.u32 %v4454_v21, 16  ;;  %v1405_v21 = vshll.u32 %v4519_v16, 16  ;;  %vm2501_vm6 = vcmask 126016  }
  0xef   :  { %670 = vst.msk [vmem:[#allocation2 + $0x20] sm:$0xf] %vm661_vm7, %v630_v34  ;;  %v1366_v56 = vsel %vm5061_vm2, %v1361_v44, %v1365_v45  ;;  %v4451_v30 = vld [vmem:[%s6815_s0 + $0x1c4] sm:$0x1]  ;;  %v4472_v16 = vld [vmem:[%s6815_s0 + $0x138] sm:$0xf] }
  0xf0   :  { %v881_v36 = vrot.slane %v879_v24, 4  ;;  %v884_v37 = vrot.slane %v882_v25, 5  ;;  %v856_v24 = vrot.slane %v854_v11, 5  ;;  %v1412_v25 = vrot.slane %v1410_v13, 4  ;;  %v4473_v11 = vld [vmem:[%s6815_s0 + $0x140] sm:$0xf] }
  0xf1   :  { %v924_v13 = vshll.u32 %v4460_v0, 16 }
  0xf2   :  { %1046 = vrot.lane.b32.xlu1 %v4469_v26, %s4923_s30  ;;  %1044 = vrot.lane.b32.xlu0 %v4468_v27, %s4923_s30  ;;  %v4486_v26 = vld [vmem:[%s6815_s0 + $0x170] sm:$0xf]  ;;  %v885_v42 = vor.u32 %v884_v37, %v881_v36  ;;  %v1407_v36 = vrot.slane %v1405_v21, 5  ;;  %v4517_v21 = vld [vmem:[%s6815_s0 + $0x144] sm:$0x1] }
  0xf3   :  { %1142 = vrot.lane.b32.xlu2 %v4484_v40, %s4924_s12  ;;  %v4471_v27 = vld [vmem:[%s6815_s0 + $0x130] sm:$0xf]  ;;  %v898_v40 = vrot.slane %v896_v32, 5 }
  0xf4   :  { %v616_v47 = vpop.permute.xlu1 %615  ;;  %v614_v48 = vpop.permute.xlu0 %613  ;;  %v886_v53 = vrot.slane %v885_v42, 4  ;;  %v4453_v42 = vld [vmem:[%s6815_s0 + $0x1cc] sm:$0x1] }
  0xf5   :  { %663 = vst.msk [vmem:[#allocation2 + $0x4] sm:$0xf] %vm661_vm7, %v616_v47  ;;  %v636_v60 = vpop.permute.xlu2 %635  ;;  %v1351_v47 = vrot.slane %v1349_v31, 5  ;;  %v4521_v31 = vld [vmem:[%s6815_s0 + $0x154] sm:$0x1] }
  0xf6   :  { %662 = vst.msk [vmem:[#allocation2] sm:$0xf] %vm661_vm7, %v614_v48  ;;  %v891_v63 = vsel %vm5061_vm2, %v886_v53, %v890_v54 }
  0xf7   :  { %673 = vst.msk [vmem:[#allocation2 + $0x2c] sm:$0xf] %vm661_vm7, %v636_v60  ;;  %v1352_v57 = vsel %vm5061_vm2, %v1347_v46, %v1351_v47  ;;  %v874_v47 = vshll.u32 %v4453_v42, 16 }
  0xfa   :  { %1463 = vrot.lane.b32.xlu1 %v1324_v52, %s4925_s22  ;;  %1144 = vrot.lane.b32.xlu0 %v4485_v55, %s4924_s12  ;;  %v899_v52 = vor.u32 %v898_v40, %v895_v38  ;;  %v1536_v55 = vld [vmem:[%s6816_s1 + $0x10] sm:$0x3]  ;;  %v860_v38 = vshll.u32 %v4451_v30, 16  ;;  %v1419_v40 = vshll.u32 %v4521_v31, 16  ;;  %v1391_v30 = vshll.u32 %v4517_v21, 16 }
  0xfb   :  { %1465 = vrot.lane.b32.xlu2 %v1338_v61, %s4925_s22  ;;  %v1590_v59 = vunpack.c.l.b16 %v1536_v55  ;;  %v4514_v55 = vld [vmem:[%s6815_s0 + $0x138] sm:$0xf] }
  0xfc   :  { %v622_v3 = vpop.permute.xlu1 %621  ;;  %v620_v4 = vpop.permute.xlu0 %619  ;;  %v900_v61 = vrot.slane %v899_v52, 4  ;;  %v1421_v52 = vrot.slane %v1419_v40, 5 }
  0xfd   :  { %666 = vst.msk [vmem:[#allocation2 + $0x10] sm:$0xf] %vm661_vm7, %v622_v3  ;;  %v642_v12 = vpop.permute.xlu2 %641  ;;  %v1593_v60 = vpack.c.b16 %v1590_v59, %v1590_v59 }
  0xfe   :  { %665 = vst.msk [vmem:[#allocation2 + $0xc] sm:$0xf] %vm661_vm7, %v620_v4 }
  0xff   :  { %676 = vst.msk [vmem:[#allocation2 + $0x38] sm:$0xf] %vm661_vm7, %v642_v12  ;;  %v1623_v1 = vsel %vm1621_vm9, %v1593_v60, 0  ;;  %v4743_v12 = vld [vmem:[%s6816_s1 + $0x8] sm:$0xff] }
 0x100   :  { %1630 = vmatpush.bf16.msra.mxu0 %v1623_v1  ;;  %4764 = vmatpush.bf16.msra.mxu3 %v1623_v1  ;;  %v4458_v1 = vld [vmem:[%s6815_s0 + $0x1e0] sm:$0xf] }
 0x102   :  { %952 = vrot.lane.b32.xlu1 %v849_v8, %s4922_s18  ;;  %950 = vrot.lane.b32.xlu0 %v835_v9, %s4922_s18  ;;  %v4474_v8 = vld [vmem:[%s6815_s0 + $0x148] sm:$0xf]  ;;  %v905_v9 = vsel %vm5061_vm2, %v900_v61, %v904_v62  ;;  %v1368_v61 = vshrl.u32 %v4514_v55, 16  ;;  %v1371_v62 = vshll.u32 %v4514_v55, 16 }
 0x103   :  { %1048 = vrot.lane.b32.xlu2 %v4470_v17, %s4923_s30  ;;  %v1398_v17 = vrot.slane %v1396_v6, 4 }
 0x104   :  { %v628_v22 = vpop.permute.xlu1 %627  ;;  %v626_v23 = vpop.permute.xlu0 %625  ;;  %1631 = vmatpush.bf16.msra.mxu0 %v4743_v12  ;;  %4765 = vmatpush.bf16.msra.mxu3 %v4743_v12  ;;  %v921_v12 = vshrl.u32 %v4460_v0, 16  ;;  %v4476_v0 = vld [vmem:[%s6815_s0 + $0x158] sm:$0xf] }
 0x105   :  { %669 = vst.msk [vmem:[#allocation2 + $0x1c] sm:$0xf] %vm661_vm7, %v628_v22  ;;  %v937_v34 = vpop.permute.xlu2 %936  ;;  %v1402_v20 = vor.u32 %v1401_v18, %v1398_v17  ;;  %v4742_v22 = vld [vmem:[%s6816_s1] sm:$0xff]  ;;  %v910_v17 = vshll.u32 %v4458_v1, 16 }
 0x106   :  { %668 = vst.msk [vmem:[#allocation2 + $0x18] sm:$0xf] %vm661_vm7, %v626_v23  ;;  %v853_v23 = vrot.slane %v851_v10, 4  ;;  %v1385_v10 = vshll.u32 %v4516_v5, 16 }
 0x107   :  { %984 = vst.msk [vmem:[#allocation2 + $0x4] sm:$0xf] %vm982_vm8, %v937_v34  ;;  %v4490_v34 = vld [vmem:[%s6815_s0 + $0x190] sm:$0xf]  ;;  %v1403_v35 = vrot.slane %v1402_v20, 4 }
 0x108   :  { %1632 = vmatpush.bf16.msra.mxu0 %v4742_v22  ;;  %4766 = vmatpush.bf16.msra.mxu3 %v4742_v22  ;;  %v857_v37 = vor.u32 %v856_v24, %v853_v23  ;;  %v1387_v23 = vrot.slane %v1385_v10, 5  ;;  %v923_v24 = vrot.slane %v921_v12, 4 }
 0x109   :  { %v1408_v45 = vsel %vm5061_vm2, %v1403_v35, %v1407_v36 }
 0x10a   :  { %1146 = vrot.lane.b32.xlu1 %v4486_v26, %s4924_s12  ;;  %1050 = vrot.lane.b32.xlu0 %v4471_v27, %s4923_s30  ;;  %v1415_v26 = vrot.slane %v1413_v14, 5  ;;  %v4452_v27 = vld [vmem:[%s6815_s0 + $0x1c8] sm:$0xf]  ;;  %v907_v14 = vshrl.u32 %v4458_v1, 16 }
 0x10b   :  { %1148 = vrot.lane.b32.xlu2 %v4487_v41, %s4924_s12  ;;  %v865_v32 = vshrl.u32 %v4452_v27, 16  ;;  %v868_v44 = vshll.u32 %v4452_v27, 16  ;;  %v912_v27 = vrot.slane %v910_v17, 5 }
 0x10c   :  { %v634_v48 = vpop.permute.xlu1 %633  ;;  %v632_v50 = vpop.permute.xlu0 %631  ;;  %v1416_v39 = vor.u32 %v1415_v26, %v1412_v25  ;;  %v926_v25 = vrot.slane %v924_v13, 5  ;;  %v909_v26 = vrot.slane %v907_v14, 4 }
 0x10d   :  { %672 = vst.msk [vmem:[#allocation2 + $0x28] sm:$0xf] %vm661_vm7, %v634_v48  ;;  %v1033_v58 = vpop.permute.xlu2 %1032  ;;  %v867_v43 = vrot.slane %v865_v32, 4  ;;  %v870_v46 = vrot.slane %v868_v44, 5  ;;  %v858_v48 = vrot.slane %v857_v37, 4 }
 0x10e   :  { %671 = vst.msk [vmem:[#allocation2 + $0x24] sm:$0xf] %vm661_vm7, %v632_v50  ;;  %v862_v50 = vrot.slane %v860_v38, 5  ;;  %v1417_v51 = vrot.slane %v1416_v39, 4  ;;  %v927_v36 = vor.u32 %v926_v25, %v923_v24  ;;  %v913_v38 = vor.u32 %v912_v27, %v909_v26 }
 0x110   :  { %v863_v59 = vsel %vm5061_vm2, %v858_v48, %v862_v50  ;;  %v1422_v60 = vsel %vm5061_vm2, %v1417_v51, %v1421_v52 }
 0x112   :  { %1469 = vrot.lane.b32.xlu1 %v1366_v56, %s4925_s22  ;;  %1467 = vrot.lane.b32.xlu0 %v1352_v57, %s4925_s22  ;;  %v871_v56 = vor.u32 %v870_v46, %v867_v43  ;;  %v4489_v43 = vld [vmem:[%s6815_s0 + $0x188] sm:$0xf] }
 0x113   :  { %958 = vrot.lane.b32.xlu2 %v891_v63, %s4922_s18 }
 0x114   :  { %v640_v3 = vpop.permute.xlu1 %639  ;;  %v638_v4 = vpop.permute.xlu0 %637  ;;  %v872_v57 = vrot.slane %v871_v56, 4 }
 0x115   :  { %675 = vst.msk [vmem:[#allocation2 + $0x34] sm:$0xf] %vm661_vm7, %v640_v3  ;;  %v5736_v15 = vpop.permute.xlu2 %1132  ;;  %v1370_v3 = vrot.slane %v1368_v61, 4 }
 0x116   :  { %674 = vst.msk [vmem:[#allocation2 + $0x30] sm:$0xf] %vm661_vm7, %v638_v4  ;;  %v1373_v4 = vrot.slane %v1371_v62, 5 }
 0x118   :  { %v1374_v18 = vor.u32 %v1373_v4, %v1370_v3 }
 0x11a   :  { %1056 = vrot.lane.b32.xlu1 %v4474_v8, %s4923_s30  ;;  %960 = vrot.lane.b32.xlu0 %v905_v9, %s4922_s18  ;;  %v4515_v8 = vld [vmem:[%s6815_s0 + $0x13c] sm:$0x1]  ;;  %v1382_v9 = vshrl.u32 %v4516_v5, 16  ;;  %v1375_v31 = vrot.slane %v1374_v18, 4 }
 0x11b   :  { %1058 = vrot.lane.b32.xlu2 %v4475_v19, %s4923_s30  ;;  %v1377_v19 = vshll.u32 %v4515_v8, 16  ;;  %v4492_v8 = vld [vmem:[%s6815_s0 + $0x1a0] sm:$0xf] }
 0x11c   :  { %v935_v28 = vpop.permute.xlu1 %934  ;;  %v644_v29 = vpop.permute.xlu0 %643  ;;  %v1384_v22 = vrot.slane %v1382_v9, 4  ;;  %v4477_v9 = vld [vmem:[%s6815_s0 + $0x160] sm:$0xf] }
 0x11d   :  { %983 = vst.msk [vmem:[#allocation2] sm:$0xf] %vm982_vm8, %v935_v28  ;;  %v1037_v41 = vpop.permute.xlu2 %1036  ;;  %v4488_v28 = vld [vmem:[%s6815_s0 + $0x180] sm:$0xf]  ;;  %v1379_v32 = vrot.slane %v1377_v19, 5 }
 0x11e   :  { %677 = vst.msk [vmem:[#allocation2 + $0x3c] sm:$0xf] %vm661_vm7, %v644_v29  ;;  %v1388_v29 = vor.u32 %v1387_v23, %v1384_v22  ;;  %vm2582_vm7 = vcmask 1042432  }
 0x11f   :  { %1081 = vst.msk [vmem:[#allocation2] sm:$0xf] %vm1080_vm10, %v1033_v58  ;;  %v876_v58 = vrot.slane %v874_v47, 5  ;;  %v1380_v42 = vsel %vm5061_vm2, %v1375_v31, %v1379_v32  ;;  %v914_v47 = vrot.slane %v913_v38, 4 }
 0x120   :  { %v1389_v40 = vrot.slane %v1388_v29, 4 }
 0x121   :  { %v877_v2 = vsel %vm5061_vm2, %v872_v57, %v876_v58 }
 0x122   :  { %1156 = vrot.lane.b32.xlu1 %v4491_v33, %s4924_s12  ;;  %1154 = vrot.lane.b32.xlu0 %v4490_v34, %s4924_s12  ;;  %v4459_v33 = vld [vmem:[%s6815_s0 + $0x1e4] sm:$0x1] }
 0x123   :  { %1475 = vrot.lane.b32.xlu2 %v1408_v45, %s4925_s22  ;;  %v916_v39 = vshll.u32 %v4459_v33, 16  ;;  %v928_v45 = vrot.slane %v927_v36, 4 }
 0x124   :  { %v941_v53 = vpop.permute.xlu1 %940  ;;  %v939_v54 = vpop.permute.xlu0 %938 }
 0x125   :  { %986 = vst.msk [vmem:[#allocation2 + $0xc] sm:$0xf] %vm982_vm8, %v941_v53  ;;  %v5786_v63 = vpop.permute.xlu2 %1136  ;;  %v918_v48 = vrot.slane %v916_v39, 5  ;;  %v4524_v53 = vld [vmem:[%s6815_s0 + $0x160] sm:$0xf] }
 0x126   :  { %985 = vst.msk [vmem:[#allocation2 + $0x8] sm:$0xf] %vm982_vm8, %v939_v54  ;;  %v4522_v54 = vld [vmem:[%s6815_s0 + $0x158] sm:$0xf]  ;;  %v1438_v58 = vshrl.u32 %v4524_v53, 16 }
 0x127   :  { %1083 = vst.msk [vmem:[#allocation2 + $0x8] sm:$0xf] %vm1080_vm10, %v1037_v41  ;;  %v1393_v41 = vrot.slane %v1391_v30, 5  ;;  %v919_v57 = vsel %vm5061_vm2, %v914_v47, %v918_v48  ;;  %v1427_v61 = vshll.u32 %v4522_v54, 16 }
 0x128   :  { %v1440_v1 = vrot.slane %v1438_v58, 4 }
 0x129   :  { %v1394_v50 = vsel %vm5061_vm2, %v1389_v40, %v1393_v41  ;;  %v1429_v4 = vrot.slane %v1427_v61, 5 }
 0x12a   :  { %954 = vrot.lane.b32.xlu1 %v863_v59, %s4922_s18  ;;  %1477 = vrot.lane.b32.xlu0 %v1422_v60, %s4925_s22  ;;  %v1441_v59 = vshll.u32 %v4524_v53, 16  ;;  %v1424_v60 = vshrl.u32 %v4522_v54, 16 }
 0x12b   :  { %956 = vrot.lane.b32.xlu2 %v877_v2, %s4922_s18 }
 0x12c   :  { %v1131_v6 = vpop.permute.xlu1 %1130  ;;  %v1035_v7 = vpop.permute.xlu0 %1034  ;;  %v1443_v2 = vrot.slane %v1441_v59, 5  ;;  %v1426_v3 = vrot.slane %v1424_v60, 4 }
 0x12d   :  { %1179 = vst.msk [vmem:[#allocation2] sm:$0xf] %vm1178_vm11, %v1131_v6  ;;  %v943_v20 = vpop.permute.xlu2 %942  ;;  %v4525_v6 = vld [vmem:[%s6815_s0 + $0x164] sm:$0x1] }
 0x12e   :  { %1082 = vst.msk [vmem:[#allocation2 + $0x4] sm:$0xf] %vm1080_vm10, %v1035_v7  ;;  %v4523_v7 = vld [vmem:[%s6815_s0 + $0x15c] sm:$0x1]  ;;  %v1444_v10 = vor.u32 %v1443_v2, %v1440_v1  ;;  %v1430_v12 = vor.u32 %v1429_v4, %v1426_v3  ;;  %v1771_v2 = vld [vmem:[#allocation3 + $0x8] sm:$0x1] }
 0x12f   :  { %1180 = vst.msk [vmem:[#allocation2 + $0x4] sm:$0xf] %vm1178_vm11, %v5736_v15  ;;  %v4461_v15 = vld [vmem:[%s6815_s0 + $0x1ec] sm:$0x1]  ;;  %v1433_v13 = vshll.u32 %v4523_v7, 16  ;;  %v1772_v3 = vsel %vm5934_vm0, 0, %v1771_v2 }
 0x130   :  { %987 = vst.msk [vmem:[#allocation2 + $0x10] sm:$0xf] %vm982_vm8, %v943_v20  ;;  %v930_v37 = vshll.u32 %v4461_v15, 16  ;;  %v1445_v17 = vrot.slane %v1444_v10, 4  ;;  %v1431_v19 = vrot.slane %v1430_v12, 4 }
 0x131   :  { %v1435_v20 = vrot.slane %v1433_v13, 5  ;;  %1773 = vst [vmem:[#allocation3 + $0x8] sm:$0x1] %v1772_v3  ;;  %v5956_v10 = vld [vmem:[%s6817_s2] ss:$0 sm:$0xff] }
 0x132   :  { %1054 = vrot.lane.b32.xlu1 %v4473_v11, %s4923_s30  ;;  %1052 = vrot.lane.b32.xlu0 %v4472_v16, %s4923_s30  ;;  %v932_v46 = vrot.slane %v930_v37, 5  ;;  %v1447_v11 = vshll.u32 %v4525_v6, 16  ;;  %v4493_v16 = vld [vmem:[%s6815_s0 + $0x1a8] sm:$0xf]  ;;  %v1774_v12 = vld [vmem:[#allocation3 + $0x10] sm:$0x1] }
 0x133   :  { %1150 = vrot.lane.b32.xlu2 %v4488_v28, %s4924_s12  ;;  %v1436_v25 = vsel %vm5061_vm2, %v1431_v19, %v1435_v20  ;;  %v1836_v13 = vld [vmem:[#allocation3 + $0x14] sm:$0x1]  ;;  %v4700_v1 = vld [vmem:[%s6815_s0 + $0xe8] sm:$0xf] }
 0x134   :  { %v1454_v34 = vpop.permute.xlu1 %1453  ;;  %v1452_v35 = vpop.permute.xlu0 %1451  ;;  %v933_v56 = vsel %vm5061_vm2, %v928_v45, %v932_v46  ;;  %v1449_v18 = vrot.slane %v1447_v11, 5  ;;  %v1837_v20 = vsel %vm5943_vm3, 0, %v1836_v13 }
 0x135   :  { %1501 = vst.msk [vmem:[#allocation2 + $0x4] sm:$0xf] %vm1499_vm12, %v1454_v34  ;;  %v1043_v44 = vpop.permute.xlu2 %1042 }
 0x136   :  { %1500 = vst.msk [vmem:[#allocation2] sm:$0xf] %vm1499_vm12, %v1452_v35  ;;  %v1450_v24 = vsel %vm5061_vm2, %v1445_v17, %v1449_v18  ;;  %v1775_v18 = vsel %vm5934_vm0, 0, %v1774_v12 }
 0x137   :  { %1776 = vst [vmem:[#allocation3 + $0x10] sm:$0x1] %v1775_v18 }
 0x138   :  { %1838 = vst [vmem:[#allocation3 + $0x14] sm:$0x1] %v1837_v20 }
 0x13a   :  { %1471 = vrot.lane.b32.xlu1 %v1380_v42, %s4925_s22  ;;  %1152 = vrot.lane.b32.xlu0 %v4489_v43, %s4924_s12 }
 0x13b   :  { %1473 = vrot.lane.b32.xlu2 %v1394_v50, %s4925_s22 }
 0x13c   :  { %v1135_v51 = vpop.permute.xlu1 %1134  ;;  %v1039_v52 = vpop.permute.xlu0 %1038 }
 0x13d   :  { %1181 = vst.msk [vmem:[#allocation2 + $0x8] sm:$0xf] %vm1178_vm11, %v1135_v51  ;;  %v4734_v55 = vld [vmem:[#allocation2] sm:$0xff]  ;;  %v1460_v62 = vpop.permute.xlu2 %1459 }
 0x13e   :  { %1084 = vst.msk [vmem:[#allocation2 + $0xc] sm:$0xf] %vm1080_vm10, %v1039_v52  ;;  %4566 = vmatmul.msk.bf16.vlgmr.msra.gmra.mxu0 %vm1596_vm13, %v4734_v55 }
 0x13f   :  { %1182 = vst.msk [vmem:[#allocation2 + $0xc] sm:$0xf] %vm1178_vm11, %v5786_v63 }
 0x142   :  { %964 = vrot.lane.b32.xlu1 %v933_v56, %s4922_s18  ;;  %962 = vrot.lane.b32.xlu0 %v919_v57, %s4922_s18 }
 0x143   :  { %1060 = vrot.lane.b32.xlu2 %v4476_v0, %s4923_s30 }
 0x144   :  { %v1458_v63 = vpop.permute.xlu1 %1457  ;;  %v1456_v5 = vpop.permute.xlu0 %1455 }
 0x145   :  { %1503 = vst.msk [vmem:[#allocation2 + $0xc] sm:$0xf] %vm1499_vm12, %v1458_v63  ;;  %v949_v14 = vpop.permute.xlu2 %948  ;;  %v1833_v63 = vld [vmem:[#allocation3 + $0xc] sm:$0x1] }
 0x146   :  { %1502 = vst.msk [vmem:[#allocation2 + $0x8] sm:$0xf] %vm1499_vm12, %v1456_v5  ;;  %v1834_v5 = vsel %vm5943_vm3, 0, %v1833_v63 }
 0x147   :  { %990 = vst.msk [vmem:[#allocation2 + $0x1c] sm:$0xf] %vm982_vm8, %v949_v14 }
 0x148   :  { %1835 = vst [vmem:[#allocation3 + $0xc] sm:$0x1] %v1834_v5 }
 0x14a   :  { %1158 = vrot.lane.b32.xlu1 %v4492_v8, %s4924_s12  ;;  %1062 = vrot.lane.b32.xlu0 %v4477_v9, %s4923_s30 }
 0x14b   :  { %1160 = vrot.lane.b32.xlu2 %v4493_v16, %s4924_s12 }
 0x14c   :  { %v1041_v21 = vpop.permute.xlu1 %1040  ;;  %v945_v22 = vpop.permute.xlu0 %944 }
 0x14d   :  { %1085 = vst.msk [vmem:[#allocation2 + $0x10] sm:$0xf] %vm1080_vm10, %v1041_v21  ;;  %v4735_v23 = vld [vmem:[#allocation2 + $0x8] sm:$0xff]  ;;  %v1143_v26 = vpop.permute.xlu2 %1142 }
 0x14e   :  { %988 = vst.msk [vmem:[#allocation2 + $0x14] sm:$0xf] %vm982_vm8, %v945_v22  ;;  %4567 = vmatmul.msk.bf16.gmra.mxu0 %vm1596_vm13, %v4735_v23  ;;  %v4926_v23 = vmov 0  }
 0x14f   :  { %1086 = vst.msk [vmem:[#allocation2 + $0x14] sm:$0xf] %vm1080_vm10, %v1043_v44 }
 0x150   :  { %1755 = vst.msk [vmem:[#allocation3] sm:$0xf] %vm1754_vm4, %v4926_v23 }
 0x151   :  { %1757 = vst.msk [vmem:[#allocation3 + $0x4] sm:$0x1] %vm1756_vm14, %v4926_v23 }
 0x152   :  { %1481 = vrot.lane.b32.xlu1 %v1450_v24, %s4925_s22  ;;  %1479 = vrot.lane.b32.xlu0 %v1436_v25, %s4925_s22  ;;  %v1777_v24 = vld [vmem:[#allocation3 + $0x18] sm:$0x1]  ;;  %v1839_v25 = vld [vmem:[#allocation3 + $0x1c] sm:$0x1]  ;;  %1758 = vst.msk [vmem:[#allocation3 + $0x50] sm:$0xf] %vm1754_vm4, %v4926_v23 }
 0x153   :  { %1759 = vst.msk [vmem:[#allocation3 + $0x54] sm:$0x1] %vm1756_vm14, %v4926_v23 }
 0x154   :  { %v1141_v15 = vpop.permute.xlu1 %1140  ;;  %v1139_v27 = vpop.permute.xlu0 %1138  ;;  %1761 = vst.msk [vmem:[#allocation3 + $0x48] sm:$0xf] %vm1754_vm4, %v4926_v23 }
 0x155   :  { %1184 = vst.msk [vmem:[#allocation2 + $0x14] sm:$0xf] %vm1178_vm11, %v1141_v15  ;;  %v1466_v28 = vpop.permute.xlu2 %1465 }
 0x156   :  { %1183 = vst.msk [vmem:[#allocation2 + $0x10] sm:$0xf] %vm1178_vm11, %v1139_v27  ;;  %v1778_v27 = vsel %vm5934_vm0, 0, %v1777_v24 }
 0x157   :  { %1504 = vst.msk [vmem:[#allocation2 + $0x10] sm:$0xf] %vm1499_vm12, %v1460_v62 }
 0x158   :  { %1779 = vst [vmem:[#allocation3 + $0x18] sm:$0x1] %v1778_v27 }
 0x159   :  { %1762 = vst.msk [vmem:[#allocation3 + $0x4c] sm:$0x1] %vm1756_vm14, %v4926_v23 }
 0x15a   :  { %1763 = vst.msk [vmem:[#allocation3 + $0x98] sm:$0xf] %vm1754_vm4, %v4926_v23 }
 0x15b   :  { %1764 = vst.msk [vmem:[#allocation3 + $0x9c] sm:$0x1] %vm1756_vm14, %v4926_v23  ;;  %vm3308_vm14 = vcmask 388416  }
 0x15c   :  { %v947_v29 = vpop.permute.xlu1 %946  ;;  %v1462_v30 = vpop.permute.xlu0 %1461 }
 0x15d   :  { %989 = vst.msk [vmem:[#allocation2 + $0x18] sm:$0xf] %vm982_vm8, %v947_v29  ;;  %v1049_v31 = vpop.permute.xlu2 %1048  ;;  %v1840_v29 = vsel %vm5943_vm3, 0, %v1839_v25 }
 0x15e   :  { %1505 = vst.msk [vmem:[#allocation2 + $0x14] sm:$0xf] %vm1499_vm12, %v1462_v30 }
 0x15f   :  { %1841 = vst [vmem:[#allocation3 + $0x1c] sm:$0x1] %v1840_v29  ;;  %v2078_v29 = vld [vmem:[#allocation3 + $0x14] sm:$0x1] }
 0x164   :  { %v1047_v32 = vpop.permute.xlu1 %1046  ;;  %v1045_v33 = vpop.permute.xlu0 %1044 }
 0x165   :  { %1088 = vst.msk [vmem:[#allocation2 + $0x1c] sm:$0xf] %vm1080_vm10, %v1047_v32  ;;  %v4736_v34 = vld [vmem:[#allocation2 + $0x10] sm:$0xff]  ;;  %v1149_v35 = vpop.permute.xlu2 %1148  ;;  %v1768_v32 = vld [vmem:[#allocation3] sm:$0x1] }
 0x166   :  { %1087 = vst.msk [vmem:[#allocation2 + $0x18] sm:$0xf] %vm1080_vm10, %v1045_v33  ;;  %4568 = vmatmul.msk.bf16.gmra.mxu0 %vm1596_vm13, %v4736_v34 }
 0x167   :  { %1185 = vst.msk [vmem:[#allocation2 + $0x18] sm:$0xf] %vm1178_vm11, %v1143_v26 }
 0x16c   :  { %v1464_v36 = vpop.permute.xlu1 %1463  ;;  %v1145_v37 = vpop.permute.xlu0 %1144 }
 0x16d   :  { %1506 = vst.msk [vmem:[#allocation2 + $0x18] sm:$0xf] %vm1499_vm12, %v1464_v36  ;;  %v959_v38 = vpop.permute.xlu2 %958  ;;  %v1830_v36 = vld [vmem:[#allocation3 + $0x4] sm:$0x1] }
 0x16e   :  { %1186 = vst.msk [vmem:[#allocation2 + $0x1c] sm:$0xf] %vm1178_vm11, %v1145_v37 }
 0x16f   :  { %1507 = vst.msk [vmem:[#allocation2 + $0x1c] sm:$0xf] %vm1499_vm12, %v1466_v28 }
 0x170   :  { %995 = vst.msk [vmem:[#allocation2 + $0x30] sm:$0xf] %vm982_vm8, %v959_v38  ;;  %v1780_v38 = vld [vmem:[#allocation3 + $0x20] sm:$0x1] }
 0x174   :  { %v953_v39 = vpop.permute.xlu1 %952  ;;  %v951_v40 = vpop.permute.xlu0 %950 }
 0x175   :  { %992 = vst.msk [vmem:[#allocation2 + $0x24] sm:$0xf] %vm982_vm8, %v953_v39  ;;  %v1059_v42 = vpop.permute.xlu2 %1058  ;;  %v1842_v39 = vld [vmem:[#allocation3 + $0x24] sm:$0x1] }
 0x176   :  { %991 = vst.msk [vmem:[#allocation2 + $0x20] sm:$0xf] %vm982_vm8, %v951_v40  ;;  %v4737_v41 = vld [vmem:[#allocation2 + $0x18] sm:$0xff]  ;;  %v1781_v40 = vsel %vm5934_vm0, 0, %v1780_v38 }
 0x177   :  { %1089 = vst.msk [vmem:[#allocation2 + $0x20] sm:$0xf] %vm1080_vm10, %v1049_v31  ;;  %4569 = vmatmul.msk.bf16.gmra.mxu0 %vm1596_vm13, %v4737_v41  ;;  %v1843_v41 = vsel %vm5943_vm3, 0, %v1842_v39 }
 0x178   :  { %1782 = vst [vmem:[#allocation3 + $0x20] sm:$0x1] %v1781_v40 }
 0x179   :  { %1844 = vst [vmem:[#allocation3 + $0x24] sm:$0x1] %v1843_v41 }
 0x17c   :  { %v1147_v43 = vpop.permute.xlu1 %1146  ;;  %v1051_v44 = vpop.permute.xlu0 %1050 }
 0x17d   :  { %1187 = vst.msk [vmem:[#allocation2 + $0x20] sm:$0xf] %vm1178_vm11, %v1147_v43  ;;  %v1476_v45 = vpop.permute.xlu2 %1475 }
 0x17e   :  { %1090 = vst.msk [vmem:[#allocation2 + $0x24] sm:$0xf] %vm1080_vm10, %v1051_v44 }
 0x17f   :  { %1188 = vst.msk [vmem:[#allocation2 + $0x24] sm:$0xf] %vm1178_vm11, %v1149_v35  ;;  %v1769_v35 = vsel %vm5934_vm0, 0, %v1768_v32 }
 0x180   :  { %1770 = vst [vmem:[#allocation3] sm:$0x1] %v1769_v35  ;;  %v1786_v35 = vld [vmem:[#allocation3 + $0x30] sm:$0x1] }
 0x181   :  { %v1787_v41 = vsel %vm5934_vm0, 0, %v1786_v35 }
 0x182   :  { %1788 = vst [vmem:[#allocation3 + $0x30] sm:$0x1] %v1787_v41 }
 0x184   :  { %v1470_v46 = vpop.permute.xlu1 %1469  ;;  %v1468_v47 = vpop.permute.xlu0 %1467 }
 0x185   :  { %1509 = vst.msk [vmem:[#allocation2 + $0x24] sm:$0xf] %vm1499_vm12, %v1470_v46  ;;  %v957_v48 = vpop.permute.xlu2 %956 }
 0x186   :  { %1508 = vst.msk [vmem:[#allocation2 + $0x20] sm:$0xf] %vm1499_vm12, %v1468_v47 }
 0x187   :  { %994 = vst.msk [vmem:[#allocation2 + $0x2c] sm:$0xf] %vm982_vm8, %v957_v48 }
 0x18c   :  { %v1057_v50 = vpop.permute.xlu1 %1056  ;;  %v961_v51 = vpop.permute.xlu0 %960 }
 0x18d   :  { %1093 = vst.msk [vmem:[#allocation2 + $0x30] sm:$0xf] %vm1080_vm10, %v1057_v50  ;;  %v4738_v52 = vld [vmem:[#allocation2 + $0x20] sm:$0xff]  ;;  %v1151_v57 = vpop.permute.xlu2 %1150 }
 0x18e   :  { %996 = vst.msk [vmem:[#allocation2 + $0x34] sm:$0xf] %vm982_vm8, %v961_v51  ;;  %4570 = vmatmul.msk.bf16.gmra.mxu0 %vm1596_vm13, %v4738_v52  ;;  %v2197_v52 = vld [vmem:[#allocation3] sm:$0xf] }
 0x18f   :  { %1094 = vst.msk [vmem:[#allocation2 + $0x34] sm:$0xf] %vm1080_vm10, %v1059_v42  ;;  %v1831_v42 = vsel %vm5943_vm3, 0, %v1830_v36  ;;  %v1848_v36 = vld [vmem:[#allocation3 + $0x34] sm:$0x1] }
 0x190   :  { %1832 = vst [vmem:[#allocation3 + $0x4] sm:$0x1] %v1831_v42 }
 0x194   :  { %v1157_v53 = vpop.permute.xlu1 %1156  ;;  %v1155_v54 = vpop.permute.xlu0 %1154 }
 0x195   :  { %1192 = vst.msk [vmem:[#allocation2 + $0x34] sm:$0xf] %vm1178_vm11, %v1157_v53  ;;  %v1474_v61 = vpop.permute.xlu2 %1473 }
 0x196   :  { %1191 = vst.msk [vmem:[#allocation2 + $0x30] sm:$0xf] %vm1178_vm11, %v1155_v54  ;;  %v2230_v54 = vshrl.u32 %v2197_v52, 16 }
 0x197   :  { %1512 = vst.msk [vmem:[#allocation2 + $0x30] sm:$0xf] %vm1499_vm12, %v1476_v45 }
 0x198   :  { %v2232_v2 = vrot.slane %v2230_v54, 4 }
 0x19c   :  { %v955_v55 = vpop.permute.xlu1 %954  ;;  %v1478_v56 = vpop.permute.xlu0 %1477 }
 0x19d   :  { %993 = vst.msk [vmem:[#allocation2 + $0x28] sm:$0xf] %vm982_vm8, %v955_v55  ;;  %v1061_v6 = vpop.permute.xlu2 %1060  ;;  %v2233_v55 = vshll.u32 %v2197_v52, 16 }
 0x19e   :  { %1513 = vst.msk [vmem:[#allocation2 + $0x34] sm:$0xf] %vm1499_vm12, %v1478_v56 }
 0x19f   :  { %v2235_v3 = vrot.slane %v2233_v55, 5 }
 0x1a1   :  { %v2236_v12 = vor.u32 %v2235_v3, %v2232_v2 }
 0x1a4   :  { %v1055_v58 = vpop.permute.xlu1 %1054  ;;  %v1053_v59 = vpop.permute.xlu0 %1052 }
 0x1a5   :  { %1092 = vst.msk [vmem:[#allocation2 + $0x2c] sm:$0xf] %vm1080_vm10, %v1055_v58  ;;  %v4740_v60 = vld [vmem:[#allocation2 + $0x30] sm:$0xff]  ;;  %v1161_v11 = vpop.permute.xlu2 %1160 }
 0x1a6   :  { %1091 = vst.msk [vmem:[#allocation2 + $0x28] sm:$0xf] %vm1080_vm10, %v1053_v59  ;;  %4572 = vmatmul.msk.bf16.vlgmr.msra.gmra.mxu3 %vm1596_vm13, %v4740_v60  ;;  %v1783_v59 = vld [vmem:[#allocation3 + $0x28] sm:$0x1]  ;;  %v1845_v60 = vld [vmem:[#allocation3 + $0x2c] sm:$0x1] }
 0x1a7   :  { %1189 = vst.msk [vmem:[#allocation2 + $0x28] sm:$0xf] %vm1178_vm11, %v1151_v57 }
 0x1ac   :  { %v1472_v62 = vpop.permute.xlu1 %1471  ;;  %v1153_v0 = vpop.permute.xlu0 %1152 }
 0x1ad   :  { %1510 = vst.msk [vmem:[#allocation2 + $0x28] sm:$0xf] %vm1499_vm12, %v1472_v62  ;;  %v1846_v62 = vsel %vm5943_vm3, 0, %v1845_v60 }
 0x1ae   :  { %1190 = vst.msk [vmem:[#allocation2 + $0x2c] sm:$0xf] %vm1178_vm11, %v1153_v0  ;;  %v2198_v0 = vld [vmem:[#allocation3 + $0x4] sm:$0x1] }
 0x1af   :  { %1511 = vst.msk [vmem:[#allocation2 + $0x2c] sm:$0xf] %vm1499_vm12, %v1474_v61  ;;  %v1784_v61 = vsel %vm5934_vm0, 0, %v1783_v59 }
 0x1b0   :  { %1785 = vst [vmem:[#allocation3 + $0x28] sm:$0x1] %v1784_v61 }
 0x1b1   :  { %1847 = vst [vmem:[#allocation3 + $0x2c] sm:$0x1] %v1846_v62 }
 0x1b4   :  { %v965_v7 = vpop.permute.xlu1 %964  ;;  %v963_v8 = vpop.permute.xlu0 %962 }
 0x1b5   :  { %998 = vst.msk [vmem:[#allocation2 + $0x3c] sm:$0xf] %vm982_vm8, %v965_v7  ;;  %v2239_v7 = vshll.u32 %v2198_v0, 16 }
 0x1b6   :  { %997 = vst.msk [vmem:[#allocation2 + $0x38] sm:$0xf] %vm982_vm8, %v963_v8  ;;  %v4739_v9 = vld [vmem:[#allocation2 + $0x28] sm:$0xff]  ;;  %vm2583_vm8 = vcmask 1046532  }
 0x1b7   :  { %1095 = vst.msk [vmem:[#allocation2 + $0x38] sm:$0xf] %vm1080_vm10, %v1061_v6  ;;  %4571 = vmatmul.msk.bf16.gmra.mxu0 %vm1596_vm13, %v4739_v9  ;;  %v2069_v9 = vld [vmem:[#allocation3 + $0x8] sm:$0xf]  ;;  %v2241_v18 = vrot.slane %v2239_v7, 5 }
 0x1bb   :  { %v1634_v17 = vpop.f32.mrf.mxu0 }
 0x1bc   :  { %v1159_v14 = vpop.permute.xlu1 %1158  ;;  %v1063_v16 = vpop.permute.xlu0 %1062  ;;  %v1635_v19 = vadd.f32 %v5956_v10, %v1634_v17 }
 0x1bd   :  { %1193 = vst.msk [vmem:[#allocation2 + $0x38] sm:$0xf] %vm1178_vm11, %v1159_v14 }
 0x1be   :  { %1096 = vst.msk [vmem:[#allocation2 + $0x3c] sm:$0xf] %vm1080_vm10, %v1063_v16  ;;  %v1674_v21 = vsub.f32 0.0, %v1635_v19  ;;  %vm6163_vm10 = vmor %vm2582_vm7, %vm2583_vm8 }
 0x1bf   :  { %1194 = vst.msk [vmem:[#allocation2 + $0x3c] sm:$0xf] %vm1178_vm11, %v1161_v11  ;;  %v2072_v11 = vld [vmem:[#allocation3 + $0xc] sm:$0x1]  ;;  %vm2697_vm11 = vcmask 191616  }
 0x1c0   :  { %v1690_v22 = vmul.f32 1.442695, %v1674_v21  ;;  %v2237_v21 = vrot.slane %v2236_v12, 4 }
 0x1c2   :  { %4789 = vpow2.f32 %v1690_v22  ;;  %v2242_v25 = vsel %vm5061_vm2, %v2237_v21, %v2241_v18  ;;  %v2090_v21 = vld [vmem:[#allocation3 + $0x24] sm:$0x1] }
 0x1c3   :  { %v1636_v28 = vpop.f32.mrf.mxu0  ;;  %2453 = vrot.lane.b32.xlu2 %v2242_v25, %s4919_s20 }
 0x1c4   :  { %v1482_v26 = vpop.permute.xlu1 %1481  ;;  %v1480_v15 = vpop.permute.xlu0 %1479  ;;  %v1637_v30 = vadd.f32 %v5956_v10, %v1636_v28  ;;  %v2075_v28 = vld [vmem:[#allocation3 + $0x10] sm:$0xf] }
 0x1c5   :  { %1515 = vst.msk [vmem:[#allocation2 + $0x3c] sm:$0xf] %vm1499_vm12, %v1482_v26 }
 0x1c6   :  { %1514 = vst.msk [vmem:[#allocation2 + $0x38] sm:$0xf] %vm1499_vm12, %v1480_v15  ;;  %v1675_v31 = vsub.f32 0.0, %v1637_v30  ;;  %vm2794_vm12 = vcmask 257216  }
 0x1c8   :  { %v4790_v33 = vpop.eup %4789  ;;  %v1692_v34 = vmul.f32 1.442695, %v1675_v31 }
 0x1c9   :  { %v1722_v37 = vadd.f32 1.0, %v4790_v33 }
 0x1ca   :  { %4791 = vpow2.f32 %v1692_v34 }
 0x1cb   :  { %4793 = vrcp.f32 %v1722_v37  ;;  %v1639_v43 = vpop.f32.mrf.mxu0 }
 0x1cc   :  { %v1640_v45 = vadd.f32 %v5956_v10, %v1639_v43 }
 0x1cd   :  { %v4741_v44 = vld [vmem:[#allocation2 + $0x38] sm:$0xff] }
 0x1ce   :  { %4573 = vmatmul.msk.bf16.gmra.mxu3 %vm1596_vm13, %v4741_v44  ;;  %v1676_v46 = vsub.f32 0.0, %v1640_v45  ;;  %v1849_v44 = vsel %vm5943_vm3, 0, %v1848_v36  ;;  %vm4058_vm13 = vcmask 1043456  }
 0x1cf   :  { %1850 = vst [vmem:[#allocation3 + $0x34] sm:$0x1] %v1849_v44 }
 0x1d0   :  { %v4792_v47 = vpop.eup %4791  ;;  %v1694_v48 = vmul.f32 1.442695, %v1676_v46 }
 0x1d1   :  { %v4794_v50 = vpop.eup %4793  ;;  %v1723_v51 = vadd.f32 1.0, %v4792_v47 }
 0x1d2   :  { %v1890_v53 = vpack.c.bf16 %v4794_v50, %v4794_v50  ;;  %4795 = vpow2.f32 %v1694_v48 }
 0x1d3   :  { %4797 = vrcp.f32 %v1723_v51  ;;  %v1641_v56 = vpop.f32.mrf.mxu0  ;;  %v2081_v51 = vld [vmem:[#allocation3 + $0x18] sm:$0xf] }
 0x1d4   :  { %v1907_v57 = vshrl.u32 %v1890_v53, 16  ;;  %v1642_v58 = vadd.f32 %v5956_v10, %v1641_v56  ;;  %v1910_v5 = vshll.u32 %v1890_v53, 16 }
 0x1d6   :  { %v1909_v63 = vrot.slane %v1907_v57, 7  ;;  %v1677_v6 = vsub.f32 0.0, %v1642_v58  ;;  %v2084_v58 = vld [vmem:[#allocation3 + $0x1c] sm:$0x1] }
 0x1d8   :  { %v4796_v13 = vpop.eup %4795  ;;  %v1912_v14 = vor.u32 %v1910_v5, %v1909_v63  ;;  %v1913_v16 = vrot.slane %v1909_v63, 4  ;;  %v1696_v17 = vmul.f32 1.442695, %v1677_v6 }
 0x1d9   :  { %v4798_v19 = vpop.eup %4797  ;;  %v1724_v20 = vadd.f32 1.0, %v4796_v13 }
 0x1da   :  { %v2070_v22 = vsel %vm5998_vm5, %v1912_v14, %v2069_v9  ;;  %v2073_v23 = vsel %vm5934_vm0, %v1913_v16, %v2072_v11  ;;  %v1891_v24 = vpack.c.bf16 %v4798_v19, %v4798_v19  ;;  %4799 = vpow2.f32 %v1696_v17  ;;  %v1789_v9 = vld [vmem:[#allocation3 + $0x38] sm:$0x1]  ;;  %v1851_v11 = vld [vmem:[#allocation3 + $0x3c] sm:$0x1] }
 0x1db   :  { %2071 = vst [vmem:[#allocation3 + $0x8] sm:$0xf] %v2070_v22  ;;  %4801 = vrcp.f32 %v1724_v20  ;;  %v1790_v13 = vsel %vm5934_vm0, 0, %v1789_v9  ;;  %v1852_v14 = vsel %vm5943_vm3, 0, %v1851_v11  ;;  %v2087_v20 = vld [vmem:[#allocation3 + $0x20] sm:$0xf] }
 0x1dc   :  { %2074 = vst [vmem:[#allocation3 + $0xc] sm:$0x1] %v2073_v23  ;;  %v1915_v26 = vshrl.u32 %v1891_v24, 16  ;;  %v1918_v27 = vshll.u32 %v1891_v24, 16 }
 0x1dd   :  { %1791 = vst [vmem:[#allocation3 + $0x38] sm:$0x1] %v1790_v13  ;;  %v1801_v13 = vld [vmem:[#allocation3 + $0x58] sm:$0x1] }
 0x1de   :  { %v1917_v15 = vrot.slane %v1915_v26, 7  ;;  %1853 = vst [vmem:[#allocation3 + $0x3c] sm:$0x1] %v1852_v14 }
 0x1e0   :  { %v4800_v30 = vpop.eup %4799  ;;  %v1920_v31 = vor.u32 %v1918_v27, %v1917_v15  ;;  %v1921_v32 = vrot.slane %v1917_v15, 4 }
 0x1e1   :  { %v4802_v33 = vpop.eup %4801  ;;  %v1725_v34 = vadd.f32 1.0, %v4800_v30 }
 0x1e2   :  { %v2076_v37 = vsel %vm5998_vm5, %v1920_v31, %v2075_v28  ;;  %v2079_v38 = vsel %vm5934_vm0, %v1921_v32, %v2078_v29  ;;  %v1892_v39 = vpack.c.bf16 %v4802_v33, %v4802_v33  ;;  %v2199_v42 = vld [vmem:[#allocation3 + $0x8] sm:$0xf] }
 0x1e3   :  { %v1644_v40 = vpop.f32.mrf.mxu0  ;;  %2077 = vst [vmem:[#allocation3 + $0x10] sm:$0xf] %v2076_v37  ;;  %4803 = vrcp.f32 %v1725_v34  ;;  %v2200_v45 = vld [vmem:[#allocation3 + $0xc] sm:$0x1]  ;;  %v2244_v46 = vshrl.u32 %v2199_v42, 16  ;;  %v2247_v48 = vshll.u32 %v2199_v42, 16 }
 0x1e4   :  { %v1645_v43 = vadd.f32 %v5956_v10, %v1644_v40  ;;  %2080 = vst [vmem:[#allocation3 + $0x14] sm:$0x1] %v2079_v38  ;;  %v1923_v47 = vshrl.u32 %v1892_v39, 16  ;;  %v2253_v50 = vshll.u32 %v2200_v45, 16  ;;  %v2166_v54 = vld [vmem:[#allocation3 + $0x8] sm:$0xf] }
 0x1e5   :  { %v2246_v53 = vrot.slane %v2244_v46, 4  ;;  %v1926_v56 = vshll.u32 %v1892_v39, 16  ;;  %v2249_v57 = vrot.slane %v2247_v48, 5  ;;  %2182 = vst.msk [vmem:[#allocation4 + $0x4] sm:$0xf] %vm1754_vm4, %v2166_v54 }
 0x1e6   :  { %v1678_v52 = vsub.f32 0.0, %v1645_v43  ;;  %v1925_v55 = vrot.slane %v1923_v47, 7  ;;  %v2255_v2 = vrot.slane %v2253_v50, 5  ;;  %v1792_v47 = vld [vmem:[#allocation3 + $0x40] sm:$0x1] }
 0x1e7   :  { %v2250_v62 = vor.u32 %v2249_v57, %v2246_v53  ;;  %v1854_v48 = vld [vmem:[#allocation3 + $0x44] sm:$0x1] }
 0x1e8   :  { %v1698_v59 = vmul.f32 1.442695, %v1678_v52  ;;  %v1928_v60 = vor.u32 %v1926_v56, %v1925_v55  ;;  %v1929_v61 = vrot.slane %v1925_v55, 4  ;;  %v1793_v52 = vsel %vm5934_vm0, 0, %v1792_v47 }
 0x1e9   :  { %v4804_v0 = vpop.eup %4803  ;;  %v2251_v7 = vrot.slane %v2250_v62, 4  ;;  %v1855_v53 = vsel %vm5943_vm3, 0, %v1854_v48  ;;  %1794 = vst [vmem:[#allocation3 + $0x40] sm:$0x1] %v1793_v52 }
 0x1ea   :  { %4805 = vpow2.f32 %v1698_v59  ;;  %v2082_v3 = vsel %vm5998_vm5, %v1928_v60, %v2081_v51  ;;  %v2085_v63 = vsel %vm5934_vm0, %v1929_v61, %v2084_v58  ;;  %v1893_v5 = vpack.c.bf16 %v4804_v0, %v4804_v0  ;;  %v2201_v16 = vld [vmem:[#allocation3 + $0x10] sm:$0xf]  ;;  %1856 = vst [vmem:[#allocation3 + $0x44] sm:$0x1] %v1855_v53 }
 0x1eb   :  { %v1646_v6 = vpop.f32.mrf.mxu0  ;;  %2083 = vst [vmem:[#allocation3 + $0x18] sm:$0xf] %v2082_v3  ;;  %v2256_v18 = vsel %vm5061_vm2, %v2251_v7, %v2255_v2  ;;  %v2258_v23 = vshrl.u32 %v2201_v16, 16  ;;  %v2202_v25 = vld [vmem:[#allocation3 + $0x14] sm:$0x1]  ;;  %v2261_v26 = vshll.u32 %v2201_v16, 16 }
 0x1ec   :  { %v1647_v12 = vadd.f32 %v5956_v10, %v1646_v6  ;;  %2086 = vst [vmem:[#allocation3 + $0x1c] sm:$0x1] %v2085_v63  ;;  %v1931_v17 = vshrl.u32 %v1893_v5, 16  ;;  %v1934_v19 = vshll.u32 %v1893_v5, 16  ;;  %2455 = vrot.lane.b32.xlu0 %v2256_v18, %s4919_s20  ;;  %v2267_v29 = vshll.u32 %v2202_v25, 16 }
 0x1ed   :  { %v2260_v28 = vrot.slane %v2258_v23, 4  ;;  %v2167_v30 = vld [vmem:[#allocation3 + $0x10] sm:$0xf]  ;;  %v2263_v34 = vrot.slane %v2261_v26, 5  ;;  %v2093_v7 = vld [vmem:[#allocation3 + $0x28] sm:$0xf] }
 0x1ee   :  { %v1679_v22 = vsub.f32 0.0, %v1647_v12  ;;  %v1933_v24 = vrot.slane %v1931_v17, 7  ;;  %2183 = vst.msk [vmem:[#allocation4 + $0x8] sm:$0xf] %vm1754_vm4, %v2167_v30  ;;  %v2269_v45 = vrot.slane %v2267_v29, 5  ;;  %v1802_v18 = vsel %vm5934_vm0, 0, %v1801_v13 }
 0x1ef   :  { %v2264_v37 = vor.u32 %v2263_v34, %v2260_v28  ;;  %1803 = vst [vmem:[#allocation3 + $0x58] sm:$0x1] %v1802_v18  ;;  %v2108_v13 = vld [vmem:[#allocation3 + $0x3c] sm:$0x1] }
 0x1f0   :  { %v4806_v15 = vpop.eup %4805  ;;  %v1700_v27 = vmul.f32 1.442695, %v1679_v22  ;;  %v1936_v31 = vor.u32 %v1934_v19, %v1933_v24  ;;  %v1937_v32 = vrot.slane %v1933_v24, 4  ;;  %v1863_v19 = vld [vmem:[#allocation3 + $0x5c] sm:$0x1] }
 0x1f1   :  { %v1726_v33 = vadd.f32 1.0, %v4806_v15  ;;  %v2265_v44 = vrot.slane %v2264_v37, 4  ;;  %v1864_v15 = vsel %vm5943_vm3, 0, %v1863_v19 }
 0x1f2   :  { %4807 = vpow2.f32 %v1700_v27  ;;  %v2088_v35 = vsel %vm5998_vm5, %v1936_v31, %v2087_v20  ;;  %v2091_v36 = vsel %vm5934_vm0, %v1937_v32, %v2090_v21  ;;  %v2203_v38 = vld [vmem:[#allocation3 + $0x18] sm:$0xf]  ;;  %v2096_v20 = vld [vmem:[#allocation3 + $0x2c] sm:$0x1]  ;;  %1865 = vst [vmem:[#allocation3 + $0x5c] sm:$0x1] %v1864_v15 }
 0x1f3   :  { %4809 = vrcp.f32 %v1726_v33  ;;  %2089 = vst [vmem:[#allocation3 + $0x20] sm:$0xf] %v2088_v35  ;;  %v2272_v40 = vshrl.u32 %v2203_v38, 16  ;;  %v2275_v41 = vshll.u32 %v2203_v38, 16  ;;  %v2168_v42 = vld [vmem:[#allocation3 + $0x18] sm:$0xf]  ;;  %v2270_v51 = vsel %vm5061_vm2, %v2265_v44, %v2269_v45 }
 0x1f4   :  { %v1649_v39 = vpop.f32.mrf.mxu0  ;;  %2092 = vst [vmem:[#allocation3 + $0x24] sm:$0x1] %v2091_v36  ;;  %v2204_v46 = vld [vmem:[#allocation3 + $0x1c] sm:$0x1]  ;;  %2457 = vrot.lane.b32.xlu1 %v2270_v51, %s4919_s20 }
 0x1f5   :  { %v1650_v43 = vadd.f32 %v5956_v10, %v1649_v39  ;;  %2184 = vst.msk [vmem:[#allocation4 + $0xc] sm:$0xf] %vm1754_vm4, %v2168_v42  ;;  %v2274_v55 = vrot.slane %v2272_v40, 4  ;;  %v2277_v56 = vrot.slane %v2275_v41, 5  ;;  %v2281_v57 = vshll.u32 %v2204_v46, 16 }
 0x1f6   :  { %v2099_v42 = vld [vmem:[#allocation3 + $0x30] sm:$0xf] }
 0x1f7   :  { %v1680_v50 = vsub.f32 0.0, %v1650_v43  ;;  %v2278_v62 = vor.u32 %v2277_v56, %v2274_v55  ;;  %v2283_v5 = vrot.slane %v2281_v57, 5  ;;  %v2102_v43 = vld [vmem:[#allocation3 + $0x34] sm:$0x1] }
 0x1f8   :  { %v4808_v54 = vpop.eup %4807 }
 0x1f9   :  { %v4810_v58 = vpop.eup %4809  ;;  %v1727_v59 = vadd.f32 1.0, %v4808_v54  ;;  %v1702_v60 = vmul.f32 1.442695, %v1680_v50  ;;  %v2279_v63 = vrot.slane %v2278_v62, 4 }
 0x1fa   :  { %v1894_v61 = vpack.c.bf16 %v4810_v58, %v4810_v58  ;;  %v2205_v0 = vld [vmem:[#allocation3 + $0x20] sm:$0xf] }
 0x1fb   :  { %4811 = vrcp.f32 %v1727_v59  ;;  %v2206_v6 = vld [vmem:[#allocation3 + $0x24] sm:$0x1]  ;;  %v2286_v11 = vshrl.u32 %v2205_v0, 16  ;;  %v2289_v12 = vshll.u32 %v2205_v0, 16  ;;  %v2284_v17 = vsel %vm5061_vm2, %v2279_v63, %v2283_v5  ;;  %v2169_v34 = vld [vmem:[#allocation3 + $0x20] sm:$0xf] }
 0x1fc   :  { %v1939_v2 = vshrl.u32 %v1894_v61, 16  ;;  %4813 = vpow2.f32 %v1702_v60  ;;  %v1651_v3 = vpop.f32.mrf.mxu0  ;;  %v1942_v16 = vshll.u32 %v1894_v61, 16  ;;  %2459 = vrot.lane.b32.xlu2 %v2284_v17, %s4919_s20  ;;  %v2295_v24 = vshll.u32 %v2206_v6, 16  ;;  %2185 = vst.msk [vmem:[#allocation4 + $0x10] sm:$0xf] %vm1754_vm4, %v2169_v34 }
 0x1fd   :  { %v1652_v9 = vadd.f32 %v5956_v10, %v1651_v3  ;;  %v2288_v22 = vrot.slane %v2286_v11, 4  ;;  %v2291_v23 = vrot.slane %v2289_v12, 5  ;;  %v1804_v58 = vld [vmem:[#allocation3 + $0x60] sm:$0x1]  ;;  %v1866_v59 = vld [vmem:[#allocation3 + $0x64] sm:$0x1] }
 0x1fe   :  { %v1941_v14 = vrot.slane %v1939_v2, 7  ;;  %v2297_v37 = vrot.slane %v2295_v24, 5  ;;  %v1805_v60 = vsel %vm5934_vm0, 0, %v1804_v58  ;;  %v1867_v61 = vsel %vm5943_vm3, 0, %v1866_v59  ;;  %v2105_v12 = vld [vmem:[#allocation3 + $0x38] sm:$0xf] }
 0x1ff   :  { %v1681_v21 = vsub.f32 0.0, %v1652_v9  ;;  %v2292_v29 = vor.u32 %v2291_v23, %v2288_v22  ;;  %1806 = vst [vmem:[#allocation3 + $0x60] sm:$0x1] %v1805_v60 }
 0x200   :  { %v1944_v25 = vor.u32 %v1942_v16, %v1941_v14  ;;  %v1945_v26 = vrot.slane %v1941_v14, 4  ;;  %1868 = vst [vmem:[#allocation3 + $0x64] sm:$0x1] %v1867_v61 }
 0x201   :  { %v4812_v27 = vpop.eup %4811  ;;  %v1704_v28 = vmul.f32 1.442695, %v1681_v21  ;;  %v2293_v36 = vrot.slane %v2292_v29, 4 }
 0x202   :  { %v4814_v30 = vpop.eup %4813  ;;  %v2094_v31 = vsel %vm5998_vm5, %v1944_v25, %v2093_v7  ;;  %v2097_v32 = vsel %vm5934_vm0, %v1945_v26, %v2096_v20  ;;  %v1895_v33 = vpack.c.bf16 %v4812_v27, %v4812_v27 }
 0x203   :  { %2095 = vst [vmem:[#allocation3 + $0x28] sm:$0xf] %v2094_v31  ;;  %v1728_v35 = vadd.f32 1.0, %v4814_v30  ;;  %4815 = vpow2.f32 %v1704_v28  ;;  %v2298_v39 = vsel %vm5061_vm2, %v2293_v36, %v2297_v37 }
 0x204   :  { %2098 = vst [vmem:[#allocation3 + $0x2c] sm:$0x1] %v2097_v32  ;;  %v1947_v38 = vshrl.u32 %v1895_v33, 16  ;;  %v1950_v41 = vshll.u32 %v1895_v33, 16  ;;  %2461 = vrot.lane.b32.xlu0 %v2298_v39, %s4919_s20  ;;  %v2111_v39 = vld [vmem:[#allocation3 + $0x40] sm:$0xf] }
 0x205   :  { %4817 = vrcp.f32 %v1728_v35 }
 0x206   :  { %v1949_v40 = vrot.slane %v1947_v38, 7 }
 0x208   :  { %v1952_v44 = vor.u32 %v1950_v41, %v1949_v40  ;;  %v1953_v45 = vrot.slane %v1949_v40, 4  ;;  %v2114_v40 = vld [vmem:[#allocation3 + $0x44] sm:$0x1] }
 0x209   :  { %v4816_v46 = vpop.eup %4815 }
 0x20a   :  { %v2100_v47 = vsel %vm5998_vm5, %v1952_v44, %v2099_v42  ;;  %v2103_v48 = vsel %vm5934_vm0, %v1953_v45, %v2102_v43  ;;  %v1729_v50 = vadd.f32 1.0, %v4816_v46  ;;  %v2207_v51 = vld [vmem:[#allocation3 + $0x28] sm:$0xf]  ;;  %v1813_v46 = vld [vmem:[#allocation3 + $0x78] sm:$0x1] }
 0x20b   :  { %v2170_v52 = vld [vmem:[#allocation3 + $0x28] sm:$0xf]  ;;  %v4818_v53 = vpop.eup %4817  ;;  %2101 = vst [vmem:[#allocation3 + $0x30] sm:$0xf] %v2100_v47  ;;  %v1654_v54 = vpop.f32.mrf.mxu0  ;;  %v2208_v55 = vld [vmem:[#allocation3 + $0x2c] sm:$0x1] }
 0x20c   :  { %2104 = vst [vmem:[#allocation3 + $0x34] sm:$0x1] %v2103_v48  ;;  %v1896_v56 = vpack.c.bf16 %v4818_v53, %v4818_v53  ;;  %4819 = vrcp.f32 %v1729_v50  ;;  %v1655_v57 = vadd.f32 %v5956_v10, %v1654_v54  ;;  %v2300_v62 = vshrl.u32 %v2207_v51, 16  ;;  %v1875_v47 = vld [vmem:[#allocation3 + $0x7c] sm:$0x1] }
 0x20d   :  { %v2303_v0 = vshll.u32 %v2207_v51, 16  ;;  %2186 = vst.msk [vmem:[#allocation4 + $0x14] sm:$0xf] %vm1754_vm4, %v2170_v52  ;;  %v2309_v63 = vshll.u32 %v2208_v55, 16  ;;  %v1814_v50 = vsel %vm5934_vm0, 0, %v1813_v46  ;;  %v1876_v51 = vsel %vm5943_vm3, 0, %v1875_v47 }
 0x20e   :  { %v1955_v2 = vshrl.u32 %v1896_v56, 16  ;;  %v1682_v3 = vsub.f32 0.0, %v1655_v57  ;;  %v2302_v5 = vrot.slane %v2300_v62, 4  ;;  %v1958_v9 = vshll.u32 %v1896_v56, 16  ;;  %1815 = vst [vmem:[#allocation3 + $0x78] sm:$0x1] %v1814_v50 }
 0x20f   :  { %v2305_v6 = vrot.slane %v2303_v0, 5  ;;  %v2311_v19 = vrot.slane %v2309_v63, 5  ;;  %1877 = vst [vmem:[#allocation3 + $0x7c] sm:$0x1] %v1876_v51 }
 0x210   :  { %v1957_v7 = vrot.slane %v1955_v2, 7  ;;  %v1706_v11 = vmul.f32 1.442695, %v1682_v3 }
 0x211   :  { %v2306_v14 = vor.u32 %v2305_v6, %v2302_v5 }
 0x212   :  { %v4820_v16 = vpop.eup %4819  ;;  %v1960_v17 = vor.u32 %v1958_v9, %v1957_v7  ;;  %v1961_v18 = vrot.slane %v1957_v7, 4  ;;  %4821 = vpow2.f32 %v1706_v11  ;;  %v2209_v20 = vld [vmem:[#allocation3 + $0x30] sm:$0xf] }
 0x213   :  { %v2171_v21 = vld [vmem:[#allocation3 + $0x30] sm:$0xf]  ;;  %v1897_v22 = vpack.c.bf16 %v4820_v16, %v4820_v16  ;;  %v1656_v23 = vpop.f32.mrf.mxu0  ;;  %v2307_v24 = vrot.slane %v2306_v14, 4  ;;  %v2210_v25 = vld [vmem:[#allocation3 + $0x34] sm:$0x1]  ;;  %v2314_v26 = vshrl.u32 %v2209_v20, 16 }
 0x214   :  { %v2317_v15 = vshll.u32 %v2209_v20, 16  ;;  %v2106_v27 = vsel %vm5998_vm5, %v1960_v17, %v2105_v12  ;;  %v2109_v28 = vsel %vm5934_vm0, %v1961_v18, %v2108_v13  ;;  %v1657_v29 = vadd.f32 %v5956_v10, %v1656_v23  ;;  %2187 = vst.msk [vmem:[#allocation4 + $0x18] sm:$0xf] %vm1754_vm4, %v2171_v21  ;;  %v2117_v16 = vld [vmem:[#allocation3 + $0x58] sm:$0xf] }
 0x215   :  { %2107 = vst [vmem:[#allocation3 + $0x38] sm:$0xf] %v2106_v27  ;;  %v1963_v30 = vshrl.u32 %v1897_v22, 16  ;;  %v2312_v31 = vsel %vm5061_vm2, %v2307_v24, %v2311_v19  ;;  %v2316_v33 = vrot.slane %v2314_v26, 4  ;;  %v2323_v34 = vshll.u32 %v2210_v25, 16 }
 0x216   :  { %2110 = vst [vmem:[#allocation3 + $0x3c] sm:$0x1] %v2109_v28  ;;  %v1683_v32 = vsub.f32 0.0, %v1657_v29  ;;  %2463 = vrot.lane.b32.xlu1 %v2312_v31, %s4919_s20  ;;  %v1966_v36 = vshll.u32 %v1897_v22, 16  ;;  %v2319_v37 = vrot.slane %v2317_v15, 5 }
 0x217   :  { %v1965_v35 = vrot.slane %v1963_v30, 7  ;;  %v2325_v48 = vrot.slane %v2323_v34, 5  ;;  %v2120_v17 = vld [vmem:[#allocation3 + $0x5c] sm:$0x1]  ;;  %v1816_v26 = vld [vmem:[#allocation3 + $0x80] sm:$0x1] }
 0x218   :  { %v4822_v38 = vpop.eup %4821  ;;  %v1708_v41 = vmul.f32 1.442695, %v1683_v32  ;;  %v2320_v45 = vor.u32 %v2319_v37, %v2316_v33  ;;  %v1878_v15 = vld [vmem:[#allocation3 + $0x84] sm:$0x1]  ;;  %v1817_v27 = vsel %vm5934_vm0, 0, %v1816_v26 }
 0x219   :  { %v1968_v42 = vor.u32 %v1966_v36, %v1965_v35  ;;  %v1969_v43 = vrot.slane %v1965_v35, 4  ;;  %v1730_v44 = vadd.f32 1.0, %v4822_v38  ;;  %v1879_v28 = vsel %vm5943_vm3, 0, %v1878_v15  ;;  %v2123_v32 = vld [vmem:[#allocation3 + $0x60] sm:$0xf] }
 0x21a   :  { %4823 = vpow2.f32 %v1708_v41  ;;  %v2321_v54 = vrot.slane %v2320_v45, 4  ;;  %v2126_v33 = vld [vmem:[#allocation3 + $0x64] sm:$0x1]  ;;  %1818 = vst [vmem:[#allocation3 + $0x80] sm:$0x1] %v1817_v27 }
 0x21b   :  { %v2112_v52 = vsel %vm5998_vm5, %v1968_v42, %v2111_v39  ;;  %v2115_v53 = vsel %vm5934_vm0, %v1969_v43, %v2114_v40  ;;  %4825 = vrcp.f32 %v1730_v44  ;;  %v1798_v34 = vld [vmem:[#allocation3 + $0x50] sm:$0x1]  ;;  %1880 = vst [vmem:[#allocation3 + $0x84] sm:$0x1] %v1879_v28  ;;  %v1807_v38 = vld [vmem:[#allocation3 + $0x68] sm:$0x1] }
 0x21c   :  { %2113 = vst [vmem:[#allocation3 + $0x40] sm:$0xf] %v2112_v52  ;;  %v2211_v55 = vld [vmem:[#allocation3 + $0x38] sm:$0xf]  ;;  %v2326_v56 = vsel %vm5061_vm2, %v2321_v54, %v2325_v48  ;;  %v1799_v37 = vsel %vm5934_vm0, 0, %v1798_v34  ;;  %v1808_v42 = vsel %vm5934_vm0, 0, %v1807_v38 }
 0x21d   :  { %2116 = vst [vmem:[#allocation3 + $0x44] sm:$0x1] %v2115_v53  ;;  %v2212_v57 = vld [vmem:[#allocation3 + $0x3c] sm:$0x1]  ;;  %v2328_v58 = vshrl.u32 %v2211_v55, 16  ;;  %v2331_v59 = vshll.u32 %v2211_v55, 16  ;;  %2465 = vrot.lane.b32.xlu2 %v2326_v56, %s4919_s20 }
 0x21e   :  { %v2337_v62 = vshll.u32 %v2212_v57, 16  ;;  %v2172_v0 = vld [vmem:[#allocation3 + $0x38] sm:$0xf]  ;;  %v1869_v39 = vld [vmem:[#allocation3 + $0x6c] sm:$0x1] }
 0x21f   :  { %v2330_v60 = vrot.slane %v2328_v58, 4  ;;  %v2333_v61 = vrot.slane %v2331_v59, 5  ;;  %2188 = vst.msk [vmem:[#allocation4 + $0x1c] sm:$0xf] %vm1754_vm4, %v2172_v0  ;;  %v1860_v43 = vld [vmem:[#allocation3 + $0x54] sm:$0x1] }
 0x220   :  { %v4824_v2 = vpop.eup %4823  ;;  %v2339_v9 = vrot.slane %v2337_v62, 5  ;;  %1800 = vst [vmem:[#allocation3 + $0x50] sm:$0x1] %v1799_v37  ;;  %v1870_v45 = vsel %vm5943_vm3, 0, %v1869_v39  ;;  %v1861_v50 = vsel %vm5943_vm3, 0, %v1860_v43 }
 0x221   :  { %v4826_v3 = vpop.eup %4825  ;;  %v1731_v63 = vadd.f32 1.0, %v4824_v2  ;;  %v2334_v5 = vor.u32 %v2333_v61, %v2330_v60  ;;  %1809 = vst [vmem:[#allocation3 + $0x68] sm:$0x1] %v1808_v42  ;;  %v1810_v54 = vld [vmem:[#allocation3 + $0x70] sm:$0x1] }
 0x222   :  { %v1898_v6 = vpack.c.bf16 %v4826_v3, %v4826_v3  ;;  %1871 = vst [vmem:[#allocation3 + $0x6c] sm:$0x1] %v1870_v45  ;;  %v1872_v55 = vld [vmem:[#allocation3 + $0x74] sm:$0x1]  ;;  %v1811_v58 = vsel %vm5934_vm0, 0, %v1810_v54 }
 0x223   :  { %4827 = vrcp.f32 %v1731_v63  ;;  %v2335_v7 = vrot.slane %v2334_v5, 4  ;;  %v1873_v59 = vsel %vm5943_vm3, 0, %v1872_v55  ;;  %1862 = vst [vmem:[#allocation3 + $0x54] sm:$0x1] %v1861_v50 }
 0x224   :  { %v1971_v11 = vshrl.u32 %v1898_v6, 16  ;;  %v1974_v14 = vshll.u32 %v1898_v6, 16  ;;  %1812 = vst [vmem:[#allocation3 + $0x70] sm:$0x1] %v1811_v58 }
 0x225   :  { %v2340_v12 = vsel %vm5061_vm2, %v2335_v7, %v2339_v9  ;;  %1874 = vst [vmem:[#allocation3 + $0x74] sm:$0x1] %v1873_v59 }
 0x226   :  { %v1973_v13 = vrot.slane %v1971_v11, 7  ;;  %2467 = vrot.lane.b32.xlu0 %v2340_v12, %s4919_s20  ;;  %v2165_v11 = vld [vmem:[#allocation3] sm:$0xf] }
 0x227   :  { %v2213_v62 = vld [vmem:[#allocation3 + $0x50] sm:$0xf]  ;;  %2181 = vst.msk [vmem:[#allocation4] sm:$0xf] %vm1754_vm4, %v2165_v11 }
 0x228   :  { %v1976_v18 = vor.u32 %v1974_v14, %v1973_v13  ;;  %v1977_v19 = vrot.slane %v1973_v13, 4  ;;  %v2342_v0 = vshrl.u32 %v2213_v62, 16  ;;  %v2345_v2 = vshll.u32 %v2213_v62, 16  ;;  %v2454_v14 = vpop.permute.xlu2 %2453 }
 0x229   :  { %v4828_v20 = vpop.eup %4827  ;;  %v1664_v21 = vpop.f32.mrf.mxu3  ;;  %2502 = vst.msk [vmem:[#allocation4] sm:$0xf] %vm2501_vm6, %v2454_v14  ;;  %v2132_v58 = vld [vmem:[#allocation3 + $0x6c] sm:$0x1] }
 0x22a   :  { %v2118_v22 = vsel %vm5998_vm5, %v1976_v18, %v2117_v16  ;;  %v2121_v23 = vsel %vm5934_vm0, %v1977_v19, %v2120_v17  ;;  %v1899_v24 = vpack.c.bf16 %v4828_v20, %v4828_v20  ;;  %v1665_v25 = vadd.f32 %v5956_v10, %v1664_v21  ;;  %v2214_v12 = vld [vmem:[#allocation3 + $0x54] sm:$0x1] }
 0x22b   :  { %2119 = vst [vmem:[#allocation3 + $0x58] sm:$0xf] %v2118_v22  ;;  %v2344_v63 = vrot.slane %v2342_v0, 4  ;;  %v2347_v5 = vrot.slane %v2345_v2, 5  ;;  %v2351_v16 = vshll.u32 %v2214_v12, 16 }
 0x22c   :  { %2122 = vst [vmem:[#allocation3 + $0x5c] sm:$0x1] %v2121_v23  ;;  %v1979_v29 = vshrl.u32 %v1899_v24, 16  ;;  %v1686_v30 = vsub.f32 0.0, %v1665_v25  ;;  %v1982_v31 = vshll.u32 %v1899_v24, 16 }
 0x22d   :  { %v2348_v7 = vor.u32 %v2347_v5, %v2344_v63  ;;  %v2353_v22 = vrot.slane %v2351_v16, 5  ;;  %v1881_v25 = vld [vmem:[#allocation3 + $0x8c] sm:$0x1]  ;;  %v1822_v5 = vld [vmem:[#allocation3 + $0x90] sm:$0x1] }
 0x22e   :  { %v1981_v35 = vrot.slane %v1979_v29, 7  ;;  %v1714_v36 = vmul.f32 1.442695, %v1686_v30  ;;  %v1882_v28 = vsel %vm5943_vm3, 0, %v1881_v25  ;;  %v1823_v12 = vsel %vm5934_vm0, 0, %v1822_v5 }
 0x22f   :  { %v2349_v20 = vrot.slane %v2348_v7, 4  ;;  %1883 = vst [vmem:[#allocation3 + $0x8c] sm:$0x1] %v1882_v28  ;;  %v2135_v25 = vld [vmem:[#allocation3 + $0x70] sm:$0xf] }
 0x230   :  { %v1984_v40 = vor.u32 %v1982_v31, %v1981_v35  ;;  %v1985_v41 = vrot.slane %v1981_v35, 4  ;;  %4829 = vpow2.f32 %v1714_v36  ;;  %1824 = vst [vmem:[#allocation3 + $0x90] sm:$0x1] %v1823_v12 }
 0x231   :  { %v1666_v44 = vpop.f32.mrf.mxu3  ;;  %v2354_v29 = vsel %vm5061_vm2, %v2349_v20, %v2353_v22 }
 0x232   :  { %v2124_v46 = vsel %vm5998_vm5, %v1984_v40, %v2123_v32  ;;  %v2127_v47 = vsel %vm5934_vm0, %v1985_v41, %v2126_v33  ;;  %v1667_v48 = vadd.f32 %v5956_v10, %v1666_v44  ;;  %2469 = vrot.lane.b32.xlu1 %v2354_v29, %s4919_s20  ;;  %v2141_v32 = vld [vmem:[#allocation3 + $0x78] sm:$0xf]  ;;  %v2144_v33 = vld [vmem:[#allocation3 + $0x7c] sm:$0x1] }
 0x233   :  { %2125 = vst [vmem:[#allocation3 + $0x60] sm:$0xf] %v2124_v46 }
 0x234   :  { %2128 = vst [vmem:[#allocation3 + $0x64] sm:$0x1] %v2127_v47  ;;  %v1687_v51 = vsub.f32 0.0, %v1667_v48  ;;  %v1659_v52 = vpop.f32.mrf.mxu0  ;;  %v2147_v47 = vld [vmem:[#allocation3 + $0x80] sm:$0xf] }
 0x235   :  { %v1660_v53 = vadd.f32 %v5956_v10, %v1659_v52  ;;  %v2150_v48 = vld [vmem:[#allocation3 + $0x84] sm:$0x1] }
 0x236   :  { %v4830_v56 = vpop.eup %4829  ;;  %v1716_v57 = vmul.f32 1.442695, %v1687_v51 }
 0x237   :  { %v1734_v60 = vadd.f32 1.0, %v4830_v56  ;;  %v1684_v61 = vsub.f32 0.0, %v1660_v53 }
 0x238   :  { %4831 = vpow2.f32 %v1716_v57  ;;  %v2129_v57 = vld [vmem:[#allocation3 + $0x68] sm:$0xf] }
 0x239   :  { %4833 = vrcp.f32 %v1734_v60  ;;  %v1710_v3 = vmul.f32 1.442695, %v1684_v61 }
 0x23b   :  { %4835 = vpow2.f32 %v1710_v3  ;;  %v4917_v3 = vld [vmem:[%s6817_s2] ss:$0 sm:$0xff]  ;;  %s4927_s2 = smov 40  }
 0x23c   :  { %v1661_v6 = vpop.f32.mrf.mxu0 }
 0x23d   :  { %v1662_v9 = vadd.f32 %v5956_v10, %v1661_v6  ;;  %v1819_v10 = vld [vmem:[#allocation3 + $0x88] sm:$0x1]  ;;  %v1884_v6 = vld [vmem:[#allocation3 + $0x94] sm:$0x1] }
 0x23e   :  { %v4832_v13 = vpop.eup %4831  ;;  %v1820_v27 = vsel %vm5934_vm0, 0, %v1819_v10  ;;  %v1885_v16 = vsel %vm5943_vm3, 0, %v1884_v6  ;;  %v2217_v10 = vld [vmem:[#allocation3 + $0x60] sm:$0xf] }
 0x23f   :  { %v4834_v17 = vpop.eup %4833  ;;  %v1735_v18 = vadd.f32 1.0, %v4832_v13  ;;  %v1685_v19 = vsub.f32 0.0, %v1662_v9  ;;  %1821 = vst [vmem:[#allocation3 + $0x88] sm:$0x1] %v1820_v27 }
 0x240   :  { %v1902_v21 = vpack.c.bf16 %v4834_v17, %v4834_v17  ;;  %1886 = vst [vmem:[#allocation3 + $0x94] sm:$0x1] %v1885_v16 }
 0x241   :  { %v4836_v23 = vpop.eup %4835  ;;  %4837 = vrcp.f32 %v1735_v18  ;;  %v1712_v24 = vmul.f32 1.442695, %v1685_v19 }
 0x242   :  { %v2003_v26 = vshrl.u32 %v1902_v21, 16  ;;  %v1732_v15 = vadd.f32 1.0, %v4836_v23  ;;  %v2006_v31 = vshll.u32 %v1902_v21, 16 }
 0x243   :  { %4839 = vpow2.f32 %v1712_v24 }
 0x244   :  { %v2005_v30 = vrot.slane %v2003_v26, 7  ;;  %4841 = vrcp.f32 %v1732_v15  ;;  %v2138_v26 = vld [vmem:[#allocation3 + $0x74] sm:$0x1] }
 0x246   :  { %v2008_v34 = vor.u32 %v2006_v31, %v2005_v30  ;;  %v2009_v35 = vrot.slane %v2005_v30, 4 }
 0x247   :  { %v4838_v36 = vpop.eup %4837 }
 0x248   :  { %v2142_v37 = vsel %vm5998_vm5, %v2008_v34, %v2141_v32  ;;  %v2145_v38 = vsel %vm5934_vm0, %v2009_v35, %v2144_v33  ;;  %v1903_v39 = vpack.c.bf16 %v4838_v36, %v4838_v36 }
 0x249   :  { %v4840_v40 = vpop.eup %4839  ;;  %2143 = vst [vmem:[#allocation3 + $0x78] sm:$0xf] %v2142_v37 }
 0x24a   :  { %v4842_v41 = vpop.eup %4841  ;;  %2146 = vst [vmem:[#allocation3 + $0x7c] sm:$0x1] %v2145_v38  ;;  %v2011_v42 = vshrl.u32 %v1903_v39, 16  ;;  %v1733_v43 = vadd.f32 1.0, %v4840_v40  ;;  %v2014_v46 = vshll.u32 %v1903_v39, 16 }
 0x24b   :  { %v1900_v44 = vpack.c.bf16 %v4842_v41, %v4842_v41 }
 0x24c   :  { %v2013_v45 = vrot.slane %v2011_v42, 7  ;;  %4843 = vrcp.f32 %v1733_v43  ;;  %v2518_v43 = vld [vmem:[#allocation3] sm:$0xe] }
 0x24d   :  { %v1987_v50 = vshrl.u32 %v1900_v44, 16  ;;  %v1990_v54 = vshll.u32 %v1900_v44, 16  ;;  %v2519_v44 = vld [vmem:[#allocation3 + $0x4] sm:$0x1] }
 0x24e   :  { %v2016_v51 = vor.u32 %v2014_v46, %v2013_v45  ;;  %v2017_v52 = vrot.slane %v2013_v45, 4 }
 0x24f   :  { %v1989_v53 = vrot.slane %v1987_v50, 7 }
 0x250   :  { %v2148_v55 = vsel %vm5998_vm5, %v2016_v51, %v2147_v47  ;;  %v2151_v56 = vsel %vm5934_vm0, %v2017_v52, %v2150_v48  ;;  %v2223_v59 = vld [vmem:[#allocation3 + $0x78] sm:$0xf]  ;;  %v2370_v47 = vshrl.u32 %v2217_v10, 16  ;;  %v2373_v48 = vshll.u32 %v2217_v10, 16 }
 0x251   :  { %2149 = vst [vmem:[#allocation3 + $0x80] sm:$0xf] %v2148_v55  ;;  %v1992_v60 = vor.u32 %v1990_v54, %v1989_v53  ;;  %v1993_v61 = vrot.slane %v1989_v53, 4  ;;  %v1669_v62 = vpop.f32.mrf.mxu3  ;;  %v2412_v0 = vshrl.u32 %v2223_v59, 16  ;;  %v2224_v13 = vld [vmem:[#allocation3 + $0x7c] sm:$0x1] }
 0x252   :  { %v4844_v2 = vpop.eup %4843  ;;  %2152 = vst [vmem:[#allocation3 + $0x84] sm:$0x1] %v2151_v56  ;;  %v1670_v63 = vadd.f32 %v4917_v3, %v1669_v62  ;;  %v2415_v18 = vshll.u32 %v2223_v59, 16  ;;  %v2421_v22 = vshll.u32 %v2224_v13, 16  ;;  %v4574_v53 = vrot.slane %v2518_v43, 9 }
 0x253   :  { %v2130_v7 = vsel %vm5998_vm5, %v1992_v60, %v2129_v57  ;;  %v2133_v9 = vsel %vm5934_vm0, %v1993_v61, %v2132_v58  ;;  %v1901_v11 = vpack.c.bf16 %v4844_v2, %v4844_v2  ;;  %v2414_v17 = vrot.slane %v2412_v0, 4  ;;  %v2520_v2 = vld [vmem:[#allocation3 + $0x8] sm:$0xe] }
 0x254   :  { %2131 = vst [vmem:[#allocation3 + $0x68] sm:$0xf] %v2130_v7  ;;  %v1688_v14 = vsub.f32 0.0, %v1670_v63  ;;  %v2417_v21 = vrot.slane %v2415_v18, 5  ;;  %v2423_v37 = vrot.slane %v2421_v22, 5  ;;  %v2587_v54 = vrot.slane %v2519_v44, 5 }
 0x255   :  { %2134 = vst [vmem:[#allocation3 + $0x6c] sm:$0x1] %v2133_v9  ;;  %v1995_v19 = vshrl.u32 %v1901_v11, 16  ;;  %v1998_v24 = vshll.u32 %v1901_v11, 16  ;;  %v2372_v59 = vrot.slane %v2370_v47, 4  ;;  %v2375_v60 = vrot.slane %v2373_v48, 5 }
 0x256   :  { %v1718_v20 = vmul.f32 1.442695, %v1688_v14  ;;  %v2418_v15 = vor.u32 %v2417_v21, %v2414_v17  ;;  %v2460_v30 = vpop.permute.xlu2 %2459  ;;  %v2588_v0 = vsel %vm6163_vm10, %v4574_v53, %v2587_v54  ;;  %v2218_v63 = vld [vmem:[#allocation3 + $0x64] sm:$0x1]  ;;  %v4575_v6 = vrot.slane %v2520_v2, 9 }
 0x257   :  { %v1997_v23 = vrot.slane %v1995_v19, 7  ;;  %2505 = vst.msk [vmem:[#allocation4 + $0xc] sm:$0xf] %vm2501_vm6, %v2460_v30  ;;  %v2376_v5 = vor.u32 %v2375_v60, %v2372_v59  ;;  %v2379_v11 = vshll.u32 %v2218_v63, 16  ;;  %v2526_v18 = vld [vmem:[#allocation3 + $0x20] sm:$0xe] }
 0x258   :  { %4845 = vpow2.f32 %v1718_v20  ;;  %v2225_v27 = vld [vmem:[#allocation3 + $0x80] sm:$0xf]  ;;  %v2419_v36 = vrot.slane %v2418_v15, 4  ;;  %v2527_v20 = vld [vmem:[#allocation3 + $0x24] sm:$0x1] }
 0x259   :  { %v2000_v28 = vor.u32 %v1998_v24, %v1997_v23  ;;  %v2001_v29 = vrot.slane %v1997_v23, 4  ;;  %v1671_v31 = vpop.f32.mrf.mxu3  ;;  %v2226_v32 = vld [vmem:[#allocation3 + $0x84] sm:$0x1]  ;;  %v2426_v33 = vshrl.u32 %v2225_v27, 16  ;;  %v2429_v34 = vshll.u32 %v2225_v27, 16 }
 0x25a   :  { %v1672_v35 = vadd.f32 %v4917_v3, %v1671_v31  ;;  %v2435_v38 = vshll.u32 %v2226_v32, 16  ;;  %v2424_v46 = vsel %vm5061_vm2, %v2419_v36, %v2423_v37  ;;  %v2521_v3 = vld [vmem:[#allocation3 + $0xc] sm:$0x1]  ;;  %v2377_v17 = vrot.slane %v2376_v5, 4  ;;  %v2525_v30 = vld [vmem:[#allocation3 + $0x1c] sm:$0x1] }
 0x25b   :  { %v2136_v39 = vsel %vm5998_vm5, %v2000_v28, %v2135_v25  ;;  %v2139_v40 = vsel %vm5934_vm0, %v2001_v29, %v2138_v26  ;;  %v2428_v41 = vrot.slane %v2426_v33, 4  ;;  %v2431_v42 = vrot.slane %v2429_v34, 5  ;;  %2479 = vrot.lane.b32.xlu0 %v2424_v46, %s4919_s20  ;;  %v2219_v12 = vld [vmem:[#allocation3 + $0x68] sm:$0xf]  ;;  %v2524_v26 = vld [vmem:[#allocation3 + $0x18] sm:$0xe] }
 0x25c   :  { %2137 = vst [vmem:[#allocation3 + $0x70] sm:$0xf] %v2136_v39  ;;  %v1689_v45 = vsub.f32 0.0, %v1672_v35  ;;  %v2437_v57 = vrot.slane %v2435_v38, 5  ;;  %v2591_v7 = vrot.slane %v2521_v3, 5  ;;  %v2384_v21 = vshrl.u32 %v2219_v12, 16 }
 0x25d   :  { %2140 = vst [vmem:[#allocation3 + $0x74] sm:$0x1] %v2139_v40  ;;  %v2432_v50 = vor.u32 %v2431_v42, %v2428_v41  ;;  %v2387_v22 = vshll.u32 %v2219_v12, 16  ;;  %v2381_v10 = vrot.slane %v2379_v11, 5  ;;  %v4578_v25 = vrot.slane %v2526_v18, 9 }
 0x25e   :  { %v4846_v51 = vpop.eup %4845  ;;  %v1720_v52 = vmul.f32 1.442695, %v1689_v45  ;;  %v2456_v58 = vpop.permute.xlu0 %2455  ;;  %v2592_v19 = vsel %vm6163_vm10, %v4575_v6, %v2591_v7  ;;  %v2603_v29 = vrot.slane %v2527_v20, 5  ;;  %v2153_v31 = vld [vmem:[#allocation3 + $0x88] sm:$0xf]  ;;  %v2386_v33 = vrot.slane %v2384_v21, 4 }
 0x25f   :  { %v1736_v55 = vadd.f32 1.0, %v4846_v51  ;;  %v2433_v56 = vrot.slane %v2432_v50, 4  ;;  %2503 = vst.msk [vmem:[#allocation4 + $0x4] sm:$0xf] %vm2501_vm6, %v2456_v58  ;;  %v2382_v28 = vsel %vm5061_vm2, %v2377_v17, %v2381_v10  ;;  %v2156_v32 = vld [vmem:[#allocation3 + $0x8c] sm:$0x1] }
 0x260   :  { %4847 = vpow2.f32 %v1720_v52  ;;  %v2389_v34 = vrot.slane %v2387_v22, 5  ;;  %v4577_v38 = vrot.slane %v2524_v26, 9  ;;  %v2599_v42 = vrot.slane %v2525_v30, 5  ;;  %v2220_v43 = vld [vmem:[#allocation3 + $0x6c] sm:$0x1] }
 0x261   :  { %4849 = vrcp.f32 %v1736_v55  ;;  %v2438_v61 = vsel %vm5061_vm2, %v2433_v56, %v2437_v57  ;;  %v2604_v44 = vsel %vm6163_vm10, %v4578_v25, %v2603_v29  ;;  %v2393_v47 = vshll.u32 %v2220_v43, 16  ;;  %v2530_v48 = vld [vmem:[#allocation3 + $0x30] sm:$0xe]  ;;  %v2175_v50 = vld [vmem:[#allocation3 + $0x60] sm:$0xf] }
 0x262   :  { %2481 = vrot.lane.b32.xlu1 %v2438_v61, %s4919_s20  ;;  %v2390_v45 = vor.u32 %v2389_v34, %v2386_v33  ;;  %v2600_v53 = vsel %vm6163_vm10, %v4577_v38, %v2599_v42  ;;  %v2531_v54 = vld [vmem:[#allocation3 + $0x34] sm:$0x1]  ;;  %2191 = vst.msk [vmem:[#allocation4 + $0x28] sm:$0xf] %vm1754_vm4, %v2175_v50  ;;  %v2159_v55 = vld [vmem:[#allocation3 + $0x90] sm:$0xf] }
 0x263   :  { %2649 = vrot.lane.b32.xlu0 %v2588_v0, %s4921_s15  ;;  %v2162_v56 = vld [vmem:[#allocation3 + $0x94] sm:$0x1]  ;;  %v2395_v60 = vrot.slane %v2393_v47, 5  ;;  %v2532_v61 = vld [vmem:[#allocation3 + $0x38] sm:$0xe]  ;;  %v4580_v63 = vrot.slane %v2530_v48, 9 }
 0x264   :  { %v2391_v57 = vrot.slane %v2390_v45, 4  ;;  %v2611_v5 = vrot.slane %v2531_v54, 5  ;;  %v2533_v7 = vld [vmem:[#allocation3 + $0x3c] sm:$0x1]  ;;  %v4581_v8 = vrot.slane %v2532_v61, 9 }
 0x265   :  { %v2536_v21 = vld [vmem:[#allocation3 + $0x58] sm:$0xe]  ;;  %v2522_v29 = vld [vmem:[#allocation3 + $0x10] sm:$0xe]  ;;  %v2523_v33 = vld [vmem:[#allocation3 + $0x14] sm:$0x1] }
 0x266   :  { %v4848_v9 = vpop.eup %4847  ;;  %v2458_v24 = vpop.permute.xlu1 %2457  ;;  %v2396_v11 = vsel %vm5061_vm2, %v2391_v57, %v2395_v60  ;;  %v2612_v20 = vsel %vm6163_vm10, %v4580_v63, %v2611_v5  ;;  %v2174_v22 = vld [vmem:[#allocation3 + $0x58] sm:$0xf]  ;;  %v2538_v34 = vld [vmem:[#allocation3 + $0x60] sm:$0xe]  ;;  %v2811_v42 = vld [vmem:[#allocation3 + $0x8] sm:$0xf] }
 0x267   :  { %v4850_v13 = vpop.eup %4849  ;;  %v1737_v14 = vadd.f32 1.0, %v4848_v9  ;;  %2504 = vst.msk [vmem:[#allocation4 + $0x8] sm:$0xf] %vm2501_vm6, %v2458_v24  ;;  %v2537_v24 = vld [vmem:[#allocation3 + $0x5c] sm:$0x1] }
 0x268   :  { %v1904_v16 = vpack.c.bf16 %v4850_v13, %v4850_v13  ;;  %v2215_v10 = vld [vmem:[#allocation3 + $0x58] sm:$0xf]  ;;  %2190 = vst.msk [vmem:[#allocation4 + $0x24] sm:$0xf] %vm1754_vm4, %v2174_v22  ;;  %v2543_v45 = vld [vmem:[#allocation3 + $0x74] sm:$0x1] }
 0x269   :  { %4851 = vrcp.f32 %v1737_v14  ;;  %v2178_v25 = vld [vmem:[#allocation3 + $0x78] sm:$0xf]  ;;  %v2356_v30 = vshrl.u32 %v2215_v10, 16  ;;  %v2635_v50 = vrot.slane %v2543_v45, 5  ;;  %v2812_v5 = vld [vmem:[#allocation3 + $0xc] sm:$0x1] }
 0x26a   :  { %v2019_v23 = vshrl.u32 %v1904_v16, 16  ;;  %2651 = vrot.lane.b32.xlu1 %v2592_v19, %s4921_s15  ;;  %v2022_v27 = vshll.u32 %v1904_v16, 16  ;;  %v2615_v19 = vrot.slane %v2533_v7, 5  ;;  %2194 = vst.msk [vmem:[#allocation4 + $0x34] sm:$0xf] %vm1754_vm4, %v2178_v25 }
 0x26b   :  { %2473 = vrot.lane.b32.xlu0 %v2382_v28, %s4919_s20  ;;  %v2623_v28 = vrot.slane %v2537_v24, 5  ;;  %v2544_v57 = vld [vmem:[#allocation3 + $0x78] sm:$0xe]  ;;  %v3423_v22 = vld [vmem:[#allocation3 + $0x10] sm:$0xf] }
 0x26c   :  { %v2021_v15 = vrot.slane %v2019_v23, 7  ;;  %v2221_v24 = vld [vmem:[#allocation3 + $0x70] sm:$0xf] }
 0x26d   :  { %v3134_v25 = vld [vmem:[#allocation3 + $0x10] sm:$0xe] }
 0x26e   :  { %v2024_v35 = vor.u32 %v2022_v27, %v2021_v15  ;;  %v2025_v36 = vrot.slane %v2021_v15, 4  ;;  %v4583_v27 = vrot.slane %v2536_v21, 9  ;;  %v3133_v21 = vld [vmem:[#allocation3 + $0xc] sm:$0x1] }
 0x26f   :  { %v4852_v37 = vpop.eup %4851 }
 0x270   :  { %v2154_v39 = vsel %vm5998_vm5, %v2024_v35, %v2153_v31  ;;  %v2157_v40 = vsel %vm5934_vm0, %v2025_v36, %v2156_v32  ;;  %v1905_v41 = vpack.c.bf16 %v4852_v37, %v4852_v37  ;;  %v2616_v32 = vsel %vm6163_vm10, %v4581_v8, %v2615_v19  ;;  %v2539_v36 = vld [vmem:[#allocation3 + $0x64] sm:$0x1]  ;;  %v2529_v8 = vld [vmem:[#allocation3 + $0x2c] sm:$0x1] }
 0x271   :  { %2155 = vst [vmem:[#allocation3 + $0x88] sm:$0xf] %v2154_v39  ;;  %v2359_v35 = vshll.u32 %v2215_v10, 16  ;;  %v4576_v37 = vrot.slane %v2522_v29, 9  ;;  %v2624_v38 = vsel %vm6163_vm10, %v4583_v27, %v2623_v28  ;;  %v2595_v39 = vrot.slane %v2523_v33, 5 }
 0x272   :  { %2158 = vst [vmem:[#allocation3 + $0x8c] sm:$0x1] %v2157_v40  ;;  %v2027_v46 = vshrl.u32 %v1905_v41, 16  ;;  %2657 = vrot.lane.b32.xlu1 %v2604_v44, %s4921_s15  ;;  %v2030_v52 = vshll.u32 %v1905_v41, 16  ;;  %v4584_v40 = vrot.slane %v2538_v34, 9  ;;  %v2358_v41 = vrot.slane %v2356_v30, 4 }
 0x273   :  { %2655 = vrot.lane.b32.xlu0 %v2600_v53, %s4921_s15  ;;  %v2627_v43 = vrot.slane %v2539_v36, 5  ;;  %v2542_v44 = vld [vmem:[#allocation3 + $0x70] sm:$0xe]  ;;  %v2847_v53 = vshll.u32 %v2811_v42, 16  ;;  %v2596_v54 = vsel %vm6163_vm10, %v4576_v37, %v2595_v39  ;;  %v3198_v28 = vrot.slane %v3133_v21, 5 }
 0x274   :  { %v2029_v51 = vrot.slane %v2027_v46, 7  ;;  %v2361_v46 = vrot.slane %v2359_v35, 5  ;;  %v4586_v48 = vrot.slane %v2542_v44, 9  ;;  %v2534_v29 = vld [vmem:[#allocation3 + $0x50] sm:$0xe]  ;;  %v2398_v33 = vshrl.u32 %v2221_v24, 16 }
 0x275   :  { %v2535_v30 = vld [vmem:[#allocation3 + $0x54] sm:$0x1]  ;;  %v2401_v34 = vshll.u32 %v2221_v24, 16  ;;  %v3459_v35 = vshll.u32 %v3423_v22, 16  ;;  %v4582_v36 = vrot.slane %v2534_v29, 9  ;;  %v4591_v39 = vrot.slane %v3134_v25, 9 }
 0x276   :  { %v2032_v58 = vor.u32 %v2030_v52, %v2029_v51  ;;  %v2033_v59 = vrot.slane %v2029_v51, 4  ;;  %v2462_v9 = vpop.permute.xlu0 %2461  ;;  %v2216_v51 = vld [vmem:[#allocation3 + $0x5c] sm:$0x1]  ;;  %v2844_v52 = vshrl.u32 %v2811_v42, 16  ;;  %v2636_v60 = vsel %vm6163_vm10, %v4586_v48, %v2635_v50  ;;  %v2173_v21 = vld [vmem:[#allocation3 + $0x50] sm:$0xf] }
 0x277   :  { %v2466_v3 = vpop.permute.xlu2 %2465  ;;  %2506 = vst.msk [vmem:[#allocation4 + $0x10] sm:$0xf] %vm2501_vm6, %v2462_v9  ;;  %v2619_v37 = vrot.slane %v2535_v30, 5  ;;  %v2403_v42 = vrot.slane %v2401_v34, 5  ;;  %v3461_v44 = vrot.slane %v3459_v35, 5 }
 0x278   :  { %v2160_v0 = vsel %vm5998_vm5, %v2032_v58, %v2159_v55  ;;  %v2163_v2 = vsel %vm5934_vm0, %v2033_v59, %v2162_v56  ;;  %v2227_v6 = vld [vmem:[#allocation3 + $0x88] sm:$0xf]  ;;  %2508 = vst.msk [vmem:[#allocation4 + $0x18] sm:$0xf] %vm2501_vm6, %v2466_v3  ;;  %v2628_v55 = vsel %vm6163_vm10, %v4584_v40, %v2627_v43  ;;  %v2362_v56 = vor.u32 %v2361_v46, %v2358_v41  ;;  %v2545_v58 = vld [vmem:[#allocation3 + $0x7c] sm:$0x1] }
 0x279   :  { %2161 = vst [vmem:[#allocation3 + $0x90] sm:$0xf] %v2160_v0  ;;  %v2228_v12 = vld [vmem:[#allocation3 + $0x8c] sm:$0x1]  ;;  %v2440_v13 = vshrl.u32 %v2227_v6, 16  ;;  %v2443_v14 = vshll.u32 %v2227_v6, 16  ;;  %v2620_v45 = vsel %vm6163_vm10, %v4582_v36, %v2619_v37 }
 0x27a   :  { %2164 = vst [vmem:[#allocation3 + $0x94] sm:$0x1] %v2163_v2  ;;  %2475 = vrot.lane.b32.xlu1 %v2396_v11, %s4919_s20  ;;  %v2449_v18 = vshll.u32 %v2228_v12, 16  ;;  %v2365_v59 = vshll.u32 %v2216_v51, 16  ;;  %v2846_v61 = vrot.slane %v2844_v52, 4  ;;  %v2849_v0 = vrot.slane %v2847_v53, 5 }
 0x27b   :  { %v2442_v16 = vrot.slane %v2440_v13, 4  ;;  %v2445_v17 = vrot.slane %v2443_v14, 5  ;;  %2661 = vrot.lane.b32.xlu0 %v2612_v20, %s4921_s15  ;;  %v2363_v2 = vrot.slane %v2362_v56, 4  ;;  %v4587_v3 = vrot.slane %v2544_v57, 9  ;;  %v2179_v13 = vld [vmem:[#allocation3 + $0x80] sm:$0xf] }
 0x27c   :  { %v2451_v15 = vrot.slane %v2449_v18, 5  ;;  %v2639_v63 = vrot.slane %v2545_v58, 5  ;;  %v2367_v6 = vrot.slane %v2365_v59, 5  ;;  %v2850_v7 = vor.u32 %v2849_v0, %v2846_v61  ;;  %v2528_v14 = vld [vmem:[#allocation3 + $0x28] sm:$0xe] }
 0x27d   :  { %v2446_v23 = vor.u32 %v2445_v17, %v2442_v16  ;;  %v2853_v12 = vshll.u32 %v2812_v5, 16  ;;  %2195 = vst.msk [vmem:[#allocation4 + $0x38] sm:$0xf] %vm1754_vm4, %v2179_v13  ;;  %v2715_v16 = vld [vmem:[#allocation3 + $0x10] sm:$0xf]  ;;  %v4579_v19 = vrot.slane %v2528_v14, 9 }
 0x27e   :  { %v2368_v9 = vsel %vm5061_vm2, %v2363_v2, %v2367_v6  ;;  %v2640_v11 = vsel %vm6163_vm10, %v4587_v3, %v2639_v63  ;;  %v2851_v17 = vrot.slane %v2850_v7, 4  ;;  %v3132_v18 = vld [vmem:[#allocation3 + $0x8] sm:$0xe]  ;;  %v2607_v20 = vrot.slane %v2529_v8, 5  ;;  %v2222_v46 = vld [vmem:[#allocation3 + $0x74] sm:$0x1] }
 0x27f   :  { %v2447_v26 = vrot.slane %v2446_v23, 4  ;;  %v2855_v23 = vrot.slane %v2853_v12, 5  ;;  %v4590_v10 = vrot.slane %v3132_v18, 9  ;;  %v2400_v41 = vrot.slane %v2398_v33, 4  ;;  %v3745_v56 = vld [vmem:[#allocation3 + $0x14] sm:$0x1] }
 0x280   :  { %v2407_v52 = vshll.u32 %v2222_v46, 16  ;;  %v2815_v59 = vld [vmem:[#allocation3 + $0x18] sm:$0xf]  ;;  %v3810_v3 = vrot.slane %v3745_v56, 5  ;;  %v2540_v12 = vld [vmem:[#allocation3 + $0x68] sm:$0xe] }
 0x281   :  { %v2452_v31 = vsel %vm5061_vm2, %v2447_v26, %v2451_v15  ;;  %v3135_v26 = vld [vmem:[#allocation3 + $0x14] sm:$0x1]  ;;  %v2856_v27 = vsel %vm5061_vm2, %v2851_v17, %v2855_v23  ;;  %v2404_v50 = vor.u32 %v2403_v42, %v2400_v41  ;;  %v2872_v63 = vshrl.u32 %v2815_v59, 16  ;;  %v2541_v13 = vld [vmem:[#allocation3 + $0x6c] sm:$0x1] }
 0x282   :  { %2483 = vrot.lane.b32.xlu2 %v2452_v31, %s4919_s20  ;;  %2663 = vrot.lane.b32.xlu1 %v2616_v32, %s4921_s15  ;;  %v3456_v31 = vshrl.u32 %v3423_v22, 16  ;;  %v2608_v32 = vsel %vm6163_vm10, %v4579_v19, %v2607_v20  ;;  %v3202_v40 = vrot.slane %v3135_v26, 5  ;;  %v2409_v61 = vrot.slane %v2407_v52, 5  ;;  %v2177_v22 = vld [vmem:[#allocation3 + $0x70] sm:$0xf] }
 0x283   :  { %2667 = vrot.lane.b32.xlu0 %v2624_v38, %s4921_s15  ;;  %v3199_v38 = vsel %vm6163_vm10, %v4590_v10, %v3198_v28  ;;  %v2405_v57 = vrot.slane %v2404_v50, 4  ;;  %v2875_v5 = vshll.u32 %v2815_v59, 16  ;;  %v2874_v17 = vrot.slane %v2872_v63, 4  ;;  %v2813_v23 = vld [vmem:[#allocation3 + $0x10] sm:$0xf] }
 0x284   :  { %v3458_v43 = vrot.slane %v3456_v31, 4  ;;  %v3203_v48 = vsel %vm6163_vm10, %v4591_v39, %v3202_v40  ;;  %v4585_v19 = vrot.slane %v2540_v12, 9  ;;  %v2631_v20 = vrot.slane %v2541_v13, 5  ;;  %2189 = vst.msk [vmem:[#allocation4 + $0x20] sm:$0xf] %vm1754_vm4, %v2173_v21 }
 0x285   :  { %v2410_v6 = vsel %vm5061_vm2, %v2405_v57, %v2409_v61  ;;  %v2877_v18 = vrot.slane %v2875_v5, 5  ;;  %2193 = vst.msk [vmem:[#allocation4 + $0x30] sm:$0xf] %vm1754_vm4, %v2177_v22  ;;  %v2816_v10 = vld [vmem:[#allocation3 + $0x1c] sm:$0x1]  ;;  %vm3920_vm5 = vcmask 585216  }
 0x286   :  { %v3462_v51 = vor.u32 %v3461_v44, %v3458_v43  ;;  %v2632_v25 = vsel %vm6163_vm10, %v4585_v19, %v2631_v20  ;;  %v2180_v28 = vld [vmem:[#allocation3 + $0x88] sm:$0xf]  ;;  %v2881_v29 = vshll.u32 %v2816_v10, 16  ;;  %v2717_v30 = vld [vmem:[#allocation3 + $0x20] sm:$0xf] }
 0x287   :  { %v2878_v26 = vor.u32 %v2877_v18, %v2874_v17  ;;  %2196 = vst.msk [vmem:[#allocation4 + $0x3c] sm:$0xf] %vm1754_vm4, %v2180_v28  ;;  %v3136_v31 = vld [vmem:[#allocation3 + $0x18] sm:$0xe]  ;;  %v3137_v33 = vld [vmem:[#allocation3 + $0x1c] sm:$0x1] }
 0x288   :  { %v2464_v47 = vpop.permute.xlu1 %2463  ;;  %v3463_v58 = vrot.slane %v3462_v51, 4  ;;  %v3427_v36 = vld [vmem:[#allocation3 + $0x20] sm:$0xf]  ;;  %v2714_v39 = vld [vmem:[#allocation3 + $0x8] sm:$0xf]  ;;  %v4592_v40 = vrot.slane %v3136_v31, 9 }
 0x289   :  { %2507 = vst.msk [vmem:[#allocation4 + $0x14] sm:$0xf] %vm2501_vm6, %v2464_v47  ;;  %v3424_v47 = vld [vmem:[#allocation3 + $0x14] sm:$0x1]  ;;  %v3206_v41 = vrot.slane %v3137_v33, 5 }
 0x28a   :  { %2653 = vrot.lane.b32.xlu2 %v2596_v54, %s4921_s15  ;;  %2669 = vrot.lane.b32.xlu1 %v2628_v55, %s4921_s15  ;;  %v3465_v53 = vshll.u32 %v3424_v47, 16  ;;  %v3327_v54 = vld [vmem:[#allocation3 + $0x18] sm:$0xf]  ;;  %v3744_v55 = vld [vmem:[#allocation3 + $0x10] sm:$0xe]  ;;  %v3484_v47 = vshrl.u32 %v3427_v36, 16 }
 0x28b   :  { %2673 = vrot.lane.b32.xlu0 %v2636_v60, %s4921_s15  ;;  %v2176_v60 = vld [vmem:[#allocation3 + $0x68] sm:$0xf]  ;;  %v4606_v2 = vrot.slane %v3744_v55, 9  ;;  %v2814_v42 = vld [vmem:[#allocation3 + $0x14] sm:$0x1]  ;;  %v3207_v51 = vsel %vm6163_vm10, %v4592_v40, %v3206_v41 }
 0x28c   :  { %2192 = vst.msk [vmem:[#allocation4 + $0x2c] sm:$0xf] %vm1754_vm4, %v2176_v60  ;;  %v3467_v0 = vrot.slane %v3465_v53, 5  ;;  %v3139_v46 = vld [vmem:[#allocation3 + $0x24] sm:$0x1]  ;;  %v2867_v50 = vshll.u32 %v2814_v42, 16 }
 0x28d   :  { %v3811_v14 = vsel %vm6163_vm10, %v4606_v2, %v3810_v3  ;;  %v3210_v53 = vrot.slane %v3139_v46, 5  ;;  %v3486_v55 = vrot.slane %v3484_v47, 4  ;;  %v3425_v57 = vld [vmem:[#allocation3 + $0x18] sm:$0xf]  ;;  %v3428_v60 = vld [vmem:[#allocation3 + $0x24] sm:$0x1] }
 0x28e   :  { %v3468_v7 = vsel %vm5061_vm2, %v3463_v58, %v3467_v0  ;;  %v2869_v58 = vrot.slane %v2867_v50, 5  ;;  %v3470_v2 = vshrl.u32 %v3425_v57, 16  ;;  %v3473_v3 = vshll.u32 %v3425_v57, 16  ;;  %v3329_v5 = vld [vmem:[#allocation3 + $0x28] sm:$0xf] }
 0x28f   :  { %v3493_v63 = vshll.u32 %v3428_v60, 16  ;;  %v2819_v13 = vld [vmem:[#allocation3 + $0x28] sm:$0xf]  ;;  %v3426_v18 = vld [vmem:[#allocation3 + $0x1c] sm:$0x1]  ;;  %vm3727_vm4 = vcmask 519616  }
 0x290   :  { %v3475_v12 = vrot.slane %v3473_v3, 5  ;;  %v3750_v21 = vld [vmem:[#allocation3 + $0x28] sm:$0xe]  ;;  %v3751_v22 = vld [vmem:[#allocation3 + $0x2c] sm:$0x1]  ;;  %v3479_v10 = vshll.u32 %v3426_v18, 16 }
 0x291   :  { %v2719_v40 = vld [vmem:[#allocation3 + $0x30] sm:$0xf]  ;;  %v3140_v42 = vld [vmem:[#allocation3 + $0x28] sm:$0xe]  ;;  %v2716_v50 = vld [vmem:[#allocation3 + $0x18] sm:$0xf] }
 0x292   :  { %2471 = vrot.lane.b32.xlu2 %v2368_v9, %s4919_s20  ;;  %2675 = vrot.lane.b32.xlu1 %v2640_v11, %s4921_s15  ;;  %v3746_v9 = vld [vmem:[#allocation3 + $0x18] sm:$0xe]  ;;  %v3747_v11 = vld [vmem:[#allocation3 + $0x1c] sm:$0x1]  ;;  %v3431_v47 = vld [vmem:[#allocation3 + $0x30] sm:$0xf] }
 0x293   :  { %2748 = vrot.lane.b32.xlu0 %v2715_v16, %s4923_s30  ;;  %v4607_v8 = vrot.slane %v3746_v9, 9  ;;  %v3814_v16 = vrot.slane %v3747_v11, 5  ;;  %v3749_v9 = vld [vmem:[#allocation3 + $0x24] sm:$0x1]  ;;  %v3472_v11 = vrot.slane %v3470_v2, 4  ;;  %v3515_v60 = vshll.u32 %v3431_v47, 16 }
 0x294   :  { %v3818_v17 = vrot.slane %v3749_v9, 5  ;;  %v3142_v57 = vld [vmem:[#allocation3 + $0x30] sm:$0xe]  ;;  %v2842_v4 = vld [vmem:[#allocation3 + $0x94] sm:$0x1] }
 0x295   :  { %v3815_v24 = vsel %vm6163_vm10, %v4607_v8, %v3814_v16  ;;  %v3326_v8 = vld [vmem:[#allocation3 + $0x10] sm:$0xf]  ;;  %v3476_v20 = vor.u32 %v3475_v12, %v3472_v11  ;;  %v3517_v9 = vrot.slane %v3515_v60, 5  ;;  %v3429_v11 = vld [vmem:[#allocation3 + $0x28] sm:$0xf] }
 0x296   :  { %v3498_v18 = vshrl.u32 %v3429_v11, 16  ;;  %v2727_v60 = vld [vmem:[#allocation3 + $0x80] sm:$0xf] }
 0x298   :  { %v2468_v15 = vpop.permute.xlu0 %2467 }
 0x299   :  { %2509 = vst.msk [vmem:[#allocation4 + $0x1c] sm:$0xf] %vm2501_vm6, %v2468_v15  ;;  %v2858_v15 = vshrl.u32 %v2813_v23, 16 }
 0x29a   :  { %2659 = vrot.lane.b32.xlu2 %v2608_v32, %s4921_s15  ;;  %3067 = vrot.lane.b32.xlu1 %v2856_v27, %s4925_s22  ;;  %v2861_v27 = vshll.u32 %v2813_v23, 16  ;;  %v2879_v32 = vrot.slane %v2878_v26, 4  ;;  %v2900_v23 = vshrl.u32 %v2819_v13, 16  ;;  %v4609_v26 = vrot.slane %v3750_v21, 9  ;;  %v3331_v21 = vld [vmem:[#allocation3 + $0x38] sm:$0xf] }
 0x29b   :  { %3260 = vrot.lane.b32.xlu0 %v3199_v38, %s4927_s2  ;;  %v2860_v34 = vrot.slane %v2858_v15, 4  ;;  %v2883_v38 = vrot.slane %v2881_v29, 5  ;;  %v3822_v15 = vrot.slane %v3751_v22, 5 }
 0x29c   :  { %v2863_v35 = vrot.slane %v2861_v27, 5  ;;  %v3477_v27 = vrot.slane %v3476_v20, 4  ;;  %v2902_v28 = vrot.slane %v2900_v23, 4 }
 0x29d   :  { %v2884_v43 = vsel %vm5061_vm2, %v2879_v32, %v2883_v38  ;;  %v3481_v32 = vrot.slane %v3479_v10, 5  ;;  %v3823_v33 = vsel %vm6163_vm10, %v4609_v26, %v3822_v15  ;;  %v3753_v10 = vld [vmem:[#allocation3 + $0x34] sm:$0x1]  ;;  %v3500_v26 = vrot.slane %v3498_v18, 4  ;;  %v3158_v18 = vld [vmem:[#allocation3 + $0x80] sm:$0xe] }
 0x29e   :  { %v2864_v44 = vor.u32 %v2863_v35, %v2860_v34  ;;  %v2820_v34 = vld [vmem:[#allocation3 + $0x2c] sm:$0x1] }
 0x29f   :  { %v3482_v35 = vsel %vm5061_vm2, %v3477_v27, %v3481_v32  ;;  %v2835_v27 = vld [vmem:[#allocation3 + $0x78] sm:$0xf]  ;;  %v3430_v32 = vld [vmem:[#allocation3 + $0x2c] sm:$0x1] }
 0x2a2   :  { %2665 = vrot.lane.b32.xlu2 %v2620_v45, %s4921_s15  ;;  %3262 = vrot.lane.b32.xlu1 %v3203_v48, %s4927_s2  ;;  %v3138_v45 = vld [vmem:[#allocation3 + $0x20] sm:$0xe]  ;;  %v3487_v48 = vshll.u32 %v3427_v36, 16 }
 0x2a3   :  { %3360 = vrot.lane.b32.xlu0 %v3327_v54, %s4928_s9  ;;  %v4593_v52 = vrot.slane %v3138_v45, 9  ;;  %v2865_v54 = vrot.slane %v2864_v44, 4 }
 0x2a4   :  { %v2470_v37 = vpop.permute.xlu1 %2469  ;;  %v3489_v56 = vrot.slane %v3487_v48, 5 }
 0x2a5   :  { %2510 = vst.msk [vmem:[#allocation4 + $0x20] sm:$0xf] %vm2501_vm6, %v2470_v37  ;;  %v3211_v59 = vsel %vm6163_vm10, %v4593_v52, %v3210_v53  ;;  %v2870_v61 = vsel %vm5061_vm2, %v2865_v54, %v2869_v58  ;;  %v4594_v52 = vrot.slane %v3140_v42, 9  ;;  %v2818_v54 = vld [vmem:[#allocation3 + $0x24] sm:$0x1] }
 0x2a6   :  { %v3490_v0 = vor.u32 %v3489_v56, %v3486_v55  ;;  %v3143_v58 = vld [vmem:[#allocation3 + $0x34] sm:$0x1] }
 0x2aa   :  { %2477 = vrot.lane.b32.xlu2 %v2410_v6, %s4919_s20  ;;  %3679 = vrot.lane.b32.xlu1 %v3468_v7, %s4929_s10  ;;  %v3748_v6 = vld [vmem:[#allocation3 + $0x20] sm:$0xe]  ;;  %v3491_v7 = vrot.slane %v3490_v0, 4 }
 0x2ab   :  { %3872 = vrot.lane.b32.xlu0 %v3811_v14, %s4930_s11  ;;  %v3495_v14 = vrot.slane %v3493_v63, 5  ;;  %v4608_v16 = vrot.slane %v3748_v6, 9  ;;  %v4595_v63 = vrot.slane %v3142_v57, 9 }
 0x2ad   :  { %v3496_v19 = vsel %vm5061_vm2, %v3491_v7, %v3495_v14 }
 0x2b2   :  { %2671 = vrot.lane.b32.xlu2 %v2632_v25, %s4921_s15  ;;  %3874 = vrot.lane.b32.xlu1 %v3815_v24, %s4930_s11  ;;  %v2903_v24 = vshll.u32 %v2819_v13, 16  ;;  %v3819_v25 = vsel %vm6163_vm10, %v4608_v16, %v3818_v17 }
 0x2b3   :  { %2752 = vrot.lane.b32.xlu0 %v2717_v30, %s4923_s30  ;;  %v2817_v30 = vld [vmem:[#allocation3 + $0x20] sm:$0xf] }
 0x2b4   :  { %v2905_v29 = vrot.slane %v2903_v24, 5  ;;  %v2886_v37 = vshrl.u32 %v2817_v30, 16  ;;  %v2889_v38 = vshll.u32 %v2817_v30, 16  ;;  %v3752_v24 = vld [vmem:[#allocation3 + $0x30] sm:$0xe] }
 0x2b5   :  { %v4610_v30 = vrot.slane %v3752_v24, 9 }
 0x2b6   :  { %v2906_v36 = vor.u32 %v2905_v29, %v2902_v28  ;;  %v2888_v45 = vrot.slane %v2886_v37, 4  ;;  %v2891_v46 = vrot.slane %v2889_v38, 5  ;;  %v3012_v37 = vshrl.u32 %v2835_v27, 16 }
 0x2b7   :  { %v3015_v38 = vshll.u32 %v2835_v27, 16 }
 0x2b8   :  { %v2907_v44 = vrot.slane %v2906_v36, 4  ;;  %v2892_v56 = vor.u32 %v2891_v46, %v2888_v45  ;;  %v3754_v36 = vld [vmem:[#allocation3 + $0x38] sm:$0xe]  ;;  %v2821_v45 = vld [vmem:[#allocation3 + $0x30] sm:$0xf] }
 0x2ba   :  { %2746 = vrot.lane.b32.xlu2 %v2714_v39, %s4923_s30  ;;  %3071 = vrot.lane.b32.xlu1 %v2884_v43, %s4925_s22  ;;  %v2909_v39 = vshll.u32 %v2820_v34, 16  ;;  %v3141_v43 = vld [vmem:[#allocation3 + $0x2c] sm:$0x1]  ;;  %v2893_v6 = vrot.slane %v2892_v56, 4 }
 0x2bb   :  { %3264 = vrot.lane.b32.xlu0 %v3207_v51, %s4927_s2  ;;  %v3214_v53 = vrot.slane %v3141_v43, 5 }
 0x2bc   :  { %v2911_v51 = vrot.slane %v2909_v39, 5  ;;  %v3755_v39 = vld [vmem:[#allocation3 + $0x3c] sm:$0x1] }
 0x2bd   :  { %v3215_v0 = vsel %vm6163_vm10, %v4594_v52, %v3214_v53  ;;  %v2836_v53 = vld [vmem:[#allocation3 + $0x7c] sm:$0x1] }
 0x2be   :  { %v2912_v55 = vsel %vm5061_vm2, %v2907_v44, %v2911_v51  ;;  %v4611_v44 = vrot.slane %v3754_v36, 9 }
 0x2c2   :  { %3069 = vrot.lane.b32.xlu2 %v2870_v61, %s4925_s22  ;;  %3266 = vrot.lane.b32.xlu1 %v3211_v59, %s4927_s2  ;;  %v3512_v59 = vshrl.u32 %v3431_v47, 16  ;;  %v2895_v61 = vshll.u32 %v2818_v54, 16  ;;  %v3830_v47 = vrot.slane %v3755_v39, 5  ;;  %v2914_v54 = vshrl.u32 %v2821_v45, 16 }
 0x2c3   :  { %3364 = vrot.lane.b32.xlu0 %v3329_v5, %s4928_s9  ;;  %v3218_v5 = vrot.slane %v3143_v58, 5  ;;  %v2917_v58 = vshll.u32 %v2821_v45, 16 }
 0x2c4   :  { %v3514_v7 = vrot.slane %v3512_v59, 4  ;;  %v2897_v13 = vrot.slane %v2895_v61, 5  ;;  %v3831_v56 = vsel %vm6163_vm10, %v4611_v44, %v3830_v47  ;;  %v3021_v59 = vshll.u32 %v2836_v53, 16 }
 0x2c5   :  { %v3219_v14 = vsel %vm6163_vm10, %v4595_v63, %v3218_v5  ;;  %v3157_v5 = vld [vmem:[#allocation3 + $0x7c] sm:$0x1] }
 0x2c6   :  { %v2898_v16 = vsel %vm5061_vm2, %v2893_v6, %v2897_v13  ;;  %v3518_v17 = vor.u32 %v3517_v9, %v3514_v7  ;;  %v2919_v6 = vrot.slane %v2917_v58, 5  ;;  %v3023_v9 = vrot.slane %v3021_v59, 5 }
 0x2c7   :  { %v3246_v13 = vrot.slane %v3157_v5, 5  ;;  %v2826_v5 = vld [vmem:[#allocation3 + $0x44] sm:$0x1] }
 0x2ca   :  { %3358 = vrot.lane.b32.xlu2 %v3326_v8, %s4928_s9  ;;  %3683 = vrot.lane.b32.xlu1 %v3496_v19, %s4929_s10  ;;  %v3432_v8 = vld [vmem:[#allocation3 + $0x34] sm:$0x1]  ;;  %v3501_v19 = vshll.u32 %v3429_v11, 16 }
 0x2cb   :  { %3876 = vrot.lane.b32.xlu0 %v3819_v25, %s4930_s11  ;;  %v3521_v20 = vshll.u32 %v3432_v8, 16  ;;  %v3519_v25 = vrot.slane %v3518_v17, 4  ;;  %v2822_v11 = vld [vmem:[#allocation3 + $0x34] sm:$0x1]  ;;  %v2718_v8 = vld [vmem:[#allocation3 + $0x28] sm:$0xf] }
 0x2cc   :  { %v3503_v15 = vrot.slane %v3501_v19, 5  ;;  %v3159_v19 = vld [vmem:[#allocation3 + $0x84] sm:$0x1] }
 0x2cd   :  { %v2480_v31 = vpop.permute.xlu0 %2479  ;;  %v3523_v29 = vrot.slane %v3521_v20, 5  ;;  %v2923_v20 = vshll.u32 %v2822_v11, 16  ;;  %v3250_v27 = vrot.slane %v3159_v19, 5 }
 0x2ce   :  { %2515 = vst.msk [vmem:[#allocation4 + $0x34] sm:$0xf] %vm2501_vm6, %v2480_v31  ;;  %v3826_v31 = vrot.slane %v3753_v10, 5 }
 0x2cf   :  { %v3524_v34 = vsel %vm5061_vm2, %v3519_v25, %v3523_v29  ;;  %v3433_v25 = vld [vmem:[#allocation3 + $0x38] sm:$0xf] }
 0x2d2   :  { %3681 = vrot.lane.b32.xlu2 %v3482_v35, %s4929_s10  ;;  %3878 = vrot.lane.b32.xlu1 %v3823_v33, %s4930_s11  ;;  %v3328_v33 = vld [vmem:[#allocation3 + $0x20] sm:$0xf]  ;;  %v3504_v35 = vor.u32 %v3503_v15, %v3500_v26  ;;  %v4603_v15 = vrot.slane %v3158_v18, 9  ;;  %v2951_v18 = vshll.u32 %v2826_v5, 16 }
 0x2d3   :  { %2756 = vrot.lane.b32.xlu0 %v2719_v40, %s4923_s30  ;;  %v3507_v40 = vshll.u32 %v3430_v32, 16 }
 0x2d4   :  { %v2482_v41 = vpop.permute.xlu1 %2481  ;;  %v3505_v46 = vrot.slane %v3504_v35, 4  ;;  %v2825_v35 = vld [vmem:[#allocation3 + $0x40] sm:$0xf] }
 0x2d5   :  { %2516 = vst.msk [vmem:[#allocation4 + $0x38] sm:$0xf] %vm2501_vm6, %v2482_v41  ;;  %v2650_v48 = vpop.permute.xlu0 %2649  ;;  %v3827_v41 = vsel %vm6163_vm10, %v4610_v30, %v3826_v31  ;;  %v3509_v52 = vrot.slane %v3507_v40, 5  ;;  %v2925_v30 = vrot.slane %v2923_v20, 5  ;;  %v1795_v40 = vld [vmem:[#allocation3 + $0x48] sm:$0x1] }
 0x2d6   :  { %2698 = vst.msk [vmem:[#allocation4] sm:$0xf] %vm2697_vm11, %v2650_v48  ;;  %v3014_v48 = vrot.slane %v3012_v37, 4  ;;  %v3251_v37 = vsel %vm6163_vm10, %v4603_v15, %v3250_v27  ;;  %v2945_v44 = vshll.u32 %v2825_v35, 16  ;;  %v1796_v45 = vsel %vm5934_vm0, 0, %v1795_v40 }
 0x2d7   :  { %1797 = vst [vmem:[#allocation3 + $0x48] sm:$0x1] %v1796_v45  ;;  %v2837_v20 = vld [vmem:[#allocation3 + $0x80] sm:$0xf] }
 0x2d8   :  { %v2947_v59 = vrot.slane %v2945_v44, 5  ;;  %v3768_v15 = vld [vmem:[#allocation3 + $0x80] sm:$0xe]  ;;  %v3026_v27 = vshrl.u32 %v2837_v20, 16 }
 0x2da   :  { %2750 = vrot.lane.b32.xlu2 %v2716_v50, %s4923_s30  ;;  %3075 = vrot.lane.b32.xlu1 %v2912_v55, %s4925_s22  ;;  %v3017_v50 = vrot.slane %v3015_v38, 5  ;;  %v3510_v55 = vsel %vm5061_vm2, %v3505_v46, %v3509_v52  ;;  %v3339_v46 = vld [vmem:[#allocation3 + $0x88] sm:$0xf]  ;;  %v3028_v44 = vrot.slane %v3026_v27, 4 }
 0x2db   :  { %3268 = vrot.lane.b32.xlu0 %v3215_v0, %s4927_s2 }
 0x2dc   :  { %v2484_v2 = vpop.permute.xlu2 %2483  ;;  %v2652_v3 = vpop.permute.xlu1 %2651  ;;  %v3018_v57 = vor.u32 %v3017_v50, %v3014_v48 }
 0x2dd   :  { %2517 = vst.msk [vmem:[#allocation4 + $0x3c] sm:$0xf] %vm2501_vm6, %v2484_v2  ;;  %v2474_v12 = vpop.permute.xlu0 %2473  ;;  %v3156_v2 = vld [vmem:[#allocation3 + $0x78] sm:$0xe] }
 0x2de   :  { %2699 = vst.msk [vmem:[#allocation4 + $0x4] sm:$0xf] %vm2697_vm11, %v2652_v3  ;;  %v2916_v3 = vrot.slane %v2914_v54, 4  ;;  %v3019_v63 = vrot.slane %v3018_v57, 4 }
 0x2df   :  { %2512 = vst.msk [vmem:[#allocation4 + $0x28] sm:$0xf] %vm2501_vm6, %v2474_v12  ;;  %v4602_v12 = vrot.slane %v3156_v2, 9  ;;  %v3330_v2 = vld [vmem:[#allocation3 + $0x30] sm:$0xf] }
 0x2e0   :  { %v2920_v17 = vor.u32 %v2919_v6, %v2916_v3  ;;  %v2720_v3 = vld [vmem:[#allocation3 + $0x38] sm:$0xf] }
 0x2e2   :  { %3073 = vrot.lane.b32.xlu2 %v2898_v16, %s4925_s22  ;;  %3270 = vrot.lane.b32.xlu1 %v3219_v14, %s4927_s2  ;;  %v3447_v14 = vld [vmem:[#allocation3 + $0x80] sm:$0xf]  ;;  %v3024_v16 = vsel %vm5061_vm2, %v3019_v63, %v3023_v9  ;;  %v2921_v26 = vrot.slane %v2920_v17, 4 }
 0x2e3   :  { %3368 = vrot.lane.b32.xlu0 %v3331_v21, %s4928_s9  ;;  %v3624_v21 = vshrl.u32 %v3447_v14, 16 }
 0x2e4   :  { %v2654_v22 = vpop.permute.xlu2 %2653  ;;  %v2658_v23 = vpop.permute.xlu1 %2657  ;;  %v2926_v36 = vsel %vm5061_vm2, %v2921_v26, %v2925_v30  ;;  %v4127_v26 = vld [vmem:[%s6819_s5] sm:$0x3] }
 0x2e5   :  { %2700 = vst.msk [vmem:[#allocation4 + $0x8] sm:$0xf] %vm2697_vm11, %v2654_v22  ;;  %v2656_v28 = vpop.permute.xlu0 %2655  ;;  %v3627_v22 = vshll.u32 %v3447_v14, 16  ;;  %v3626_v31 = vrot.slane %v3624_v21, 4 }
 0x2e6   :  { %2702 = vst.msk [vmem:[#allocation4 + $0x10] sm:$0xf] %vm2697_vm11, %v2658_v23  ;;  %v3247_v23 = vsel %vm6163_vm10, %v4602_v12, %v3246_v13 }
 0x2e7   :  { %2701 = vst.msk [vmem:[#allocation4 + $0xc] sm:$0xf] %vm2697_vm11, %v2656_v28  ;;  %v3449_v28 = vld [vmem:[#allocation3 + $0x88] sm:$0xf]  ;;  %v3629_v32 = vrot.slane %v3627_v22, 5 }
 0x2e8   :  { %v3638_v38 = vshrl.u32 %v3449_v28, 16  ;;  %v3641_v39 = vshll.u32 %v3449_v28, 16  ;;  %v3029_v28 = vshll.u32 %v2837_v20, 16  ;;  %v3333_v20 = vld [vmem:[#allocation3 + $0x48] sm:$0xf] }
 0x2ea   :  { %3362 = vrot.lane.b32.xlu2 %v3328_v33, %s4928_s9  ;;  %3687 = vrot.lane.b32.xlu1 %v3524_v34, %s4929_s10  ;;  %v3526_v33 = vshrl.u32 %v3433_v25, 16  ;;  %v3529_v34 = vshll.u32 %v3433_v25, 16  ;;  %v3640_v52 = vrot.slane %v3638_v38, 4  ;;  %v3643_v53 = vrot.slane %v3641_v39, 5  ;;  %v4755_v25 = vld [vmem:[%s6818_s3 + $0x18] sm:$0xff]  ;;  %v4754_v39 = vld [vmem:[%s6818_s3 + $0x10] sm:$0xff] }
 0x2eb   :  { %3880 = vrot.lane.b32.xlu0 %v3827_v41, %s4930_s11  ;;  %v3448_v41 = vld [vmem:[#allocation3 + $0x84] sm:$0x1]  ;;  %v3145_v38 = vld [vmem:[#allocation3 + $0x3c] sm:$0x1]  ;;  %v3031_v45 = vrot.slane %v3029_v28, 5 }
 0x2ec   :  { %v2472_v42 = vpop.permute.xlu2 %2471  ;;  %v2476_v43 = vpop.permute.xlu1 %2475  ;;  %v3528_v50 = vrot.slane %v3526_v33, 4  ;;  %v3633_v54 = vshll.u32 %v3448_v41, 16  ;;  %v3644_v63 = vor.u32 %v3643_v53, %v3640_v52  ;;  %v3769_v33 = vld [vmem:[#allocation3 + $0x84] sm:$0x1]  ;;  %v4753_v52 = vld [vmem:[%s6818_s3 + $0x8] sm:$0xff] }
 0x2ed   :  { %2511 = vst.msk [vmem:[#allocation4 + $0x24] sm:$0xf] %vm2501_vm6, %v2472_v42  ;;  %v2662_v51 = vpop.permute.xlu0 %2661  ;;  %v3630_v42 = vor.u32 %v3629_v32, %v3626_v31  ;;  %v2953_v32 = vrot.slane %v2951_v18, 5 }
 0x2ee   :  { %2513 = vst.msk [vmem:[#allocation4 + $0x2c] sm:$0xf] %vm2501_vm6, %v2476_v43  ;;  %v2942_v43 = vshrl.u32 %v2825_v35, 16  ;;  %v3645_v19 = vrot.slane %v3644_v63, 4 }
 0x2ef   :  { %2704 = vst.msk [vmem:[#allocation4 + $0x18] sm:$0xf] %vm2697_vm11, %v2662_v51  ;;  %v3531_v51 = vrot.slane %v3529_v34, 5  ;;  %v3631_v57 = vrot.slane %v3630_v42, 4  ;;  %v1857_v34 = vld [vmem:[#allocation3 + $0x4c] sm:$0x1] }
 0x2f0   :  { %v2944_v58 = vrot.slane %v2942_v43, 4  ;;  %v1858_v40 = vsel %vm5943_vm3, 0, %v1857_v34  ;;  %v3858_v43 = vrot.slane %v3769_v33, 5  ;;  %v3758_v33 = vld [vmem:[#allocation3 + $0x48] sm:$0xe] }
 0x2f1   :  { %1859 = vst [vmem:[#allocation3 + $0x4c] sm:$0x1] %v1858_v40 }
 0x2f2   :  { %3685 = vrot.lane.b32.xlu2 %v3510_v55, %s4929_s10  ;;  %3882 = vrot.lane.b32.xlu1 %v3831_v56, %s4930_s11  ;;  %v3434_v55 = vld [vmem:[#allocation3 + $0x3c] sm:$0x1]  ;;  %v2948_v12 = vor.u32 %v2947_v59, %v2944_v58  ;;  %v3032_v58 = vor.u32 %v3031_v45, %v3028_v44  ;;  %v3146_v59 = vld [vmem:[#allocation3 + $0x40] sm:$0xe] }
 0x2f3   :  { %2772 = vrot.lane.b32.xlu0 %v2727_v60, %s4923_s30  ;;  %v3532_v60 = vor.u32 %v3531_v51, %v3528_v50  ;;  %v3535_v9 = vshll.u32 %v3434_v55, 16  ;;  %v2838_v55 = vld [vmem:[#allocation3 + $0x84] sm:$0x1] }
 0x2f4   :  { %v2660_v61 = vpop.permute.xlu2 %2659  ;;  %v2664_v0 = vpop.permute.xlu1 %2663 }
 0x2f5   :  { %2703 = vst.msk [vmem:[#allocation4 + $0x14] sm:$0xf] %vm2697_vm11, %v2660_v61  ;;  %v2668_v7 = vpop.permute.xlu0 %2667  ;;  %v3450_v61 = vld [vmem:[#allocation3 + $0x8c] sm:$0x1]  ;;  %v3533_v17 = vrot.slane %v3532_v60, 4 }
 0x2f6   :  { %2705 = vst.msk [vmem:[#allocation4 + $0x1c] sm:$0xf] %vm2697_vm11, %v2664_v0  ;;  %v3961_v0 = vld [vmem:[%s6818_s3 + $0x20] sm:$0xf]  ;;  %v3647_v11 = vshll.u32 %v3450_v61, 16 }
 0x2f7   :  { %2707 = vst.msk [vmem:[#allocation4 + $0x24] sm:$0xf] %vm2697_vm11, %v2668_v7  ;;  %v4023_v6 = vunpack.c.l.b16 %v3961_v0  ;;  %v3635_v7 = vrot.slane %v3633_v54, 5  ;;  %v3222_v54 = vrot.slane %v3145_v38, 5  ;;  %v3147_v0 = vld [vmem:[#allocation3 + $0x44] sm:$0x1] }
 0x2f8   :  { %v3759_v34 = vld [vmem:[#allocation3 + $0x4c] sm:$0x1] }
 0x2f9   :  { %v4028_v13 = vpack.c.b16 %v4023_v6, %v4023_v6  ;;  %v3636_v14 = vsel %vm5061_vm2, %v3631_v57, %v3635_v7  ;;  %v4597_v7 = vrot.slane %v3146_v59, 9  ;;  %v3838_v40 = vrot.slane %v3759_v34, 5 }
 0x2fa   :  { %2754 = vrot.lane.b32.xlu2 %v2718_v8, %s4923_s30  ;;  %3091 = vrot.lane.b32.xlu1 %v3024_v16, %s4925_s22 }
 0x2fb   :  { %3284 = vrot.lane.b32.xlu0 %v3247_v23, %s4927_s2  ;;  %v4060_v21 = vsel %vm4058_vm13, %v4028_v13, 0  ;;  %v3537_v23 = vrot.slane %v3535_v9, 5  ;;  %v3033_v9 = vrot.slane %v3032_v58, 4 }
 0x2fc   :  { %v2666_v24 = vpop.permute.xlu2 %2665  ;;  %v2670_v10 = vpop.permute.xlu1 %2669  ;;  %4065 = vmatpush.bf16.msra.mxu1 %v4060_v21  ;;  %4767 = vmatpush.bf16.msrb.mxu3 %v4060_v21 }
 0x2fd   :  { %2706 = vst.msk [vmem:[#allocation4 + $0x20] sm:$0xf] %vm2697_vm11, %v2666_v24  ;;  %v2674_v29 = vpop.permute.xlu0 %2673  ;;  %v3649_v24 = vrot.slane %v3647_v11, 5  ;;  %v3538_v30 = vsel %vm5061_vm2, %v3533_v17, %v3537_v23  ;;  %v3226_v11 = vrot.slane %v3147_v0, 5  ;;  %v2823_v23 = vld [vmem:[#allocation3 + $0x38] sm:$0xf] }
 0x2fe   :  { %2708 = vst.msk [vmem:[#allocation4 + $0x28] sm:$0xf] %vm2697_vm11, %v2670_v10  ;;  %v2949_v10 = vrot.slane %v2948_v12, 4  ;;  %v2928_v27 = vshrl.u32 %v2823_v23, 16  ;;  %v2931_v28 = vshll.u32 %v2823_v23, 16 }
 0x2ff   :  { %v3650_v31 = vsel %vm5061_vm2, %v3645_v19, %v3649_v24  ;;  %v3227_v18 = vsel %vm6163_vm10, %v4597_v7, %v3226_v11  ;;  %v1825_v0 = vld [vmem:[#allocation3 + $0x98] sm:$0x1]  ;;  %v2728_v23 = vld [vmem:[#allocation3 + $0x88] sm:$0xf] }
 0x300   :  { %v2954_v35 = vsel %vm5061_vm2, %v2949_v10, %v2953_v32  ;;  %4066 = vmatpush.bf16.msra.mxu1 %v4755_v25  ;;  %4768 = vmatpush.bf16.msrb.mxu3 %v4755_v25  ;;  %v3757_v25 = vld [vmem:[#allocation3 + $0x44] sm:$0x1]  ;;  %v2839_v32 = vld [vmem:[#allocation3 + $0x88] sm:$0xf]  ;;  %v2933_v38 = vrot.slane %v2931_v28, 5 }
 0x302   :  { %3077 = vrot.lane.b32.xlu2 %v2926_v36, %s4925_s22  ;;  %3286 = vrot.lane.b32.xlu1 %v3251_v37, %s4927_s2  ;;  %v4618_v36 = vrot.slane %v3768_v15, 9  ;;  %v3144_v37 = vld [vmem:[#allocation3 + $0x38] sm:$0xe] }
 0x303   :  { %3384 = vrot.lane.b32.xlu0 %v3339_v46, %s4928_s9  ;;  %v4696_v46 = vld [vmem:[%s6815_s0 + $0xd8] sm:$0xf]  ;;  %v4596_v53 = vrot.slane %v3144_v37, 9  ;;  %v2930_v37 = vrot.slane %v2928_v27, 4 }
 0x304   :  { %v2478_v47 = vpop.permute.xlu2 %2477  ;;  %v2676_v48 = vpop.permute.xlu1 %2675  ;;  %4067 = vmatpush.bf16.msra.mxu1 %v4754_v39  ;;  %4769 = vmatpush.bf16.msrb.mxu3 %v4754_v39  ;;  %v3859_v57 = vsel %vm6163_vm10, %v4618_v36, %v3858_v43  ;;  %v4613_v39 = vrot.slane %v3758_v33, 9 }
 0x305   :  { %2514 = vst.msk [vmem:[#allocation4 + $0x30] sm:$0xf] %vm2501_vm6, %v2478_v47  ;;  %v2749_v56 = vpop.permute.xlu0 %2748  ;;  %v4756_v47 = vld [vmem:[%s6815_s0 + $0xdc] sm:$0xf0]  ;;  %v3223_v63 = vsel %vm6163_vm10, %v4596_v53, %v3222_v54  ;;  %v2934_v53 = vor.u32 %v2933_v38, %v2930_v37  ;;  %vm4033_vm6 = vcmask 588800  }
 0x306   :  { %2710 = vst.msk [vmem:[#allocation4 + $0x30] sm:$0xf] %vm2697_vm11, %v2674_v29  ;;  %v6377_v29 = vsel %vm1621_vm9, %v4127_v26, 0  ;;  %vm3115_vm9 = vcmask 322816   ;;  %v4697_v50 = vor.u32 %v4756_v47, %v4696_v46  ;;  %v2548_v46 = vld [vmem:[#allocation3 + $0x88] sm:$0xe] }
 0x307   :  { %2711 = vst.msk [vmem:[#allocation4 + $0x34] sm:$0xf] %vm2697_vm11, %v2676_v48  ;;  %4203 = vmatpush.bf16.msra.mxu2 %v6377_v29  ;;  %v3435_v48 = vld [vmem:[#allocation3 + $0x40] sm:$0xf]  ;;  %v2549_v47 = vld [vmem:[#allocation3 + $0x8c] sm:$0x1] }
 0x308   :  { %2796 = vst.msk [vmem:[#allocation4 + $0x4] sm:$0xf] %vm2794_vm12, %v2749_v56  ;;  %v2726_v56 = vld [vmem:[#allocation3 + $0x78] sm:$0xf]  ;;  %v3540_v60 = vshrl.u32 %v3435_v48, 16  ;;  %v3543_v61 = vshll.u32 %v3435_v48, 16  ;;  %4068 = vmatpush.bf16.msra.mxu1 %v4753_v52  ;;  %4770 = vmatpush.bf16.msrb.mxu3 %v4753_v52 }
 0x309   :  { %v2841_v48 = vld [vmem:[#allocation3 + $0x90] sm:$0xf]  ;;  %v2824_v52 = vld [vmem:[#allocation3 + $0x3c] sm:$0x1] }
 0x30a   :  { %3366 = vrot.lane.b32.xlu2 %v3330_v2, %s4928_s9  ;;  %2758 = vrot.lane.b32.xlu1 %v2720_v3, %s4923_s30  ;;  %v3035_v2 = vshll.u32 %v2838_v55, 16  ;;  %v4752_v3 = vld [vmem:[%s6818_s3] sm:$0xff]  ;;  %v3542_v12 = vrot.slane %v3540_v60, 4  ;;  %v3545_v13 = vrot.slane %v3543_v61, 5  ;;  %v3054_v58 = vshrl.u32 %v2841_v48, 16 }
 0x30b   :  { %3703 = vrot.lane.b32.xlu0 %v3636_v14, %s4929_s10  ;;  %4726 = vmatmul.msk.bf16.vlgmr.msra.gmra.mxu2 %vm4168_vm15, %v4697_v50  ;;  %v3057_v59 = vshll.u32 %v2841_v48, 16  ;;  %v2721_v60 = vld [vmem:[#allocation3 + $0x40] sm:$0xf]  ;;  %v2937_v61 = vshll.u32 %v2824_v52, 16 }
 0x30c   :  { %v2672_v8 = vpop.permute.xlu2 %2671  ;;  %v3068_v16 = vpop.permute.xlu1 %3067  ;;  %4069 = vmatpush.bf16.msra.mxu1 %v4752_v3  ;;  %4771 = vmatpush.bf16.msrb.mxu3 %v4752_v3  ;;  %v3546_v19 = vor.u32 %v3545_v13, %v3542_v12  ;;  %v2840_v3 = vld [vmem:[#allocation3 + $0x8c] sm:$0x1]  ;;  %v3056_v12 = vrot.slane %v3054_v58, 4 }
 0x30d   :  { %2709 = vst.msk [vmem:[#allocation4 + $0x2c] sm:$0xf] %vm2697_vm11, %v2672_v8  ;;  %v3261_v22 = vpop.permute.xlu0 %3260  ;;  %v3037_v8 = vrot.slane %v3035_v2, 5  ;;  %v2935_v2 = vrot.slane %v2934_v53, 4  ;;  %v3059_v13 = vrot.slane %v3057_v59, 5 }
 0x30e   :  { %v3547_v26 = vrot.slane %v3546_v19, 4  ;;  %v2939_v19 = vrot.slane %v2937_v61, 5 }
 0x30f   :  { %v3038_v17 = vsel %vm5061_vm2, %v3033_v9, %v3037_v8 }
 0x310   :  { %4772 = vmatpush.bf16.msra.mxu3 %v6377_v29 }
 0x312   :  { %3689 = vrot.lane.b32.xlu2 %v3538_v30, %s4929_s10  ;;  %3705 = vrot.lane.b32.xlu1 %v3650_v31, %s4929_s10  ;;  %v3834_v31 = vrot.slane %v3757_v25, 5 }
 0x313   :  { %3081 = vrot.lane.b32.xlu0 %v2954_v35, %s4925_s22  ;;  %v3338_v35 = vld [vmem:[#allocation3 + $0x80] sm:$0xf] }
 0x314   :  { %v2747_v41 = vpop.permute.xlu2 %2746  ;;  %v3263_v42 = vpop.permute.xlu1 %3262 }
 0x315   :  { %2795 = vst.msk [vmem:[#allocation4] sm:$0xf] %vm2794_vm12, %v2747_v41  ;;  %v3361_v51 = vpop.permute.xlu0 %3360  ;;  %v3040_v41 = vshrl.u32 %v2839_v32, 16 }
 0x316   :  { %3116 = vst.msk [vmem:[#allocation4] sm:$0xf] %vm3115_vm9, %v3068_v16  ;;  %v3436_v16 = vld [vmem:[#allocation3 + $0x44] sm:$0x1] }
 0x317   :  { %3309 = vst.msk [vmem:[#allocation4] sm:$0xf] %vm3308_vm14, %v3261_v22  ;;  %v3549_v21 = vshll.u32 %v3436_v16, 16  ;;  %v3756_v22 = vld [vmem:[#allocation3 + $0x40] sm:$0xe]  ;;  %v3042_v54 = vrot.slane %v3040_v41, 4 }
 0x318   :  { %v4612_v15 = vrot.slane %v3756_v22, 9  ;;  %v3049_v16 = vshll.u32 %v2840_v3, 16  ;;  %v2940_v22 = vsel %vm5061_vm2, %v2935_v2, %v2939_v19  ;;  %v4704_v2 = vld [vmem:[%s6815_s0 + $0xf8] sm:$0xf]  ;;  %v4758_v3 = vld [vmem:[%s6815_s0 + $0xfc] sm:$0xf0] }
 0x319   :  { %v3551_v30 = vrot.slane %v3549_v21, 5 }
 0x31a   :  { %2770 = vrot.lane.b32.xlu2 %v2726_v56, %s4923_s30  ;;  %3896 = vrot.lane.b32.xlu1 %v3859_v57, %s4930_s11  ;;  %v3835_v43 = vsel %vm6163_vm10, %v4612_v15, %v3834_v31  ;;  %v4589_v56 = vrot.slane %v2548_v46, 9  ;;  %v2647_v57 = vrot.slane %v2549_v47, 5  ;;  %v3051_v25 = vrot.slane %v3049_v16, 5  ;;  %v3162_v31 = vld [vmem:[#allocation3 + $0x90] sm:$0xe] }
 0x31b   :  { %3272 = vrot.lane.b32.xlu0 %v3223_v63, %s4927_s2  ;;  %v3552_v36 = vsel %vm5061_vm2, %v3547_v26, %v3551_v30  ;;  %v3771_v26 = vld [vmem:[#allocation3 + $0x8c] sm:$0x1]  ;;  %v3063_v15 = vshll.u32 %v2842_v4, 16  ;;  %v4605_v41 = vrot.slane %v3162_v31, 9  ;;  %v2828_v4 = vld [vmem:[#allocation3 + $0x5c] sm:$0x1] }
 0x31c   :  { %v3070_v5 = vpop.permute.xlu2 %3069  ;;  %v3680_v6 = vpop.permute.xlu1 %3679  ;;  %v2648_v7 = vsel %vm6163_vm10, %v4589_v56, %v2647_v57  ;;  %v3862_v33 = vrot.slane %v3771_v26, 5 }
 0x31d   :  { %3117 = vst.msk [vmem:[#allocation4 + $0x4] sm:$0xf] %vm3115_vm9, %v3070_v5  ;;  %v3873_v14 = vpop.permute.xlu0 %3872  ;;  %v1826_v5 = vsel %vm5934_vm0, 0, %v1825_v0 }
 0x31e   :  { %3310 = vst.msk [vmem:[#allocation4 + $0x4] sm:$0xf] %vm3308_vm14, %v3263_v42  ;;  %v3043_v42 = vshll.u32 %v2839_v32, 16  ;;  %v3437_v32 = vld [vmem:[#allocation3 + $0x48] sm:$0xf] }
 0x31f   :  { %3408 = vst.msk [vmem:[#allocation4 + $0x4] sm:$0xf] %vm3406_vm1, %v3361_v51  ;;  %v3839_v51 = vsel %vm6163_vm10, %v4613_v39, %v3838_v40  ;;  %v3554_v38 = vshrl.u32 %v3437_v32, 16  ;;  %v3557_v39 = vshll.u32 %v3437_v32, 16  ;;  %v3773_v32 = vld [vmem:[#allocation3 + $0x94] sm:$0x1] }
 0x320   :  { %v3045_v55 = vrot.slane %v3043_v42, 5  ;;  %1827 = vst [vmem:[#allocation3 + $0x98] sm:$0x1] %v1826_v5  ;;  %v3340_v5 = vld [vmem:[#allocation3 + $0x90] sm:$0xf] }
 0x321   :  { %v3556_v47 = vrot.slane %v3554_v38, 4  ;;  %v3559_v48 = vrot.slane %v3557_v39, 5  ;;  %v3866_v38 = vrot.slane %v3773_v32, 5  ;;  %v3774_v39 = vld [vmem:[#allocation3 + $0x98] sm:$0xe] }
 0x322   :  { %3093 = vrot.lane.b32.xlu2 %v3038_v17, %s4925_s22  ;;  %3274 = vrot.lane.b32.xlu1 %v3227_v18, %s4927_s2  ;;  %v3046_v63 = vor.u32 %v3045_v55, %v3042_v54  ;;  %v4757_v17 = vld [vmem:[%s6815_s0 + $0xec] sm:$0xf0]  ;;  %v3438_v54 = vld [vmem:[#allocation3 + $0x4c] sm:$0x1] }
 0x323   :  { %3372 = vrot.lane.b32.xlu0 %v3333_v20, %s4928_s9  ;;  %v4701_v21 = vor.u32 %v4757_v17, %v4700_v1  ;;  %v3560_v59 = vor.u32 %v3559_v48, %v3556_v47 }
 0x324   :  { %v3359_v24 = vpop.permute.xlu2 %3358  ;;  %v3875_v10 = vpop.permute.xlu1 %3874  ;;  %v3047_v20 = vrot.slane %v3046_v63, 4  ;;  %v3332_v63 = vld [vmem:[#allocation3 + $0x40] sm:$0xf] }
 0x325   :  { %3407 = vst.msk [vmem:[#allocation4] sm:$0xf] %vm3406_vm1, %v3359_v24  ;;  %v2753_v29 = vpop.permute.xlu0 %2752  ;;  %v3770_v24 = vld [vmem:[#allocation3 + $0x88] sm:$0xe]  ;;  %4727 = vmatmul.msk.bf16.gmra.mxu2 %vm4168_vm15, %v4701_v21 }
 0x326   :  { %3728 = vst.msk [vmem:[#allocation4] sm:$0xf] %vm3727_vm4, %v3680_v6  ;;  %v1887_v6 = vld [vmem:[#allocation3 + $0x9c] sm:$0x1]  ;;  %v3052_v27 = vsel %vm5061_vm2, %v3047_v20, %v3051_v25  ;;  %v4619_v30 = vrot.slane %v3770_v24, 9  ;;  %v2965_v25 = vshll.u32 %v2828_v4, 16 }
 0x327   :  { %3921 = vst.msk [vmem:[#allocation4] sm:$0xf] %vm3920_vm5, %v3873_v14  ;;  %v1888_v8 = vsel %vm5943_vm3, 0, %v1887_v6  ;;  %v3453_v40 = vld [vmem:[#allocation3 + $0x98] sm:$0xf]  ;;  %v4705_v6 = vor.u32 %v4758_v3, %v4704_v2 }
 0x328   :  { %2798 = vst.msk [vmem:[#allocation4 + $0xc] sm:$0xf] %vm2794_vm12, %v2753_v29  ;;  %v3669_v46 = vshll.u32 %v3453_v40, 16 }
 0x329   :  { %1889 = vst [vmem:[#allocation3 + $0x9c] sm:$0x1] %v1888_v8 }
 0x32a   :  { %3382 = vrot.lane.b32.xlu2 %v3338_v35, %s4928_s9  ;;  %3691 = vrot.lane.b32.xlu1 %v3552_v36, %s4929_s10  ;;  %v3163_v35 = vld [vmem:[#allocation3 + $0x94] sm:$0x1]  ;;  %v3065_v36 = vrot.slane %v3063_v15, 5  ;;  %v3671_v56 = vrot.slane %v3669_v46, 5 }
 0x32b   :  { %3884 = vrot.lane.b32.xlu0 %v3835_v43, %s4930_s11  ;;  %v3258_v42 = vrot.slane %v3163_v35, 5  ;;  %v3863_v43 = vsel %vm6163_vm10, %v4619_v30, %v3862_v33  ;;  %v2967_v33 = vrot.slane %v2965_v25, 5  ;;  %v4708_v35 = vld [vmem:[%s6815_s0 + $0x108] sm:$0xf] }
 0x32c   :  { %v3682_v44 = vpop.permute.xlu2 %3681  ;;  %v3072_v45 = vpop.permute.xlu1 %3071 }
 0x32d   :  { %3729 = vst.msk [vmem:[#allocation4 + $0x4] sm:$0xf] %vm3727_vm4, %v3682_v44  ;;  %v3265_v50 = vpop.permute.xlu0 %3264 }
 0x32e   :  { %3922 = vst.msk [vmem:[#allocation4 + $0x4] sm:$0xf] %vm3920_vm5, %v3875_v10  ;;  %v3060_v10 = vor.u32 %v3059_v13, %v3056_v12  ;;  %v2722_v13 = vld [vmem:[#allocation3 + $0x58] sm:$0xf] }
 0x330   :  { %v3061_v34 = vrot.slane %v3060_v10, 4  ;;  %v3454_v61 = vld [vmem:[#allocation3 + $0x9c] sm:$0x1]  ;;  %v2547_v10 = vld [vmem:[#allocation3 + $0x84] sm:$0x1] }
 0x331   :  { %v2643_v31 = vrot.slane %v2547_v10, 5 }
 0x332   :  { %2760 = vrot.lane.b32.xlu2 %v2721_v60, %s4923_s30  ;;  %3886 = vrot.lane.b32.xlu1 %v3839_v51, %s4930_s11  ;;  %v3066_v44 = vsel %vm5061_vm2, %v3061_v34, %v3065_v36  ;;  %v3259_v51 = vsel %vm6163_vm10, %v4605_v41, %v3258_v42  ;;  %v3563_v60 = vshll.u32 %v3438_v54, 16  ;;  %v4759_v36 = vld [vmem:[%s6815_s0 + $0x10c] sm:$0xf0]  ;;  %v3151_v54 = vld [vmem:[#allocation3 + $0x64] sm:$0x1] }
 0x333   :  { %2679 = vrot.lane.b32.xlu0 %v2648_v7, %s4921_s15  ;;  %v4709_v41 = vor.u32 %v4759_v36, %v4708_v35 }
 0x334   :  { %v2751_v9 = vpop.permute.xlu2 %2750  ;;  %v3267_v11 = vpop.permute.xlu1 %3266  ;;  %v3565_v12 = vrot.slane %v3563_v60, 5 }
 0x335   :  { %2797 = vst.msk [vmem:[#allocation4 + $0x8] sm:$0xf] %vm2794_vm12, %v2751_v9  ;;  %v4744_v14 = vld [vmem:[#allocation4] sm:$0xff]  ;;  %v3365_v18 = vpop.permute.xlu0 %3364  ;;  %v3675_v9 = vshll.u32 %v3454_v61, 16  ;;  %4728 = vmatmul.msk.bf16.gmra.mxu2 %vm4168_vm15, %v4705_v6 }
 0x336   :  { %3118 = vst.msk [vmem:[#allocation4 + $0x8] sm:$0xf] %vm3115_vm9, %v3072_v45  ;;  %4670 = vmatmul.msk.bf16.vlgmr.msra.gmra.mxu1 %vm4033_vm6, %v4744_v14  ;;  %v3666_v45 = vshrl.u32 %v3453_v40, 16  ;;  %v3775_v40 = vld [vmem:[#allocation3 + $0x9c] sm:$0x1] }
 0x337   :  { %3311 = vst.msk [vmem:[#allocation4 + $0x8] sm:$0xf] %vm3308_vm14, %v3265_v50  ;;  %v2827_v50 = vld [vmem:[#allocation3 + $0x58] sm:$0xf]  ;;  %v3870_v46 = vrot.slane %v3775_v40, 5 }
 0x338   :  { %v3668_v55 = vrot.slane %v3666_v45, 4  ;;  %v2956_v57 = vshrl.u32 %v2827_v50, 16  ;;  %v2959_v0 = vshll.u32 %v2827_v50, 16  ;;  %v4621_v45 = vrot.slane %v3774_v39, 9  ;;  %v3440_v6 = vld [vmem:[#allocation3 + $0x64] sm:$0x1] }
 0x339   :  { %v2833_v40 = vld [vmem:[#allocation3 + $0x70] sm:$0xf] }
 0x33a   :  { %3079 = vrot.lane.b32.xlu2 %v2940_v22, %s4925_s22  ;;  %2774 = vrot.lane.b32.xlu1 %v2728_v23, %s4923_s30  ;;  %v3672_v7 = vor.u32 %v3671_v56, %v3668_v55  ;;  %v2958_v1 = vrot.slane %v2956_v57, 4  ;;  %v2961_v16 = vrot.slane %v2959_v0, 5  ;;  %v2723_v22 = vld [vmem:[#allocation3 + $0x60] sm:$0xf]  ;;  %v3441_v55 = vld [vmem:[#allocation3 + $0x68] sm:$0xf]  ;;  %v3871_v57 = vsel %vm6163_vm10, %v4621_v45, %v3870_v46 }
 0x33b   :  { %3095 = vrot.lane.b32.xlu0 %v3052_v27, %s4925_s22  ;;  %v2546_v23 = vld [vmem:[#allocation3 + $0x80] sm:$0xe]  ;;  %v2729_v0 = vld [vmem:[#allocation3 + $0x90] sm:$0xf]  ;;  %v3582_v2 = vshrl.u32 %v3441_v55, 16  ;;  %v3585_v3 = vshll.u32 %v3441_v55, 16 }
 0x33c   :  { %v3074_v28 = vpop.permute.xlu2 %3073  ;;  %v3684_v29 = vpop.permute.xlu1 %3683  ;;  %v3673_v17 = vrot.slane %v3672_v7, 4  ;;  %v2962_v21 = vor.u32 %v2961_v16, %v2958_v1  ;;  %v4588_v27 = vrot.slane %v2546_v23, 9  ;;  %v3577_v16 = vshll.u32 %v3440_v6, 16 }
 0x33d   :  { %3119 = vst.msk [vmem:[#allocation4 + $0xc] sm:$0xf] %vm3115_vm9, %v3074_v28  ;;  %v3877_v37 = vpop.permute.xlu0 %3876  ;;  %v3587_v1 = vrot.slane %v3585_v3, 5  ;;  %v3001_v55 = vshll.u32 %v2833_v40, 16 }
 0x33e   :  { %3312 = vst.msk [vmem:[#allocation4 + $0xc] sm:$0xf] %vm3308_vm14, %v3267_v11  ;;  %v3561_v11 = vrot.slane %v3560_v59, 4  ;;  %v2963_v28 = vrot.slane %v2962_v21, 4  ;;  %v2644_v42 = vsel %vm6163_vm10, %v4588_v27, %v2643_v31  ;;  %v3234_v59 = vrot.slane %v3151_v54, 5 }
 0x33f   :  { %3410 = vst.msk [vmem:[#allocation4 + $0xc] sm:$0xf] %vm3406_vm1, %v3365_v18  ;;  %v3677_v18 = vrot.slane %v3675_v9, 5  ;;  %v3442_v21 = vld [vmem:[#allocation3 + $0x6c] sm:$0x1]  ;;  %v3579_v27 = vrot.slane %v3577_v16, 5 }
 0x340   :  { %v3566_v20 = vsel %vm5061_vm2, %v3561_v11, %v3565_v12  ;;  %v2998_v54 = vshrl.u32 %v2833_v40, 16  ;;  %v3003_v6 = vrot.slane %v3001_v55, 5 }
 0x341   :  { %v3678_v24 = vsel %vm5061_vm2, %v3673_v17, %v3677_v18  ;;  %v3451_v17 = vld [vmem:[#allocation3 + $0x90] sm:$0xf] }
 0x342   :  { %3898 = vrot.lane.b32.xlu2 %v3863_v43, %s4930_s11  ;;  %3097 = vrot.lane.b32.xlu1 %v3066_v44, %s4925_s22  ;;  %v2968_v43 = vsel %vm5061_vm2, %v2963_v28, %v2967_v33  ;;  %v3439_v44 = vld [vmem:[#allocation3 + $0x60] sm:$0xf]  ;;  %v3652_v25 = vshrl.u32 %v3451_v17, 16  ;;  %v3591_v28 = vshll.u32 %v3442_v21, 16  ;;  %v3762_v33 = vld [vmem:[#allocation3 + $0x68] sm:$0xe] }
 0x343   :  { %3290 = vrot.lane.b32.xlu0 %v3259_v51, %s4927_s2  ;;  %v3568_v51 = vshrl.u32 %v3439_v44, 16  ;;  %v4615_v46 = vrot.slane %v3762_v33, 9 }
 0x344   :  { %v3363_v52 = vpop.permute.xlu2 %3362  ;;  %v3879_v53 = vpop.permute.xlu1 %3878 }
 0x345   :  { %3409 = vst.msk [vmem:[#allocation4 + $0x8] sm:$0xf] %vm3406_vm1, %v3363_v52  ;;  %v2757_v58 = vpop.permute.xlu0 %2756  ;;  %4729 = vmatmul.msk.bf16.gmra.mxu2 %vm4168_vm15, %v4709_v41  ;;  %v3571_v52 = vshll.u32 %v3439_v44, 16  ;;  %v3570_v60 = vrot.slane %v3568_v51, 4 }
 0x346   :  { %3730 = vst.msk [vmem:[#allocation4 + $0x8] sm:$0xf] %vm3727_vm4, %v3684_v29  ;;  %v3772_v29 = vld [vmem:[#allocation3 + $0x90] sm:$0xe] }
 0x347   :  { %3923 = vst.msk [vmem:[#allocation4 + $0x8] sm:$0xf] %vm3920_vm5, %v3877_v37  ;;  %v4620_v37 = vrot.slane %v3772_v29, 9  ;;  %v3573_v61 = vrot.slane %v3571_v52, 5  ;;  %v2829_v29 = vld [vmem:[#allocation3 + $0x60] sm:$0xf] }
 0x348   :  { %2800 = vst.msk [vmem:[#allocation4 + $0x14] sm:$0xf] %vm2794_vm12, %v2757_v58  ;;  %v2970_v44 = vshrl.u32 %v2829_v29, 16  ;;  %v2973_v45 = vshll.u32 %v2829_v29, 16 }
 0x349   :  { %v3867_v47 = vsel %vm6163_vm10, %v4620_v37, %v3866_v38  ;;  %v3574_v12 = vor.u32 %v3573_v61, %v3570_v60  ;;  %v3654_v38 = vrot.slane %v3652_v25, 4 }
 0x34a   :  { %3370 = vrot.lane.b32.xlu2 %v3332_v63, %s4928_s9  ;;  %3386 = vrot.lane.b32.xlu1 %v3340_v5, %s4928_s9  ;;  %v3160_v63 = vld [vmem:[#allocation3 + $0x88] sm:$0xe]  ;;  %v3161_v5 = vld [vmem:[#allocation3 + $0x8c] sm:$0x1] }
 0x34b   :  { %2762 = vrot.lane.b32.xlu0 %v2722_v13, %s4923_s30  ;;  %v4604_v13 = vrot.slane %v3160_v63, 9  ;;  %v3575_v4 = vrot.slane %v3574_v12, 4 }
 0x34c   :  { %v3686_v14 = vpop.permute.xlu2 %3685  ;;  %v3076_v8 = vpop.permute.xlu1 %3075 }
 0x34d   :  { %3731 = vst.msk [vmem:[#allocation4 + $0xc] sm:$0xf] %vm3727_vm4, %v3686_v14  ;;  %v3269_v19 = vpop.permute.xlu0 %3268  ;;  %v3254_v14 = vrot.slane %v3161_v5, 5  ;;  %v3000_v5 = vrot.slane %v2998_v54, 4 }
 0x34e   :  { %3924 = vst.msk [vmem:[#allocation4 + $0xc] sm:$0xf] %vm3920_vm5, %v3879_v53  ;;  %v3150_v53 = vld [vmem:[#allocation3 + $0x60] sm:$0xe] }
 0x34f   :  { %v4599_v58 = vrot.slane %v3150_v53, 9  ;;  %v3255_v23 = vsel %vm6163_vm10, %v4604_v13, %v3254_v14  ;;  %v2834_v13 = vld [vmem:[#allocation3 + $0x74] sm:$0x1] }
 0x351   :  { %v3235_v7 = vsel %vm6163_vm10, %v4599_v58, %v3234_v59 }
 0x352   :  { %3693 = vrot.lane.b32.xlu2 %v3566_v20, %s4929_s10  ;;  %2764 = vrot.lane.b32.xlu1 %v2723_v22, %s4923_s30  ;;  %v4760_v20 = vld [vmem:[%s6815_s0 + $0x1fc] sm:$0xf0] }
 0x353   :  { %3709 = vrot.lane.b32.xlu0 %v3678_v24, %s4929_s10  ;;  %v3334_v24 = vld [vmem:[#allocation3 + $0x60] sm:$0xf] }
 0x354   :  { %v2755_v26 = vpop.permute.xlu2 %2754  ;;  %v3271_v15 = vpop.permute.xlu1 %3270 }
 0x355   :  { %2799 = vst.msk [vmem:[#allocation4 + $0x10] sm:$0xf] %vm2794_vm12, %v2755_v26  ;;  %v4745_v30 = vld [vmem:[#allocation4 + $0x8] sm:$0xff]  ;;  %v3369_v34 = vpop.permute.xlu0 %3368  ;;  %v3655_v26 = vshll.u32 %v3451_v17, 16 }
 0x356   :  { %3120 = vst.msk [vmem:[#allocation4 + $0x10] sm:$0xf] %vm3115_vm9, %v3076_v8  ;;  %4671 = vmatmul.msk.bf16.gmra.mxu1 %vm4033_vm6, %v4745_v30  ;;  %v3584_v8 = vrot.slane %v3582_v2, 4  ;;  %v3580_v30 = vsel %vm5061_vm2, %v3575_v4, %v3579_v27  ;;  %v2975_v2 = vrot.slane %v2973_v45, 5  ;;  %v2724_v17 = vld [vmem:[#allocation3 + $0x68] sm:$0xf] }
 0x357   :  { %3313 = vst.msk [vmem:[#allocation4 + $0x10] sm:$0xf] %vm3308_vm14, %v3269_v19  ;;  %v4712_v19 = vld [vmem:[%s6815_s0 + $0x1f8] sm:$0xf]  ;;  %v3657_v39 = vrot.slane %v3655_v26, 5 }
 0x358   :  { %v4713_v22 = vor.u32 %v4760_v20, %v4712_v19  ;;  %v3588_v10 = vor.u32 %v3587_v1, %v3584_v8  ;;  %v4716_v8 = vld [vmem:[%s6815_s0 + $0x208] sm:$0xf]  ;;  %v4761_v1 = vld [vmem:[%s6815_s0 + $0x20c] sm:$0xf0]  ;;  %v3004_v19 = vor.u32 %v3003_v6, %v3000_v5  ;;  %v3444_v45 = vld [vmem:[#allocation3 + $0x74] sm:$0x1] }
 0x359   :  { %v3658_v53 = vor.u32 %v3657_v39, %v3654_v38  ;;  %v3443_v20 = vld [vmem:[#allocation3 + $0x70] sm:$0xf]  ;;  %v4717_v4 = vor.u32 %v4761_v1, %v4716_v8  ;;  %v3605_v55 = vshll.u32 %v3444_v45, 16 }
 0x35a   :  { %2677 = vrot.lane.b32.xlu2 %v2644_v42, %s4921_s15  ;;  %3083 = vrot.lane.b32.xlu1 %v2968_v43, %s4925_s22  ;;  %v3589_v37 = vrot.slane %v3588_v10, 4  ;;  %v3341_v42 = vld [vmem:[#allocation3 + $0x98] sm:$0xf]  ;;  %v3593_v43 = vrot.slane %v3591_v28, 5  ;;  %v3154_v26 = vld [vmem:[#allocation3 + $0x70] sm:$0xe] }
 0x35b   :  { %3900 = vrot.lane.b32.xlu0 %v3867_v47, %s4930_s11  ;;  %4730 = vmatmul.msk.bf16.gmra.mxu2 %vm4168_vm15, %v4713_v22  ;;  %v3659_v63 = vrot.slane %v3658_v53, 4  ;;  %v3599_v27 = vshll.u32 %v3443_v20, 16  ;;  %v3005_v29 = vrot.slane %v3004_v19, 4  ;;  %v3760_v19 = vld [vmem:[#allocation3 + $0x60] sm:$0xe] }
 0x35c   :  { %v3078_v48 = vpop.permute.xlu2 %3077  ;;  %v3688_v50 = vpop.permute.xlu1 %3687  ;;  %v3594_v52 = vsel %vm5061_vm2, %v3589_v37, %v3593_v43  ;;  %v3148_v43 = vld [vmem:[#allocation3 + $0x58] sm:$0xe] }
 0x35d   :  { %3121 = vst.msk [vmem:[#allocation4 + $0x14] sm:$0xf] %vm3115_vm9, %v3078_v48  ;;  %v3881_v56 = vpop.permute.xlu0 %3880  ;;  %v3452_v48 = vld [vmem:[#allocation3 + $0x94] sm:$0x1]  ;;  %v3601_v38 = vrot.slane %v3599_v27, 5 }
 0x35e   :  { %3314 = vst.msk [vmem:[#allocation4 + $0x14] sm:$0xf] %vm3308_vm14, %v3271_v15  ;;  %v2831_v15 = vld [vmem:[#allocation3 + $0x68] sm:$0xf]  ;;  %v2725_v27 = vld [vmem:[#allocation3 + $0x70] sm:$0xf] }
 0x35f   :  { %3412 = vst.msk [vmem:[#allocation4 + $0x14] sm:$0xf] %vm3406_vm1, %v3369_v34  ;;  %v3763_v34 = vld [vmem:[#allocation3 + $0x6c] sm:$0x1]  ;;  %v2984_v35 = vshrl.u32 %v2831_v15, 16  ;;  %v2987_v36 = vshll.u32 %v2831_v15, 16 }
 0x360   :  { %v3846_v47 = vrot.slane %v3763_v34, 5  ;;  %v3596_v15 = vshrl.u32 %v3443_v20, 16  ;;  %v3761_v20 = vld [vmem:[#allocation3 + $0x64] sm:$0x1] }
 0x361   :  { %v2989_v51 = vrot.slane %v2987_v36, 5 }
 0x362   :  { %2776 = vrot.lane.b32.xlu2 %v2729_v0, %s4923_s30  ;;  %3902 = vrot.lane.b32.xlu1 %v3871_v57, %s4930_s11  ;;  %v2832_v57 = vld [vmem:[#allocation3 + $0x6c] sm:$0x1]  ;;  %v3847_v58 = vsel %vm6163_vm10, %v4615_v46, %v3846_v47  ;;  %v2972_v0 = vrot.slane %v2970_v44, 4  ;;  %v3598_v37 = vrot.slane %v3596_v15, 4  ;;  %v3149_v44 = vld [vmem:[#allocation3 + $0x5c] sm:$0x1] }
 0x363   :  { %3278 = vrot.lane.b32.xlu0 %v3235_v7, %s4927_s2  ;;  %v2993_v7 = vshll.u32 %v2832_v57, 16  ;;  %v3446_v57 = vld [vmem:[#allocation3 + $0x7c] sm:$0x1] }
 0x364   :  { %v3367_v9 = vpop.permute.xlu2 %3366  ;;  %v3883_v11 = vpop.permute.xlu1 %3882  ;;  %v3619_v5 = vshll.u32 %v3446_v57, 16 }
 0x365   :  { %3411 = vst.msk [vmem:[#allocation4 + $0x10] sm:$0xf] %vm3406_vm1, %v3367_v9  ;;  %v2773_v18 = vpop.permute.xlu0 %2772  ;;  %v2830_v9 = vld [vmem:[#allocation3 + $0x64] sm:$0x1]  ;;  %v2995_v21 = vrot.slane %v2993_v7, 5 }
 0x366   :  { %3732 = vst.msk [vmem:[#allocation4 + $0x10] sm:$0xf] %vm3727_vm4, %v3688_v50  ;;  %v2986_v50 = vrot.slane %v2984_v35, 4  ;;  %v2979_v22 = vshll.u32 %v2830_v9, 16  ;;  %v4601_v35 = vrot.slane %v3154_v26, 9  ;;  %v3621_v8 = vrot.slane %v3619_v5, 5 }
 0x367   :  { %3925 = vst.msk [vmem:[#allocation4 + $0x10] sm:$0xf] %vm3920_vm5, %v3881_v56  ;;  %v3661_v56 = vshll.u32 %v3452_v48, 16 }
 0x368   :  { %2808 = vst.msk [vmem:[#allocation4 + $0x34] sm:$0xf] %vm2794_vm12, %v2773_v18  ;;  %v2990_v61 = vor.u32 %v2989_v51, %v2986_v50  ;;  %v2976_v18 = vor.u32 %v2975_v2, %v2972_v0  ;;  %v2981_v33 = vrot.slane %v2979_v22, 5  ;;  %v3602_v50 = vor.u32 %v3601_v38, %v3598_v37  ;;  %v3336_v0 = vld [vmem:[#allocation3 + $0x70] sm:$0xf] }
 0x369   :  { %v3663_v12 = vrot.slane %v3661_v56, 5  ;;  %v4598_v51 = vrot.slane %v3148_v43, 9  ;;  %v3765_v43 = vld [vmem:[#allocation3 + $0x74] sm:$0x1] }
 0x36a   :  { %3288 = vrot.lane.b32.xlu2 %v3255_v23, %s4927_s2  ;;  %3374 = vrot.lane.b32.xlu1 %v3334_v24, %s4928_s9  ;;  %v2991_v14 = vrot.slane %v2990_v61, 4  ;;  %v3007_v23 = vshll.u32 %v2834_v13, 16  ;;  %v2977_v28 = vrot.slane %v2976_v18, 4  ;;  %v3767_v13 = vld [vmem:[#allocation3 + $0x7c] sm:$0x1] }
 0x36b   :  { %3695 = vrot.lane.b32.xlu0 %v3580_v30, %s4929_s10  ;;  %v3664_v16 = vsel %vm5061_vm2, %v3659_v63, %v3663_v12  ;;  %4731 = vmatmul.msk.bf16.gmra.mxu2 %vm4168_vm15, %v4717_v4  ;;  %v3155_v30 = vld [vmem:[#allocation3 + $0x74] sm:$0x1]  ;;  %v3607_v63 = vrot.slane %v3605_v55, 5 }
 0x36c   :  { %v3690_v31 = vpop.permute.xlu2 %3689  ;;  %v3092_v32 = vpop.permute.xlu1 %3091  ;;  %v2996_v24 = vsel %vm5061_vm2, %v2991_v14, %v2995_v21  ;;  %v3009_v34 = vrot.slane %v3007_v23, 5  ;;  %v3242_v36 = vrot.slane %v3155_v30, 5  ;;  %v2982_v39 = vsel %vm5061_vm2, %v2977_v28, %v2981_v33  ;;  %v3152_v28 = vld [vmem:[#allocation3 + $0x68] sm:$0xe] }
 0x36d   :  { %3733 = vst.msk [vmem:[#allocation4 + $0x14] sm:$0xf] %vm3727_vm4, %v3690_v31  ;;  %v3285_v41 = vpop.permute.xlu0 %3284  ;;  %v3445_v31 = vld [vmem:[#allocation3 + $0x78] sm:$0xf]  ;;  %v4614_v23 = vrot.slane %v3760_v19, 9  ;;  %v4600_v33 = vrot.slane %v3152_v28, 9 }
 0x36e   :  { %3926 = vst.msk [vmem:[#allocation4 + $0x14] sm:$0xf] %vm3920_vm5, %v3883_v11  ;;  %v3010_v40 = vsel %vm5061_vm2, %v3005_v29, %v3009_v34  ;;  %v3243_v46 = vsel %vm6163_vm10, %v4601_v35, %v3242_v36  ;;  %v3153_v29 = vld [vmem:[#allocation3 + $0x6c] sm:$0x1] }
 0x36f   :  { %v3238_v34 = vrot.slane %v3153_v29, 5 }
 0x371   :  { %v3239_v36 = vsel %vm6163_vm10, %v4600_v33, %v3238_v34 }
 0x372   :  { %3388 = vrot.lane.b32.xlu2 %v3341_v42, %s4928_s9  ;;  %3697 = vrot.lane.b32.xlu1 %v3594_v52, %s4929_s10  ;;  %v3613_v42 = vshll.u32 %v3445_v31, 16  ;;  %v3230_v52 = vrot.slane %v3149_v44, 5 }
 0x373   :  { %3890 = vrot.lane.b32.xlu0 %v3847_v58, %s4930_s11  ;;  %v3603_v58 = vrot.slane %v3602_v50, 4 }
 0x374   :  { %v2771_v59 = vpop.permute.xlu2 %2770  ;;  %v3287_v60 = vpop.permute.xlu1 %3286  ;;  %v3615_v54 = vrot.slane %v3613_v42, 5  ;;  %v3231_v61 = vsel %vm6163_vm10, %v4598_v51, %v3230_v52  ;;  %v3764_v42 = vld [vmem:[#allocation3 + $0x70] sm:$0xe]  ;;  %v3850_v51 = vrot.slane %v3765_v43, 5 }
 0x375   :  { %2807 = vst.msk [vmem:[#allocation4 + $0x30] sm:$0xf] %vm2794_vm12, %v2771_v59  ;;  %v4746_v3 = vld [vmem:[#allocation4 + $0x10] sm:$0xff]  ;;  %v3385_v11 = vpop.permute.xlu0 %3384  ;;  %v4720_v59 = vld [vmem:[%s6815_s0 + $0x218] sm:$0xf]  ;;  %v3608_v6 = vsel %vm5061_vm2, %v3603_v58, %v3607_v63  ;;  %v4616_v50 = vrot.slane %v3764_v42, 9 }
 0x376   :  { %3128 = vst.msk [vmem:[#allocation4 + $0x30] sm:$0xf] %vm3115_vm9, %v3092_v32  ;;  %4672 = vmatmul.msk.bf16.gmra.mxu1 %vm4033_vm6, %v4746_v3 }
 0x377   :  { %3321 = vst.msk [vmem:[#allocation4 + $0x30] sm:$0xf] %vm3308_vm14, %v3285_v41  ;;  %v3610_v41 = vshrl.u32 %v3445_v31, 16 }
 0x379   :  { %v3612_v53 = vrot.slane %v3610_v41, 4  ;;  %v6643_v41 = vld [vmem:[%s6820_s4] ss:$0 sm:$0xff] }
 0x37a   :  { %3707 = vrot.lane.b32.xlu2 %v3664_v16, %s4929_s10  ;;  %2766 = vrot.lane.b32.xlu1 %v2724_v17, %s4923_s30  ;;  %v3854_v16 = vrot.slane %v3767_v13, 5  ;;  %v3335_v17 = vld [vmem:[#allocation3 + $0x68] sm:$0xf] }
 0x37b   :  { %3087 = vrot.lane.b32.xlu0 %v2996_v24, %s4925_s22  ;;  %v3616_v2 = vor.u32 %v3615_v54, %v3612_v53  ;;  %v3842_v24 = vrot.slane %v3761_v20, 5  ;;  %v6651_v53 = vld [vmem:[%s6821_s6] ss:$0 sm:$0xff] }
 0x37c   :  { %v3094_v10 = vpop.permute.xlu2 %3093  ;;  %v2759_v25 = vpop.permute.xlu1 %2758 }
 0x37d   :  { %3129 = vst.msk [vmem:[#allocation4 + $0x34] sm:$0xf] %vm3115_vm9, %v3094_v10  ;;  %v3704_v32 = vpop.permute.xlu0 %3703  ;;  %v3617_v12 = vrot.slane %v3616_v2, 4  ;;  %v3843_v10 = vsel %vm6163_vm10, %v4614_v23, %v3842_v24 }
 0x37e   :  { %3322 = vst.msk [vmem:[#allocation4 + $0x34] sm:$0xf] %vm3308_vm14, %v3287_v60  ;;  %v4762_v60 = vld [vmem:[%s6815_s0 + $0x21c] sm:$0xf0] }
 0x37f   :  { %3420 = vst.msk [vmem:[#allocation4 + $0x34] sm:$0xf] %vm3406_vm1, %v3385_v11  ;;  %v4721_v3 = vor.u32 %v4762_v60, %v4720_v59  ;;  %v3766_v11 = vld [vmem:[#allocation3 + $0x78] sm:$0xe]  ;;  %v3622_v18 = vsel %vm5061_vm2, %v3617_v12, %v3621_v8  ;;  %vm4361_vm2 = vcmask 64512  }
 0x380   :  { %2801 = vst.msk [vmem:[#allocation4 + $0x18] sm:$0xf] %vm2794_vm12, %v2759_v25  ;;  %v4617_v1 = vrot.slane %v3766_v11, 9 }
 0x381   :  { %4732 = vmatmul.msk.bf16.gmra.mxu2 %vm4168_vm15, %v4721_v3 }
 0x382   :  { %3085 = vrot.lane.b32.xlu2 %v2982_v39, %s4925_s22  ;;  %3089 = vrot.lane.b32.xlu1 %v3010_v40, %s4925_s22  ;;  %v3855_v4 = vsel %vm6163_vm10, %v4617_v1, %v3854_v16  ;;  %v3337_v40 = vld [vmem:[#allocation3 + $0x78] sm:$0xf] }
 0x383   :  { %3282 = vrot.lane.b32.xlu0 %v3243_v46, %s4927_s2 }
 0x384   :  { %v3383_v47 = vpop.permute.xlu2 %3382  ;;  %v3706_v48 = vpop.permute.xlu1 %3705 }
 0x385   :  { %3419 = vst.msk [vmem:[#allocation4 + $0x30] sm:$0xf] %vm3406_vm1, %v3383_v47  ;;  %v3082_v56 = vpop.permute.xlu0 %3081 }
 0x386   :  { %3740 = vst.msk [vmem:[#allocation4 + $0x30] sm:$0xf] %vm3727_vm4, %v3704_v32 }
 0x387   :  { %3741 = vst.msk [vmem:[#allocation4 + $0x34] sm:$0xf] %vm3727_vm4, %v3706_v48 }
 0x38a   :  { %3276 = vrot.lane.b32.xlu2 %v3231_v61, %s4927_s2  ;;  %3378 = vrot.lane.b32.xlu1 %v3336_v0, %s4928_s9 }
 0x38b   :  { %3699 = vrot.lane.b32.xlu0 %v3608_v6, %s4929_s10 }
 0x38c   :  { %v2761_v7 = vpop.permute.xlu2 %2760  ;;  %v3897_v9 = vpop.permute.xlu1 %3896 }
 0x38d   :  { %2802 = vst.msk [vmem:[#allocation4 + $0x1c] sm:$0xf] %vm2794_vm12, %v2761_v7  ;;  %v3273_v14 = vpop.permute.xlu0 %3272 }
 0x38e   :  { %3123 = vst.msk [vmem:[#allocation4 + $0x1c] sm:$0xf] %vm3115_vm9, %v3082_v56  ;;  %v4205_v44 = vpop.f32.mrf.mxu2  ;;  %v3851_v56 = vsel %vm6163_vm10, %v4616_v50, %v3850_v51 }
 0x38f   :  { %3933 = vst.msk [vmem:[#allocation4 + $0x30] sm:$0xf] %vm3920_vm5, %v3897_v9 }
 0x392   :  { %3376 = vrot.lane.b32.xlu2 %v3335_v17, %s4928_s9  ;;  %3701 = vrot.lane.b32.xlu1 %v3622_v18, %s4929_s10 }
 0x393   :  { %3894 = vrot.lane.b32.xlu0 %v3855_v4, %s4930_s11 }
 0x394   :  { %v3080_v21 = vpop.permute.xlu2 %3079  ;;  %v3275_v22 = vpop.permute.xlu1 %3274 }
 0x395   :  { %3122 = vst.msk [vmem:[#allocation4 + $0x18] sm:$0xf] %vm3115_vm9, %v3080_v21  ;;  %v3373_v49 = vpop.permute.xlu0 %3372 }
 0x396   :  { %3315 = vst.msk [vmem:[#allocation4 + $0x18] sm:$0xf] %vm3308_vm14, %v3273_v14  ;;  %v4207_v0 = vpop.f32.mrf.mxu2 }
 0x397   :  { %3316 = vst.msk [vmem:[#allocation4 + $0x1c] sm:$0xf] %vm3308_vm14, %v3275_v22 }
 0x398   :  { %3414 = vst.msk [vmem:[#allocation4 + $0x1c] sm:$0xf] %vm3406_vm1, %v3373_v49 }
 0x39a   :  { %3888 = vrot.lane.b32.xlu2 %v3843_v10, %s4930_s11 }
 0x39c   :  { %v3899_v25 = vpop.permute.xlu2 %3898  ;;  %v3692_v26 = vpop.permute.xlu1 %3691 }
 0x39d   :  { %3934 = vst.msk [vmem:[#allocation4 + $0x34] sm:$0xf] %vm3920_vm5, %v3899_v25  ;;  %v3885_v15 = vpop.permute.xlu0 %3884 }
 0x3a2   :  { %2768 = vrot.lane.b32.xlu2 %v2725_v27, %s4923_s30 }
 0x3a4   :  { %v3371_v30 = vpop.permute.xlu2 %3370  ;;  %v3887_v31 = vpop.permute.xlu1 %3886  ;;  %v4750_v32 = vld [vmem:[#allocation4 + $0x30] sm:$0xff] }
 0x3a5   :  { %3413 = vst.msk [vmem:[#allocation4 + $0x18] sm:$0xf] %vm3406_vm1, %v3371_v30  ;;  %4676 = vmatmul.msk.bf16.vlgmr.msrb.gmra.mxu3 %vm4033_vm6, %v4750_v32  ;;  %v2680_v35 = vpop.permute.xlu0 %2679 }
 0x3a6   :  { %3734 = vst.msk [vmem:[#allocation4 + $0x18] sm:$0xf] %vm3727_vm4, %v3692_v26 }
 0x3a7   :  { %3927 = vst.msk [vmem:[#allocation4 + $0x18] sm:$0xf] %vm3920_vm5, %v3885_v15 }
 0x3a8   :  { %2713 = vst.msk [vmem:[#allocation4 + $0x3c] sm:$0xf] %vm2697_vm11, %v2680_v35  ;;  %v4210_v8 = vpop.f32.mrf.mxu2 }
 0x3aa   :  { %3280 = vrot.lane.b32.xlu2 %v3239_v36, %s4927_s2 }
 0x3ac   :  { %v3694_v37 = vpop.permute.xlu2 %3693  ;;  %v2775_v38 = vpop.permute.xlu1 %2774 }
 0x3ad   :  { %3735 = vst.msk [vmem:[#allocation4 + $0x1c] sm:$0xf] %vm3727_vm4, %v3694_v37  ;;  %v3096_v39 = vpop.permute.xlu0 %3095 }
 0x3ae   :  { %3928 = vst.msk [vmem:[#allocation4 + $0x1c] sm:$0xf] %vm3920_vm5, %v3887_v31 }
 0x3b0   :  { %v4212_v4 = vpop.f32.mrf.mxu2 }
 0x3b2   :  { %3380 = vrot.lane.b32.xlu2 %v3337_v40, %s4928_s9 }
 0x3b3   :  { %v4071_v47 = vpop.f32.mrf.mxu1 }
 0x3b4   :  { %v2678_v45 = vpop.permute.xlu2 %2677  ;;  %v3098_v46 = vpop.permute.xlu1 %3097  ;;  %v4072_v52 = vadd.f32 %v6643_v41, %v4071_v47  ;;  %v4763_v47 = vld [vmem:[%s6815_s0 + $0x22c] sm:$0xf0] }
 0x3b5   :  { %2712 = vst.msk [vmem:[#allocation4 + $0x38] sm:$0xf] %vm2697_vm11, %v2678_v45  ;;  %v4747_v48 = vld [vmem:[#allocation4 + $0x18] sm:$0xff]  ;;  %v3291_v54 = vpop.permute.xlu0 %3290 }
 0x3b6   :  { %2809 = vst.msk [vmem:[#allocation4 + $0x38] sm:$0xf] %vm2794_vm12, %v2775_v38  ;;  %4673 = vmatmul.msk.bf16.gmra.mxu1 %vm4033_vm6, %v4747_v48  ;;  %v4245_v55 = vadd.f32 %v4205_v44, %v4072_v52 }
 0x3b7   :  { %3130 = vst.msk [vmem:[#allocation4 + $0x38] sm:$0xf] %vm3115_vm9, %v3096_v39 }
 0x3b8   :  { %v4265_v57 = vadd.f32 %v6651_v53, %v4245_v55  ;;  %v4215_v15 = vpop.f32.mrf.mxu2 }
 0x3ba   :  { %3892 = vrot.lane.b32.xlu2 %v3851_v56, %s4930_s11  ;;  %v4281_v58 = vsub.f32 0.0, %v4265_v57 }
 0x3bb   :  { %v4073_v61 = vpop.f32.mrf.mxu1 }
 0x3bc   :  { %v2777_v59 = vpop.permute.xlu2 %2776  ;;  %v3387_v60 = vpop.permute.xlu1 %3386  ;;  %v4297_v2 = vmul.f32 1.442695, %v4281_v58  ;;  %v4074_v3 = vadd.f32 %v6643_v41, %v4073_v61 }
 0x3bd   :  { %2810 = vst.msk [vmem:[#allocation4 + $0x3c] sm:$0xf] %vm2794_vm12, %v2777_v59  ;;  %v2763_v62 = vpop.permute.xlu0 %2762 }
 0x3be   :  { %3131 = vst.msk [vmem:[#allocation4 + $0x3c] sm:$0xf] %vm3115_vm9, %v3098_v46  ;;  %4853 = vpow2.f32 %v4297_v2  ;;  %v4246_v63 = vadd.f32 %v4207_v0, %v4074_v3  ;;  %v4724_v46 = vld [vmem:[%s6815_s0 + $0x228] sm:$0xf] }
 0x3bf   :  { %3324 = vst.msk [vmem:[#allocation4 + $0x3c] sm:$0xf] %vm3308_vm14, %v3291_v54  ;;  %v4725_v50 = vor.u32 %v4763_v47, %v4724_v46 }
 0x3c0   :  { %2803 = vst.msk [vmem:[#allocation4 + $0x20] sm:$0xf] %vm2794_vm12, %v2763_v62  ;;  %v4266_v5 = vadd.f32 %v6651_v53, %v4246_v63  ;;  %v4217_v43 = vpop.f32.mrf.mxu2 }
 0x3c2   :  { %v4282_v6 = vsub.f32 0.0, %v4266_v5 }
 0x3c4   :  { %v3289_v7 = vpop.permute.xlu2 %3288  ;;  %v2765_v9 = vpop.permute.xlu1 %2764  ;;  %v4299_v12 = vmul.f32 1.442695, %v4282_v6 }
 0x3c5   :  { %3323 = vst.msk [vmem:[#allocation4 + $0x38] sm:$0xf] %vm3308_vm14, %v3289_v7  ;;  %v4854_v11 = vpop.eup %4853  ;;  %v3710_v14 = vpop.permute.xlu0 %3709 }
 0x3c6   :  { %3421 = vst.msk [vmem:[#allocation4 + $0x38] sm:$0xf] %vm3406_vm1, %v3387_v60  ;;  %v4329_v13 = vadd.f32 1.0, %v4854_v11  ;;  %4855 = vpow2.f32 %v4299_v12 }
 0x3c7   :  { %2804 = vst.msk [vmem:[#allocation4 + $0x24] sm:$0xf] %vm2794_vm12, %v2765_v9 }
 0x3c8   :  { %4857 = vrcp.f32 %v4329_v13  ;;  %v6706_v57 = vpop.f32.mrf.mxu2 }
 0x3cc   :  { %v3389_v1 = vpop.permute.xlu2 %3388  ;;  %v3084_v16 = vpop.permute.xlu1 %3083 }
 0x3cd   :  { %3422 = vst.msk [vmem:[#allocation4 + $0x3c] sm:$0xf] %vm3406_vm1, %v3389_v1  ;;  %v4856_v17 = vpop.eup %4855  ;;  %v3901_v20 = vpop.permute.xlu0 %3900 }
 0x3ce   :  { %3743 = vst.msk [vmem:[#allocation4 + $0x3c] sm:$0xf] %vm3727_vm4, %v3710_v14  ;;  %v4858_v18 = vpop.eup %4857  ;;  %v4330_v19 = vadd.f32 1.0, %v4856_v17 }
 0x3cf   :  { %3124 = vst.msk [vmem:[#allocation4 + $0x20] sm:$0xf] %vm3115_vm9, %v3084_v16 }
 0x3d0   :  { %4362 = vst.msk [vmem:[%s6822_s7] sm:$0xff] %vm4361_vm2, %v4858_v18  ;;  %4859 = vrcp.f32 %v4330_v19  ;;  %v6716_v2 = vpop.f32.mrf.mxu2 }
 0x3d3   :  { %v4076_v23 = vpop.f32.mrf.mxu1 }
 0x3d4   :  { %v3708_v21 = vpop.permute.xlu2 %3707  ;;  %v3903_v22 = vpop.permute.xlu1 %3902  ;;  %v4077_v24 = vadd.f32 %v6643_v41, %v4076_v23 }
 0x3d5   :  { %3742 = vst.msk [vmem:[#allocation4 + $0x38] sm:$0xf] %vm3727_vm4, %v3708_v21  ;;  %v3279_v10 = vpop.permute.xlu0 %3278 }
 0x3d6   :  { %3935 = vst.msk [vmem:[#allocation4 + $0x38] sm:$0xf] %vm3920_vm5, %v3901_v20  ;;  %v4860_v49 = vpop.eup %4859  ;;  %v4247_v25 = vadd.f32 %v4210_v8, %v4077_v24 }
 0x3d7   :  { %3936 = vst.msk [vmem:[#allocation4 + $0x3c] sm:$0xf] %vm3920_vm5, %v3903_v22 }
 0x3d8   :  { %4363 = vst.msk [vmem:[%s6822_s7 + $0x8] sm:$0xff] %vm4361_vm2, %v4860_v49  ;;  %v4267_v26 = vadd.f32 %v6651_v53, %v4247_v25 }
 0x3da   :  { %v4283_v27 = vsub.f32 0.0, %v4267_v26 }
 0x3db   :  { %v4078_v30 = vpop.f32.mrf.mxu1 }
 0x3dc   :  { %v3086_v28 = vpop.permute.xlu2 %3085  ;;  %v3375_v29 = vpop.permute.xlu1 %3374  ;;  %v4301_v31 = vmul.f32 1.442695, %v4283_v27  ;;  %v4079_v32 = vadd.f32 %v6643_v41, %v4078_v30 }
 0x3dd   :  { %3125 = vst.msk [vmem:[#allocation4 + $0x24] sm:$0xf] %vm3115_vm9, %v3086_v28  ;;  %v3696_v34 = vpop.permute.xlu0 %3695 }
 0x3de   :  { %3318 = vst.msk [vmem:[#allocation4 + $0x24] sm:$0xf] %vm3308_vm14, %v3279_v10  ;;  %v4751_v33 = vld [vmem:[#allocation4 + $0x38] sm:$0xff]  ;;  %4861 = vpow2.f32 %v4301_v31  ;;  %v4248_v35 = vadd.f32 %v4212_v4, %v4079_v32  ;;  %v6724_v14 = vpop.f32.mrf.mxu2 }
 0x3df   :  { %4677 = vmatmul.msk.bf16.gmra.mxu3 %vm4033_vm6, %v4751_v33 }
 0x3e0   :  { %v4268_v36 = vadd.f32 %v6651_v53, %v4248_v35 }
 0x3e2   :  { %v4284_v37 = vsub.f32 0.0, %v4268_v36 }
 0x3e4   :  { %v3277_v38 = vpop.permute.xlu2 %3276  ;;  %v3698_v39 = vpop.permute.xlu1 %3697  ;;  %v4303_v42 = vmul.f32 1.442695, %v4284_v37 }
 0x3e5   :  { %3317 = vst.msk [vmem:[#allocation4 + $0x20] sm:$0xf] %vm3308_vm14, %v3277_v38  ;;  %v4862_v40 = vpop.eup %4861  ;;  %v3891_v45 = vpop.permute.xlu0 %3890 }
 0x3e6   :  { %3415 = vst.msk [vmem:[#allocation4 + $0x20] sm:$0xf] %vm3406_vm1, %v3375_v29  ;;  %v4331_v44 = vadd.f32 1.0, %v4862_v40  ;;  %4863 = vpow2.f32 %v4303_v42  ;;  %v6730_v21 = vpop.f32.mrf.mxu2 }
 0x3e7   :  { %3736 = vst.msk [vmem:[#allocation4 + $0x20] sm:$0xf] %vm3727_vm4, %v3696_v34 }
 0x3e8   :  { %4865 = vrcp.f32 %v4331_v44 }
 0x3ec   :  { %v3377_v48 = vpop.permute.xlu2 %3376  ;;  %v4864_v51 = vpop.eup %4863 }
 0x3ed   :  { %3416 = vst.msk [vmem:[#allocation4 + $0x24] sm:$0xf] %vm3406_vm1, %v3377_v48  ;;  %v2767_v52 = vpop.permute.xlu1 %2766  ;;  %v4332_v55 = vadd.f32 1.0, %v4864_v51  ;;  %v3088_v56 = vpop.permute.xlu0 %3087 }
 0x3ee   :  { %3737 = vst.msk [vmem:[#allocation4 + $0x24] sm:$0xf] %vm3727_vm4, %v3698_v39  ;;  %v4866_v54 = vpop.eup %4865  ;;  %v6739_v26 = vpop.f32.mrf.mxu2 }
 0x3ef   :  { %3930 = vst.msk [vmem:[#allocation4 + $0x24] sm:$0xf] %vm3920_vm5, %v3891_v45  ;;  %4733 = vmatmul.msk.bf16.vlgmr.msra.gmra.mxu3 %vm4168_vm15, %v4725_v50  ;;  %4867 = vrcp.f32 %v4332_v55 }
 0x3f0   :  { %4364 = vst.msk [vmem:[%s6822_s7 + $0x10] sm:$0xff] %vm4361_vm2, %v4866_v54 }
 0x3f1   :  { %2805 = vst.msk [vmem:[#allocation4 + $0x28] sm:$0xf] %vm2794_vm12, %v2767_v52 }
 0x3f2   :  { %3126 = vst.msk [vmem:[#allocation4 + $0x28] sm:$0xf] %vm3115_vm9, %v3088_v56 }
 0x3f3   :  { %v4081_v59 = vpop.f32.mrf.mxu1 }
 0x3f4   :  { %v3889_v58 = vpop.permute.xlu2 %3888  ;;  %v4082_v60 = vadd.f32 %v6643_v41, %v4081_v59 }
 0x3f5   :  { %3929 = vst.msk [vmem:[#allocation4 + $0x20] sm:$0xf] %vm3920_vm5, %v3889_v58  ;;  %v4868_v61 = vpop.eup %4867  ;;  %v3090_v3 = vpop.permute.xlu1 %3089 }
 0x3f6   :  { %4365 = vst.msk [vmem:[%s6822_s7 + $0x18] sm:$0xff] %vm4361_vm2, %v4868_v61  ;;  %v4249_v0 = vadd.f32 %v4215_v15, %v4082_v60  ;;  %v3283_v62 = vpop.permute.xlu0 %3282  ;;  %v6746_v29 = vpop.f32.mrf.mxu2 }
 0x3f8   :  { %v4269_v63 = vadd.f32 %v6651_v53, %v4249_v0 }
 0x3fa   :  { %v4285_v5 = vsub.f32 0.0, %v4269_v63 }
 0x3fb   :  { %v4083_v9 = vpop.f32.mrf.mxu1 }
 0x3fc   :  { %v2769_v6 = vpop.permute.xlu2 %2768  ;;  %v4748_v7 = vld [vmem:[#allocation4 + $0x20] sm:$0xff]  ;;  %v4305_v11 = vmul.f32 1.442695, %v4285_v5  ;;  %v4084_v12 = vadd.f32 %v6643_v41, %v4083_v9 }
 0x3fd   :  { %2806 = vst.msk [vmem:[#allocation4 + $0x2c] sm:$0xf] %vm2794_vm12, %v2769_v6  ;;  %4674 = vmatmul.msk.bf16.gmra.mxu1 %vm4033_vm6, %v4748_v7  ;;  %v3379_v1 = vpop.permute.xlu1 %3378 }
 0x3fe   :  { %3127 = vst.msk [vmem:[#allocation4 + $0x2c] sm:$0xf] %vm3115_vm9, %v3090_v3  ;;  %4869 = vpow2.f32 %v4305_v11  ;;  %v4250_v13 = vadd.f32 %v4217_v43, %v4084_v12  ;;  %v3700_v16 = vpop.permute.xlu0 %3699 }
 0x3ff   :  { %3320 = vst.msk [vmem:[#allocation4 + $0x2c] sm:$0xf] %vm3308_vm14, %v3283_v62 }
 0x400   :  { %v4270_v8 = vadd.f32 %v6651_v53, %v4250_v13 }
 0x402   :  { %v4286_v17 = vsub.f32 0.0, %v4270_v8 }
 0x404   :  { %v3281_v18 = vpop.permute.xlu2 %3280  ;;  %v4870_v19 = vpop.eup %4869  ;;  %v4307_v20 = vmul.f32 1.442695, %v4286_v17 }
 0x405   :  { %3319 = vst.msk [vmem:[#allocation4 + $0x28] sm:$0xf] %vm3308_vm14, %v3281_v18  ;;  %v4333_v4 = vadd.f32 1.0, %v4870_v19  ;;  %v3702_v23 = vpop.permute.xlu1 %3701  ;;  %v4235_v30 = vpop.f32.mrf.mxu2 }
 0x406   :  { %3417 = vst.msk [vmem:[#allocation4 + $0x28] sm:$0xf] %vm3406_vm1, %v3379_v1  ;;  %4871 = vpow2.f32 %v4307_v20  ;;  %v3895_v49 = vpop.permute.xlu0 %3894 }
 0x407   :  { %3738 = vst.msk [vmem:[#allocation4 + $0x28] sm:$0xf] %vm3727_vm4, %v3700_v16  ;;  %4873 = vrcp.f32 %v4333_v4 }
 0x40c   :  { %v3381_v22 = vpop.permute.xlu2 %3380  ;;  %v4872_v24 = vpop.eup %4871 }
 0x40d   :  { %3418 = vst.msk [vmem:[#allocation4 + $0x2c] sm:$0xf] %vm3406_vm1, %v3381_v22  ;;  %v4874_v10 = vpop.eup %4873  ;;  %v4334_v25 = vadd.f32 1.0, %v4872_v24  ;;  %v4237_v37 = vpop.f32.mrf.mxu2 }
 0x40e   :  { %3739 = vst.msk [vmem:[#allocation4 + $0x2c] sm:$0xf] %vm3727_vm4, %v3702_v23 }
 0x40f   :  { %3932 = vst.msk [vmem:[#allocation4 + $0x2c] sm:$0xf] %vm3920_vm5, %v3895_v49  ;;  %4875 = vrcp.f32 %v4334_v25 }
 0x410   :  { %4366 = vst.msk [vmem:[%s6822_s7 + $0x20] sm:$0xff] %vm4361_vm2, %v4874_v10 }
 0x414   :  { %v3893_v15 = vpop.permute.xlu2 %3892 }
 0x415   :  { %3931 = vst.msk [vmem:[#allocation4 + $0x28] sm:$0xf] %vm3920_vm5, %v3893_v15  ;;  %v4876_v27 = vpop.eup %4875 }
 0x416   :  { %4367 = vst.msk [vmem:[%s6822_s7 + $0x28] sm:$0xff] %vm4361_vm2, %v4876_v27 }
 0x41c   :  { %v4749_v28 = vld [vmem:[#allocation4 + $0x28] sm:$0xff] }
 0x41d   :  { %4675 = vmatmul.msk.bf16.gmra.mxu1 %vm4033_vm6, %v4749_v28 }
 0x428   :  { %v4101_v31 = vpop.f32.mrf.mxu3 }
 0x429   :  { %v4102_v32 = vadd.f32 %v6643_v41, %v4101_v31 }
 0x42b   :  { %v4257_v33 = vadd.f32 %v4235_v30, %v4102_v32 }
 0x42d   :  { %v4277_v34 = vadd.f32 %v6651_v53, %v4257_v33 }
 0x42f   :  { %v4293_v35 = vsub.f32 0.0, %v4277_v34 }
 0x430   :  { %v4103_v36 = vpop.f32.mrf.mxu3 }
 0x431   :  { %v4321_v38 = vmul.f32 1.442695, %v4293_v35  ;;  %v4104_v39 = vadd.f32 %v6643_v41, %v4103_v36 }
 0x433   :  { %4877 = vpow2.f32 %v4321_v38  ;;  %v4258_v40 = vadd.f32 %v4237_v37, %v4104_v39  ;;  %v4086_v42 = vpop.f32.mrf.mxu1 }
 0x434   :  { %v4087_v43 = vadd.f32 %v6643_v41, %v4086_v42 }
 0x435   :  { %v4278_v44 = vadd.f32 %v6651_v53, %v4258_v40 }
 0x436   :  { %v4251_v45 = vadd.f32 %v6706_v57, %v4087_v43 }
 0x437   :  { %v4294_v46 = vsub.f32 0.0, %v4278_v44 }
 0x438   :  { %v4271_v47 = vadd.f32 %v6651_v53, %v4251_v45 }
 0x439   :  { %v4878_v48 = vpop.eup %4877  ;;  %v4323_v50 = vmul.f32 1.442695, %v4294_v46 }
 0x43a   :  { %v4341_v51 = vadd.f32 1.0, %v4878_v48  ;;  %v4287_v52 = vsub.f32 0.0, %v4271_v47 }
 0x43b   :  { %4879 = vpow2.f32 %v4323_v50  ;;  %v4088_v54 = vpop.f32.mrf.mxu1 }
 0x43c   :  { %4881 = vrcp.f32 %v4341_v51  ;;  %v4309_v55 = vmul.f32 1.442695, %v4287_v52  ;;  %v4089_v56 = vadd.f32 %v6643_v41, %v4088_v54 }
 0x43e   :  { %4883 = vpow2.f32 %v4309_v55  ;;  %v4252_v58 = vadd.f32 %v6716_v2, %v4089_v56 }
 0x440   :  { %v4272_v59 = vadd.f32 %v6651_v53, %v4252_v58 }
 0x441   :  { %v4880_v60 = vpop.eup %4879 }
 0x442   :  { %v4882_v57 = vpop.eup %4881  ;;  %v4342_v61 = vadd.f32 1.0, %v4880_v60  ;;  %v4288_v0 = vsub.f32 0.0, %v4272_v59 }
 0x443   :  { %4374 = vst.msk [vmem:[%s6822_s7 + $0x60] sm:$0xff] %vm4361_vm2, %v4882_v57 }
 0x444   :  { %v4884_v3 = vpop.eup %4883  ;;  %4885 = vrcp.f32 %v4342_v61  ;;  %v4311_v62 = vmul.f32 1.442695, %v4288_v0 }
 0x445   :  { %v4335_v63 = vadd.f32 1.0, %v4884_v3 }
 0x446   :  { %4887 = vpow2.f32 %v4311_v62 }
 0x447   :  { %4889 = vrcp.f32 %v4335_v63 }
 0x44a   :  { %v4886_v5 = vpop.eup %4885 }
 0x44b   :  { %4375 = vst.msk [vmem:[%s6822_s7 + $0x68] sm:$0xff] %vm4361_vm2, %v4886_v5 }
 0x44c   :  { %v4888_v2 = vpop.eup %4887 }
 0x44d   :  { %v4890_v6 = vpop.eup %4889  ;;  %v4336_v7 = vadd.f32 1.0, %v4888_v2 }
 0x44e   :  { %4368 = vst.msk [vmem:[%s6822_s7 + $0x30] sm:$0xff] %vm4361_vm2, %v4890_v6 }
 0x44f   :  { %4891 = vrcp.f32 %v4336_v7 }
 0x455   :  { %v4892_v9 = vpop.eup %4891 }
 0x456   :  { %4369 = vst.msk [vmem:[%s6822_s7 + $0x38] sm:$0xff] %vm4361_vm2, %v4892_v9 }
 0x462   :  { %v4106_v11 = vpop.f32.mrf.mxu3 }
 0x463   :  { %v4107_v13 = vadd.f32 %v6643_v41, %v4106_v11 }
 0x46a   :  { %v4108_v12 = vpop.f32.mrf.mxu3 }
 0x46b   :  { %v4109_v18 = vadd.f32 %v6643_v41, %v4108_v12 }
 0x472   :  { %v4240_v8 = vpop.f32.mrf.mxu3 }
 0x473   :  { %v4259_v1 = vadd.f32 %v4240_v8, %v4107_v13 }
 0x475   :  { %v4279_v16 = vadd.f32 %v6651_v53, %v4259_v1 }
 0x477   :  { %v4295_v17 = vsub.f32 0.0, %v4279_v16 }
 0x479   :  { %v4325_v19 = vmul.f32 1.442695, %v4295_v17 }
 0x47a   :  { %v4242_v20 = vpop.f32.mrf.mxu3  ;;  %v4091_v4 = vpop.f32.mrf.mxu1 }
 0x47b   :  { %4893 = vpow2.f32 %v4325_v19  ;;  %v4260_v22 = vadd.f32 %v4242_v20, %v4109_v18  ;;  %v4092_v23 = vadd.f32 %v6643_v41, %v4091_v4 }
 0x47d   :  { %v4280_v24 = vadd.f32 %v6651_v53, %v4260_v22  ;;  %v4253_v49 = vadd.f32 %v6724_v14, %v4092_v23 }
 0x47f   :  { %v4296_v10 = vsub.f32 0.0, %v4280_v24  ;;  %v4273_v25 = vadd.f32 %v6651_v53, %v4253_v49 }
 0x481   :  { %v4894_v15 = vpop.eup %4893  ;;  %v4327_v27 = vmul.f32 1.442695, %v4296_v10  ;;  %v4289_v28 = vsub.f32 0.0, %v4273_v25 }
 0x482   :  { %v4343_v30 = vadd.f32 1.0, %v4894_v15  ;;  %v4093_v31 = vpop.f32.mrf.mxu1 }
 0x483   :  { %4895 = vpow2.f32 %v4327_v27  ;;  %v4313_v32 = vmul.f32 1.442695, %v4289_v28  ;;  %v4094_v33 = vadd.f32 %v6643_v41, %v4093_v31 }
 0x484   :  { %4897 = vrcp.f32 %v4343_v30 }
 0x485   :  { %4899 = vpow2.f32 %v4313_v32  ;;  %v4254_v34 = vadd.f32 %v6730_v21, %v4094_v33 }
 0x487   :  { %v4274_v35 = vadd.f32 %v6651_v53, %v4254_v34 }
 0x489   :  { %v4896_v36 = vpop.eup %4895  ;;  %v4290_v14 = vsub.f32 0.0, %v4274_v35 }
 0x48a   :  { %v4898_v37 = vpop.eup %4897  ;;  %v4344_v38 = vadd.f32 1.0, %v4896_v36 }
 0x48b   :  { %v4900_v39 = vpop.eup %4899  ;;  %4376 = vst.msk [vmem:[%s6822_s7 + $0x70] sm:$0xff] %vm4361_vm2, %v4898_v37  ;;  %v4315_v40 = vmul.f32 1.442695, %v4290_v14 }
 0x48c   :  { %4901 = vrcp.f32 %v4344_v38  ;;  %v4337_v42 = vadd.f32 1.0, %v4900_v39 }
 0x48d   :  { %4903 = vpow2.f32 %v4315_v40 }
 0x48e   :  { %4905 = vrcp.f32 %v4337_v42 }
 0x492   :  { %v4902_v43 = vpop.eup %4901 }
 0x493   :  { %v4904_v44 = vpop.eup %4903  ;;  %4377 = vst.msk [vmem:[%s6822_s7 + $0x78] sm:$0xff] %vm4361_vm2, %v4902_v43 }
 0x494   :  { %v4906_v21 = vpop.eup %4905  ;;  %v4338_v45 = vadd.f32 1.0, %v4904_v44 }
 0x495   :  { %4370 = vst.msk [vmem:[%s6822_s7 + $0x40] sm:$0xff] %vm4361_vm2, %v4906_v21 }
 0x496   :  { %4907 = vrcp.f32 %v4338_v45 }
 0x49a   :  { %v4096_v46 = vpop.f32.mrf.mxu1 }
 0x49b   :  { %v4097_v47 = vadd.f32 %v6643_v41, %v4096_v46 }
 0x49c   :  { %v4908_v48 = vpop.eup %4907 }
 0x49d   :  { %4371 = vst.msk [vmem:[%s6822_s7 + $0x48] sm:$0xff] %vm4361_vm2, %v4908_v48  ;;  %v4255_v50 = vadd.f32 %v6739_v26, %v4097_v47 }
 0x49f   :  { %v4275_v51 = vadd.f32 %v6651_v53, %v4255_v50 }
 0x4a1   :  { %v4291_v52 = vsub.f32 0.0, %v4275_v51 }
 0x4a2   :  { %v4098_v54 = vpop.f32.mrf.mxu1 }
 0x4a3   :  { %v4317_v55 = vmul.f32 1.442695, %v4291_v52  ;;  %v4099_v56 = vadd.f32 %v6643_v41, %v4098_v54 }
 0x4a5   :  { %4909 = vpow2.f32 %v4317_v55  ;;  %v4256_v58 = vadd.f32 %v6746_v29, %v4099_v56 }
 0x4a7   :  { %v4276_v59 = vadd.f32 %v6651_v53, %v4256_v58 }
 0x4a9   :  { %v4292_v60 = vsub.f32 0.0, %v4276_v59 }
 0x4ab   :  { %v4910_v57 = vpop.eup %4909  ;;  %v4319_v61 = vmul.f32 1.442695, %v4292_v60 }
 0x4ac   :  { %v4339_v0 = vadd.f32 1.0, %v4910_v57 }
 0x4ad   :  { %4911 = vpow2.f32 %v4319_v61 }
 0x4ae   :  { %4913 = vrcp.f32 %v4339_v0 }
 0x4b3   :  { %v4912_v3 = vpop.eup %4911 }
 0x4b4   :  { %v4914_v26 = vpop.eup %4913  ;;  %v4340_v62 = vadd.f32 1.0, %v4912_v3 }
 0x4b5   :  { %4372 = vst.msk [vmem:[%s6822_s7 + $0x50] sm:$0xff] %vm4361_vm2, %v4914_v26 }
 0x4b6   :  { %4915 = vrcp.f32 %v4340_v62 }
 0x4bc   :  { %v4916_v41 = vpop.eup %4915 }
 0x4bd   :  { %4373 = vst.msk [vmem:[%s6822_s7 + $0x58] sm:$0xff] %vm4361_vm2, %v4916_v41 }

// kernel: fwd.3
= control target key start
LH: loop header
LB: loop body
LE: loop exit
PB: predicated region body
PF: predicated region fallthrough
CT: control target
= control target key end

     0   :  { %vm21_vm0 = vcmask 60416   ;;  %vm23_vm1 = vcmask 57344   ;;  %vm33_vm2 = vsmask.f32 256  ;;  %v5326_v0 = vmov 0   ;;  %s5327_s9 = smov 8   ;;  %s7184_s0 = inlined_call_operand.vmem [shape: f32[2,8,8,8], index: 0, kind: input, shape index: {}]   ;;  %s7185_s1 = inlined_call_operand.vmem [shape: bf16[72,8], index: 1, kind: input, shape index: {}]   ;;  %s7186_s2 = inlined_call_operand.vmem [shape: f32[1,8], index: 2, kind: input, shape index: {}]   ;;  %s7187_s3 = inlined_call_operand.vmem [shape: bf16[72,8], index: 3, kind: input, shape index: {}]   ;;  %s7188_s4 = inlined_call_operand.vmem [shape: f32[1,8], index: 4, kind: input, shape index: {}]   ;;  %s7189_s5 = inlined_call_operand.vmem [shape: f32[2,8,8,8], index: 5, kind: output, shape index: {}]  }
   0x1   :  { %22 = vst.msk [vmem:[#allocation2] sm:$0xf] %vm21_vm0, %v5326_v0  ;;  %vm95_vm3 = vsmask.f32 7938  ;;  %vm5370_vm4 = vmand %vm23_vm1, %vm33_vm2  ;;  %v5374_v2 = vld [vmem:[#allocation2 + $0x10] sm:$0x1] }
   0x2   :  { %24 = vst.msk [vmem:[#allocation2 + $0x4] sm:$0x1] %vm23_vm1, %v5326_v0  ;;  %vm5378_vm5 = vmand %vm23_vm1, %vm95_vm3  ;;  %v5384_v4 = vld [vmem:[#allocation2 + $0x14] sm:$0x1]  ;;  %v158_v5 = vld [vmem:[%s7184_s0 + $0x8] sm:$0xff]  ;;  %v42_v12 = vsel %vm5370_vm4, 0, %v5374_v2 }
   0x3   :  { %25 = vst.msk [vmem:[#allocation2 + $0x50] sm:$0xf] %vm21_vm0, %v5326_v0  ;;  %v5391_v6 = vpack.c.bf16 %v158_v5, %v158_v5  ;;  %v5393_v7 = vld [vmem:[#allocation2 + $0x8] sm:$0x1]  ;;  %v157_v8 = vld [vmem:[%s7184_s0] sm:$0xff]  ;;  %v159_v11 = vld [vmem:[%s7184_s0 + $0x10] sm:$0xff] }
   0x4   :  { %26 = vst.msk [vmem:[#allocation2 + $0x54] sm:$0x1] %vm23_vm1, %v5326_v0  ;;  %v5400_v9 = vld [vmem:[#allocation2 + $0xc] sm:$0x1]  ;;  %v5402_v10 = vpack.c.bf16 %v157_v8, %v157_v8  ;;  %v104_v13 = vsel %vm5378_vm5, 0, %v5384_v4  ;;  %v39_v16 = vsel %vm5370_vm4, 0, %v5393_v7  ;;  %v5427_v19 = vpack.c.bf16 %v159_v11, %v159_v11  ;;  %vm5544_vm9 = vmand %vm21_vm0, %vm95_vm3 }
   0x5   :  { %28 = vst.msk [vmem:[#allocation2 + $0x48] sm:$0xf] %vm21_vm0, %v5326_v0  ;;  %v198_v14 = vshrl.u32 %v5391_v6, 16  ;;  %v162_v15 = vld [vmem:[%s7184_s0 + $0x28] sm:$0xff]  ;;  %v5425_v18 = vld [vmem:[#allocation2 + $0x18] sm:$0x1] }
   0x6   :  { %29 = vst.msk [vmem:[#allocation2 + $0x4c] sm:$0x1] %vm23_vm1, %v5326_v0  ;;  %v190_v17 = vshrl.u32 %v5402_v10, 16  ;;  %v201_v21 = vshll.u32 %v5391_v6, 16  ;;  %v101_v22 = vsel %vm5378_vm5, 0, %v5400_v9  ;;  %v5435_v23 = vpack.c.bf16 %v162_v15, %v162_v15  ;;  %v163_v33 = vld [vmem:[%s7184_s0 + $0x30] sm:$0xff] }
   0x7   :  { %30 = vst.msk [vmem:[#allocation2 + $0x98] sm:$0xf] %vm21_vm0, %v5326_v0  ;;  %v193_v26 = vshll.u32 %v5402_v10, 16  ;;  %v5444_v28 = vrot.slane %v198_v14, 7  ;;  %v45_v30 = vsel %vm5370_vm4, 0, %v5425_v18  ;;  %v206_v32 = vshrl.u32 %v5427_v19, 16 }
   0x8   :  { %v35_v20 = vld [vmem:[#allocation2] sm:$0x1]  ;;  %31 = vst.msk [vmem:[#allocation2 + $0x9c] sm:$0x1] %vm23_vm1, %v5326_v0  ;;  %v5446_v29 = vrot.slane %v190_v17, 7  ;;  %v230_v36 = vshrl.u32 %v5435_v23, 16  ;;  %v5461_v37 = vpack.c.bf16 %v163_v33, %v163_v33 }
   0x9   :  { %v36_v24 = vsel %vm5370_vm4, 0, %v35_v20  ;;  %v97_v25 = vld [vmem:[#allocation2 + $0x4] sm:$0x1]  ;;  %2477 = vst.msk [vmem:[#allocation4] sm:$0xf] %vm21_vm0, %v5326_v0  ;;  %v204_v34 = vrot.slane %v5444_v28, 4  ;;  %v203_v14 = vor.u32 %v201_v21, %v5444_v28 }
   0xa   :  { %37 = vst [vmem:[#allocation2] sm:$0x1] %v36_v24  ;;  %v98_v27 = vsel %vm5378_vm5, 0, %v97_v25  ;;  %v5451_v31 = vld [vmem:[#allocation2 + $0x1c] sm:$0x1]  ;;  %v196_v38 = vrot.slane %v5446_v29, 4 }
   0xb   :  { %99 = vst [vmem:[#allocation2 + $0x4] sm:$0x1] %v98_v27  ;;  %vm512_vm6 = vsmask.f32 3328  ;;  %vm513_vm7 = vsmask.f32 7440 }
   0xc   :  { %2478 = vst.msk [vmem:[#allocation4 + $0x4] sm:$0x1] %vm23_vm1, %v5326_v0  ;;  %v53_v35 = vld [vmem:[#allocation2 + $0x30] sm:$0x1]  ;;  %v5466_v39 = vrot.slane %v206_v32, 7  ;;  %v107_v41 = vsel %vm5378_vm5, 0, %v5451_v31  ;;  %vm5525_vm8 = vmor %vm512_vm6, %vm513_vm7 }
   0xd   :  { %2479 = vst.msk [vmem:[#allocation4 + $0x50] sm:$0xf] %vm21_vm0, %v5326_v0  ;;  %v115_v40 = vld [vmem:[#allocation2 + $0x34] sm:$0x1]  ;;  %v209_v42 = vshll.u32 %v5427_v19, 16  ;;  %v54_v43 = vsel %vm5370_vm4, 0, %v53_v35 }
   0xe   :  { %2480 = vst.msk [vmem:[#allocation4 + $0x54] sm:$0x1] %vm23_vm1, %v5326_v0  ;;  %v5476_v44 = vrot.slane %v230_v36, 7  ;;  %v212_v45 = vrot.slane %v5466_v39, 4  ;;  %v116_v46 = vsel %vm5378_vm5, 0, %v115_v40  ;;  %v233_v47 = vshll.u32 %v5435_v23, 16 }
   0xf   :  { %2482 = vst.msk [vmem:[#allocation4 + $0x48] sm:$0xf] %vm21_vm0, %v5326_v0  ;;  %v238_v48 = vshrl.u32 %v5461_v37, 16  ;;  %v56_v50 = vld [vmem:[#allocation2 + $0x38] sm:$0x1]  ;;  %v241_v51 = vshll.u32 %v5461_v37, 16  ;;  %v211_v32 = vor.u32 %v209_v42, %v5466_v39 }
  0x10   :  { %2483 = vst.msk [vmem:[#allocation4 + $0x4c] sm:$0x1] %vm23_vm1, %v5326_v0  ;;  %v236_v49 = vrot.slane %v5476_v44, 4  ;;  %v5491_v53 = vld [vmem:[#allocation2 + $0x3c] sm:$0x1]  ;;  %v57_v58 = vsel %vm5370_vm4, 0, %v56_v50 }
  0x11   :  { %v480_v52 = vld [vmem:[#allocation2] sm:$0xf]  ;;  %2484 = vst.msk [vmem:[#allocation4 + $0x98] sm:$0xf] %vm21_vm0, %v5326_v0  ;;  %v5497_v59 = vld [vmem:[#allocation2 + $0x58] sm:$0x1] }
  0x12   :  { %v481_v54 = vld [vmem:[#allocation2 + $0x4] sm:$0x1]  ;;  %v516_v55 = vshrl.u32 %v480_v52, 16  ;;  %v519_v56 = vshll.u32 %v480_v52, 16  ;;  %2485 = vst.msk [vmem:[#allocation4 + $0x9c] sm:$0x1] %vm23_vm1, %v5326_v0  ;;  %v235_v52 = vor.u32 %v233_v47, %v5476_v44 }
  0x13   :  { %v525_v57 = vshll.u32 %v481_v54, 16  ;;  %43 = vst [vmem:[#allocation2 + $0x10] sm:$0x1] %v42_v12  ;;  %v5503_v62 = vrot.slane %v238_v48, 7  ;;  %v165_v63 = vld [vmem:[%s7184_s0 + $0x40] sm:$0xff]  ;;  %v119_v0 = vsel %vm5378_vm5, 0, %v5491_v53 }
  0x14   :  { %v518_v60 = vrot.slane %v516_v55, 4  ;;  %v521_v61 = vrot.slane %v519_v56, 5  ;;  %105 = vst [vmem:[#allocation2 + $0x14] sm:$0x1] %v104_v13  ;;  %v5511_v2 = vld [vmem:[#allocation2 + $0x5c] sm:$0x1]  ;;  %v5513_v5 = vpack.c.bf16 %v165_v63, %v165_v63 }
  0x15   :  { %40 = vst [vmem:[#allocation2 + $0x8] sm:$0x1] %v39_v16  ;;  %v166_v4 = vld [vmem:[%s7184_s0 + $0x48] sm:$0xff]  ;;  %v527_v8 = vrot.slane %v525_v57, 5  ;;  %v244_v9 = vrot.slane %v5503_v62, 4  ;;  %v69_v15 = vsel %vm5370_vm4, 0, %v5497_v59  ;;  %v243_v23 = vor.u32 %v241_v51, %v5503_v62 }
  0x16   :  { %v522_v7 = vor.u32 %v521_v61, %v518_v60  ;;  %102 = vst [vmem:[#allocation2 + $0xc] sm:$0x1] %v101_v22  ;;  %v5519_v11 = vld [vmem:[#allocation2 + $0x50] sm:$0x1]  ;;  %v5521_v12 = vpack.c.bf16 %v166_v4, %v166_v4  ;;  %v131_v16 = vsel %vm5378_vm5, 0, %v5511_v2  ;;  %v254_v17 = vshrl.u32 %v5513_v5, 16 }
  0x17   :  { %46 = vst [vmem:[#allocation2 + $0x18] sm:$0x1] %v45_v30  ;;  %v168_v18 = vld [vmem:[%s7184_s0 + $0x58] sm:$0xff]  ;;  %v5548_v20 = vld [vmem:[#allocation2 + $0x54] sm:$0x1]  ;;  %v195_v22 = vor.u32 %v193_v26, %v5446_v29  ;;  %v257_v24 = vshll.u32 %v5513_v5, 16 }
  0x18   :  { %v523_v19 = vrot.slane %v522_v7, 4  ;;  %108 = vst [vmem:[#allocation2 + $0x1c] sm:$0x1] %v107_v41  ;;  %v262_v21 = vshrl.u32 %v5521_v12, 16  ;;  %v66_v25 = vsel %vm5370_vm4, 0, %v5519_v11  ;;  %v5563_v33 = vrot.slane %v254_v17, 7 }
  0x19   :  { %55 = vst [vmem:[#allocation2 + $0x30] sm:$0x1] %v54_v43  ;;  %v5558_v27 = vld [vmem:[#allocation2 + $0x60] sm:$0x1]  ;;  %v128_v10 = vsel %vm5378_vm5, 0, %v5548_v20  ;;  %v5576_v41 = vpack.c.bf16 %v168_v18, %v168_v18  ;;  %v265_v55 = vshll.u32 %v5521_v12, 16 }
  0x1a   :  { %v528_v30 = vsel %vm5525_vm8, %v523_v19, %v527_v8  ;;  %v358_v31 = vld [vmem:[#allocation2 + $0x10] sm:$0xf]  ;;  %117 = vst [vmem:[#allocation2 + $0x34] sm:$0x1] %v116_v46  ;;  %v72_v36 = vsel %vm5370_vm4, 0, %v5558_v27  ;;  %v5574_v40 = vrot.slane %v262_v21, 7  ;;  %v259_v53 = vor.u32 %v257_v24, %v5563_v33 }
  0x1b   :  { %739 = vrot.lane.b32.xlu0 %v528_v30, %s5327_s9  ;;  %v359_v26 = vsel %vm5544_vm9, %v203_v14, %v358_v31  ;;  %v361_v35 = vld [vmem:[#allocation2 + $0x14] sm:$0x1]  ;;  %58 = vst [vmem:[#allocation2 + $0x38] sm:$0x1] %v57_v58  ;;  %v5582_v46 = vld [vmem:[#allocation2 + $0x64] sm:$0x1] }
  0x1c   :  { %360 = vst [vmem:[#allocation2 + $0x10] sm:$0xf] %v359_v26  ;;  %v362_v42 = vsel %vm5370_vm4, %v204_v34, %v361_v35  ;;  %v352_v43 = vld [vmem:[#allocation2 + $0x8] sm:$0xf]  ;;  %v260_v54 = vrot.slane %v5563_v33, 4  ;;  %v134_v47 = vsel %vm5378_vm5, 0, %v5582_v46 }
  0x1d   :  { %363 = vst [vmem:[#allocation2 + $0x14] sm:$0x1] %v362_v42  ;;  %v353_v48 = vsel %vm5544_vm9, %v195_v22, %v352_v43  ;;  %v355_v50 = vld [vmem:[#allocation2 + $0xc] sm:$0x1]  ;;  %v5595_v56 = vld [vmem:[#allocation2 + $0x70] sm:$0x1] }
  0x1e   :  { %354 = vst [vmem:[#allocation2 + $0x8] sm:$0xf] %v353_v48  ;;  %v356_v28 = vsel %vm5370_vm4, %v196_v38, %v355_v50  ;;  %v364_v34 = vld [vmem:[#allocation2 + $0x18] sm:$0xf]  ;;  %v278_v29 = vshrl.u32 %v5576_v41, 16  ;;  %v268_v63 = vrot.slane %v5574_v40, 4 }
  0x1f   :  { %357 = vst [vmem:[#allocation2 + $0xc] sm:$0x1] %v356_v28  ;;  %v365_v57 = vsel %vm5544_vm9, %v211_v32, %v364_v34  ;;  %v367_v58 = vld [vmem:[#allocation2 + $0x1c] sm:$0x1]  ;;  %v5610_v61 = vld [vmem:[#allocation2 + $0x74] sm:$0x1] }
  0x20   :  { %366 = vst [vmem:[#allocation2 + $0x18] sm:$0xf] %v365_v57  ;;  %v368_v38 = vsel %vm5370_vm4, %v212_v45, %v367_v58  ;;  %v382_v60 = vld [vmem:[#allocation2 + $0x30] sm:$0xf]  ;;  %v78_v4 = vsel %vm5370_vm4, 0, %v5595_v56  ;;  %v140_v7 = vsel %vm5378_vm5, 0, %v5610_v61 }
  0x21   :  { %369 = vst [vmem:[#allocation2 + $0x1c] sm:$0x1] %v368_v38  ;;  %v383_v37 = vsel %vm5544_vm9, %v235_v52, %v382_v60  ;;  %v385_v51 = vld [vmem:[#allocation2 + $0x34] sm:$0x1]  ;;  %v160_v8 = vld [vmem:[%s7184_s0 + $0x18] sm:$0xff]  ;;  %v5630_v18 = vrot.slane %v278_v29, 7 }
  0x22   :  { %384 = vst [vmem:[#allocation2 + $0x30] sm:$0xf] %v383_v37  ;;  %v386_v39 = vsel %vm5370_vm4, %v236_v49, %v385_v51  ;;  %v388_v45 = vld [vmem:[#allocation2 + $0x38] sm:$0xf]  ;;  %v281_v44 = vshll.u32 %v5576_v41, 16  ;;  %v5633_v19 = vpack.c.bf16 %v160_v8, %v160_v8  ;;  %v169_v62 = vld [vmem:[%s7184_s0 + $0x60] sm:$0xff] }
  0x23   :  { %v484_v14 = vld [vmem:[#allocation2 + $0x10] sm:$0xf]  ;;  %387 = vst [vmem:[#allocation2 + $0x34] sm:$0x1] %v386_v39  ;;  %v389_v17 = vsel %vm5544_vm9, %v243_v23, %v388_v45  ;;  %v284_v51 = vrot.slane %v5630_v18, 4  ;;  %vm868_vm10 = vcmask 1042432  }
  0x24   :  { %v485_v49 = vld [vmem:[#allocation2 + $0x14] sm:$0x1]  ;;  %v544_v21 = vshrl.u32 %v484_v14, 16  ;;  %v547_v22 = vshll.u32 %v484_v14, 16  ;;  %120 = vst [vmem:[#allocation2 + $0x3c] sm:$0x1] %v119_v0  ;;  %v283_v61 = vor.u32 %v281_v44, %v5630_v18 }
  0x25   :  { %v553_v30 = vshll.u32 %v485_v49, 16  ;;  %v482_v31 = vld [vmem:[#allocation2 + $0x8] sm:$0xf]  ;;  %390 = vst [vmem:[#allocation2 + $0x38] sm:$0xf] %v389_v17  ;;  %v214_v32 = vshrl.u32 %v5633_v19, 16 }
  0x26   :  { %v546_v26 = vrot.slane %v544_v21, 4  ;;  %v549_v35 = vrot.slane %v547_v22, 5  ;;  %v483_v42 = vld [vmem:[#allocation2 + $0xc] sm:$0x1]  ;;  %v530_v43 = vshrl.u32 %v482_v31, 16  ;;  %v533_v48 = vshll.u32 %v482_v31, 16 }
  0x27   :  { %v555_v50 = vrot.slane %v553_v30, 5  ;;  %v539_v52 = vshll.u32 %v483_v42, 16  ;;  %v486_v28 = vld [vmem:[#allocation2 + $0x18] sm:$0xf]  ;;  %70 = vst [vmem:[#allocation2 + $0x58] sm:$0x1] %v69_v15 }
  0x28   :  { %v550_v0 = vor.u32 %v549_v35, %v546_v26  ;;  %v532_v34 = vrot.slane %v530_v43, 4  ;;  %v535_v57 = vrot.slane %v533_v48, 5  ;;  %v487_v58 = vld [vmem:[#allocation2 + $0x1c] sm:$0x1]  ;;  %v558_v23 = vshrl.u32 %v486_v28, 16  ;;  %s5328_s22 = smov 16  }
  0x29   :  { %v541_v29 = vrot.slane %v539_v52, 5  ;;  %v561_v38 = vshll.u32 %v486_v28, 16  ;;  %v567_v60 = vshll.u32 %v487_v58, 16  ;;  %v492_v37 = vld [vmem:[#allocation2 + $0x30] sm:$0xf]  ;;  %v5648_v49 = vrot.slane %v214_v32, 7 }
  0x2a   :  { %v551_v39 = vrot.slane %v550_v0, 4  ;;  %v536_v45 = vor.u32 %v535_v57, %v532_v34  ;;  %v560_v8 = vrot.slane %v558_v23, 4  ;;  %v493_v59 = vld [vmem:[#allocation2 + $0x34] sm:$0x1]  ;;  %v600_v15 = vshrl.u32 %v492_v37, 16  ;;  %s5329_s25 = smov 24  }
  0x2b   :  { %v563_v14 = vrot.slane %v561_v38, 5  ;;  %v603_v17 = vshll.u32 %v492_v37, 16  ;;  %v609_v5 = vshll.u32 %v493_v59, 16  ;;  %v391_v24 = vld [vmem:[#allocation2 + $0x3c] sm:$0x1]  ;;  %v569_v35 = vrot.slane %v567_v60, 5 }
  0x2c   :  { %v556_v21 = vsel %vm5525_vm8, %v551_v39, %v555_v50  ;;  %v537_v22 = vrot.slane %v536_v45, 4  ;;  %v602_v30 = vrot.slane %v600_v15, 4  ;;  %v392_v31 = vsel %vm5370_vm4, %v244_v9, %v391_v24  ;;  %v494_v26 = vld [vmem:[#allocation2 + $0x38] sm:$0xf]  ;;  %132 = vst [vmem:[#allocation2 + $0x5c] sm:$0x1] %v131_v16 }
  0x2d   :  { %743 = vrot.lane.b32.xlu1 %v556_v21, %s5327_s9  ;;  %v564_v32 = vor.u32 %v563_v14, %v560_v8  ;;  %v605_v42 = vrot.slane %v603_v17, 5  ;;  %393 = vst [vmem:[#allocation2 + $0x3c] sm:$0x1] %v392_v31  ;;  %v614_v43 = vshrl.u32 %v494_v26, 16  ;;  %v611_v48 = vrot.slane %v609_v5, 5  ;;  %v161_v60 = vld [vmem:[%s7184_s0 + $0x20] sm:$0xff] }
  0x2e   :  { %v542_v9 = vsel %vm5525_vm8, %v537_v22, %v541_v29  ;;  %v617_v50 = vshll.u32 %v494_v26, 16  ;;  %v400_v52 = vld [vmem:[#allocation2 + $0x58] sm:$0xf]  ;;  %67 = vst [vmem:[#allocation2 + $0x50] sm:$0x1] %v66_v25  ;;  %v217_v11 = vshll.u32 %v5633_v19, 16  ;;  %v5678_v25 = vpack.c.bf16 %v169_v62, %v169_v62 }
  0x2f   :  { %741 = vrot.lane.b32.xlu0 %v542_v9, %s5327_s9  ;;  %v565_v2 = vrot.slane %v564_v32, 4  ;;  %v606_v16 = vor.u32 %v605_v42, %v602_v30  ;;  %v616_v28 = vrot.slane %v614_v43, 4  ;;  %v401_v0 = vsel %vm5544_vm9, %v259_v53, %v400_v52  ;;  %129 = vst [vmem:[#allocation2 + $0x54] sm:$0x1] %v128_v10  ;;  %v47_v34 = vld [vmem:[#allocation2 + $0x20] sm:$0x1] }
  0x30   :  { %v619_v57 = vrot.slane %v617_v50, 5  ;;  %402 = vst [vmem:[#allocation2 + $0x58] sm:$0xf] %v401_v0  ;;  %v109_v58 = vld [vmem:[#allocation2 + $0x24] sm:$0x1]  ;;  %v48_v53 = vsel %vm5370_vm4, 0, %v47_v34  ;;  %v267_v14 = vor.u32 %v265_v55, %v5574_v40  ;;  %v219_v12 = vor.u32 %v217_v11, %v5648_v49 }
  0x31   :  { %v607_v23 = vrot.slane %v606_v16, 4  ;;  %73 = vst [vmem:[#allocation2 + $0x60] sm:$0x1] %v72_v36  ;;  %v110_v20 = vsel %vm5378_vm5, 0, %v109_v58  ;;  %v220_v10 = vrot.slane %v5648_v49, 4  ;;  %v171_v19 = vld [vmem:[%s7184_s0 + $0x70] sm:$0xff]  ;;  %v570_v29 = vsel %vm5525_vm8, %v565_v2, %v569_v35 }
  0x32   :  { %v620_v38 = vor.u32 %v619_v57, %v616_v28  ;;  %135 = vst [vmem:[#allocation2 + $0x64] sm:$0x1] %v134_v47  ;;  %v80_v27 = vld [vmem:[#allocation2 + $0x78] sm:$0x1]  ;;  %v5698_v36 = vld [vmem:[#allocation2 + $0x7c] sm:$0x1]  ;;  %v5735_v55 = vpack.c.bf16 %v161_v60, %v161_v60 }
  0x33   :  { %v403_v37 = vld [vmem:[#allocation2 + $0x5c] sm:$0x1]  ;;  %79 = vst [vmem:[#allocation2 + $0x70] sm:$0x1] %v78_v4  ;;  %v81_v39 = vsel %vm5370_vm4, 0, %v80_v27  ;;  %v143_v46 = vsel %vm5378_vm5, 0, %v5698_v36  ;;  %v612_v47 = vsel %vm5525_vm8, %v607_v23, %v611_v48 }
  0x34   :  { %v495_v45 = vld [vmem:[#allocation2 + $0x3c] sm:$0x1]  ;;  %v621_v8 = vrot.slane %v620_v38, 4  ;;  %v404_v59 = vsel %vm5370_vm4, %v260_v54, %v403_v37  ;;  %141 = vst [vmem:[#allocation2 + $0x74] sm:$0x1] %v140_v7  ;;  %v286_v56 = vshrl.u32 %v5678_v25, 16  ;;  %v5731_v7 = vpack.c.bf16 %v171_v19, %v171_v19 }
  0x35   :  { %745 = vrot.lane.b32.xlu1 %v570_v29, %s5327_s9  ;;  %v623_v4 = vshll.u32 %v495_v45, 16  ;;  %405 = vst [vmem:[#allocation2 + $0x5c] sm:$0x1] %v404_v59  ;;  %v496_v15 = vld [vmem:[#allocation2 + $0x50] sm:$0xf]  ;;  %v289_v33 = vshll.u32 %v5678_v25, 16 }
  0x36   :  { %v497_v17 = vld [vmem:[#allocation2 + $0x54] sm:$0x1]  ;;  %v628_v54 = vshrl.u32 %v496_v15, 16  ;;  %v631_v5 = vshll.u32 %v496_v15, 16  ;;  %49 = vst [vmem:[#allocation2 + $0x20] sm:$0x1] %v48_v53 }
  0x37   :  { %751 = vrot.lane.b32.xlu0 %v612_v47, %s5327_s9  ;;  %v625_v24 = vrot.slane %v623_v4, 5  ;;  %v498_v21 = vld [vmem:[#allocation2 + $0x58] sm:$0xf]  ;;  %v637_v22 = vshll.u32 %v497_v17, 16  ;;  %111 = vst [vmem:[#allocation2 + $0x24] sm:$0x1] %v110_v20 }
  0x38   :  { %v642_v30 = vshrl.u32 %v498_v21, 16  ;;  %v645_v31 = vshll.u32 %v498_v21, 16  ;;  %v630_v26 = vrot.slane %v628_v54, 4  ;;  %v633_v32 = vrot.slane %v631_v5, 5  ;;  %v406_v35 = vld [vmem:[#allocation2 + $0x60] sm:$0xf] }
  0x39   :  { %v626_v41 = vsel %vm5525_vm8, %v621_v8, %v625_v24  ;;  %v639_v44 = vrot.slane %v637_v22, 5  ;;  %v407_v42 = vsel %vm5544_vm9, %v267_v14, %v406_v35  ;;  %v409_v43 = vld [vmem:[#allocation2 + $0x64] sm:$0x1]  ;;  %82 = vst [vmem:[#allocation2 + $0x78] sm:$0x1] %v81_v39  ;;  %v5741_v62 = vrot.slane %v286_v56, 7 }
  0x3a   :  { %v644_v9 = vrot.slane %v642_v30, 4  ;;  %v647_v48 = vrot.slane %v645_v31, 5  ;;  %v634_v50 = vor.u32 %v633_v32, %v630_v26  ;;  %408 = vst [vmem:[#allocation2 + $0x60] sm:$0xf] %v407_v42  ;;  %v410_v52 = vsel %vm5370_vm4, %v268_v63, %v409_v43  ;;  %v418_v2 = vld [vmem:[#allocation2 + $0x70] sm:$0xf] }
  0x3b   :  { %411 = vst [vmem:[#allocation2 + $0x64] sm:$0x1] %v410_v52  ;;  %v419_v16 = vsel %vm5544_vm9, %v283_v61, %v418_v2  ;;  %v421_v28 = vld [vmem:[#allocation2 + $0x74] sm:$0x1]  ;;  %v292_v0 = vrot.slane %v5741_v62, 4  ;;  %v302_v34 = vshrl.u32 %v5731_v7, 16  ;;  %v291_v53 = vor.u32 %v289_v33, %v5741_v62 }
  0x3c   :  { %v499_v57 = vld [vmem:[#allocation2 + $0x5c] sm:$0x1]  ;;  %v648_v58 = vor.u32 %v647_v48, %v644_v9  ;;  %v635_v11 = vrot.slane %v634_v50, 4  ;;  %420 = vst [vmem:[#allocation2 + $0x70] sm:$0xf] %v419_v16  ;;  %v422_v40 = vsel %vm5370_vm4, %v284_v51, %v421_v28  ;;  %v305_v63 = vshll.u32 %v5731_v7, 16 }
  0x3d   :  { %753 = vrot.lane.b32.xlu1 %v626_v41, %s5327_s9  ;;  %v651_v25 = vshll.u32 %v499_v57, 16  ;;  %423 = vst [vmem:[#allocation2 + $0x74] sm:$0x1] %v422_v40  ;;  %v370_v23 = vld [vmem:[#allocation2 + $0x20] sm:$0xf]  ;;  %v5758_v20 = vrot.slane %v302_v34, 7 }
  0x3e   :  { %v649_v19 = vrot.slane %v648_v58, 4  ;;  %v640_v29 = vsel %vm5525_vm8, %v635_v11, %v639_v44  ;;  %v371_v18 = vsel %vm5544_vm9, %v219_v12, %v370_v23  ;;  %v373_v38 = vld [vmem:[#allocation2 + $0x24] sm:$0x1]  ;;  %144 = vst [vmem:[#allocation2 + $0x7c] sm:$0x1] %v143_v46  ;;  %v222_v51 = vshrl.u32 %v5735_v55, 16 }
  0x3f   :  { %v653_v27 = vrot.slane %v651_v25, 5  ;;  %755 = vrot.lane.b32.xlu2 %v640_v29, %s5327_s9  ;;  %372 = vst [vmem:[#allocation2 + $0x20] sm:$0xf] %v371_v18  ;;  %v374_v60 = vsel %vm5370_vm4, %v220_v10, %v373_v38  ;;  %v86_v37 = vld [vmem:[#allocation2 + $0x88] sm:$0x1]  ;;  %v308_v39 = vrot.slane %v5758_v20, 4  ;;  %v307_v30 = vor.u32 %v305_v63, %v5758_v20 }
  0x40   :  { %375 = vst [vmem:[#allocation2 + $0x24] sm:$0x1] %v374_v60  ;;  %v424_v47 = vld [vmem:[#allocation2 + $0x78] sm:$0xf]  ;;  %v87_v36 = vsel %vm5370_vm4, 0, %v86_v37  ;;  %v5777_v46 = vrot.slane %v222_v51, 7 }
  0x41   :  { %v654_v45 = vsel %vm5525_vm8, %v649_v19, %v653_v27  ;;  %v500_v8 = vld [vmem:[#allocation2 + $0x60] sm:$0xf]  ;;  %v425_v49 = vsel %vm5544_vm9, %v291_v53, %v424_v47  ;;  %88 = vst [vmem:[#allocation2 + $0x88] sm:$0x1] %v87_v36  ;;  %v148_v59 = vld [vmem:[#allocation2 + $0x8c] sm:$0x1] }
  0x42   :  { %757 = vrot.lane.b32.xlu0 %v654_v45, %s5327_s9  ;;  %v501_v10 = vld [vmem:[#allocation2 + $0x64] sm:$0x1]  ;;  %v656_v56 = vshrl.u32 %v500_v8, 16  ;;  %v659_v4 = vshll.u32 %v500_v8, 16  ;;  %426 = vst [vmem:[#allocation2 + $0x78] sm:$0xf] %v425_v49 }
  0x43   :  { %v665_v15 = vshll.u32 %v501_v10, 16  ;;  %v504_v14 = vld [vmem:[#allocation2 + $0x70] sm:$0xf]  ;;  %v149_v33 = vsel %vm5378_vm5, 0, %v148_v59  ;;  %v50_v17 = vld [vmem:[#allocation2 + $0x28] sm:$0x1] }
  0x44   :  { %v658_v54 = vrot.slane %v656_v56, 4  ;;  %v661_v5 = vrot.slane %v659_v4, 5  ;;  %v505_v61 = vld [vmem:[#allocation2 + $0x74] sm:$0x1]  ;;  %v684_v7 = vshrl.u32 %v504_v14, 16  ;;  %v687_v24 = vshll.u32 %v504_v14, 16 }
  0x45   :  { %v667_v21 = vrot.slane %v665_v15, 5  ;;  %v693_v22 = vshll.u32 %v505_v61, 16  ;;  %v427_v12 = vld [vmem:[#allocation2 + $0x7c] sm:$0x1]  ;;  %150 = vst [vmem:[#allocation2 + $0x8c] sm:$0x1] %v149_v33 }
  0x46   :  { %v662_v31 = vor.u32 %v661_v5, %v658_v54  ;;  %v686_v26 = vrot.slane %v684_v7, 4  ;;  %v689_v32 = vrot.slane %v687_v24, 5  ;;  %v488_v35 = vld [vmem:[#allocation2 + $0x20] sm:$0xf]  ;;  %v428_v41 = vsel %vm5370_vm4, %v292_v0, %v427_v12  ;;  %v112_v44 = vld [vmem:[#allocation2 + $0x2c] sm:$0x1] }
  0x47   :  { %v695_v42 = vrot.slane %v693_v22, 5  ;;  %v489_v43 = vld [vmem:[#allocation2 + $0x24] sm:$0x1]  ;;  %v572_v62 = vshrl.u32 %v488_v35, 16  ;;  %v575_v9 = vshll.u32 %v488_v35, 16  ;;  %v51_v48 = vsel %vm5370_vm4, 0, %v50_v17 }
  0x48   :  { %v663_v50 = vrot.slane %v662_v31, 4  ;;  %v690_v52 = vor.u32 %v689_v32, %v686_v26  ;;  %v581_v2 = vshll.u32 %v489_v43, 16  ;;  %429 = vst [vmem:[#allocation2 + $0x7c] sm:$0x1] %v428_v41  ;;  %v436_v16 = vld [vmem:[#allocation2 + $0x88] sm:$0xf] }
  0x49   :  { %v574_v28 = vrot.slane %v572_v62, 4  ;;  %v577_v34 = vrot.slane %v575_v9, 5  ;;  %v506_v57 = vld [vmem:[#allocation2 + $0x78] sm:$0xf]  ;;  %v437_v58 = vsel %vm5544_vm9, %v307_v30, %v436_v16  ;;  %52 = vst [vmem:[#allocation2 + $0x28] sm:$0x1] %v51_v48 }
  0x4a   :  { %v668_v0 = vsel %vm5525_vm8, %v663_v50, %v667_v21  ;;  %v691_v11 = vrot.slane %v690_v52, 4  ;;  %v583_v40 = vrot.slane %v581_v2, 5  ;;  %v698_v63 = vshrl.u32 %v506_v57, 16  ;;  %438 = vst [vmem:[#allocation2 + $0x88] sm:$0xf] %v437_v58  ;;  %v167_v25 = vld [vmem:[%s7184_s0 + $0x50] sm:$0xff] }
  0x4b   :  { %759 = vrot.lane.b32.xlu1 %v668_v0, %s5327_s9  ;;  %v578_v23 = vor.u32 %v577_v34, %v574_v28  ;;  %v701_v53 = vshll.u32 %v506_v57, 16  ;;  %v113_v19 = vsel %vm5378_vm5, 0, %v112_v44  ;;  %v225_v29 = vshll.u32 %v5735_v55, 16  ;;  %v170_v10 = vld [vmem:[%s7184_s0 + $0x68] sm:$0xff]  ;;  %v804_v33 = vld [vmem:[#allocation2] sm:$0xe] }
  0x4c   :  { %v696_v18 = vsel %vm5525_vm8, %v691_v11, %v695_v42  ;;  %v700_v38 = vrot.slane %v698_v63, 4  ;;  %v439_v51 = vld [vmem:[#allocation2 + $0x8c] sm:$0x1]  ;;  %114 = vst [vmem:[#allocation2 + $0x2c] sm:$0x1] %v113_v19  ;;  %v183_v27 = vpack.c.bf16 %v167_v25, %v167_v25  ;;  %v228_v49 = vrot.slane %v5777_v46, 4 }
  0x4d   :  { %763 = vrot.lane.b32.xlu0 %v696_v18, %s5327_s9  ;;  %v579_v60 = vrot.slane %v578_v23, 4  ;;  %v703_v37 = vrot.slane %v701_v53, 5  ;;  %v440_v47 = vsel %vm5370_vm4, %v308_v39, %v439_v51  ;;  %v227_v36 = vor.u32 %v225_v29, %v5777_v46  ;;  %v74_v39 = vld [vmem:[#allocation2 + $0x68] sm:$0x1]  ;;  %v805_v17 = vld [vmem:[#allocation2 + $0x4] sm:$0x1] }
  0x4e   :  { %441 = vst [vmem:[#allocation2 + $0x8c] sm:$0x1] %v440_v47  ;;  %v270_v59 = vshrl.u32 %v183_v27, 16  ;;  %v75_v46 = vsel %vm5370_vm4, 0, %v74_v39  ;;  %v136_v54 = vld [vmem:[#allocation2 + $0x6c] sm:$0x1]  ;;  %v186_v12 = vpack.c.bf16 %v170_v10, %v170_v10 }
  0x4f   :  { %v584_v55 = vsel %vm5525_vm8, %v579_v60, %v583_v40  ;;  %v507_v45 = vld [vmem:[#allocation2 + $0x7c] sm:$0x1]  ;;  %v704_v8 = vor.u32 %v703_v37, %v700_v38  ;;  %vm869_vm11 = vcmask 1046532   ;;  %76 = vst [vmem:[#allocation2 + $0x68] sm:$0x1] %v75_v46  ;;  %v137_v21 = vsel %vm5378_vm5, 0, %v136_v54 }
  0x50   :  { %747 = vrot.lane.b32.xlu2 %v584_v55, %s5327_s9  ;;  %v707_v20 = vshll.u32 %v507_v45, 16  ;;  %v376_v56 = vld [vmem:[#allocation2 + $0x28] sm:$0xf]  ;;  %v272_v22 = vrot.slane %v270_v59, 7  ;;  %v808_v35 = vld [vmem:[#allocation2 + $0x10] sm:$0xe]  ;;  %vm5830_vm12 = vmor %vm868_vm10, %vm869_vm11 }
  0x51   :  { %v705_v4 = vrot.slane %v704_v8, 4  ;;  %v510_v15 = vld [vmem:[#allocation2 + $0x88] sm:$0xf]  ;;  %v377_v14 = vsel %vm5544_vm9, %v227_v36, %v376_v56  ;;  %138 = vst [vmem:[#allocation2 + $0x6c] sm:$0x1] %v137_v21  ;;  %v273_v44 = vshll.u32 %v183_v27, 16 }
  0x52   :  { %v709_v5 = vrot.slane %v707_v20, 5  ;;  %v726_v61 = vshrl.u32 %v510_v15, 16  ;;  %v729_v7 = vshll.u32 %v510_v15, 16  ;;  %378 = vst [vmem:[#allocation2 + $0x28] sm:$0xf] %v377_v14  ;;  %v4945_v62 = vrot.slane %v804_v33, 9 }
  0x53   :  { %v379_v24 = vld [vmem:[#allocation2 + $0x2c] sm:$0x1]  ;;  %v873_v9 = vrot.slane %v805_v17, 5  ;;  %v83_v48 = vld [vmem:[#allocation2 + $0x80] sm:$0x1]  ;;  %v275_v2 = vor.u32 %v273_v44, %v272_v22  ;;  %v294_v34 = vshrl.u32 %v186_v12, 16 }
  0x54   :  { %v710_v30 = vsel %vm5525_vm8, %v705_v4, %v709_v5  ;;  %v728_v31 = vrot.slane %v726_v61, 4  ;;  %v731_v26 = vrot.slane %v729_v7, 5  ;;  %v380_v32 = vsel %vm5370_vm4, %v228_v49, %v379_v24  ;;  %v809_v52 = vld [vmem:[#allocation2 + $0x14] sm:$0x1]  ;;  %v145_v28 = vld [vmem:[#allocation2 + $0x84] sm:$0x1] }
  0x55   :  { %765 = vrot.lane.b32.xlu1 %v710_v30, %s5327_s9  ;;  %v511_v41 = vld [vmem:[#allocation2 + $0x8c] sm:$0x1]  ;;  %381 = vst [vmem:[#allocation2 + $0x2c] sm:$0x1] %v380_v32  ;;  %v84_v16 = vsel %vm5370_vm4, 0, %v83_v48  ;;  %v276_v0 = vrot.slane %v272_v22, 4  ;;  %v874_v29 = vsel %vm5830_vm12, %v4945_v62, %v873_v9 }
  0x56   :  { %v732_v42 = vor.u32 %v731_v26, %v728_v31  ;;  %v735_v43 = vshll.u32 %v511_v41, 16  ;;  %85 = vst [vmem:[#allocation2 + $0x80] sm:$0x1] %v84_v16  ;;  %v146_v11 = vsel %vm5378_vm5, 0, %v145_v28  ;;  %v4947_v63 = vrot.slane %v808_v35, 9  ;;  %s5330_s28 = smov 32  }
  0x57   :  { %147 = vst [vmem:[#allocation2 + $0x84] sm:$0x1] %v146_v11  ;;  %v297_v25 = vshll.u32 %v186_v12, 16  ;;  %v412_v18 = vld [vmem:[#allocation2 + $0x68] sm:$0xf]  ;;  %v881_v51 = vrot.slane %v809_v52, 5 }
  0x58   :  { %v733_v57 = vrot.slane %v732_v42, 4  ;;  %v737_v58 = vrot.slane %v735_v43, 5  ;;  %v810_v38 = vld [vmem:[#allocation2 + $0x18] sm:$0xe]  ;;  %v413_v27 = vsel %vm5544_vm9, %v275_v2, %v412_v18  ;;  %v415_v60 = vld [vmem:[#allocation2 + $0x6c] sm:$0x1] }
  0x59   :  { %v490_v40 = vld [vmem:[#allocation2 + $0x28] sm:$0xf]  ;;  %v811_v37 = vld [vmem:[#allocation2 + $0x1c] sm:$0x1]  ;;  %v296_v47 = vrot.slane %v294_v34, 7  ;;  %v416_v8 = vsel %vm5370_vm4, %v276_v0, %v415_v60  ;;  %v4948_v56 = vrot.slane %v810_v38, 9  ;;  %v882_v33 = vsel %vm5830_vm12, %v4947_v63, %v881_v51 }
  0x5a   :  { %v738_v23 = vsel %vm5525_vm8, %v733_v57, %v737_v58  ;;  %v586_v53 = vshrl.u32 %v490_v40, 16  ;;  %v589_v19 = vshll.u32 %v490_v40, 16  ;;  %414 = vst [vmem:[#allocation2 + $0x68] sm:$0xf] %v413_v27  ;;  %v885_v39 = vrot.slane %v811_v37, 5  ;;  %s5331_s29 = smov 40  }
  0x5b   :  { %769 = vrot.lane.b32.xlu0 %v738_v23, %s5327_s9  ;;  %417 = vst [vmem:[#allocation2 + $0x6c] sm:$0x1] %v416_v8  ;;  %v299_v59 = vor.u32 %v297_v25, %v296_v47  ;;  %v300_v10 = vrot.slane %v296_v47, 4  ;;  %v814_v54 = vld [vmem:[#allocation2 + $0x28] sm:$0xe]  ;;  %vm787_vm13 = vcmask 126016  }
  0x5c   :  { %v491_v36 = vld [vmem:[#allocation2 + $0x2c] sm:$0x1]  ;;  %v588_v55 = vrot.slane %v586_v53, 4  ;;  %v591_v45 = vrot.slane %v589_v19, 5  ;;  %v886_v24 = vsel %vm5830_vm12, %v4948_v56, %v885_v39  ;;  %v816_v22 = vld [vmem:[#allocation2 + $0x30] sm:$0xe] }
  0x5d   :  { %v595_v49 = vshll.u32 %v491_v36, 16  ;;  %935 = vrot.lane.b32.xlu1 %v874_v29, %s5328_s22  ;;  %v430_v15 = vld [vmem:[#allocation2 + $0x80] sm:$0xf]  ;;  %v815_v5 = vld [vmem:[#allocation2 + $0x2c] sm:$0x1]  ;;  %v4950_v32 = vrot.slane %v814_v54, 9 }
  0x5e   :  { %v592_v20 = vor.u32 %v591_v45, %v588_v55  ;;  %v431_v17 = vsel %vm5544_vm9, %v299_v59, %v430_v15  ;;  %v433_v46 = vld [vmem:[#allocation2 + $0x84] sm:$0x1]  ;;  %v817_v12 = vld [vmem:[#allocation2 + $0x34] sm:$0x1]  ;;  %v893_v35 = vrot.slane %v815_v5, 5  ;;  %v4951_v43 = vrot.slane %v816_v22, 9 }
  0x5f   :  { %v597_v4 = vrot.slane %v595_v49, 5  ;;  %432 = vst [vmem:[#allocation2 + $0x80] sm:$0xf] %v431_v17  ;;  %v434_v61 = vsel %vm5370_vm4, %v300_v10, %v433_v46  ;;  %v897_v62 = vrot.slane %v817_v12, 5  ;;  %v820_v16 = vld [vmem:[#allocation2 + $0x50] sm:$0xe] }
  0x60   :  { %v593_v14 = vrot.slane %v592_v20, 4  ;;  %435 = vst [vmem:[#allocation2 + $0x84] sm:$0x1] %v434_v61  ;;  %v894_v52 = vsel %vm5830_vm12, %v4950_v32, %v893_v35  ;;  %v821_v58 = vld [vmem:[#allocation2 + $0x54] sm:$0x1]  ;;  %v4953_v29 = vrot.slane %v820_v16, 9 }
  0x61   :  { %v502_v21 = vld [vmem:[#allocation2 + $0x68] sm:$0xf]  ;;  %v898_v40 = vsel %vm5830_vm12, %v4951_v43, %v897_v62  ;;  %v822_v23 = vld [vmem:[#allocation2 + $0x58] sm:$0xe]  ;;  %v823_v53 = vld [vmem:[#allocation2 + $0x5c] sm:$0x1] }
  0x62   :  { %v598_v7 = vsel %vm5525_vm8, %v593_v14, %v597_v4  ;;  %v503_v30 = vld [vmem:[#allocation2 + $0x6c] sm:$0x1]  ;;  %v670_v31 = vshrl.u32 %v502_v21, 16  ;;  %v673_v26 = vshll.u32 %v502_v21, 16  ;;  %v905_v18 = vrot.slane %v821_v58, 5  ;;  %v164_v49 = vld [vmem:[%s7184_s0 + $0x38] sm:$0xff] }
  0x63   :  { %749 = vrot.lane.b32.xlu2 %v598_v7, %s5327_s9  ;;  %939 = vrot.lane.b32.xlu0 %v882_v33, %s5328_s22  ;;  %v679_v41 = vshll.u32 %v503_v30, 16  ;;  %v4954_v27 = vrot.slane %v822_v23, 9  ;;  %v909_v60 = vrot.slane %v823_v53, 5  ;;  %v59_v36 = vld [vmem:[#allocation2 + $0x40] sm:$0x1]  ;;  %v180_v39 = vpack.c.bf16 %v164_v49, %v164_v49  ;;  %s5332_s30 = smov 48  }
  0x64   :  { %v672_v44 = vrot.slane %v670_v31, 4  ;;  %v675_v42 = vrot.slane %v673_v26, 5  ;;  %v906_v47 = vsel %vm5830_vm12, %v4953_v29, %v905_v18  ;;  %v826_v55 = vld [vmem:[#allocation2 + $0x68] sm:$0xe]  ;;  %v827_v45 = vld [vmem:[#allocation2 + $0x6c] sm:$0x1] }
  0x65   :  { %941 = vrot.lane.b32.xlu1 %v886_v24, %s5328_s22  ;;  %v681_v48 = vrot.slane %v679_v41, 5  ;;  %v60_v8 = vsel %vm5370_vm4, 0, %v59_v36  ;;  %v910_v10 = vsel %vm5830_vm12, %v4954_v27, %v909_v60  ;;  %v806_v20 = vld [vmem:[#allocation2 + $0x8] sm:$0xe]  ;;  %v807_v56 = vld [vmem:[#allocation2 + $0xc] sm:$0x1] }
  0x66   :  { %v676_v9 = vor.u32 %v675_v42, %v672_v44  ;;  %v508_v2 = vld [vmem:[#allocation2 + $0x80] sm:$0xf]  ;;  %61 = vst [vmem:[#allocation2 + $0x40] sm:$0x1] %v60_v8  ;;  %v828_v4 = vld [vmem:[#allocation2 + $0x70] sm:$0xe] }
  0x67   :  { %v509_v28 = vld [vmem:[#allocation2 + $0x84] sm:$0x1]  ;;  %v712_v34 = vshrl.u32 %v508_v2, 16  ;;  %v715_v57 = vshll.u32 %v508_v2, 16  ;;  %v829_v15 = vld [vmem:[#allocation2 + $0x74] sm:$0x1] }
  0x68   :  { %v677_v0 = vrot.slane %v676_v9, 4  ;;  %v721_v11 = vshll.u32 %v509_v28, 16  ;;  %v4956_v14 = vrot.slane %v826_v55, 9  ;;  %v917_v33 = vrot.slane %v827_v45, 5  ;;  %v832_v12 = vld [vmem:[#allocation2 + $0x80] sm:$0xe] }
  0x69   :  { %v714_v63 = vrot.slane %v712_v34, 4  ;;  %v717_v25 = vrot.slane %v715_v57, 5  ;;  %v246_v17 = vshrl.u32 %v180_v39, 16  ;;  %v4946_v46 = vrot.slane %v806_v20, 9  ;;  %v833_v30 = vld [vmem:[#allocation2 + $0x84] sm:$0x1] }
  0x6a   :  { %v682_v19 = vsel %vm5525_vm8, %v677_v0, %v681_v48  ;;  %v723_v51 = vrot.slane %v721_v11, 5  ;;  %v877_v54 = vrot.slane %v807_v56, 5  ;;  %v4957_v5 = vrot.slane %v828_v4, 9  ;;  %v812_v35 = vld [vmem:[#allocation2 + $0x20] sm:$0xe]  ;;  %s5333_s6 = smov 56  }
  0x6b   :  { %945 = vrot.lane.b32.xlu0 %v894_v52, %s5328_s22  ;;  %761 = vrot.lane.b32.xlu2 %v682_v19, %s5327_s9  ;;  %v718_v38 = vor.u32 %v717_v25, %v714_v63  ;;  %v921_v61 = vrot.slane %v829_v15, 5  ;;  %v5884_v7 = vrot.slane %v246_v17, 7  ;;  %v249_v24 = vshll.u32 %v180_v39, 16  ;;  %v813_v41 = vld [vmem:[#allocation2 + $0x24] sm:$0x1]  ;;  %s5334_s7 = smov 64  }
  0x6c   :  { %v918_v21 = vsel %vm5830_vm12, %v4956_v14, %v917_v33  ;;  %v878_v26 = vsel %vm5830_vm12, %v4946_v46, %v877_v54  ;;  %v834_v42 = vld [vmem:[#allocation2 + $0x88] sm:$0xe]  ;;  %v835_v43 = vld [vmem:[#allocation2 + $0x8c] sm:$0x1]  ;;  %v4959_v62 = vrot.slane %v832_v12, 9  ;;  %v929_v9 = vrot.slane %v833_v30, 5 }
  0x6d   :  { %947 = vrot.lane.b32.xlu1 %v898_v40, %s5328_s22  ;;  %v719_v37 = vrot.slane %v718_v38, 4  ;;  %v251_v22 = vor.u32 %v249_v24, %v5884_v7  ;;  %v394_v31 = vld [vmem:[#allocation2 + $0x40] sm:$0xf]  ;;  %v922_v32 = vsel %vm5830_vm12, %v4957_v5, %v921_v61  ;;  %v4949_v48 = vrot.slane %v812_v35, 9  ;;  %v818_v58 = vld [vmem:[#allocation2 + $0x38] sm:$0xe] }
  0x6e   :  { %v889_v52 = vrot.slane %v813_v41, 5  ;;  %v4960_v2 = vrot.slane %v834_v42, 9  ;;  %v933_v16 = vrot.slane %v835_v43, 5  ;;  %v930_v28 = vsel %vm5830_vm12, %v4959_v62, %v929_v9  ;;  %v819_v0 = vld [vmem:[#allocation2 + $0x3c] sm:$0x1] }
  0x6f   :  { %v724_v59 = vsel %vm5525_vm8, %v719_v37, %v723_v51  ;;  %v395_v44 = vsel %vm5544_vm9, %v251_v22, %v394_v31  ;;  %v448_v11 = vld [vmem:[#allocation2] sm:$0xf]  ;;  %v4952_v40 = vrot.slane %v818_v58, 9  ;;  %v901_v63 = vrot.slane %v819_v0, 5  ;;  %v1001_v25 = vld [vmem:[#allocation2 + $0x10] sm:$0xf] }
  0x70   :  { %396 = vst [vmem:[#allocation2 + $0x40] sm:$0xf] %v395_v44  ;;  %v890_v34 = vsel %vm5830_vm12, %v4949_v48, %v889_v52  ;;  %v934_v57 = vsel %vm5830_vm12, %v4960_v2, %v933_v16  ;;  %v1002_v53 = vld [vmem:[#allocation2 + $0x18] sm:$0xf]  ;;  %v824_v19 = vld [vmem:[#allocation2 + $0x60] sm:$0xe] }
  0x71   :  { %464 = vst.msk [vmem:[#allocation3] sm:$0xf] %vm21_vm0, %v448_v11  ;;  %v902_v23 = vsel %vm5830_vm12, %v4952_v40, %v901_v63  ;;  %v825_v29 = vld [vmem:[#allocation2 + $0x64] sm:$0x1]  ;;  %v456_v38 = vld [vmem:[#allocation2 + $0x50] sm:$0xf] }
  0x72   :  { %v450_v51 = vld [vmem:[#allocation2 + $0x10] sm:$0xf]  ;;  %v4955_v27 = vrot.slane %v824_v19, 9  ;;  %v913_v60 = vrot.slane %v825_v29, 5  ;;  %472 = vst.msk [vmem:[#allocation3 + $0x20] sm:$0xf] %vm21_vm0, %v456_v38 }
  0x73   :  { %951 = vrot.lane.b32.xlu0 %v906_v47, %s5328_s22  ;;  %767 = vrot.lane.b32.xlu2 %v724_v59, %s5327_s9  ;;  %v1004_v37 = vld [vmem:[#allocation2 + $0x28] sm:$0xf]  ;;  %466 = vst.msk [vmem:[#allocation3 + $0x8] sm:$0xf] %vm21_vm0, %v450_v51  ;;  %v1005_v36 = vld [vmem:[#allocation2 + $0x30] sm:$0xf] }
  0x74   :  { %v914_v47 = vsel %vm5830_vm12, %v4955_v27, %v913_v60  ;;  %v830_v55 = vld [vmem:[#allocation2 + $0x78] sm:$0xe]  ;;  %v831_v45 = vld [vmem:[#allocation2 + $0x7c] sm:$0x1]  ;;  %v449_v8 = vld [vmem:[#allocation2 + $0x8] sm:$0xf] }
  0x75   :  { %953 = vrot.lane.b32.xlu1 %v910_v10, %s5328_s22  ;;  %v452_v49 = vld [vmem:[#allocation2 + $0x20] sm:$0xf]  ;;  %v451_v59 = vld [vmem:[#allocation2 + $0x18] sm:$0xf]  ;;  %v4958_v10 = vrot.slane %v830_v55, 9  ;;  %v925_v20 = vrot.slane %v831_v45, 5 }
  0x76   :  { %465 = vst.msk [vmem:[#allocation3 + $0x4] sm:$0xf] %vm21_vm0, %v449_v8  ;;  %v1097_v39 = vld [vmem:[#allocation2 + $0x8] sm:$0xf]  ;;  %v1008_v4 = vld [vmem:[#allocation2 + $0x58] sm:$0xf] }
  0x77   :  { %468 = vst.msk [vmem:[#allocation3 + $0x10] sm:$0xf] %vm21_vm0, %v452_v49  ;;  %v1007_v56 = vld [vmem:[#allocation2 + $0x40] sm:$0xf]  ;;  %v121_v14 = vld [vmem:[#allocation2 + $0x44] sm:$0x1]  ;;  %v926_v33 = vsel %vm5830_vm12, %v4958_v10, %v925_v20 }
  0x78   :  { %467 = vst.msk [vmem:[#allocation3 + $0xc] sm:$0xf] %vm21_vm0, %v451_v59  ;;  %v1099_v17 = vld [vmem:[#allocation2 + $0x10] sm:$0xf]  ;;  %v122_v46 = vsel %vm5378_vm5, 0, %v121_v14  ;;  %v1130_v54 = vshrl.u32 %v1097_v39, 16 }
  0x79   :  { %v1133_v5 = vshll.u32 %v1097_v39, 16  ;;  %123 = vst [vmem:[#allocation2 + $0x44] sm:$0x1] %v122_v46  ;;  %v172_v61 = vld [vmem:[%s7184_s0 + $0x78] sm:$0xff]  ;;  %v1144_v24 = vshrl.u32 %v1099_v17, 16  ;;  %vm983_vm14 = vcmask 191616  }
  0x7a   :  { %v454_v22 = vld [vmem:[#allocation2 + $0x30] sm:$0xf]  ;;  %v453_v12 = vld [vmem:[#allocation2 + $0x28] sm:$0xf]  ;;  %v188_v30 = vpack.c.bf16 %v172_v61, %v172_v61  ;;  %v455_v31 = vld [vmem:[#allocation2 + $0x38] sm:$0xf] }
  0x7b   :  { %957 = vrot.lane.b32.xlu0 %v918_v21, %s5328_s22  ;;  %937 = vrot.lane.b32.xlu2 %v878_v26, %s5328_s22  ;;  %v1147_v21 = vshll.u32 %v1099_v17, 16  ;;  %470 = vst.msk [vmem:[#allocation3 + $0x18] sm:$0xf] %vm21_vm0, %v454_v22  ;;  %v89_v26 = vld [vmem:[#allocation2 + $0x90] sm:$0x1]  ;;  %v1132_v41 = vrot.slane %v1130_v54, 4 }
  0x7c   :  { %v1135_v44 = vrot.slane %v1133_v5, 5  ;;  %469 = vst.msk [vmem:[#allocation3 + $0x14] sm:$0xf] %vm21_vm0, %v453_v12  ;;  %v1000_v42 = vld [vmem:[#allocation2 + $0x8] sm:$0xf]  ;;  %v90_v52 = vsel %vm5370_vm4, 0, %v89_v26 }
  0x7d   :  { %959 = vrot.lane.b32.xlu1 %v922_v32, %s5328_s22  ;;  %v1010_v32 = vld [vmem:[#allocation2 + $0x68] sm:$0xf]  ;;  %v1098_v43 = vld [vmem:[#allocation2 + $0xc] sm:$0x1]  ;;  %v1100_v62 = vld [vmem:[#allocation2 + $0x14] sm:$0x1] }
  0x7e   :  { %471 = vst.msk [vmem:[#allocation3 + $0x1c] sm:$0xf] %vm21_vm0, %v455_v31  ;;  %v1103_v48 = vld [vmem:[#allocation2 + $0x20] sm:$0xf]  ;;  %v310_v2 = vshrl.u32 %v188_v30, 16  ;;  %v1139_v58 = vshll.u32 %v1098_v43, 16  ;;  %v1136_v63 = vor.u32 %v1135_v44, %v1132_v41 }
  0x7f   :  { %v1011_v16 = vld [vmem:[#allocation2 + $0x70] sm:$0xf]  ;;  %v1153_v0 = vshll.u32 %v1100_v62, 16  ;;  %v1172_v11 = vshrl.u32 %v1103_v48, 16  ;;  %v1105_v40 = vld [vmem:[#allocation2 + $0x28] sm:$0xf] }
  0x80   :  { %91 = vst [vmem:[#allocation2 + $0x90] sm:$0x1] %v90_v52  ;;  %v5946_v19 = vrot.slane %v310_v2, 7  ;;  %v313_v51 = vshll.u32 %v188_v30, 16  ;;  %v1003_v27 = vld [vmem:[#allocation2 + $0x20] sm:$0xf] }
  0x81   :  { %v1013_v60 = vld [vmem:[#allocation2 + $0x80] sm:$0xf]  ;;  %v1137_v55 = vrot.slane %v1136_v63, 4  ;;  %v1141_v45 = vrot.slane %v1139_v58, 5  ;;  %v1174_v39 = vrot.slane %v1172_v11, 4  ;;  %vm1080_vm15 = vcmask 257216  }
  0x82   :  { %v315_v59 = vor.u32 %v313_v51, %v5946_v19  ;;  %v1109_v46 = vld [vmem:[#allocation2 + $0x38] sm:$0xf]  ;;  %v1111_v5 = vld [vmem:[#allocation2 + $0x40] sm:$0xf]  ;;  %v460_v61 = vld [vmem:[#allocation2 + $0x70] sm:$0xf] }
  0x83   :  { %963 = vrot.lane.b32.xlu0 %v930_v28, %s5328_s22  ;;  %943 = vrot.lane.b32.xlu2 %v890_v34, %s5328_s22  ;;  %v1146_v28 = vrot.slane %v1144_v24, 4  ;;  %v1149_v34 = vrot.slane %v1147_v21, 5  ;;  %476 = vst.msk [vmem:[#allocation3 + $0x30] sm:$0xf] %vm21_vm0, %v460_v61  ;;  %v462_v24 = vld [vmem:[#allocation2 + $0x80] sm:$0xf]  ;;  %v1142_v22 = vsel %vm5525_vm8, %v1137_v55, %v1141_v45 }
  0x84   :  { %v461_v21 = vld [vmem:[#allocation2 + $0x78] sm:$0xf]  ;;  %v1106_v26 = vld [vmem:[#allocation2 + $0x2c] sm:$0x1]  ;;  %478 = vst.msk [vmem:[#allocation3 + $0x38] sm:$0xf] %vm21_vm0, %v462_v24 }
  0x85   :  { %965 = vrot.lane.b32.xlu1 %v934_v57, %s5328_s22  ;;  %v252_v57 = vrot.slane %v5884_v7, 4  ;;  %v1150_v29 = vor.u32 %v1149_v34, %v1146_v28  ;;  %v458_v7 = vld [vmem:[#allocation2 + $0x60] sm:$0xf]  ;;  %v1228_v41 = vshrl.u32 %v1111_v5, 16  ;;  %v1231_v44 = vshll.u32 %v1111_v5, 16 }
  0x86   :  { %474 = vst.msk [vmem:[#allocation3 + $0x28] sm:$0xf] %vm21_vm0, %v458_v7  ;;  %v1115_v58 = vld [vmem:[#allocation2 + $0x60] sm:$0xf]  ;;  %v463_v11 = vld [vmem:[#allocation2 + $0x88] sm:$0xf] }
  0x87   :  { %v1151_v20 = vrot.slane %v1150_v29, 4  ;;  %v442_v14 = vld [vmem:[#allocation2 + $0x90] sm:$0xf]  ;;  %477 = vst.msk [vmem:[#allocation3 + $0x34] sm:$0xf] %vm21_vm0, %v461_v21  ;;  %v1230_v34 = vrot.slane %v1228_v41, 4 }
  0x88   :  { %v443_v54 = vsel %vm5544_vm9, %v315_v59, %v442_v14  ;;  %479 = vst.msk [vmem:[#allocation3 + $0x3c] sm:$0xf] %vm21_vm0, %v463_v11  ;;  %v1259_v29 = vshll.u32 %v1115_v58, 16  ;;  %v151_v55 = vld [vmem:[#allocation2 + $0x94] sm:$0x1]  ;;  %vm1401_vm1 = vcmask 322816  }
  0x89   :  { %444 = vst [vmem:[#allocation2 + $0x90] sm:$0xf] %v443_v54  ;;  %v1116_v45 = vld [vmem:[#allocation2 + $0x64] sm:$0x1]  ;;  %v1118_v5 = vld [vmem:[#allocation2 + $0x6c] sm:$0x1] }
  0x8a   :  { %v1265_v54 = vshll.u32 %v1116_v45, 16  ;;  %v1279_v41 = vshll.u32 %v1118_v5, 16  ;;  %vm1594_vm2 = vcmask 388416   ;;  %vm2344_vm3 = vcmask 1043456  }
  0x8b   :  { %1034 = vrot.lane.b32.xlu0 %v1001_v25, %s5329_s25  ;;  %949 = vrot.lane.b32.xlu2 %v902_v23, %s5328_s22  ;;  %v1175_v25 = vshll.u32 %v1103_v48, 16  ;;  %v457_v23 = vld [vmem:[#allocation2 + $0x58] sm:$0xf]  ;;  %vm1692_vm6 = vcmask 454016   ;;  %vm2013_vm7 = vcmask 519616   ;;  %vm2206_vm10 = vcmask 585216  }
  0x8c   :  { %473 = vst.msk [vmem:[#allocation3 + $0x24] sm:$0xf] %vm21_vm0, %v457_v23  ;;  %vm2319_vm11 = vcmask 588800  }
  0x8d   :  { %1036 = vrot.lane.b32.xlu1 %v1002_v53, %s5329_s25  ;;  %v740_v18 = vpop.permute.xlu0 %739  ;;  %v459_v53 = vld [vmem:[#allocation2 + $0x68] sm:$0xf] }
  0x8e   :  { %788 = vst.msk [vmem:[#allocation3] sm:$0xf] %vm787_vm13, %v740_v18  ;;  %v397_v18 = vld [vmem:[#allocation2 + $0x44] sm:$0x1] }
  0x8f   :  { %475 = vst.msk [vmem:[#allocation3 + $0x2c] sm:$0xf] %vm21_vm0, %v459_v53  ;;  %v398_v49 = vsel %vm5370_vm4, %v252_v57, %v397_v18  ;;  %v1233_v57 = vrot.slane %v1231_v44, 5  ;;  %v1256_v53 = vshrl.u32 %v1115_v58, 16  ;;  %v1012_v44 = vld [vmem:[#allocation2 + $0x78] sm:$0xf] }
  0x90   :  { %399 = vst [vmem:[#allocation2 + $0x44] sm:$0x1] %v398_v49  ;;  %v1261_v49 = vrot.slane %v1259_v29, 5  ;;  %v1281_v58 = vrot.slane %v1279_v41, 5 }
  0x91   :  { %v1234_v51 = vor.u32 %v1233_v57, %v1230_v34 }
  0x93   :  { %1040 = vrot.lane.b32.xlu0 %v1004_v37, %s5329_s25  ;;  %955 = vrot.lane.b32.xlu2 %v914_v47, %s5328_s22  ;;  %v1186_v37 = vshrl.u32 %v1105_v40, 16  ;;  %v1189_v47 = vshll.u32 %v1105_v40, 16 }
  0x95   :  { %1042 = vrot.lane.b32.xlu1 %v1005_v36, %s5329_s25  ;;  %v1014_v36 = vld [vmem:[#allocation2 + $0x88] sm:$0xf]  ;;  %v1191_v17 = vrot.slane %v1189_v47, 5 }
  0x97   :  { %v1112_v23 = vld [vmem:[#allocation2 + $0x44] sm:$0x1] }
  0x99   :  { %v756_v15 = vpop.permute.xlu2 %755 }
  0x9a   :  { %796 = vst.msk [vmem:[#allocation3 + $0x20] sm:$0xf] %vm787_vm13, %v756_v15  ;;  %v1104_v15 = vld [vmem:[#allocation2 + $0x24] sm:$0x1] }
  0x9b   :  { %1046 = vrot.lane.b32.xlu0 %v1007_v56, %s5329_s25  ;;  %961 = vrot.lane.b32.xlu2 %v926_v33, %s5328_s22  ;;  %v1155_v56 = vrot.slane %v1153_v0, 5  ;;  %v1188_v33 = vrot.slane %v1186_v37, 4  ;;  %v1181_v31 = vshll.u32 %v1104_v15, 16  ;;  %v1110_v0 = vld [vmem:[#allocation2 + $0x3c] sm:$0x1] }
  0x9c   :  { %v1009_v37 = vld [vmem:[#allocation2 + $0x60] sm:$0xf] }
  0x9d   :  { %1048 = vrot.lane.b32.xlu1 %v1008_v4, %s5329_s25  ;;  %v1177_v4 = vrot.slane %v1175_v25, 5  ;;  %v1156_v43 = vsel %vm5525_vm8, %v1151_v20, %v1155_v56  ;;  %v1192_v62 = vor.u32 %v1191_v17, %v1188_v33  ;;  %v1183_v52 = vrot.slane %v1181_v31, 5  ;;  %v1117_v25 = vld [vmem:[#allocation2 + $0x68] sm:$0xf]  ;;  %v1101_v56 = vld [vmem:[#allocation2 + $0x18] sm:$0xf] }
  0x9e   :  { %v1235_v20 = vrot.slane %v1234_v51, 4  ;;  %v1121_v17 = vld [vmem:[#allocation2 + $0x78] sm:$0xf]  ;;  %v1158_v21 = vshrl.u32 %v1101_v56, 16  ;;  %v1107_v51 = vld [vmem:[#allocation2 + $0x30] sm:$0xf] }
  0x9f   :  { %v744_v35 = vpop.permute.xlu1 %743  ;;  %v1178_v30 = vor.u32 %v1177_v4, %v1174_v39  ;;  %v1193_v40 = vrot.slane %v1192_v62, 4  ;;  %v152_v39 = vsel %vm5378_vm5, 0, %v151_v55  ;;  %v1298_v31 = vshrl.u32 %v1121_v17, 16  ;;  %v1015_v55 = vld [vmem:[#allocation2 + $0x90] sm:$0xf] }
  0xa0   :  { %790 = vst.msk [vmem:[#allocation3 + $0x8] sm:$0xf] %vm787_vm13, %v744_v35  ;;  %v1217_v35 = vshll.u32 %v1109_v46, 16 }
  0xa1   :  { %v742_v9 = vpop.permute.xlu0 %741  ;;  %v1179_v48 = vrot.slane %v1178_v30, 4  ;;  %153 = vst [vmem:[#allocation2 + $0x94] sm:$0x1] %v152_v39 }
  0xa2   :  { %789 = vst.msk [vmem:[#allocation3 + $0x4] sm:$0xf] %vm787_vm13, %v742_v9  ;;  %v1195_v9 = vshll.u32 %v1106_v26, 16  ;;  %v1219_v28 = vrot.slane %v1217_v35, 5  ;;  %v1301_v26 = vshll.u32 %v1121_v17, 16 }
  0xa3   :  { %1052 = vrot.lane.b32.xlu0 %v1010_v32, %s5329_s25  ;;  %1032 = vrot.lane.b32.xlu2 %v1000_v42, %s5329_s25  ;;  %v1214_v32 = vshrl.u32 %v1109_v46, 16  ;;  %v1006_v42 = vld [vmem:[#allocation2 + $0x38] sm:$0xf]  ;;  %v1184_v7 = vsel %vm5525_vm8, %v1179_v48, %v1183_v52  ;;  %v1267_v48 = vrot.slane %v1265_v54, 5  ;;  %v1160_v52 = vrot.slane %v1158_v21, 4 }
  0xa4   :  { %v1197_v63 = vrot.slane %v1195_v9, 5  ;;  %v1303_v34 = vrot.slane %v1301_v26, 5 }
  0xa5   :  { %1054 = vrot.lane.b32.xlu1 %v1011_v16, %s5329_s25  ;;  %v1216_v16 = vrot.slane %v1214_v32, 4  ;;  %v316_v32 = vrot.slane %v5946_v19, 4 }
  0xa6   :  { %v1198_v47 = vsel %vm5525_vm8, %v1193_v40, %v1197_v63  ;;  %v1127_v40 = vld [vmem:[#allocation2 + $0x90] sm:$0xf] }
  0xa7   :  { %v746_v38 = vpop.permute.xlu1 %745  ;;  %v1220_v18 = vor.u32 %v1219_v28, %v1216_v16  ;;  %v1102_v16 = vld [vmem:[#allocation2 + $0x1c] sm:$0x1]  ;;  %v1300_v28 = vrot.slane %v1298_v31, 4 }
  0xa8   :  { %791 = vst.msk [vmem:[#allocation3 + $0xc] sm:$0xf] %vm787_vm13, %v746_v38  ;;  %v1223_v38 = vshll.u32 %v1110_v0, 16  ;;  %v445_v57 = vld [vmem:[#allocation2 + $0x94] sm:$0x1] }
  0xa9   :  { %v752_v8 = vpop.permute.xlu0 %751  ;;  %v1221_v59 = vrot.slane %v1220_v18, 4  ;;  %v1122_v0 = vld [vmem:[#allocation2 + $0x7c] sm:$0x1]  ;;  %v446_v11 = vsel %vm5370_vm4, %v316_v32, %v445_v57  ;;  %v1167_v18 = vshll.u32 %v1102_v16, 16 }
  0xaa   :  { %v748_v10 = vpop.permute.xlu2 %747  ;;  %794 = vst.msk [vmem:[#allocation3 + $0x18] sm:$0xf] %vm787_vm13, %v752_v8  ;;  %v1258_v8 = vrot.slane %v1256_v53, 4 }
  0xab   :  { %1058 = vrot.lane.b32.xlu0 %v1013_v60, %s5329_s25  ;;  %792 = vst.msk [vmem:[#allocation3 + $0x10] sm:$0xf] %vm787_vm13, %v748_v10  ;;  %1038 = vrot.lane.b32.xlu2 %v1003_v27, %s5329_s25  ;;  %v1270_v27 = vshrl.u32 %v1117_v25, 16  ;;  %v1273_v60 = vshll.u32 %v1117_v25, 16  ;;  %v1225_v10 = vrot.slane %v1223_v38, 5 }
  0xac   :  { %v1262_v24 = vor.u32 %v1261_v49, %v1258_v8  ;;  %447 = vst [vmem:[#allocation2 + $0x94] sm:$0x1] %v446_v11  ;;  %v1124_v38 = vld [vmem:[#allocation2 + $0x84] sm:$0x1]  ;;  %v1200_v49 = vshrl.u32 %v1107_v51, 16 }
  0xad   :  { %1060 = vrot.lane.b32.xlu1 %v1014_v36, %s5329_s25  ;;  %v1237_v36 = vshll.u32 %v1112_v23, 16  ;;  %v1272_v14 = vrot.slane %v1270_v27, 4  ;;  %v1275_v33 = vrot.slane %v1273_v60, 5  ;;  %v1226_v30 = vsel %vm5525_vm8, %v1221_v59, %v1225_v10 }
  0xae   :  { %v1263_v9 = vrot.slane %v1262_v24, 4  ;;  %v1304_v27 = vor.u32 %v1303_v34, %v1300_v28  ;;  %v1307_v60 = vshll.u32 %v1122_v0, 16  ;;  %v1321_v8 = vshll.u32 %v1124_v38, 16  ;;  %v1119_v28 = vld [vmem:[#allocation2 + $0x70] sm:$0xf] }
  0xaf   :  { %v754_v12 = vpop.permute.xlu1 %753  ;;  %v1239_v46 = vrot.slane %v1237_v36, 5  ;;  %v1276_v35 = vor.u32 %v1275_v33, %v1272_v14  ;;  %v1203_v59 = vshll.u32 %v1107_v51, 16  ;;  %v1108_v33 = vld [vmem:[#allocation2 + $0x34] sm:$0x1] }
  0xb0   :  { %795 = vst.msk [vmem:[#allocation3 + $0x1c] sm:$0xf] %vm787_vm13, %v754_v12  ;;  %v1123_v12 = vld [vmem:[#allocation2 + $0x80] sm:$0xf]  ;;  %v1268_v29 = vsel %vm5525_vm8, %v1263_v9, %v1267_v48  ;;  %v1309_v39 = vrot.slane %v1307_v60, 5  ;;  %v1323_v5 = vrot.slane %v1321_v8, 5 }
  0xb1   :  { %v1315_v62 = vshll.u32 %v1123_v12, 16  ;;  %v1277_v19 = vrot.slane %v1276_v35, 4  ;;  %v1205_v24 = vrot.slane %v1203_v59, 5  ;;  %v1209_v26 = vshll.u32 %v1108_v33, 16  ;;  %v1425_v60 = vld [vmem:[#allocation2 + $0x24] sm:$0x1] }
  0xb3   :  { %1353 = vrot.lane.b32.xlu0 %v1142_v22, %s5330_s28  ;;  %1044 = vrot.lane.b32.xlu2 %v1006_v42, %s5329_s25  ;;  %v1161_v22 = vshll.u32 %v1101_v56, 16  ;;  %v1240_v42 = vsel %vm5525_vm8, %v1235_v20, %v1239_v46  ;;  %v1317_v25 = vrot.slane %v1315_v62, 5  ;;  %v1282_v36 = vsel %vm5525_vm8, %v1277_v19, %v1281_v58  ;;  %v1128_v17 = vld [vmem:[#allocation2 + $0x94] sm:$0x1]  ;;  %v1113_v46 = vld [vmem:[#allocation2 + $0x58] sm:$0xf] }
  0xb4   :  { %v758_v2 = vpop.permute.xlu0 %757  ;;  %v1169_v20 = vrot.slane %v1167_v18, 5  ;;  %v1305_v56 = vrot.slane %v1304_v27, 4  ;;  %v1349_v31 = vshll.u32 %v1128_v17, 16  ;;  %v1242_v32 = vshrl.u32 %v1113_v46, 16  ;;  %v1419_v62 = vld [vmem:[#allocation2 + $0xc] sm:$0x1] }
  0xb5   :  { %1355 = vrot.lane.b32.xlu1 %v1156_v43, %s5330_s28  ;;  %797 = vst.msk [vmem:[#allocation3 + $0x24] sm:$0xf] %vm787_vm13, %v758_v2  ;;  %v1312_v43 = vshrl.u32 %v1123_v12, 16  ;;  %v1163_v2 = vrot.slane %v1161_v22, 5  ;;  %v1484_v19 = vrot.slane %v1419_v62, 5 }
  0xb6   :  { %v1310_v12 = vsel %vm5525_vm8, %v1305_v56, %v1309_v39  ;;  %v1351_v48 = vrot.slane %v1349_v31, 5  ;;  %v1244_v16 = vrot.slane %v1242_v32, 4  ;;  %v1424_v27 = vld [vmem:[#allocation2 + $0x20] sm:$0xe]  ;;  %v1428_v17 = vld [vmem:[#allocation2 + $0x30] sm:$0xe] }
  0xb7   :  { %v1314_v63 = vrot.slane %v1312_v43, 4  ;;  %v1418_v43 = vld [vmem:[#allocation2 + $0x8] sm:$0xe] }
  0xb8   :  { %v4961_v57 = vrot.slane %v1418_v43, 9 }
  0xb9   :  { %v1318_v45 = vor.u32 %v1317_v25, %v1314_v63  ;;  %v1284_v25 = vshrl.u32 %v1119_v28, 16 }
  0xba   :  { %v1485_v18 = vsel %vm5830_vm12, %v4961_v57, %v1484_v19  ;;  %v1436_v19 = vld [vmem:[#allocation2 + $0x60] sm:$0xe] }
  0xbb   :  { %1359 = vrot.lane.b32.xlu0 %v1184_v7, %s5330_s28  ;;  %1050 = vrot.lane.b32.xlu2 %v1009_v37, %s5329_s25  ;;  %v1164_v7 = vor.u32 %v1163_v2, %v1160_v52  ;;  %v1340_v37 = vshrl.u32 %v1127_v40, 16  ;;  %v1319_v54 = vrot.slane %v1318_v45, 4  ;;  %v1211_v52 = vrot.slane %v1209_v26, 5 }
  0xbc   :  { %v1286_v45 = vrot.slane %v1284_v25, 4 }
  0xbd   :  { %v750_v4 = vpop.permute.xlu2 %749  ;;  %1361 = vrot.lane.b32.xlu1 %v1198_v47, %s5330_s28  ;;  %v760_v15 = vpop.permute.xlu1 %759  ;;  %v1343_v47 = vshll.u32 %v1127_v40, 16  ;;  %v1165_v10 = vrot.slane %v1164_v7, 4  ;;  %v1324_v41 = vsel %vm5525_vm8, %v1319_v54, %v1323_v5  ;;  %v1114_v40 = vld [vmem:[#allocation2 + $0x5c] sm:$0x1] }
  0xbe   :  { %793 = vst.msk [vmem:[#allocation3 + $0x14] sm:$0xf] %vm787_vm13, %v750_v4  ;;  %v1342_v4 = vrot.slane %v1340_v37, 4  ;;  %v1251_v51 = vshll.u32 %v1114_v40, 16 }
  0xbf   :  { %798 = vst.msk [vmem:[#allocation3 + $0x28] sm:$0xf] %vm787_vm13, %v760_v15  ;;  %v764_v61 = vpop.permute.xlu0 %763  ;;  %v1345_v15 = vrot.slane %v1343_v47, 5  ;;  %v1170_v35 = vsel %vm5525_vm8, %v1165_v10, %v1169_v20  ;;  %v4964_v10 = vrot.slane %v1424_v27, 9  ;;  %v1496_v20 = vrot.slane %v1425_v60, 5 }
  0xc0   :  { %800 = vst.msk [vmem:[#allocation3 + $0x30] sm:$0xf] %vm787_vm13, %v764_v61  ;;  %v1202_v61 = vrot.slane %v1200_v49, 4  ;;  %v1253_v59 = vrot.slane %v1251_v51, 5  ;;  %v1441_v51 = vld [vmem:[#allocation2 + $0x74] sm:$0x1] }
  0xc1   :  { %v1497_v5 = vsel %vm5830_vm12, %v4964_v10, %v1496_v20 }
  0xc3   :  { %1365 = vrot.lane.b32.xlu0 %v1226_v30, %s5330_s28  ;;  %1056 = vrot.lane.b32.xlu2 %v1012_v44, %s5329_s25  ;;  %v1346_v30 = vor.u32 %v1345_v15, %v1342_v4  ;;  %v1206_v44 = vor.u32 %v1205_v24, %v1202_v61  ;;  %v1125_v4 = vld [vmem:[#allocation2 + $0x88] sm:$0xf] }
  0xc4   :  { %v1326_v61 = vshrl.u32 %v1125_v4, 16  ;;  %v1329_v24 = vshll.u32 %v1125_v4, 16 }
  0xc5   :  { %1367 = vrot.lane.b32.xlu1 %v1240_v42, %s5330_s28  ;;  %v762_v23 = vpop.permute.xlu2 %761  ;;  %v1245_v42 = vshll.u32 %v1113_v46, 16  ;;  %v1347_v9 = vrot.slane %v1346_v30, 4  ;;  %v1207_v34 = vrot.slane %v1206_v44, 4  ;;  %v1429_v46 = vld [vmem:[#allocation2 + $0x34] sm:$0x1] }
  0xc6   :  { %799 = vst.msk [vmem:[#allocation3 + $0x2c] sm:$0xf] %vm787_vm13, %v762_v23  ;;  %v1287_v23 = vshll.u32 %v1119_v28, 16  ;;  %v1504_v30 = vrot.slane %v1429_v46, 5  ;;  %v1328_v44 = vrot.slane %v1326_v61, 4 }
  0xc7   :  { %v766_v53 = vpop.permute.xlu1 %765  ;;  %v1247_v58 = vrot.slane %v1245_v42, 5  ;;  %v1352_v63 = vsel %vm5525_vm8, %v1347_v9, %v1351_v48  ;;  %v1212_v7 = vsel %vm5525_vm8, %v1207_v34, %v1211_v52  ;;  %v1331_v42 = vrot.slane %v1329_v24, 5  ;;  %v1126_v9 = vld [vmem:[#allocation2 + $0x8c] sm:$0x1]  ;;  %v1434_v52 = vld [vmem:[#allocation2 + $0x58] sm:$0xe] }
  0xc8   :  { %801 = vst.msk [vmem:[#allocation3 + $0x34] sm:$0xf] %vm787_vm13, %v766_v53  ;;  %v1422_v53 = vld [vmem:[#allocation2 + $0x18] sm:$0xe]  ;;  %v1289_v8 = vrot.slane %v1287_v23, 5  ;;  %v1335_v57 = vshll.u32 %v1126_v9, 16 }
  0xc9   :  { %v1248_v38 = vor.u32 %v1247_v58, %v1244_v16  ;;  %v4963_v37 = vrot.slane %v1422_v53, 9  ;;  %v1332_v34 = vor.u32 %v1331_v42, %v1328_v44  ;;  %v1437_v58 = vld [vmem:[#allocation2 + $0x64] sm:$0x1]  ;;  %v4970_v23 = vrot.slane %v1436_v19, 9  ;;  %v1448_v61 = vld [vmem:[#allocation2 + $0x90] sm:$0xe] }
  0xca   :  { %v1290_v33 = vor.u32 %v1289_v8, %v1286_v45  ;;  %v1337_v25 = vrot.slane %v1335_v57, 5  ;;  %v1520_v53 = vrot.slane %v1437_v58, 5  ;;  %v1528_v8 = vrot.slane %v1441_v51, 5  ;;  %v1449_v24 = vld [vmem:[#allocation2 + $0x94] sm:$0x1] }
  0xcb   :  { %1371 = vrot.lane.b32.xlu0 %v1268_v29, %s5330_s28  ;;  %1062 = vrot.lane.b32.xlu2 %v1015_v55, %s5329_s25  ;;  %v1423_v29 = vld [vmem:[#allocation2 + $0x1c] sm:$0x1]  ;;  %v1120_v55 = vld [vmem:[#allocation2 + $0x74] sm:$0x1]  ;;  %v1249_v49 = vrot.slane %v1248_v38, 4 }
  0xcc   :  { %v1492_v47 = vrot.slane %v1423_v29, 5  ;;  %v1291_v31 = vrot.slane %v1290_v33, 4  ;;  %v1440_v38 = vld [vmem:[#allocation2 + $0x70] sm:$0xe]  ;;  %v1521_v60 = vsel %vm5830_vm12, %v4970_v23, %v1520_v53  ;;  %v1447_v33 = vld [vmem:[#allocation2 + $0x8c] sm:$0x1] }
  0xcd   :  { %1373 = vrot.lane.b32.xlu1 %v1282_v36, %s5330_s28  ;;  %v770_v14 = vpop.permute.xlu0 %769  ;;  %v768_v21 = vpop.permute.xlu2 %767  ;;  %v1254_v54 = vsel %vm5525_vm8, %v1249_v49, %v1253_v59  ;;  %v4972_v45 = vrot.slane %v1440_v38, 9  ;;  %v1433_v9 = vld [vmem:[#allocation2 + $0x44] sm:$0x1]  ;;  %v1614_v19 = vld [vmem:[#allocation2 + $0x20] sm:$0xf] }
  0xce   :  { %803 = vst.msk [vmem:[#allocation3 + $0x3c] sm:$0xf] %vm787_vm13, %v770_v14  ;;  %v1493_v15 = vsel %vm5830_vm12, %v4963_v37, %v1492_v47  ;;  %v1293_v14 = vshll.u32 %v1120_v55, 16  ;;  %v1420_v37 = vld [vmem:[#allocation2 + $0x10] sm:$0xe] }
  0xcf   :  { %v936_v22 = vpop.permute.xlu1 %935  ;;  %802 = vst.msk [vmem:[#allocation3 + $0x38] sm:$0xf] %vm787_vm13, %v768_v21  ;;  %v1430_v21 = vld [vmem:[#allocation2 + $0x38] sm:$0xe]  ;;  %v1421_v47 = vld [vmem:[#allocation2 + $0x14] sm:$0x1] }
  0xd0   :  { %984 = vst.msk [vmem:[#allocation3] sm:$0xf] %vm983_vm14, %v936_v22  ;;  %v1431_v22 = vld [vmem:[#allocation2 + $0x3c] sm:$0x1]  ;;  %v1295_v26 = vrot.slane %v1293_v14, 5  ;;  %v4962_v59 = vrot.slane %v1420_v37, 9 }
  0xd1   :  { %v1443_v55 = vld [vmem:[#allocation2 + $0x7c] sm:$0x1]  ;;  %v1488_v10 = vrot.slane %v1421_v47, 5  ;;  %v1446_v14 = vld [vmem:[#allocation2 + $0x88] sm:$0xe] }
  0xd2   :  { %v1296_v16 = vsel %vm5525_vm8, %v1291_v31, %v1295_v26  ;;  %v4976_v26 = vrot.slane %v1448_v61, 9  ;;  %v1438_v58 = vld [vmem:[#allocation2 + $0x68] sm:$0xe]  ;;  %v1617_v51 = vld [vmem:[#allocation2 + $0x38] sm:$0xf] }
  0xd3   :  { %1377 = vrot.lane.b32.xlu0 %v1310_v12, %s5330_s28  ;;  %1357 = vrot.lane.b32.xlu2 %v1170_v35, %s5330_s28  ;;  %v4966_v12 = vrot.slane %v1428_v17, 9  ;;  %v4967_v35 = vrot.slane %v1430_v21, 9  ;;  %v1489_v17 = vsel %vm5830_vm12, %v4962_v59, %v1488_v10  ;;  %v4975_v21 = vrot.slane %v1446_v14, 9  ;;  %v2047_v61 = vld [vmem:[#allocation2 + $0x64] sm:$0x1] }
  0xd5   :  { %1379 = vrot.lane.b32.xlu1 %v1324_v41, %s5330_s28  ;;  %v940_v2 = vpop.permute.xlu0 %939  ;;  %v938_v0 = vpop.permute.xlu2 %937  ;;  %v1508_v41 = vrot.slane %v1431_v22, 5  ;;  %v1505_v48 = vsel %vm5830_vm12, %v4966_v12, %v1504_v30  ;;  %v1540_v22 = vrot.slane %v1447_v33, 5 }
  0xd6   :  { %986 = vst.msk [vmem:[#allocation3 + $0x8] sm:$0xf] %vm983_vm14, %v940_v2  ;;  %v1435_v2 = vld [vmem:[#allocation2 + $0x5c] sm:$0x1] }
  0xd7   :  { %v942_v11 = vpop.permute.xlu1 %941  ;;  %985 = vst.msk [vmem:[#allocation3 + $0x4] sm:$0xf] %vm983_vm14, %v938_v0  ;;  %v1509_v28 = vsel %vm5830_vm12, %v4967_v35, %v1508_v41  ;;  %v4969_v0 = vrot.slane %v1434_v52, 9  ;;  %v1541_v44 = vsel %vm5830_vm12, %v4975_v21, %v1540_v22 }
  0xd8   :  { %987 = vst.msk [vmem:[#allocation3 + $0xc] sm:$0xf] %vm983_vm14, %v942_v11  ;;  %v1516_v11 = vrot.slane %v1435_v2, 5  ;;  %v1512_v2 = vrot.slane %v1433_v9, 5  ;;  %v1712_v9 = vld [vmem:[#allocation2 + $0x1c] sm:$0x1] }
  0xdb   :  { %1383 = vrot.lane.b32.xlu0 %v1352_v63, %s5330_s28  ;;  %1363 = vrot.lane.b32.xlu2 %v1212_v7, %s5330_s28  ;;  %v1333_v63 = vrot.slane %v1332_v34, 4  ;;  %v1613_v34 = vld [vmem:[#allocation2 + $0x18] sm:$0xf] }
  0xdd   :  { %1546 = vrot.lane.b32.xlu1 %v1485_v18, %s5331_s29  ;;  %v946_v36 = vpop.permute.xlu0 %945  ;;  %v944_v56 = vpop.permute.xlu2 %943  ;;  %v1517_v18 = vsel %vm5830_vm12, %v4969_v0, %v1516_v11  ;;  %v1338_v27 = vsel %vm5525_vm8, %v1333_v63, %v1337_v25  ;;  %v1439_v0 = vld [vmem:[#allocation2 + $0x6c] sm:$0x1]  ;;  %v4971_v63 = vrot.slane %v1438_v58, 9  ;;  %v1725_v58 = vld [vmem:[#allocation2 + $0x60] sm:$0xf] }
  0xde   :  { %989 = vst.msk [vmem:[#allocation3 + $0x14] sm:$0xf] %vm983_vm14, %v946_v36  ;;  %v1442_v36 = vld [vmem:[#allocation2 + $0x78] sm:$0xe]  ;;  %v1524_v25 = vrot.slane %v1439_v0, 5 }
  0xdf   :  { %v948_v39 = vpop.permute.xlu1 %947  ;;  %988 = vst.msk [vmem:[#allocation3 + $0x10] sm:$0xf] %vm983_vm14, %v944_v56  ;;  %v4973_v20 = vrot.slane %v1442_v36, 9  ;;  %v1532_v56 = vrot.slane %v1443_v55, 5  ;;  %v1709_v36 = vld [vmem:[#allocation2 + $0x10] sm:$0xf] }
  0xe0   :  { %990 = vst.msk [vmem:[#allocation3 + $0x18] sm:$0xf] %vm983_vm14, %v948_v39  ;;  %v1525_v38 = vsel %vm5830_vm12, %v4971_v63, %v1524_v25  ;;  %v1729_v0 = vld [vmem:[#allocation2 + $0x70] sm:$0xf] }
  0xe1   :  { %v1533_v46 = vsel %vm5830_vm12, %v4973_v20, %v1532_v56  ;;  %v1742_v20 = vshrl.u32 %v1709_v36, 16  ;;  %v1745_v56 = vshll.u32 %v1709_v36, 16 }
  0xe3   :  { %1550 = vrot.lane.b32.xlu0 %v1493_v15, %s5331_s29  ;;  %1369 = vrot.lane.b32.xlu2 %v1254_v54, %s5330_s28  ;;  %v1529_v15 = vsel %vm5830_vm12, %v4972_v45, %v1528_v8  ;;  %v1426_v54 = vld [vmem:[#allocation2 + $0x28] sm:$0xe]  ;;  %v1728_v45 = vld [vmem:[#allocation2 + $0x6c] sm:$0x1]  ;;  %v1747_v21 = vrot.slane %v1745_v56, 5 }
  0xe4   :  { %v4965_v30 = vrot.slane %v1426_v54, 9  ;;  %v1877_v14 = vshll.u32 %v1728_v45, 16  ;;  %v1730_v56 = vld [vmem:[#allocation2 + $0x74] sm:$0x1] }
  0xe5   :  { %1552 = vrot.lane.b32.xlu1 %v1497_v5, %s5331_s29  ;;  %v952_v32 = vpop.permute.xlu0 %951  ;;  %v950_v43 = vpop.permute.xlu2 %949  ;;  %v1427_v5 = vld [vmem:[#allocation2 + $0x2c] sm:$0x1] }
  0xe6   :  { %992 = vst.msk [vmem:[#allocation3 + $0x20] sm:$0xf] %vm983_vm14, %v952_v32  ;;  %v1500_v31 = vrot.slane %v1427_v5, 5  ;;  %v1544_v32 = vrot.slane %v1449_v24, 5  ;;  %v2046_v5 = vld [vmem:[#allocation2 + $0x60] sm:$0xe] }
  0xe7   :  { %v954_v62 = vpop.permute.xlu1 %953  ;;  %991 = vst.msk [vmem:[#allocation3 + $0x1c] sm:$0xf] %vm983_vm14, %v950_v43  ;;  %v1744_v24 = vrot.slane %v1742_v20, 4 }
  0xe8   :  { %993 = vst.msk [vmem:[#allocation3 + $0x24] sm:$0xf] %vm983_vm14, %v954_v62  ;;  %v1501_v42 = vsel %vm5830_vm12, %v4965_v30, %v1500_v31  ;;  %v1545_v43 = vsel %vm5830_vm12, %v4976_v26, %v1544_v32  ;;  %v1432_v62 = vld [vmem:[#allocation2 + $0x40] sm:$0xe]  ;;  %v1710_v30 = vld [vmem:[#allocation2 + $0x14] sm:$0x1] }
  0xe9   :  { %v4968_v52 = vrot.slane %v1432_v62, 9  ;;  %v4985_v26 = vrot.slane %v2046_v5, 9  ;;  %v2128_v32 = vrot.slane %v2047_v61, 5  ;;  %v1751_v62 = vshll.u32 %v1710_v30, 16 }
  0xea   :  { %v1891_v61 = vshll.u32 %v1730_v56, 16  ;;  %v2036_v56 = vld [vmem:[#allocation2 + $0x28] sm:$0xe] }
  0xeb   :  { %1556 = vrot.lane.b32.xlu0 %v1505_v48, %s5331_s29  ;;  %1375 = vrot.lane.b32.xlu2 %v1296_v16, %s5330_s28  ;;  %v1513_v57 = vsel %vm5830_vm12, %v4968_v52, %v1512_v2  ;;  %v1612_v52 = vld [vmem:[#allocation2 + $0x10] sm:$0xf]  ;;  %v2129_v2 = vsel %vm5830_vm12, %v4985_v26, %v2128_v32 }
  0xed   :  { %1558 = vrot.lane.b32.xlu1 %v1509_v28, %s5331_s29  ;;  %v958_v40 = vpop.permute.xlu0 %957  ;;  %v956_v29 = vpop.permute.xlu2 %955 }
  0xee   :  { %995 = vst.msk [vmem:[#allocation3 + $0x2c] sm:$0xf] %vm983_vm14, %v958_v40  ;;  %v1727_v40 = vld [vmem:[#allocation2 + $0x68] sm:$0xf] }
  0xef   :  { %v960_v7 = vpop.permute.xlu1 %959  ;;  %994 = vst.msk [vmem:[#allocation3 + $0x28] sm:$0xf] %vm983_vm14, %v956_v29  ;;  %v1616_v29 = vld [vmem:[#allocation2 + $0x30] sm:$0xf] }
  0xf0   :  { %996 = vst.msk [vmem:[#allocation3 + $0x30] sm:$0xf] %vm983_vm14, %v960_v7  ;;  %v1868_v7 = vshrl.u32 %v1727_v40, 16 }
  0xf2   :  { %v1870_v37 = vrot.slane %v1868_v7, 4  ;;  %v1857_v7 = vshll.u32 %v1725_v58, 16 }
  0xf3   :  { %1562 = vrot.lane.b32.xlu0 %v1517_v18, %s5331_s29  ;;  %1381 = vrot.lane.b32.xlu2 %v1338_v27, %s5330_s28  ;;  %v1871_v18 = vshll.u32 %v1727_v40, 16  ;;  %v1444_v27 = vld [vmem:[#allocation2 + $0x80] sm:$0xe] }
  0xf4   :  { %v4974_v8 = vrot.slane %v1444_v27, 9  ;;  %v2033_v27 = vld [vmem:[#allocation2 + $0x1c] sm:$0x1]  ;;  %v1859_v20 = vrot.slane %v1857_v7, 5 }
  0xf5   :  { %1564 = vrot.lane.b32.xlu1 %v1521_v60, %s5331_s29  ;;  %v964_v49 = vpop.permute.xlu0 %963  ;;  %v962_v39 = vpop.permute.xlu2 %961  ;;  %v1445_v60 = vld [vmem:[#allocation2 + $0x84] sm:$0x1]  ;;  %v1873_v47 = vrot.slane %v1871_v18, 5  ;;  %v1882_v18 = vshrl.u32 %v1729_v0, 16  ;;  %v2100_v45 = vrot.slane %v2033_v27, 5 }
  0xf6   :  { %998 = vst.msk [vmem:[#allocation3 + $0x38] sm:$0xf] %vm983_vm14, %v964_v49  ;;  %v1536_v49 = vrot.slane %v1445_v60, 5  ;;  %v1615_v60 = vld [vmem:[#allocation2 + $0x28] sm:$0xf] }
  0xf7   :  { %v966_v4 = vpop.permute.xlu1 %965  ;;  %997 = vst.msk [vmem:[#allocation3 + $0x34] sm:$0xf] %vm983_vm14, %v962_v39  ;;  %v1711_v39 = vld [vmem:[#allocation2 + $0x18] sm:$0xf] }
  0xf8   :  { %999 = vst.msk [vmem:[#allocation3 + $0x3c] sm:$0xf] %vm983_vm14, %v966_v4  ;;  %v1620_v4 = vld [vmem:[#allocation2 + $0x60] sm:$0xf]  ;;  %v1537_v33 = vsel %vm5830_vm12, %v4974_v8, %v1536_v49  ;;  %v1759_v54 = vshll.u32 %v1711_v39, 16  ;;  %v1884_v8 = vrot.slane %v1882_v18, 4 }
  0xfb   :  { %1568 = vrot.lane.b32.xlu0 %v1529_v15, %s5331_s29  ;;  %1548 = vrot.lane.b32.xlu2 %v1489_v17, %s5331_s29  ;;  %v1874_v15 = vor.u32 %v1873_v47, %v1870_v37  ;;  %v1621_v17 = vld [vmem:[#allocation2 + $0x68] sm:$0xf] }
  0xfd   :  { %1570 = vrot.lane.b32.xlu1 %v1533_v46, %s5331_s29  ;;  %v1035_v12 = vpop.permute.xlu0 %1034  ;;  %v1033_v35 = vpop.permute.xlu2 %1032  ;;  %v1756_v46 = vshrl.u32 %v1711_v39, 16  ;;  %v1875_v22 = vrot.slane %v1874_v15, 4  ;;  %v1726_v39 = vld [vmem:[#allocation2 + $0x64] sm:$0x1] }
  0xfe   :  { %1082 = vst.msk [vmem:[#allocation3 + $0x4] sm:$0xf] %vm1080_vm15, %v1035_v12  ;;  %v1879_v12 = vrot.slane %v1877_v14, 5 }
  0xff   :  { %v1037_v41 = vpop.permute.xlu1 %1036  ;;  %1081 = vst.msk [vmem:[#allocation3] sm:$0xf] %vm1080_vm15, %v1033_v35  ;;  %v1758_v35 = vrot.slane %v1756_v46, 4  ;;  %v1713_v46 = vld [vmem:[#allocation2 + $0x20] sm:$0xf] }
 0x100   :  { %1083 = vst.msk [vmem:[#allocation3 + $0x8] sm:$0xf] %vm1080_vm15, %v1037_v41  ;;  %v1761_v41 = vrot.slane %v1759_v54, 5  ;;  %v1770_v26 = vshrl.u32 %v1713_v46, 16  ;;  %v1773_v32 = vshll.u32 %v1713_v46, 16  ;;  %v4980_v46 = vrot.slane %v2036_v56, 9 }
 0x103   :  { %1574 = vrot.lane.b32.xlu0 %v1541_v44, %s5331_s29  ;;  %1554 = vrot.lane.b32.xlu2 %v1501_v42, %s5331_s29 }
 0x105   :  { %1576 = vrot.lane.b32.xlu1 %v1545_v43, %s5331_s29  ;;  %v1041_v48 = vpop.permute.xlu0 %1040  ;;  %v1039_v16 = vpop.permute.xlu2 %1038  ;;  %v1748_v43 = vor.u32 %v1747_v21, %v1744_v24  ;;  %v1618_v24 = vld [vmem:[#allocation2 + $0x40] sm:$0xf] }
 0x106   :  { %1085 = vst.msk [vmem:[#allocation3 + $0x10] sm:$0xf] %vm1080_vm15, %v1041_v48  ;;  %v1880_v48 = vsel %vm5525_vm8, %v1875_v22, %v1879_v12  ;;  %v1863_v22 = vshll.u32 %v1726_v39, 16  ;;  %v1622_v12 = vld [vmem:[#allocation2 + $0x70] sm:$0xf] }
 0x107   :  { %v1043_v28 = vpop.permute.xlu1 %1042  ;;  %1084 = vst.msk [vmem:[#allocation3 + $0xc] sm:$0xf] %vm1080_vm15, %v1039_v16  ;;  %v1762_v16 = vor.u32 %v1761_v41, %v1758_v35  ;;  %v1893_v41 = vrot.slane %v1891_v61, 5  ;;  %v2037_v39 = vld [vmem:[#allocation2 + $0x2c] sm:$0x1] }
 0x108   :  { %1086 = vst.msk [vmem:[#allocation3 + $0x14] sm:$0xf] %vm1080_vm15, %v1043_v28  ;;  %v1765_v28 = vshll.u32 %v1712_v9, 16 }
 0x10a   :  { %v1767_v40 = vrot.slane %v1765_v28, 5  ;;  %v1714_v28 = vld [vmem:[#allocation2 + $0x24] sm:$0x1] }
 0x10b   :  { %1646 = vrot.lane.b32.xlu0 %v1613_v34, %s5332_s30  ;;  %1560 = vrot.lane.b32.xlu2 %v1513_v57, %s5331_s29  ;;  %v1749_v34 = vrot.slane %v1748_v43, 4  ;;  %v1753_v57 = vrot.slane %v1751_v62, 5 }
 0x10d   :  { %1648 = vrot.lane.b32.xlu1 %v1614_v19, %s5332_s30  ;;  %v1047_v11 = vpop.permute.xlu0 %1046  ;;  %v1045_v23 = vpop.permute.xlu2 %1044 }
 0x10e   :  { %1088 = vst.msk [vmem:[#allocation3 + $0x1c] sm:$0xf] %vm1080_vm15, %v1047_v11  ;;  %v1763_v11 = vrot.slane %v1762_v16, 4 }
 0x10f   :  { %v1049_v53 = vpop.permute.xlu1 %1048  ;;  %1087 = vst.msk [vmem:[#allocation3 + $0x18] sm:$0xf] %vm1080_vm15, %v1045_v23  ;;  %v1754_v23 = vsel %vm5525_vm8, %v1749_v34, %v1753_v57  ;;  %v2052_v57 = vld [vmem:[#allocation2 + $0x78] sm:$0xe] }
 0x110   :  { %1089 = vst.msk [vmem:[#allocation3 + $0x20] sm:$0xf] %vm1080_vm15, %v1049_v53  ;;  %v1731_v53 = vld [vmem:[#allocation2 + $0x78] sm:$0xf]  ;;  %v1768_v37 = vsel %vm5525_vm8, %v1763_v11, %v1767_v40  ;;  %v1779_v40 = vshll.u32 %v1714_v28, 16 }
 0x111   :  { %v1896_v47 = vshrl.u32 %v1731_v53, 16  ;;  %v1899_v36 = vshll.u32 %v1731_v53, 16  ;;  %v1625_v28 = vld [vmem:[#allocation2 + $0x88] sm:$0xf] }
 0x113   :  { %1652 = vrot.lane.b32.xlu0 %v1616_v29, %s5332_s30  ;;  %1566 = vrot.lane.b32.xlu2 %v1525_v38, %s5331_s29  ;;  %v1854_v29 = vshrl.u32 %v1725_v58, 16  ;;  %v1885_v38 = vshll.u32 %v1729_v0, 16  ;;  %v1901_v15 = vrot.slane %v1899_v36, 5  ;;  %v2034_v36 = vld [vmem:[#allocation2 + $0x20] sm:$0xe] }
 0x115   :  { %1654 = vrot.lane.b32.xlu1 %v1617_v51, %s5332_s30  ;;  %v1053_v55 = vpop.permute.xlu0 %1052  ;;  %v1051_v59 = vpop.permute.xlu2 %1050  ;;  %v2032_v51 = vld [vmem:[#allocation2 + $0x18] sm:$0xe]  ;;  %v1887_v49 = vrot.slane %v1885_v38, 5 }
 0x116   :  { %1091 = vst.msk [vmem:[#allocation3 + $0x28] sm:$0xf] %vm1080_vm15, %v1053_v55  ;;  %v4978_v55 = vrot.slane %v2032_v51, 9  ;;  %v1781_v51 = vrot.slane %v1779_v40, 5  ;;  %v1623_v40 = vld [vmem:[#allocation2 + $0x78] sm:$0xf] }
 0x117   :  { %v1055_v10 = vpop.permute.xlu1 %1054  ;;  %1090 = vst.msk [vmem:[#allocation3 + $0x24] sm:$0xf] %vm1080_vm15, %v1051_v59  ;;  %v1888_v5 = vor.u32 %v1887_v49, %v1884_v8  ;;  %v2030_v49 = vld [vmem:[#allocation2 + $0x10] sm:$0xe] }
 0x118   :  { %1092 = vst.msk [vmem:[#allocation3 + $0x2c] sm:$0xf] %vm1080_vm15, %v1055_v10  ;;  %v1856_v10 = vrot.slane %v1854_v29, 4  ;;  %v2101_v54 = vsel %vm5830_vm12, %v4978_v55, %v2100_v45  ;;  %v2035_v55 = vld [vmem:[#allocation2 + $0x24] sm:$0x1] }
 0x119   :  { %v1889_v35 = vrot.slane %v1888_v5, 4 }
 0x11a   :  { %v1860_v21 = vor.u32 %v1859_v20, %v1856_v10 }
 0x11b   :  { %1660 = vrot.lane.b32.xlu0 %v1620_v4, %s5332_s30  ;;  %1572 = vrot.lane.b32.xlu2 %v1537_v33, %s5331_s29  ;;  %v1898_v4 = vrot.slane %v1896_v47, 4  ;;  %v1894_v34 = vsel %vm5525_vm8, %v1889_v35, %v1893_v41  ;;  %v92_v35 = vld [vmem:[#allocation2 + $0x98] sm:$0x1] }
 0x11c   :  { %v93_v41 = vsel %vm5370_vm4, 0, %v92_v35 }
 0x11d   :  { %1662 = vrot.lane.b32.xlu1 %v1621_v17, %s5332_s30  ;;  %v1059_v31 = vpop.permute.xlu0 %1058  ;;  %v1057_v44 = vpop.permute.xlu2 %1056  ;;  %v1732_v17 = vld [vmem:[#allocation2 + $0x7c] sm:$0x1]  ;;  %v1902_v30 = vor.u32 %v1901_v15, %v1898_v4  ;;  %v4979_v4 = vrot.slane %v2034_v36, 9  ;;  %v2104_v15 = vrot.slane %v2035_v55, 5  ;;  %94 = vst [vmem:[#allocation2 + $0x98] sm:$0x1] %v93_v41 }
 0x11e   :  { %1094 = vst.msk [vmem:[#allocation3 + $0x34] sm:$0xf] %vm1080_vm15, %v1059_v31  ;;  %v1905_v31 = vshll.u32 %v1732_v17, 16  ;;  %v1720_v55 = vld [vmem:[#allocation2 + $0x3c] sm:$0x1] }
 0x11f   :  { %v1061_v42 = vpop.permute.xlu1 %1060  ;;  %1093 = vst.msk [vmem:[#allocation3 + $0x30] sm:$0xf] %vm1080_vm15, %v1057_v44  ;;  %v1861_v44 = vrot.slane %v1860_v21, 4  ;;  %v1903_v62 = vrot.slane %v1902_v30, 4 }
 0x120   :  { %1095 = vst.msk [vmem:[#allocation3 + $0x38] sm:$0xf] %vm1080_vm15, %v1061_v42  ;;  %v1865_v42 = vrot.slane %v1863_v22, 5  ;;  %v1907_v9 = vrot.slane %v1905_v31, 5  ;;  %v1734_v22 = vld [vmem:[#allocation2 + $0x84] sm:$0x1] }
 0x122   :  { %v1866_v58 = vsel %vm5525_vm8, %v1861_v44, %v1865_v42  ;;  %v1908_v0 = vsel %vm5525_vm8, %v1903_v62, %v1907_v9  ;;  %v1715_v42 = vld [vmem:[#allocation2 + $0x28] sm:$0xf]  ;;  %v154_v62 = vld [vmem:[#allocation2 + $0x9c] sm:$0x1] }
 0x123   :  { %1983 = vrot.lane.b32.xlu0 %v1880_v48, %s5333_s6  ;;  %1644 = vrot.lane.b32.xlu2 %v1612_v52, %s5332_s30  ;;  %v1772_v48 = vrot.slane %v1770_v26, 4  ;;  %v1775_v52 = vrot.slane %v1773_v32, 5  ;;  %v1919_v32 = vshll.u32 %v1734_v22, 16 }
 0x125   :  { %2174 = vrot.lane.b32.xlu1 %v2129_v2, %s5334_s7  ;;  %v1354_v19 = vpop.permute.xlu0 %1353  ;;  %v1063_v63 = vpop.permute.xlu2 %1062  ;;  %v1776_v11 = vor.u32 %v1775_v52, %v1772_v48  ;;  %v1921_v48 = vrot.slane %v1919_v32, 5  ;;  %v155_v52 = vsel %vm5378_vm5, 0, %v154_v62  ;;  %v1735_v32 = vld [vmem:[#allocation2 + $0x88] sm:$0xf] }
 0x126   :  { %1402 = vst.msk [vmem:[#allocation3] sm:$0xf] %vm1401_vm1, %v1354_v19  ;;  %v2053_v19 = vld [vmem:[#allocation2 + $0x7c] sm:$0x1]  ;;  %v1924_v62 = vshrl.u32 %v1735_v32, 16 }
 0x127   :  { %v1356_v25 = vpop.permute.xlu1 %1355  ;;  %1096 = vst.msk [vmem:[#allocation3 + $0x3c] sm:$0xf] %vm1080_vm15, %v1063_v63  ;;  %v2048_v63 = vld [vmem:[#allocation2 + $0x68] sm:$0xe]  ;;  %v2140_v53 = vrot.slane %v2053_v19, 5  ;;  %v1777_v38 = vrot.slane %v1776_v11, 4 }
 0x128   :  { %1403 = vst.msk [vmem:[#allocation3 + $0x4] sm:$0xf] %vm1401_vm1, %v1356_v25  ;;  %v2049_v25 = vld [vmem:[#allocation2 + $0x6c] sm:$0x1]  ;;  %v4986_v7 = vrot.slane %v2048_v63, 9 }
 0x129   :  { %v2132_v18 = vrot.slane %v2049_v25, 5  ;;  %v1782_v8 = vsel %vm5525_vm8, %v1777_v38, %v1781_v51  ;;  %156 = vst [vmem:[#allocation2 + $0x9c] sm:$0x1] %v155_v52  ;;  %v2055_v11 = vld [vmem:[#allocation2 + $0x84] sm:$0x1] }
 0x12a   :  { %v2050_v25 = vld [vmem:[#allocation2 + $0x70] sm:$0xe] }
 0x12b   :  { %1965 = vrot.lane.b32.xlu0 %v1754_v23, %s5333_s6  ;;  %1650 = vrot.lane.b32.xlu2 %v1615_v60, %s5332_s30  ;;  %v4988_v23 = vrot.slane %v2052_v57, 9  ;;  %v2133_v45 = vsel %vm5830_vm12, %v4986_v7, %v2132_v18  ;;  %v1787_v57 = vshll.u32 %v1715_v42, 16  ;;  %v2144_v18 = vrot.slane %v2055_v11, 5  ;;  %v1736_v11 = vld [vmem:[#allocation2 + $0x8c] sm:$0x1] }
 0x12d   :  { %1967 = vrot.lane.b32.xlu1 %v1768_v37, %s5333_s6  ;;  %v1360_v59 = vpop.permute.xlu0 %1359  ;;  %v1358_v14 = vpop.permute.xlu2 %1357  ;;  %v1733_v37 = vld [vmem:[#allocation2 + $0x80] sm:$0xf]  ;;  %v2141_v47 = vsel %vm5830_vm12, %v4988_v23, %v2140_v53  ;;  %v2051_v23 = vld [vmem:[#allocation2 + $0x74] sm:$0x1]  ;;  %v2056_v53 = vld [vmem:[#allocation2 + $0x88] sm:$0xe] }
 0x12e   :  { %1405 = vst.msk [vmem:[#allocation3 + $0xc] sm:$0xf] %vm1401_vm1, %v1360_v59  ;;  %v2031_v59 = vld [vmem:[#allocation2 + $0x14] sm:$0x1]  ;;  %v1910_v10 = vshrl.u32 %v1733_v37, 16  ;;  %v1913_v20 = vshll.u32 %v1733_v37, 16 }
 0x12f   :  { %v1362_v33 = vpop.permute.xlu1 %1361  ;;  %1404 = vst.msk [vmem:[#allocation3 + $0x8] sm:$0xf] %vm1401_vm1, %v1358_v14  ;;  %v4977_v14 = vrot.slane %v2030_v49, 9  ;;  %v1789_v36 = vrot.slane %v1787_v57, 5  ;;  %v1716_v49 = vld [vmem:[#allocation2 + $0x2c] sm:$0x1] }
 0x130   :  { %1406 = vst.msk [vmem:[#allocation3 + $0x10] sm:$0xf] %vm1401_vm1, %v1362_v33  ;;  %v2096_v33 = vrot.slane %v2031_v59, 5  ;;  %v1912_v5 = vrot.slane %v1910_v10, 4  ;;  %v1915_v61 = vrot.slane %v1913_v20, 5 }
 0x132   :  { %v2097_v30 = vsel %vm5830_vm12, %v4977_v14, %v2096_v33  ;;  %v1916_v26 = vor.u32 %v1915_v61, %v1912_v5 }
 0x133   :  { %2160 = vrot.lane.b32.xlu0 %v2101_v54, %s5334_s7  ;;  %1656 = vrot.lane.b32.xlu2 %v1618_v24, %s5332_s30  ;;  %v2108_v54 = vrot.slane %v2037_v39, 5  ;;  %v1821_v39 = vshll.u32 %v1720_v55, 16  ;;  %v2058_v55 = vld [vmem:[#allocation2 + $0x90] sm:$0xe] }
 0x134   :  { %v1917_v9 = vrot.slane %v1916_v26, 4 }
 0x135   :  { %1664 = vrot.lane.b32.xlu1 %v1622_v12, %s5332_s30  ;;  %v1366_v43 = vpop.permute.xlu0 %1365  ;;  %v1364_v2 = vpop.permute.xlu2 %1363  ;;  %v2105_v12 = vsel %vm5830_vm12, %v4979_v4, %v2104_v15  ;;  %v2109_v31 = vsel %vm5830_vm12, %v4980_v46, %v2108_v54  ;;  %v1793_v15 = vshll.u32 %v1716_v49, 16  ;;  %v2039_v46 = vld [vmem:[#allocation2 + $0x34] sm:$0x1]  ;;  %v62_v54 = vld [vmem:[#allocation2 + $0x48] sm:$0x1]  ;;  %v1823_v61 = vrot.slane %v1821_v39, 5 }
 0x136   :  { %1408 = vst.msk [vmem:[#allocation3 + $0x18] sm:$0xf] %vm1401_vm1, %v1366_v43  ;;  %v1719_v43 = vld [vmem:[#allocation2 + $0x38] sm:$0xf]  ;;  %v1922_v63 = vsel %vm5525_vm8, %v1917_v9, %v1921_v48  ;;  %v2112_v26 = vrot.slane %v2039_v46, 5  ;;  %v1927_v9 = vshll.u32 %v1735_v32, 16 }
 0x137   :  { %v1368_v16 = vpop.permute.xlu1 %1367  ;;  %1407 = vst.msk [vmem:[#allocation3 + $0x14] sm:$0xf] %vm1401_vm1, %v1364_v2  ;;  %v1812_v19 = vshrl.u32 %v1719_v43, 16 }
 0x138   :  { %1409 = vst.msk [vmem:[#allocation3 + $0x1c] sm:$0xf] %vm1401_vm1, %v1368_v16 }
 0x139   :  { %v1814_v38 = vrot.slane %v1812_v19, 4  ;;  %v1926_v19 = vrot.slane %v1924_v62, 4 }
 0x13b   :  { %1985 = vrot.lane.b32.xlu0 %v1894_v34, %s5333_s6  ;;  %1981 = vrot.lane.b32.xlu2 %v1866_v58, %s5333_s6  ;;  %v1784_v34 = vshrl.u32 %v1715_v42, 16  ;;  %v1815_v58 = vshll.u32 %v1719_v43, 16 }
 0x13d   :  { %1987 = vrot.lane.b32.xlu1 %v1908_v0, %s5333_s6  ;;  %v1372_v29 = vpop.permute.xlu0 %1371  ;;  %v1370_v27 = vpop.permute.xlu2 %1369  ;;  %v2054_v0 = vld [vmem:[#allocation2 + $0x80] sm:$0xe]  ;;  %v1817_v51 = vrot.slane %v1815_v58, 5  ;;  %v1929_v58 = vrot.slane %v1927_v9, 5 }
 0x13e   :  { %1411 = vst.msk [vmem:[#allocation3 + $0x24] sm:$0xf] %vm1401_vm1, %v1372_v29  ;;  %v2057_v29 = vld [vmem:[#allocation2 + $0x8c] sm:$0x1]  ;;  %v4989_v7 = vrot.slane %v2054_v0, 9 }
 0x13f   :  { %v1374_v60 = vpop.permute.xlu1 %1373  ;;  %1410 = vst.msk [vmem:[#allocation3 + $0x20] sm:$0xf] %vm1401_vm1, %v1370_v27  ;;  %v4987_v27 = vrot.slane %v2050_v25, 9  ;;  %v1818_v56 = vor.u32 %v1817_v51, %v1814_v38  ;;  %v1740_v0 = vld [vmem:[#allocation2 + $0x9c] sm:$0x1]  ;;  %v1933_v38 = vshll.u32 %v1736_v11, 16 }
 0x140   :  { %1412 = vst.msk [vmem:[#allocation3 + $0x28] sm:$0xf] %vm1401_vm1, %v1374_v60  ;;  %v2136_v60 = vrot.slane %v2051_v23, 5  ;;  %v2145_v20 = vsel %vm5830_vm12, %v4989_v7, %v2144_v18  ;;  %v1721_v23 = vld [vmem:[#allocation2 + $0x40] sm:$0xf]  ;;  %v1961_v7 = vshll.u32 %v1740_v0, 16  ;;  %v1930_v18 = vor.u32 %v1929_v58, %v1926_v19 }
 0x141   :  { %v1819_v5 = vrot.slane %v1818_v56, 4  ;;  %v1718_v56 = vld [vmem:[#allocation2 + $0x34] sm:$0x1]  ;;  %v2040_v0 = vld [vmem:[#allocation2 + $0x38] sm:$0xe] }
 0x142   :  { %v2137_v14 = vsel %vm5830_vm12, %v4987_v27, %v2136_v60  ;;  %v1624_v60 = vld [vmem:[#allocation2 + $0x80] sm:$0xf]  ;;  %v1963_v49 = vrot.slane %v1961_v7, 5  ;;  %v2041_v11 = vld [vmem:[#allocation2 + $0x3c] sm:$0x1] }
 0x143   :  { %2180 = vrot.lane.b32.xlu0 %v2141_v47, %s5334_s7  ;;  %2176 = vrot.lane.b32.xlu2 %v2133_v45, %s5334_s7  ;;  %v1786_v47 = vrot.slane %v1784_v34, 4  ;;  %v4990_v45 = vrot.slane %v2056_v53, 9  ;;  %v1626_v53 = vld [vmem:[#allocation2 + $0x90] sm:$0xf] }
 0x145   :  { %1969 = vrot.lane.b32.xlu1 %v1782_v8, %s5333_s6  ;;  %v1378_v17 = vpop.permute.xlu0 %1377  ;;  %v1376_v24 = vpop.permute.xlu2 %1375  ;;  %v2148_v8 = vrot.slane %v2057_v29, 5  ;;  %v1790_v4 = vor.u32 %v1789_v36, %v1786_v47  ;;  %v1826_v47 = vshrl.u32 %v1721_v23, 16  ;;  %v1829_v36 = vshll.u32 %v1721_v23, 16 }
 0x146   :  { %1414 = vst.msk [vmem:[#allocation3 + $0x30] sm:$0xf] %vm1401_vm1, %v1378_v17  ;;  %v2038_v17 = vld [vmem:[#allocation2 + $0x30] sm:$0xe] }
 0x147   :  { %v1380_v21 = vpop.permute.xlu1 %1379  ;;  %1413 = vst.msk [vmem:[#allocation3 + $0x2c] sm:$0xf] %vm1401_vm1, %v1376_v24  ;;  %v2149_v33 = vsel %vm5830_vm12, %v4990_v45, %v2148_v8  ;;  %v1791_v24 = vrot.slane %v1790_v4, 4  ;;  %v2059_v45 = vld [vmem:[#allocation2 + $0x94] sm:$0x1] }
 0x148   :  { %1415 = vst.msk [vmem:[#allocation3 + $0x34] sm:$0xf] %vm1401_vm1, %v1380_v21  ;;  %v1795_v21 = vrot.slane %v1793_v15, 5  ;;  %v4991_v15 = vrot.slane %v2058_v55, 9 }
 0x14a   :  { %v1796_v48 = vsel %vm5525_vm8, %v1791_v24, %v1795_v21 }
 0x14b   :  { %2162 = vrot.lane.b32.xlu0 %v2105_v12, %s5334_s7  ;;  %2158 = vrot.lane.b32.xlu2 %v2097_v30, %s5334_s7  ;;  %v1739_v12 = vld [vmem:[#allocation2 + $0x98] sm:$0xf]  ;;  %v63_v30 = vsel %vm5370_vm4, 0, %v62_v54 }
 0x14c   :  { %64 = vst [vmem:[#allocation2 + $0x48] sm:$0x1] %v63_v30  ;;  %v1952_v42 = vshrl.u32 %v1739_v12, 16  ;;  %v1955_v43 = vshll.u32 %v1739_v12, 16  ;;  %v2247_v12 = vld [vmem:[%s7185_s1 + $0x20] sm:$0xf] }
 0x14d   :  { %2164 = vrot.lane.b32.xlu1 %v2109_v31, %s5334_s7  ;;  %v1384_v44 = vpop.permute.xlu0 %1383  ;;  %v1382_v2 = vpop.permute.xlu2 %1381  ;;  %v4981_v31 = vrot.slane %v2038_v17, 9  ;;  %v1831_v17 = vrot.slane %v1829_v36, 5  ;;  %v2309_v32 = vunpack.c.l.b16 %v2247_v12 }
 0x14e   :  { %1417 = vst.msk [vmem:[#allocation3 + $0x3c] sm:$0xf] %vm1401_vm1, %v1384_v44  ;;  %v1824_v44 = vsel %vm5525_vm8, %v1819_v5, %v1823_v61  ;;  %v1957_v34 = vrot.slane %v1955_v43, 5  ;;  %v1722_v5 = vld [vmem:[#allocation2 + $0x44] sm:$0x1] }
 0x14f   :  { %v1547_v16 = vpop.permute.xlu1 %1546  ;;  %1416 = vst.msk [vmem:[#allocation3 + $0x38] sm:$0xf] %vm1401_vm1, %v1382_v2  ;;  %v2113_v52 = vsel %vm5830_vm12, %v4981_v31, %v2112_v26  ;;  %v124_v2 = vld [vmem:[#allocation2 + $0x4c] sm:$0x1]  ;;  %v1835_v26 = vshll.u32 %v1722_v5, 16 }
 0x150   :  { %1595 = vst.msk [vmem:[#allocation3] sm:$0xf] %vm1594_vm2, %v1547_v16  ;;  %v125_v16 = vsel %vm5378_vm5, 0, %v124_v2  ;;  %v1737_v2 = vld [vmem:[#allocation2 + $0x90] sm:$0xf] }
 0x151   :  { %126 = vst [vmem:[#allocation2 + $0x4c] sm:$0x1] %v125_v16  ;;  %v1837_v62 = vrot.slane %v1835_v26, 5 }
 0x153   :  { %1670 = vrot.lane.b32.xlu0 %v1625_v28, %s5332_s30  ;;  %1666 = vrot.lane.b32.xlu2 %v1623_v40, %s5332_s30  ;;  %v1954_v28 = vrot.slane %v1952_v42, 4  ;;  %v1717_v40 = vld [vmem:[#allocation2 + $0x30] sm:$0xf]  ;;  %v1619_v16 = vld [vmem:[#allocation2 + $0x48] sm:$0xf] }
 0x154   :  { %v1798_v51 = vshrl.u32 %v1717_v40, 16  ;;  %v1801_v27 = vshll.u32 %v1717_v40, 16  ;;  %v1938_v40 = vshrl.u32 %v1737_v2, 16 }
 0x155   :  { %1989 = vrot.lane.b32.xlu1 %v1922_v63, %s5333_s6  ;;  %v1551_v37 = vpop.permute.xlu0 %1550  ;;  %v1549_v59 = vpop.permute.xlu2 %1548  ;;  %v1958_v29 = vor.u32 %v1957_v34, %v1954_v28  ;;  %v5164_v28 = vld [vmem:[%s7185_s1 + $0x18] sm:$0xff]  ;;  %v2042_v34 = vld [vmem:[#allocation2 + $0x40] sm:$0xe] }
 0x156   :  { %1597 = vst.msk [vmem:[#allocation3 + $0x8] sm:$0xf] %vm1594_vm2, %v1551_v37  ;;  %v1627_v37 = vld [vmem:[#allocation2 + $0x98] sm:$0xf]  ;;  %v1800_v39 = vrot.slane %v1798_v51, 4  ;;  %v1803_v4 = vrot.slane %v1801_v27, 5 }
 0x157   :  { %v1553_v10 = vpop.permute.xlu1 %1552  ;;  %1596 = vst.msk [vmem:[#allocation3 + $0x4] sm:$0xf] %vm1594_vm2, %v1549_v59  ;;  %v1959_v8 = vrot.slane %v1958_v29, 4  ;;  %v1931_v59 = vrot.slane %v1930_v18, 4  ;;  %v4983_v29 = vrot.slane %v2042_v34, 9  ;;  %v4982_v18 = vrot.slane %v2040_v0, 9 }
 0x158   :  { %1598 = vst.msk [vmem:[#allocation3 + $0xc] sm:$0xf] %vm1594_vm2, %v1553_v10  ;;  %v1935_v10 = vrot.slane %v1933_v38, 5  ;;  %v1804_v21 = vor.u32 %v1803_v4, %v1800_v39  ;;  %v2045_v23 = vld [vmem:[#allocation2 + $0x4c] sm:$0x1]  ;;  %v2116_v38 = vrot.slane %v2041_v11, 5 }
 0x159   :  { %v1964_v61 = vsel %vm5525_vm8, %v1959_v8, %v1963_v49  ;;  %v5162_v49 = vld [vmem:[%s7185_s1 + $0x8] sm:$0xff]  ;;  %v5161_v39 = vld [vmem:[%s7185_s1] sm:$0xff] }
 0x15a   :  { %v1936_v24 = vsel %vm5525_vm8, %v1931_v59, %v1935_v10  ;;  %v2117_v59 = vsel %vm5830_vm12, %v4982_v18, %v2116_v38 }
 0x15b   :  { %2182 = vrot.lane.b32.xlu0 %v2145_v20, %s5334_s7  ;;  %2178 = vrot.lane.b32.xlu2 %v2137_v14, %s5334_s7  ;;  %v2152_v14 = vrot.slane %v2059_v45, 5  ;;  %v1738_v45 = vld [vmem:[#allocation2 + $0x94] sm:$0x1] }
 0x15d   :  { %2184 = vrot.lane.b32.xlu1 %v2149_v33, %s5334_s7  ;;  %v1557_v22 = vpop.permute.xlu0 %1556  ;;  %v1555_v35 = vpop.permute.xlu2 %1554  ;;  %v1828_v33 = vrot.slane %v1826_v47, 4  ;;  %v2153_v30 = vsel %vm5830_vm12, %v4991_v15, %v2152_v14 }
 0x15e   :  { %1600 = vst.msk [vmem:[#allocation3 + $0x14] sm:$0xf] %vm1594_vm2, %v1557_v22  ;;  %v1807_v22 = vshll.u32 %v1718_v56, 16  ;;  %v1947_v56 = vshll.u32 %v1738_v45, 16 }
 0x15f   :  { %v1559_v41 = vpop.permute.xlu1 %1558  ;;  %1599 = vst.msk [vmem:[#allocation3 + $0x10] sm:$0xf] %vm1594_vm2, %v1555_v35  ;;  %v1832_v31 = vor.u32 %v1831_v17, %v1828_v33  ;;  %v2314_v35 = vpack.c.b16 %v2309_v32, %v2309_v32 }
 0x160   :  { %1601 = vst.msk [vmem:[#allocation3 + $0x18] sm:$0xf] %vm1594_vm2, %v1559_v41  ;;  %v1805_v41 = vrot.slane %v1804_v21, 4  ;;  %v1809_v42 = vrot.slane %v1807_v22, 5  ;;  %v1949_v14 = vrot.slane %v1947_v56, 5 }
 0x161   :  { %v1833_v43 = vrot.slane %v1832_v31, 4  ;;  %v2346_v9 = vsel %vm2344_vm3, %v2314_v35, 0  ;;  %v2061_v21 = vld [vmem:[#allocation2 + $0x9c] sm:$0x1] }
 0x162   :  { %5177 = vmatpush.bf16.msra.mxu2 %v2346_v9  ;;  %2351 = vmatpush.bf16.msra.mxu0 %v2346_v9  ;;  %v1810_v19 = vsel %vm5525_vm8, %v1805_v41, %v1809_v42  ;;  %v1724_v41 = vld [vmem:[#allocation2 + $0x4c] sm:$0x1] }
 0x163   :  { %1975 = vrot.lane.b32.xlu0 %v1824_v44, %s5333_s6  ;;  %1971 = vrot.lane.b32.xlu2 %v1796_v48, %s5333_s6  ;;  %v1838_v58 = vsel %vm5525_vm8, %v1833_v43, %v1837_v62  ;;  %v1849_v43 = vshll.u32 %v1724_v41, 16  ;;  %v2489_v41 = vld [vmem:[#allocation4 + $0x8] sm:$0x1] }
 0x165   :  { %2166 = vrot.lane.b32.xlu1 %v2113_v52, %s5334_s7  ;;  %v1563_v57 = vpop.permute.xlu0 %1562  ;;  %v1561_v63 = vpop.permute.xlu2 %1560 }
 0x166   :  { %1603 = vst.msk [vmem:[#allocation3 + $0x20] sm:$0xf] %vm1594_vm2, %v1563_v57  ;;  %v2043_v57 = vld [vmem:[#allocation2 + $0x44] sm:$0x1]  ;;  %5178 = vmatpush.bf16.msra.mxu2 %v5164_v28  ;;  %2352 = vmatpush.bf16.msra.mxu0 %v5164_v28 }
 0x167   :  { %v1565_v25 = vpop.permute.xlu1 %1564  ;;  %1602 = vst.msk [vmem:[#allocation3 + $0x1c] sm:$0xf] %vm1594_vm2, %v1561_v63  ;;  %v1941_v63 = vshll.u32 %v1737_v2, 16  ;;  %v2120_v7 = vrot.slane %v2043_v57, 5 }
 0x168   :  { %1604 = vst.msk [vmem:[#allocation3 + $0x24] sm:$0xf] %vm1594_vm2, %v1565_v25  ;;  %v2044_v25 = vld [vmem:[#allocation2 + $0x48] sm:$0xe] }
 0x169   :  { %v4984_v27 = vrot.slane %v2044_v25, 9  ;;  %v1943_v47 = vrot.slane %v1941_v63, 5  ;;  %v2121_v8 = vsel %vm5830_vm12, %v4983_v29, %v2120_v7 }
 0x16b   :  { %1672 = vrot.lane.b32.xlu0 %v1626_v53, %s5332_s30  ;;  %1668 = vrot.lane.b32.xlu2 %v1624_v60, %s5332_s30  ;;  %v5163_v53 = vld [vmem:[%s7185_s1 + $0x10] sm:$0xff]  ;;  %v2124_v60 = vrot.slane %v2045_v23, 5 }
 0x16c   :  { %5179 = vmatpush.bf16.msra.mxu2 %v5163_v53  ;;  %2353 = vmatpush.bf16.msra.mxu0 %v5163_v53 }
 0x16d   :  { %1674 = vrot.lane.b32.xlu1 %v1627_v37, %s5332_s30  ;;  %v1569_v20 = vpop.permute.xlu0 %1568  ;;  %v1567_v46 = vpop.permute.xlu2 %1566  ;;  %v1940_v37 = vrot.slane %v1938_v40, 4  ;;  %v2125_v10 = vsel %vm5830_vm12, %v4984_v27, %v2124_v60 }
 0x16e   :  { %1606 = vst.msk [vmem:[#allocation3 + $0x2c] sm:$0xf] %vm1594_vm2, %v1569_v20 }
 0x16f   :  { %v1571_v54 = vpop.permute.xlu1 %1570  ;;  %1605 = vst.msk [vmem:[#allocation3 + $0x28] sm:$0xf] %vm1594_vm2, %v1567_v46  ;;  %v1944_v20 = vor.u32 %v1943_v47, %v1940_v37  ;;  %v1723_v46 = vld [vmem:[#allocation2 + $0x48] sm:$0xf] }
 0x170   :  { %1607 = vst.msk [vmem:[#allocation3 + $0x30] sm:$0xf] %vm1594_vm2, %v1571_v54  ;;  %5180 = vmatpush.bf16.msra.mxu2 %v5162_v49  ;;  %2354 = vmatpush.bf16.msra.mxu0 %v5162_v49  ;;  %v1840_v5 = vshrl.u32 %v1723_v46, 16 }
 0x171   :  { %v1945_v15 = vrot.slane %v1944_v20, 4 }
 0x172   :  { %v1842_v31 = vrot.slane %v1840_v5, 4 }
 0x173   :  { %1995 = vrot.lane.b32.xlu0 %v1964_v61, %s5333_s6  ;;  %1991 = vrot.lane.b32.xlu2 %v1936_v24, %s5333_s6  ;;  %v1950_v54 = vsel %vm5525_vm8, %v1945_v15, %v1949_v14  ;;  %v1843_v61 = vshll.u32 %v1723_v46, 16  ;;  %v2060_v24 = vld [vmem:[#allocation2 + $0x98] sm:$0xe] }
 0x174   :  { %5181 = vmatpush.bf16.msra.mxu2 %v5161_v39  ;;  %2355 = vmatpush.bf16.msra.mxu0 %v5161_v39  ;;  %v4992_v12 = vrot.slane %v2060_v24, 9 }
 0x175   :  { %2186 = vrot.lane.b32.xlu1 %v2153_v30, %s5334_s7  ;;  %v1575_v44 = vpop.permute.xlu0 %1574  ;;  %v1573_v48 = vpop.permute.xlu2 %1572  ;;  %v2156_v30 = vrot.slane %v2061_v21, 5  ;;  %v1845_v26 = vrot.slane %v1843_v61, 5 }
 0x176   :  { %1609 = vst.msk [vmem:[#allocation3 + $0x38] sm:$0xf] %vm1594_vm2, %v1575_v44 }
 0x177   :  { %v1577_v52 = vpop.permute.xlu1 %1576  ;;  %1608 = vst.msk [vmem:[#allocation3 + $0x34] sm:$0xf] %vm1594_vm2, %v1573_v48  ;;  %v2157_v44 = vsel %vm5830_vm12, %v4992_v12, %v2156_v30  ;;  %v1846_v42 = vor.u32 %v1845_v26, %v1842_v31  ;;  %v1851_v48 = vrot.slane %v1849_v43, 5  ;;  %v2519_v30 = vld [vmem:[#allocation4 + $0x58] sm:$0x1] }
 0x178   :  { %1610 = vst.msk [vmem:[#allocation3 + $0x3c] sm:$0xf] %vm1594_vm2, %v1577_v52  ;;  %v2579_v31 = vld [vmem:[#allocation4 + $0x5c] sm:$0x1]  ;;  %v2520_v26 = vsel %vm5370_vm4, 0, %v2519_v30 }
 0x179   :  { %v1847_v9 = vrot.slane %v1846_v42, 4  ;;  %2521 = vst [vmem:[#allocation4 + $0x58] sm:$0x1] %v2520_v26  ;;  %v2490_v42 = vsel %vm5370_vm4, 0, %v2489_v41 }
 0x17a   :  { %2491 = vst [vmem:[#allocation4 + $0x8] sm:$0x1] %v2490_v42 }
 0x17b   :  { %1658 = vrot.lane.b32.xlu0 %v1619_v16, %s5332_s30  ;;  %1973 = vrot.lane.b32.xlu2 %v1810_v19, %s5333_s6  ;;  %v1852_v16 = vsel %vm5525_vm8, %v1847_v9, %v1851_v48  ;;  %v2582_v9 = vld [vmem:[#allocation4 + $0x64] sm:$0x1] }
 0x17d   :  { %1977 = vrot.lane.b32.xlu1 %v1838_v58, %s5333_s6  ;;  %v1647_v51 = vpop.permute.xlu0 %1646  ;;  %v1645_v36 = vpop.permute.xlu2 %1644 }
 0x17e   :  { %1694 = vst.msk [vmem:[#allocation3 + $0x4] sm:$0xf] %vm1692_vm6, %v1647_v51 }
 0x17f   :  { %v1649_v55 = vpop.permute.xlu1 %1648  ;;  %1693 = vst.msk [vmem:[#allocation3] sm:$0xf] %vm1692_vm6, %v1645_v36 }
 0x180   :  { %1695 = vst.msk [vmem:[#allocation3 + $0x8] sm:$0xf] %vm1692_vm6, %v1649_v55 }
 0x181   :  { %v2783_v41 = vld [vmem:[#allocation4 + $0x8] sm:$0xf] }
 0x183   :  { %2170 = vrot.lane.b32.xlu0 %v2121_v8, %s5334_s7  ;;  %2168 = vrot.lane.b32.xlu2 %v2117_v59, %s5334_s7 }
 0x185   :  { %2172 = vrot.lane.b32.xlu1 %v2125_v10, %s5334_s7  ;;  %v1653_v4 = vpop.permute.xlu0 %1652  ;;  %v1651_v33 = vpop.permute.xlu2 %1650 }
 0x186   :  { %1697 = vst.msk [vmem:[#allocation3 + $0x10] sm:$0xf] %vm1692_vm6, %v1653_v4 }
 0x187   :  { %v1655_v17 = vpop.permute.xlu1 %1654  ;;  %1696 = vst.msk [vmem:[#allocation3 + $0xc] sm:$0xf] %vm1692_vm6, %v1651_v33 }
 0x188   :  { %1698 = vst.msk [vmem:[#allocation3 + $0x14] sm:$0xf] %vm1692_vm6, %v1655_v17 }
 0x18b   :  { %1993 = vrot.lane.b32.xlu2 %v1950_v54, %s5333_s6 }
 0x18d   :  { %v1661_v22 = vpop.permute.xlu0 %1660  ;;  %v1657_v32 = vpop.permute.xlu2 %1656 }
 0x18e   :  { %1701 = vst.msk [vmem:[#allocation3 + $0x20] sm:$0xf] %vm1692_vm6, %v1661_v22 }
 0x18f   :  { %v1663_v35 = vpop.permute.xlu1 %1662  ;;  %1699 = vst.msk [vmem:[#allocation3 + $0x18] sm:$0xf] %vm1692_vm6, %v1657_v32  ;;  %v2580_v32 = vsel %vm5378_vm5, 0, %v2579_v31 }
 0x190   :  { %1702 = vst.msk [vmem:[#allocation3 + $0x24] sm:$0xf] %vm1692_vm6, %v1663_v35  ;;  %v6343_v35 = vld [vmem:[%s7186_s2] ss:$0 sm:$0xff] }
 0x191   :  { %2581 = vst [vmem:[#allocation4 + $0x5c] sm:$0x1] %v2580_v32 }
 0x193   :  { %2188 = vrot.lane.b32.xlu2 %v2157_v44, %s5334_s7  ;;  %v2549_v44 = vld [vmem:[#allocation4 + $0xc] sm:$0x1] }
 0x194   :  { %v2550_v43 = vsel %vm5378_vm5, 0, %v2549_v44 }
 0x195   :  { %v1984_v62 = vpop.permute.xlu0 %1983  ;;  %v1982_v52 = vpop.permute.xlu2 %1981  ;;  %2551 = vst [vmem:[#allocation4 + $0xc] sm:$0x1] %v2550_v43  ;;  %v2528_v43 = vld [vmem:[#allocation4 + $0x70] sm:$0x1] }
 0x196   :  { %2023 = vst.msk [vmem:[#allocation3 + $0x24] sm:$0xf] %vm2013_vm7, %v1984_v62  ;;  %v2522_v62 = vld [vmem:[#allocation4 + $0x60] sm:$0x1] }
 0x197   :  { %v2175_v2 = vpop.permute.xlu1 %2174  ;;  %2022 = vst.msk [vmem:[#allocation3 + $0x20] sm:$0xf] %vm2013_vm7, %v1982_v52  ;;  %v2523_v52 = vsel %vm5370_vm4, 0, %v2522_v62  ;;  %v2588_v62 = vld [vmem:[#allocation4 + $0x74] sm:$0x1] }
 0x198   :  { %2215 = vst.msk [vmem:[#allocation3 + $0x20] sm:$0xf] %vm2206_vm10, %v2175_v2  ;;  %v2583_v2 = vsel %vm5378_vm5, 0, %v2582_v9 }
 0x199   :  { %2524 = vst [vmem:[#allocation4 + $0x60] sm:$0x1] %v2523_v52 }
 0x19a   :  { %2584 = vst [vmem:[#allocation4 + $0x64] sm:$0x1] %v2583_v2 }
 0x19b   :  { %1979 = vrot.lane.b32.xlu2 %v1852_v16, %s5333_s6 }
 0x19d   :  { %v1966_v28 = vpop.permute.xlu0 %1965  ;;  %v2177_v34 = vpop.permute.xlu2 %2176 }
 0x19e   :  { %2014 = vst.msk [vmem:[#allocation3] sm:$0xf] %vm2013_vm7, %v1966_v28 }
 0x19f   :  { %v1968_v57 = vpop.permute.xlu1 %1967  ;;  %2216 = vst.msk [vmem:[#allocation3 + $0x24] sm:$0xf] %vm2206_vm10, %v2177_v34 }
 0x1a0   :  { %2015 = vst.msk [vmem:[#allocation3 + $0x4] sm:$0xf] %vm2013_vm7, %v1968_v57 }
 0x1a5   :  { %v2161_v19 = vpop.permute.xlu0 %2160  ;;  %v2159_v58 = vpop.permute.xlu2 %2158 }
 0x1a6   :  { %2208 = vst.msk [vmem:[#allocation3 + $0x4] sm:$0xf] %vm2206_vm10, %v2161_v19  ;;  %v5157_v0 = vld [vmem:[#allocation3 + $0x20] sm:$0xff] }
 0x1a7   :  { %v1665_v11 = vpop.permute.xlu1 %1664  ;;  %2207 = vst.msk [vmem:[#allocation3] sm:$0xf] %vm2206_vm10, %v2159_v58  ;;  %5045 = vmatmul.msk.bf16.vlgmr.msra.gmra.mxu2 %vm2319_vm11, %v5157_v0 }
 0x1a8   :  { %1703 = vst.msk [vmem:[#allocation3 + $0x28] sm:$0xf] %vm1692_vm6, %v1665_v11  ;;  %v2492_v11 = vld [vmem:[#allocation4 + $0x10] sm:$0x1] }
 0x1ad   :  { %v1986_v40 = vpop.permute.xlu0 %1985  ;;  %v1667_v63 = vpop.permute.xlu2 %1666 }
 0x1ae   :  { %2024 = vst.msk [vmem:[#allocation3 + $0x28] sm:$0xf] %vm2013_vm7, %v1986_v40  ;;  %v5153_v23 = vld [vmem:[#allocation3] sm:$0xff] }
 0x1af   :  { %v1988_v25 = vpop.permute.xlu1 %1987  ;;  %1704 = vst.msk [vmem:[#allocation3 + $0x2c] sm:$0xf] %vm1692_vm6, %v1667_v63  ;;  %5041 = vmatmul.msk.bf16.vlgmr.msra.gmra.mxu0 %vm2319_vm11, %v5153_v23  ;;  %v2493_v63 = vsel %vm5370_vm4, 0, %v2492_v11 }
 0x1b0   :  { %2025 = vst.msk [vmem:[#allocation3 + $0x2c] sm:$0xf] %vm2013_vm7, %v1988_v25  ;;  %v2552_v25 = vld [vmem:[#allocation4 + $0x14] sm:$0x1] }
 0x1b1   :  { %2494 = vst [vmem:[#allocation4 + $0x10] sm:$0x1] %v2493_v63 }
 0x1b5   :  { %v2181_v53 = vpop.permute.xlu0 %2180  ;;  %v2179_v29 = vpop.permute.xlu2 %2178 }
 0x1b6   :  { %2218 = vst.msk [vmem:[#allocation3 + $0x2c] sm:$0xf] %vm2206_vm10, %v2181_v53  ;;  %v2553_v53 = vsel %vm5378_vm5, 0, %v2552_v25 }
 0x1b7   :  { %v1970_v7 = vpop.permute.xlu1 %1969  ;;  %2217 = vst.msk [vmem:[#allocation3 + $0x28] sm:$0xf] %vm2206_vm10, %v2179_v29 }
 0x1b8   :  { %2016 = vst.msk [vmem:[#allocation3 + $0x8] sm:$0xf] %vm2013_vm7, %v1970_v7 }
 0x1b9   :  { %2554 = vst [vmem:[#allocation4 + $0x14] sm:$0x1] %v2553_v53 }
 0x1bd   :  { %v2163_v18 = vpop.permute.xlu0 %2162  ;;  %v1972_v38 = vpop.permute.xlu2 %1971 }
 0x1be   :  { %2209 = vst.msk [vmem:[#allocation3 + $0x8] sm:$0xf] %vm2206_vm10, %v2163_v18  ;;  %v5158_v27 = vld [vmem:[#allocation3 + $0x28] sm:$0xff] }
 0x1bf   :  { %v2165_v51 = vpop.permute.xlu1 %2164  ;;  %2017 = vst.msk [vmem:[#allocation3 + $0xc] sm:$0xf] %vm2013_vm7, %v1972_v38  ;;  %5046 = vmatmul.msk.bf16.gmra.mxu2 %vm2319_vm11, %v5158_v27  ;;  %v2525_v38 = vld [vmem:[#allocation4 + $0x68] sm:$0x1] }
 0x1c0   :  { %2210 = vst.msk [vmem:[#allocation3 + $0xc] sm:$0xf] %vm2206_vm10, %v2165_v51  ;;  %v2585_v51 = vld [vmem:[#allocation4 + $0x6c] sm:$0x1] }
 0x1c5   :  { %v1671_v60 = vpop.permute.xlu0 %1670  ;;  %v1669_v37 = vpop.permute.xlu2 %1668 }
 0x1c6   :  { %1706 = vst.msk [vmem:[#allocation3 + $0x34] sm:$0xf] %vm1692_vm6, %v1671_v60 }
 0x1c7   :  { %v1990_v47 = vpop.permute.xlu1 %1989  ;;  %1705 = vst.msk [vmem:[#allocation3 + $0x30] sm:$0xf] %vm1692_vm6, %v1669_v37  ;;  %v5154_v36 = vld [vmem:[#allocation3 + $0x8] sm:$0xff] }
 0x1c8   :  { %2026 = vst.msk [vmem:[#allocation3 + $0x30] sm:$0xf] %vm2013_vm7, %v1990_v47  ;;  %5042 = vmatmul.msk.bf16.gmra.mxu0 %vm2319_vm11, %v5154_v36  ;;  %v2526_v47 = vsel %vm5370_vm4, 0, %v2525_v38  ;;  %v2586_v36 = vsel %vm5378_vm5, 0, %v2585_v51 }
 0x1c9   :  { %2527 = vst [vmem:[#allocation4 + $0x68] sm:$0x1] %v2526_v47  ;;  %v2837_v47 = vld [vmem:[#allocation4 + $0x60] sm:$0xf] }
 0x1ca   :  { %2587 = vst [vmem:[#allocation4 + $0x6c] sm:$0x1] %v2586_v36  ;;  %v2840_v36 = vld [vmem:[#allocation4 + $0x64] sm:$0x1] }
 0x1cd   :  { %v2183_v55 = vpop.permute.xlu0 %2182  ;;  %v1992_v45 = vpop.permute.xlu2 %1991 }
 0x1ce   :  { %2219 = vst.msk [vmem:[#allocation3 + $0x30] sm:$0xf] %vm2206_vm10, %v2183_v55 }
 0x1cf   :  { %v2185_v8 = vpop.permute.xlu1 %2184  ;;  %2027 = vst.msk [vmem:[#allocation3 + $0x34] sm:$0xf] %vm2013_vm7, %v1992_v45 }
 0x1d0   :  { %2220 = vst.msk [vmem:[#allocation3 + $0x34] sm:$0xf] %vm2206_vm10, %v2185_v8 }
 0x1d5   :  { %v1976_v49 = vpop.permute.xlu0 %1975  ;;  %v1974_v59 = vpop.permute.xlu2 %1973 }
 0x1d6   :  { %2019 = vst.msk [vmem:[#allocation3 + $0x14] sm:$0xf] %vm2013_vm7, %v1976_v49 }
 0x1d7   :  { %v2167_v10 = vpop.permute.xlu1 %2166  ;;  %2018 = vst.msk [vmem:[#allocation3 + $0x10] sm:$0xf] %vm2013_vm7, %v1974_v59  ;;  %v5159_v20 = vld [vmem:[#allocation3 + $0x30] sm:$0xff] }
 0x1d8   :  { %2211 = vst.msk [vmem:[#allocation3 + $0x10] sm:$0xf] %vm2206_vm10, %v2167_v10  ;;  %5047 = vmatmul.msk.bf16.gmra.mxu2 %vm2319_vm11, %v5159_v20 }
 0x1dd   :  { %v1673_v56 = vpop.permute.xlu0 %1672  ;;  %v2169_v39 = vpop.permute.xlu2 %2168 }
 0x1de   :  { %1707 = vst.msk [vmem:[#allocation3 + $0x38] sm:$0xf] %vm1692_vm6, %v1673_v56 }
 0x1df   :  { %v1675_v4 = vpop.permute.xlu1 %1674  ;;  %2212 = vst.msk [vmem:[#allocation3 + $0x14] sm:$0xf] %vm2206_vm10, %v2169_v39 }
 0x1e0   :  { %1708 = vst.msk [vmem:[#allocation3 + $0x3c] sm:$0xf] %vm1692_vm6, %v1675_v4 }
 0x1e5   :  { %v1996_v15 = vpop.permute.xlu0 %1995  ;;  %v1994_v14 = vpop.permute.xlu2 %1993 }
 0x1e6   :  { %2029 = vst.msk [vmem:[#allocation3 + $0x3c] sm:$0xf] %vm2013_vm7, %v1996_v15  ;;  %v5155_v33 = vld [vmem:[#allocation3 + $0x10] sm:$0xff] }
 0x1e7   :  { %v2187_v17 = vpop.permute.xlu1 %2186  ;;  %2028 = vst.msk [vmem:[#allocation3 + $0x38] sm:$0xf] %vm2013_vm7, %v1994_v14  ;;  %5043 = vmatmul.msk.bf16.gmra.mxu0 %vm2319_vm11, %v5155_v33 }
 0x1e8   :  { %2221 = vst.msk [vmem:[#allocation3 + $0x38] sm:$0xf] %vm2206_vm10, %v2187_v17 }
 0x1ed   :  { %v1659_v46 = vpop.permute.xlu0 %1658  ;;  %v2189_v54 = vpop.permute.xlu2 %2188 }
 0x1ee   :  { %1700 = vst.msk [vmem:[#allocation3 + $0x1c] sm:$0xf] %vm1692_vm6, %v1659_v46 }
 0x1ef   :  { %v1978_v5 = vpop.permute.xlu1 %1977  ;;  %2222 = vst.msk [vmem:[#allocation3 + $0x3c] sm:$0xf] %vm2206_vm10, %v2189_v54  ;;  %v2495_v54 = vld [vmem:[#allocation4 + $0x18] sm:$0x1] }
 0x1f0   :  { %2020 = vst.msk [vmem:[#allocation3 + $0x18] sm:$0xf] %vm2013_vm7, %v1978_v5 }
 0x1f5   :  { %v2171_v61 = vpop.permute.xlu0 %2170  ;;  %v1980_v21 = vpop.permute.xlu2 %1979 }
 0x1f6   :  { %2213 = vst.msk [vmem:[#allocation3 + $0x18] sm:$0xf] %vm2206_vm10, %v2171_v61  ;;  %v5160_v24 = vld [vmem:[#allocation3 + $0x38] sm:$0xff] }
 0x1f7   :  { %v2173_v22 = vpop.permute.xlu1 %2172  ;;  %2021 = vst.msk [vmem:[#allocation3 + $0x1c] sm:$0xf] %vm2013_vm7, %v1980_v21  ;;  %5048 = vmatmul.msk.bf16.gmra.mxu2 %vm2319_vm11, %v5160_v24  ;;  %v2831_v61 = vld [vmem:[#allocation4 + $0x58] sm:$0xf]  ;;  %v2834_v24 = vld [vmem:[#allocation4 + $0x5c] sm:$0x1] }
 0x1f8   :  { %2214 = vst.msk [vmem:[#allocation3 + $0x1c] sm:$0xf] %vm2206_vm10, %v2173_v22  ;;  %v2496_v21 = vsel %vm5370_vm4, 0, %v2495_v54  ;;  %v2555_v22 = vld [vmem:[#allocation4 + $0x1c] sm:$0x1] }
 0x1f9   :  { %2497 = vst [vmem:[#allocation4 + $0x18] sm:$0x1] %v2496_v21  ;;  %v2556_v42 = vsel %vm5378_vm5, 0, %v2555_v22 }
 0x1fa   :  { %2557 = vst [vmem:[#allocation4 + $0x1c] sm:$0x1] %v2556_v42 }
 0x1ff   :  { %v5156_v12 = vld [vmem:[#allocation3 + $0x18] sm:$0xff] }
 0x200   :  { %5044 = vmatmul.msk.bf16.gmra.mxu0 %vm2319_vm11, %v5156_v12 }
 0x22a   :  { %v2377_v48 = vpop.f32.mrf.mxu2 }
 0x22b   :  { %v2378_v16 = vadd.f32 %v6343_v35, %v2377_v48 }
 0x22c   :  { %v2357_v28 = vpop.f32.mrf.mxu0 }
 0x22d   :  { %v2405_v34 = vsub.f32 0.0, %v2378_v16  ;;  %v2358_v57 = vadd.f32 %v6343_v35, %v2357_v28  ;;  %v2786_v28 = vld [vmem:[#allocation4 + $0xc] sm:$0x1] }
 0x22f   :  { %v2429_v19 = vmul.f32 1.442695, %v2405_v34  ;;  %v2397_v58 = vsub.f32 0.0, %v2358_v57  ;;  %v2529_v57 = vsel %vm5370_vm4, 0, %v2528_v43 }
 0x230   :  { %2530 = vst [vmem:[#allocation4 + $0x70] sm:$0x1] %v2529_v57 }
 0x231   :  { %5198 = vpow2.f32 %v2429_v19  ;;  %v2413_v0 = vmul.f32 1.442695, %v2397_v58  ;;  %v2589_v19 = vsel %vm5378_vm5, 0, %v2588_v62 }
 0x232   :  { %v2379_v40 = vpop.f32.mrf.mxu2  ;;  %2590 = vst [vmem:[#allocation4 + $0x74] sm:$0x1] %v2589_v19 }
 0x233   :  { %5200 = vpow2.f32 %v2413_v0  ;;  %v2380_v23 = vadd.f32 %v6343_v35, %v2379_v40 }
 0x234   :  { %v2359_v29 = vpop.f32.mrf.mxu0 }
 0x235   :  { %v2406_v7 = vsub.f32 0.0, %v2380_v23  ;;  %v2360_v18 = vadd.f32 %v6343_v35, %v2359_v29  ;;  %v2486_v29 = vld [vmem:[#allocation4] sm:$0x1] }
 0x237   :  { %v5199_v27 = vpop.eup %5198  ;;  %v2431_v60 = vmul.f32 1.442695, %v2406_v7  ;;  %v2398_v37 = vsub.f32 0.0, %v2360_v18 }
 0x238   :  { %v2453_v55 = vadd.f32 1.0, %v5199_v27  ;;  %v2498_v27 = vld [vmem:[#allocation4 + $0x20] sm:$0x1] }
 0x239   :  { %v5201_v45 = vpop.eup %5200  ;;  %5202 = vpow2.f32 %v2431_v60  ;;  %v2415_v8 = vmul.f32 1.442695, %v2398_v37  ;;  %v2558_v60 = vld [vmem:[#allocation4 + $0x24] sm:$0x1] }
 0x23a   :  { %5204 = vrcp.f32 %v2453_v55  ;;  %v2445_v49 = vadd.f32 1.0, %v5201_v45 }
 0x23b   :  { %5206 = vpow2.f32 %v2415_v8 }
 0x23c   :  { %5208 = vrcp.f32 %v2445_v49  ;;  %v2499_v49 = vsel %vm5370_vm4, 0, %v2498_v27  ;;  %v2561_v27 = vld [vmem:[#allocation4 + $0x2c] sm:$0x1] }
 0x23d   :  { %2500 = vst [vmem:[#allocation4 + $0x20] sm:$0x1] %v2499_v49 }
 0x23f   :  { %v5203_v59 = vpop.eup %5202 }
 0x240   :  { %v5205_v10 = vpop.eup %5204  ;;  %v2454_v20 = vadd.f32 1.0, %v5203_v59  ;;  %v2487_v59 = vsel %vm5370_vm4, 0, %v2486_v29 }
 0x241   :  { %v5207_v56 = vpop.eup %5206  ;;  %v2614_v39 = vpack.c.bf16 %v5205_v10, %v5205_v10  ;;  %2488 = vst [vmem:[#allocation4] sm:$0x1] %v2487_v59 }
 0x242   :  { %v5209_v4 = vpop.eup %5208  ;;  %5210 = vrcp.f32 %v2454_v20  ;;  %v2446_v15 = vadd.f32 1.0, %v5207_v56  ;;  %v2382_v14 = vpop.f32.mrf.mxu2  ;;  %v2789_v56 = vld [vmem:[#allocation4 + $0x10] sm:$0xf] }
 0x243   :  { %v2687_v33 = vshrl.u32 %v2614_v39, 16  ;;  %v2606_v17 = vpack.c.bf16 %v5209_v4, %v5209_v4  ;;  %v2383_v46 = vadd.f32 %v6343_v35, %v2382_v14  ;;  %v2690_v5 = vshll.u32 %v2614_v39, 16 }
 0x244   :  { %5212 = vrcp.f32 %v2446_v15  ;;  %v2559_v4 = vsel %vm5378_vm5, 0, %v2558_v60 }
 0x245   :  { %v2689_v12 = vrot.slane %v2687_v33, 7  ;;  %v2623_v30 = vshrl.u32 %v2606_v17, 16  ;;  %v2626_v31 = vshll.u32 %v2606_v17, 16  ;;  %v2407_v26 = vsub.f32 0.0, %v2383_v46  ;;  %v2362_v32 = vpop.f32.mrf.mxu0  ;;  %2560 = vst [vmem:[#allocation4 + $0x24] sm:$0x1] %v2559_v4 }
 0x246   :  { %v2363_v44 = vadd.f32 %v6343_v35, %v2362_v32 }
 0x247   :  { %v2692_v9 = vor.u32 %v2690_v5, %v2689_v12  ;;  %v2693_v48 = vrot.slane %v2689_v12, 4  ;;  %v2625_v52 = vrot.slane %v2623_v30, 7  ;;  %v2433_v2 = vmul.f32 1.442695, %v2407_v26  ;;  %v2792_v5 = vld [vmem:[#allocation4 + $0x14] sm:$0x1] }
 0x248   :  { %v5211_v16 = vpop.eup %5210  ;;  %v2399_v34 = vsub.f32 0.0, %v2363_v44  ;;  %v2531_v12 = vld [vmem:[#allocation4 + $0x78] sm:$0x1]  ;;  %v6413_v4 = vld [vmem:[#allocation4] sm:$0xf] }
 0x249   :  { %v2832_v58 = vsel %vm5544_vm9, %v2692_v9, %v2831_v61  ;;  %v2835_v0 = vsel %vm5370_vm4, %v2693_v48, %v2834_v24  ;;  %v2628_v11 = vor.u32 %v2626_v31, %v2625_v52  ;;  %v2629_v40 = vrot.slane %v2625_v52, 4 }
 0x24a   :  { %v5213_v63 = vpop.eup %5212  ;;  %2833 = vst [vmem:[#allocation4 + $0x58] sm:$0xf] %v2832_v58  ;;  %v2615_v25 = vpack.c.bf16 %v5211_v16, %v5211_v16  ;;  %5214 = vpow2.f32 %v2433_v2  ;;  %v2417_v23 = vmul.f32 1.442695, %v2399_v34  ;;  %v2384_v53 = vpop.f32.mrf.mxu2  ;;  %v2532_v9 = vsel %vm5370_vm4, 0, %v2531_v12 }
 0x24b   :  { %2836 = vst [vmem:[#allocation4 + $0x5c] sm:$0x1] %v2835_v0  ;;  %v2784_v7 = vsel %vm5544_vm9, %v2628_v11, %v2783_v41  ;;  %v2787_v18 = vsel %vm5370_vm4, %v2629_v40, %v2786_v28  ;;  %v2607_v38 = vpack.c.bf16 %v5213_v63, %v5213_v63  ;;  %v2385_v51 = vadd.f32 %v6343_v35, %v2384_v53  ;;  %v2591_v41 = vld [vmem:[#allocation4 + $0x7c] sm:$0x1]  ;;  %v2546_v0 = vld [vmem:[#allocation4 + $0x4] sm:$0x1] }
 0x24c   :  { %2785 = vst [vmem:[#allocation4 + $0x8] sm:$0xf] %v2784_v7  ;;  %v2695_v37 = vshrl.u32 %v2615_v25, 16  ;;  %5216 = vpow2.f32 %v2417_v23  ;;  %v2698_v20 = vshll.u32 %v2615_v25, 16  ;;  %v2592_v2 = vsel %vm5378_vm5, 0, %v2591_v41 }
 0x24d   :  { %2788 = vst [vmem:[#allocation4 + $0xc] sm:$0x1] %v2787_v18  ;;  %v2631_v55 = vshrl.u32 %v2607_v38, 16  ;;  %v2408_v45 = vsub.f32 0.0, %v2385_v51  ;;  %v2364_v8 = vpop.f32.mrf.mxu0  ;;  %v2634_v14 = vshll.u32 %v2607_v38, 16  ;;  %v2547_v63 = vsel %vm5378_vm5, 0, %v2546_v0 }
 0x24e   :  { %v2697_v10 = vrot.slane %v2695_v37, 7  ;;  %v2365_v39 = vadd.f32 %v6343_v35, %v2364_v8  ;;  %2533 = vst [vmem:[#allocation4 + $0x78] sm:$0x1] %v2532_v9  ;;  %v2501_v51 = vld [vmem:[#allocation4 + $0x28] sm:$0x1] }
 0x24f   :  { %v2633_v15 = vrot.slane %v2631_v55, 7  ;;  %v2435_v33 = vmul.f32 1.442695, %v2408_v45  ;;  %2593 = vst [vmem:[#allocation4 + $0x7c] sm:$0x1] %v2592_v2  ;;  %v2502_v59 = vsel %vm5370_vm4, 0, %v2501_v51 }
 0x250   :  { %v5215_v17 = vpop.eup %5214  ;;  %v2700_v46 = vor.u32 %v2698_v20, %v2697_v10  ;;  %v2701_v54 = vrot.slane %v2697_v10, 4  ;;  %v2400_v61 = vsub.f32 0.0, %v2365_v39  ;;  %2548 = vst [vmem:[#allocation4 + $0x4] sm:$0x1] %v2547_v63  ;;  %v2843_v45 = vld [vmem:[#allocation4 + $0x68] sm:$0xf] }
 0x251   :  { %v2636_v24 = vor.u32 %v2634_v14, %v2633_v15  ;;  %v2637_v21 = vrot.slane %v2633_v15, 4  ;;  %v2455_v22 = vadd.f32 1.0, %v5215_v17  ;;  %5218 = vpow2.f32 %v2435_v33  ;;  %v2846_v8 = vld [vmem:[#allocation4 + $0x6c] sm:$0x1]  ;;  %v2795_v14 = vld [vmem:[#allocation4 + $0x18] sm:$0xf] }
 0x252   :  { %v5217_v30 = vpop.eup %5216  ;;  %v2838_v31 = vsel %vm5544_vm9, %v2700_v46, %v2837_v47  ;;  %v2841_v26 = vsel %vm5370_vm4, %v2701_v54, %v2840_v36  ;;  %v2419_v32 = vmul.f32 1.442695, %v2400_v61  ;;  %v2562_v10 = vsel %vm5378_vm5, 0, %v2561_v27  ;;  %2503 = vst [vmem:[#allocation4 + $0x28] sm:$0x1] %v2502_v59 }
 0x253   :  { %2839 = vst [vmem:[#allocation4 + $0x60] sm:$0xf] %v2838_v31  ;;  %v2790_v44 = vsel %vm5544_vm9, %v2636_v24, %v2789_v56  ;;  %v2793_v42 = vsel %vm5370_vm4, %v2637_v21, %v2792_v5  ;;  %5220 = vrcp.f32 %v2455_v22  ;;  %v2447_v43 = vadd.f32 1.0, %v5217_v30  ;;  %v2913_v62 = vld [vmem:[#allocation4 + $0x8] sm:$0xf] }
 0x254   :  { %2842 = vst [vmem:[#allocation4 + $0x64] sm:$0x1] %v2841_v26  ;;  %5222 = vpow2.f32 %v2419_v32  ;;  %v2914_v48 = vld [vmem:[#allocation4 + $0xc] sm:$0x1]  ;;  %v2958_v52 = vshrl.u32 %v2913_v62, 16  ;;  %v2961_v16 = vshll.u32 %v2913_v62, 16 }
 0x255   :  { %2791 = vst [vmem:[#allocation4 + $0x10] sm:$0xf] %v2790_v44  ;;  %5224 = vrcp.f32 %v2447_v43  ;;  %v2967_v34 = vshll.u32 %v2914_v48, 16  ;;  %v2798_v21 = vld [vmem:[#allocation4 + $0x1c] sm:$0x1]  ;;  %v2944_v31 = vshrl.u32 %v6413_v4, 16 }
 0x256   :  { %2794 = vst [vmem:[#allocation4 + $0x14] sm:$0x1] %v2793_v42  ;;  %v2960_v28 = vrot.slane %v2958_v52, 4  ;;  %v2963_v19 = vrot.slane %v2961_v16, 5  ;;  %v2534_v42 = vld [vmem:[#allocation4 + $0x80] sm:$0x1] }
 0x257   :  { %v5219_v57 = vpop.eup %5218  ;;  %v2969_v53 = vrot.slane %v2967_v34, 5  ;;  %2563 = vst [vmem:[#allocation4 + $0x2c] sm:$0x1] %v2562_v10  ;;  %v2594_v52 = vld [vmem:[#allocation4 + $0x84] sm:$0x1] }
 0x258   :  { %v2456_v58 = vadd.f32 1.0, %v5219_v57  ;;  %v2964_v40 = vor.u32 %v2963_v19, %v2960_v28  ;;  %v2849_v28 = vld [vmem:[#allocation4 + $0x70] sm:$0xf]  ;;  %v2852_v34 = vld [vmem:[#allocation4 + $0x74] sm:$0x1] }
 0x259   :  { %v5221_v11 = vpop.eup %5220  ;;  %v2801_v51 = vld [vmem:[#allocation4 + $0x20] sm:$0xf]  ;;  %v2804_v27 = vld [vmem:[#allocation4 + $0x24] sm:$0x1] }
 0x25a   :  { %v5223_v25 = vpop.eup %5222  ;;  %v2616_v23 = vpack.c.bf16 %v5221_v11, %v5221_v11  ;;  %5226 = vrcp.f32 %v2456_v58  ;;  %v2965_v38 = vrot.slane %v2964_v40, 4  ;;  %v2535_v40 = vsel %vm5370_vm4, 0, %v2534_v42 }
 0x25b   :  { %v5225_v29 = vpop.eup %5224  ;;  %v2448_v7 = vadd.f32 1.0, %v5223_v25  ;;  %v2387_v18 = vpop.f32.mrf.mxu2  ;;  %2536 = vst [vmem:[#allocation4 + $0x80] sm:$0x1] %v2535_v40  ;;  %v2930_v40 = vld [vmem:[#allocation4 + $0x5c] sm:$0x1] }
 0x25c   :  { %v2703_v60 = vshrl.u32 %v2616_v23, 16  ;;  %v2706_v37 = vshll.u32 %v2616_v23, 16  ;;  %v2608_v47 = vpack.c.bf16 %v5225_v29, %v5225_v29  ;;  %v2388_v36 = vadd.f32 %v6343_v35, %v2387_v18  ;;  %v2915_v55 = vld [vmem:[#allocation4 + $0x10] sm:$0xf] }
 0x25d   :  { %5228 = vrcp.f32 %v2448_v7  ;;  %v2970_v49 = vsel %vm5525_vm8, %v2965_v38, %v2969_v53  ;;  %v2972_v33 = vshrl.u32 %v2915_v55, 16  ;;  %v2975_v17 = vshll.u32 %v2915_v55, 16  ;;  %v2916_v63 = vld [vmem:[#allocation4 + $0x14] sm:$0x1] }
 0x25e   :  { %v2705_v20 = vrot.slane %v2703_v60, 7  ;;  %v2639_v56 = vshrl.u32 %v2608_v47, 16  ;;  %v2409_v39 = vsub.f32 0.0, %v2388_v36  ;;  %3169 = vrot.lane.b32.xlu0 %v2970_v49, %s5327_s9  ;;  %v2642_v15 = vshll.u32 %v2608_v47, 16 }
 0x25f   :  { %v2974_v12 = vrot.slane %v2972_v33, 4  ;;  %v2977_v30 = vrot.slane %v2975_v17, 5  ;;  %v2595_v29 = vsel %vm5378_vm5, 0, %v2594_v52  ;;  %v2947_v7 = vshll.u32 %v6413_v4, 16  ;;  %v2504_v33 = vld [vmem:[#allocation4 + $0x30] sm:$0x1] }
 0x260   :  { %v5227_v46 = vpop.eup %5226  ;;  %v2708_v54 = vor.u32 %v2706_v37, %v2705_v20  ;;  %v2709_v5 = vrot.slane %v2705_v20, 4  ;;  %v2641_v61 = vrot.slane %v2639_v56, 7  ;;  %v2437_v24 = vmul.f32 1.442695, %v2409_v39  ;;  %2596 = vst [vmem:[#allocation4 + $0x84] sm:$0x1] %v2595_v29 }
 0x261   :  { %v2617_v22 = vpack.c.bf16 %v5227_v46, %v5227_v46  ;;  %v2978_v25 = vor.u32 %v2977_v30, %v2974_v12  ;;  %v2981_v55 = vshll.u32 %v2916_v63, 16  ;;  %v2912_v56 = vld [vmem:[#allocation4 + $0x4] sm:$0x1]  ;;  %v2564_v17 = vld [vmem:[#allocation4 + $0x34] sm:$0x1]  ;;  %v2949_v30 = vrot.slane %v2947_v7, 5 }
 0x262   :  { %v2844_v26 = vsel %vm5544_vm9, %v2708_v54, %v2843_v45  ;;  %v2847_v32 = vsel %vm5370_vm4, %v2709_v5, %v2846_v8  ;;  %v2644_v41 = vor.u32 %v2642_v15, %v2641_v61  ;;  %v2645_v44 = vrot.slane %v2641_v61, 4  ;;  %v2597_v52 = vld [vmem:[#allocation4 + $0x8c] sm:$0x1] }
 0x263   :  { %v5229_v43 = vpop.eup %5228  ;;  %2845 = vst [vmem:[#allocation4 + $0x68] sm:$0xf] %v2844_v26  ;;  %v2711_v62 = vshrl.u32 %v2617_v22, 16  ;;  %v2714_v9 = vshll.u32 %v2617_v22, 16  ;;  %5230 = vpow2.f32 %v2437_v24  ;;  %v2389_v48 = vpop.f32.mrf.mxu2  ;;  %v2979_v36 = vrot.slane %v2978_v25, 4 }
 0x264   :  { %2848 = vst [vmem:[#allocation4 + $0x6c] sm:$0x1] %v2847_v32  ;;  %v2796_v2 = vsel %vm5544_vm9, %v2644_v41, %v2795_v14  ;;  %v2799_v16 = vsel %vm5370_vm4, %v2645_v44, %v2798_v21  ;;  %v2609_v57 = vpack.c.bf16 %v5229_v43, %v5229_v43  ;;  %v2367_v19 = vpop.f32.mrf.mxu0  ;;  %v2390_v58 = vadd.f32 %v6343_v35, %v2389_v48  ;;  %v2537_v26 = vld [vmem:[#allocation4 + $0x88] sm:$0x1] }
 0x265   :  { %2797 = vst [vmem:[#allocation4 + $0x18] sm:$0xf] %v2796_v2  ;;  %v2713_v0 = vrot.slane %v2711_v62, 7  ;;  %v2368_v11 = vadd.f32 %v6343_v35, %v2367_v19  ;;  %v2946_v45 = vrot.slane %v2944_v31, 4  ;;  %v2983_v14 = vrot.slane %v2981_v55, 5 }
 0x266   :  { %2800 = vst [vmem:[#allocation4 + $0x1c] sm:$0x1] %v2799_v16  ;;  %v2647_v23 = vshrl.u32 %v2609_v57, 16  ;;  %v2650_v53 = vshll.u32 %v2609_v57, 16  ;;  %v2410_v37 = vsub.f32 0.0, %v2390_v58  ;;  %v2505_v21 = vsel %vm5370_vm4, 0, %v2504_v33 }
 0x267   :  { %v2716_v18 = vor.u32 %v2714_v9, %v2713_v0  ;;  %v2717_v38 = vrot.slane %v2713_v0, 4  ;;  %v2401_v60 = vsub.f32 0.0, %v2368_v11  ;;  %v2984_v5 = vsel %vm5525_vm8, %v2979_v36, %v2983_v14  ;;  %2506 = vst [vmem:[#allocation4 + $0x30] sm:$0x1] %v2505_v21  ;;  %v2929_v62 = vld [vmem:[#allocation4 + $0x58] sm:$0xf] }
 0x268   :  { %v2649_v47 = vrot.slane %v2647_v23, 7  ;;  %v2439_v20 = vmul.f32 1.442695, %v2410_v37  ;;  %3171 = vrot.lane.b32.xlu1 %v2984_v5, %s5327_s9  ;;  %v2565_v22 = vsel %vm5378_vm5, 0, %v2564_v17  ;;  %v2953_v31 = vshll.u32 %v2912_v56, 16 }
 0x269   :  { %v5231_v8 = vpop.eup %5230  ;;  %v2850_v49 = vsel %vm5544_vm9, %v2716_v18, %v2849_v28  ;;  %v2853_v59 = vsel %vm5370_vm4, %v2717_v38, %v2852_v34  ;;  %v2421_v10 = vmul.f32 1.442695, %v2401_v60  ;;  %v2538_v41 = vsel %vm5370_vm4, 0, %v2537_v26  ;;  %2566 = vst [vmem:[#allocation4 + $0x34] sm:$0x1] %v2565_v22 }
 0x26a   :  { %2851 = vst [vmem:[#allocation4 + $0x70] sm:$0xf] %v2850_v49  ;;  %v2652_v39 = vor.u32 %v2650_v53, %v2649_v47  ;;  %v2653_v4 = vrot.slane %v2649_v47, 4  ;;  %v2457_v15 = vadd.f32 1.0, %v5231_v8  ;;  %v2950_v44 = vor.u32 %v2949_v30, %v2946_v45  ;;  %v2931_v53 = vld [vmem:[#allocation4 + $0x60] sm:$0xf] }
 0x26b   :  { %2854 = vst [vmem:[#allocation4 + $0x74] sm:$0x1] %v2853_v59  ;;  %5232 = vpow2.f32 %v2421_v10  ;;  %v2955_v42 = vrot.slane %v2953_v31, 5  ;;  %v2598_v34 = vsel %vm5378_vm5, 0, %v2597_v52  ;;  %v3070_v23 = vshrl.u32 %v2929_v62, 16 }
 0x26c   :  { %v2802_v46 = vsel %vm5544_vm9, %v2652_v39, %v2801_v51  ;;  %v2805_v54 = vsel %vm5370_vm4, %v2653_v4, %v2804_v27  ;;  %5234 = vrcp.f32 %v2457_v15  ;;  %v2369_v61 = vpop.f32.mrf.mxu0  ;;  %v2917_v12 = vld [vmem:[#allocation4 + $0x18] sm:$0xf]  ;;  %2539 = vst [vmem:[#allocation4 + $0x88] sm:$0x1] %v2538_v41  ;;  %v2951_v28 = vrot.slane %v2950_v44, 4 }
 0x26d   :  { %2803 = vst [vmem:[#allocation4 + $0x20] sm:$0xf] %v2802_v46  ;;  %5236 = vpow2.f32 %v2439_v20  ;;  %v2370_v24 = vadd.f32 %v6343_v35, %v2369_v61  ;;  %v2986_v43 = vshrl.u32 %v2917_v12, 16  ;;  %v2918_v57 = vld [vmem:[#allocation4 + $0x1c] sm:$0x1]  ;;  %v2989_v11 = vshll.u32 %v2917_v12, 16 }
 0x26e   :  { %2806 = vst [vmem:[#allocation4 + $0x24] sm:$0x1] %v2805_v54  ;;  %v2956_v25 = vsel %vm5525_vm8, %v2951_v28, %v2955_v42  ;;  %v2995_v18 = vshll.u32 %v2918_v57, 16  ;;  %v3072_v38 = vrot.slane %v3070_v23, 4  ;;  %v3073_v51 = vshll.u32 %v2929_v62, 16 }
 0x26f   :  { %v2402_v32 = vsub.f32 0.0, %v2370_v24  ;;  %2599 = vst [vmem:[#allocation4 + $0x8c] sm:$0x1] %v2598_v34  ;;  %v2988_v0 = vrot.slane %v2986_v43, 4  ;;  %3167 = vrot.lane.b32.xlu2 %v2956_v25, %s5327_s9  ;;  %v2991_v7 = vrot.slane %v2989_v11, 5  ;;  %v3079_v27 = vshll.u32 %v2930_v40, 16 }
 0x270   :  { %v3084_v36 = vshrl.u32 %v2931_v53, 16  ;;  %v2855_v55 = vld [vmem:[#allocation4 + $0x78] sm:$0xf]  ;;  %v2858_v45 = vld [vmem:[#allocation4 + $0x7c] sm:$0x1]  ;;  %v3075_v8 = vrot.slane %v3073_v51, 5 }
 0x271   :  { %v5233_v9 = vpop.eup %5232  ;;  %v2423_v48 = vmul.f32 1.442695, %v2402_v32  ;;  %v2992_v47 = vor.u32 %v2991_v7, %v2988_v0  ;;  %v3087_v49 = vshll.u32 %v2931_v53, 16  ;;  %v2997_v39 = vrot.slane %v2995_v18, 5  ;;  %v2540_v21 = vld [vmem:[#allocation4 + $0x90] sm:$0x1] }
 0x272   :  { %v5235_v2 = vpop.eup %5234  ;;  %v2449_v16 = vadd.f32 1.0, %v5233_v9  ;;  %v3076_v33 = vor.u32 %v3075_v8, %v3072_v38  ;;  %v6454_v17 = vrot.slane %v3079_v27, 5  ;;  %v6456_v46 = vrot.slane %v3084_v36, 4  ;;  %v2600_v22 = vld [vmem:[#allocation4 + $0x94] sm:$0x1] }
 0x273   :  { %v5237_v19 = vpop.eup %5236  ;;  %v2618_v58 = vpack.c.bf16 %v5235_v2, %v5235_v2  ;;  %5238 = vpow2.f32 %v2423_v48  ;;  %v2993_v56 = vrot.slane %v2992_v47, 4  ;;  %v2541_v31 = vsel %vm5370_vm4, 0, %v2540_v21  ;;  %v2807_v9 = vld [vmem:[#allocation4 + $0x28] sm:$0xf]  ;;  %v2810_v48 = vld [vmem:[#allocation4 + $0x2c] sm:$0x1] }
 0x274   :  { %5240 = vrcp.f32 %v2449_v16  ;;  %v2458_v63 = vadd.f32 1.0, %v5237_v19  ;;  %v6467_v26 = vrot.slane %v3087_v49, 5  ;;  %v2601_v42 = vsel %vm5378_vm5, 0, %v2600_v22  ;;  %2542 = vst [vmem:[#allocation4 + $0x90] sm:$0x1] %v2541_v31 }
 0x275   :  { %v2719_v29 = vshrl.u32 %v2618_v58, 16  ;;  %v2722_v37 = vshll.u32 %v2618_v58, 16  ;;  %v2998_v30 = vsel %vm5525_vm8, %v2993_v56, %v2997_v39  ;;  %v3077_v2 = vrot.slane %v3076_v33, 4  ;;  %v6473_v16 = vld [vmem:[#allocation4 + $0x70] sm:$0xf] }
 0x276   :  { %5242 = vrcp.f32 %v2458_v63  ;;  %v2861_v58 = vld [vmem:[#allocation4 + $0x80] sm:$0xf]  ;;  %v2864_v0 = vld [vmem:[#allocation4 + $0x84] sm:$0x1]  ;;  %2602 = vst [vmem:[#allocation4 + $0x94] sm:$0x1] %v2601_v42 }
 0x277   :  { %v2721_v60 = vrot.slane %v2719_v29, 7  ;;  %3173 = vrot.lane.b32.xlu2 %v2998_v30, %s5327_s9  ;;  %v2507_v40 = vld [vmem:[#allocation4 + $0x38] sm:$0x1]  ;;  %v3112_v63 = vshrl.u32 %v6473_v16, 16  ;;  %v2567_v29 = vld [vmem:[#allocation4 + $0x3c] sm:$0x1] }
 0x278   :  { %v2919_v7 = vld [vmem:[#allocation4 + $0x20] sm:$0xf]  ;;  %v2508_v27 = vsel %vm5370_vm4, 0, %v2507_v40  ;;  %v2920_v47 = vld [vmem:[#allocation4 + $0x24] sm:$0x1] }
 0x279   :  { %v5239_v59 = vpop.eup %5238  ;;  %v2724_v10 = vor.u32 %v2722_v37, %v2721_v60  ;;  %v2725_v20 = vrot.slane %v2721_v60, 4  ;;  %v2568_v60 = vsel %vm5378_vm5, 0, %v2567_v29  ;;  %v3082_v37 = vsel %vm5525_vm8, %v3077_v2, %v6454_v17  ;;  %2509 = vst [vmem:[#allocation4 + $0x38] sm:$0x1] %v2508_v27  ;;  %v6487_v49 = vld [vmem:[#allocation4 + $0x64] sm:$0x1] }
 0x27a   :  { %v5241_v4 = vpop.eup %5240  ;;  %v2450_v15 = vadd.f32 1.0, %v5239_v59  ;;  %v2392_v14 = vpop.f32.mrf.mxu2  ;;  %v2813_v21 = vld [vmem:[#allocation4 + $0x30] sm:$0xf]  ;;  %v2816_v22 = vld [vmem:[#allocation4 + $0x34] sm:$0x1]  ;;  %v3090_v2 = vor.u32 %v6467_v26, %v6456_v46 }
 0x27b   :  { %v2856_v54 = vsel %vm5544_vm9, %v2724_v10, %v2855_v55  ;;  %v2859_v5 = vsel %vm5370_vm4, %v2725_v20, %v2858_v45  ;;  %v2610_v61 = vpack.c.bf16 %v5241_v4, %v5241_v4  ;;  %v2393_v24 = vadd.f32 %v6343_v35, %v2392_v14  ;;  %2569 = vst [vmem:[#allocation4 + $0x3c] sm:$0x1] %v2568_v60  ;;  %v2936_v42 = vld [vmem:[#allocation4 + $0x74] sm:$0x1] }
 0x27c   :  { %v5243_v12 = vpop.eup %5242  ;;  %2857 = vst [vmem:[#allocation4 + $0x78] sm:$0xf] %v2856_v54  ;;  %5244 = vrcp.f32 %v2450_v15  ;;  %v3000_v20 = vshrl.u32 %v2919_v7, 16  ;;  %v3003_v4 = vshll.u32 %v2919_v7, 16  ;;  %v3009_v15 = vshll.u32 %v2920_v47, 16 }
 0x27d   :  { %2860 = vst [vmem:[#allocation4 + $0x7c] sm:$0x1] %v2859_v5  ;;  %v2655_v32 = vshrl.u32 %v2610_v61, 16  ;;  %v2619_v41 = vpack.c.bf16 %v5243_v12, %v5243_v12  ;;  %v2411_v44 = vsub.f32 0.0, %v2393_v24  ;;  %v2372_v43 = vpop.f32.mrf.mxu0  ;;  %v2658_v62 = vshll.u32 %v2610_v61, 16 }
 0x27e   :  { %v2373_v52 = vadd.f32 %v6343_v35, %v2372_v43  ;;  %v3002_v54 = vrot.slane %v3000_v20, 4  ;;  %v3093_v5 = vshll.u32 %v6487_v49, 16  ;;  %v3005_v12 = vrot.slane %v3003_v4, 5 }
 0x27f   :  { %v2657_v28 = vrot.slane %v2655_v32, 7  ;;  %v2727_v34 = vshrl.u32 %v2619_v41, 16  ;;  %v2730_v57 = vshll.u32 %v2619_v41, 16  ;;  %v2441_v19 = vmul.f32 1.442695, %v2411_v44  ;;  %3185 = vrot.lane.b32.xlu2 %v3082_v37, %s5327_s9 }
 0x280   :  { %v2403_v11 = vsub.f32 0.0, %v2373_v52  ;;  %v3011_v30 = vrot.slane %v3009_v15, 5  ;;  %v3006_v43 = vor.u32 %v3005_v12, %v3002_v54  ;;  %v3114_v52 = vrot.slane %v3112_v63, 4 }
 0x281   :  { %v2660_v25 = vor.u32 %v2658_v62, %v2657_v28  ;;  %v2661_v23 = vrot.slane %v2657_v28, 4  ;;  %v2729_v53 = vrot.slane %v2727_v34, 7  ;;  %5246 = vpow2.f32 %v2441_v19  ;;  %v2516_v19 = vld [vmem:[#allocation4 + $0x50] sm:$0x1] }
 0x282   :  { %v5245_v18 = vpop.eup %5244  ;;  %v2394_v38 = vpop.f32.mrf.mxu2  ;;  %v2425_v51 = vmul.f32 1.442695, %v2403_v11  ;;  %v3007_v11 = vrot.slane %v3006_v43, 4  ;;  %v2517_v29 = vsel %vm5370_vm4, 0, %v2516_v19  ;;  %v3091_v60 = vrot.slane %v3090_v2, 4 }
 0x283   :  { %v2808_v36 = vsel %vm5544_vm9, %v2660_v25, %v2807_v9  ;;  %v2811_v55 = vsel %vm5370_vm4, %v2661_v23, %v2810_v48  ;;  %v2732_v45 = vor.u32 %v2730_v57, %v2729_v53  ;;  %v2733_v8 = vrot.slane %v2729_v53, 4  ;;  %v2510_v9 = vld [vmem:[#allocation4 + $0x40] sm:$0x1]  ;;  %v2570_v48 = vld [vmem:[#allocation4 + $0x44] sm:$0x1] }
 0x284   :  { %2809 = vst [vmem:[#allocation4 + $0x28] sm:$0xf] %v2808_v36  ;;  %v2611_v59 = vpack.c.bf16 %v5245_v18, %v5245_v18  ;;  %v2395_v10 = vadd.f32 %v6343_v35, %v2394_v38  ;;  %5248 = vpow2.f32 %v2425_v51  ;;  %v2571_v26 = vsel %vm5378_vm5, 0, %v2570_v48  ;;  %v2937_v38 = vld [vmem:[#allocation4 + $0x78] sm:$0xf] }
 0x285   :  { %2812 = vst [vmem:[#allocation4 + $0x2c] sm:$0x1] %v2811_v55  ;;  %v2862_v56 = vsel %vm5544_vm9, %v2732_v45, %v2861_v58  ;;  %v2865_v39 = vsel %vm5370_vm4, %v2733_v8, %v2864_v0  ;;  %v2374_v14 = vpop.f32.mrf.mxu0  ;;  %v2576_v58 = vld [vmem:[#allocation4 + $0x54] sm:$0x1]  ;;  %v3115_v25 = vshll.u32 %v6473_v16, 16  ;;  %v3012_v23 = vsel %vm5525_vm8, %v3007_v11, %v3011_v30 }
 0x286   :  { %2863 = vst [vmem:[#allocation4 + $0x80] sm:$0xf] %v2862_v56  ;;  %v2663_v33 = vshrl.u32 %v2611_v59, 16  ;;  %v2412_v17 = vsub.f32 0.0, %v2395_v10  ;;  %v2666_v24 = vshll.u32 %v2611_v59, 16  ;;  %v2375_v31 = vadd.f32 %v6343_v35, %v2374_v14  ;;  %3175 = vrot.lane.b32.xlu0 %v3012_v23, %s5327_s9 }
 0x287   :  { %v5247_v61 = vpop.eup %5246  ;;  %2866 = vst [vmem:[#allocation4 + $0x84] sm:$0x1] %v2865_v39  ;;  %v2511_v35 = vsel %vm5370_vm4, 0, %v2510_v9  ;;  %v3121_v53 = vshll.u32 %v2936_v42, 16  ;;  %v3117_v7 = vrot.slane %v3115_v25, 5  ;;  %v2577_v18 = vsel %vm5378_vm5, 0, %v2576_v58 }
 0x288   :  { %v2665_v32 = vrot.slane %v2663_v33, 7  ;;  %v2459_v41 = vadd.f32 1.0, %v5247_v61  ;;  %v2443_v44 = vmul.f32 1.442695, %v2412_v17  ;;  %v2404_v62 = vsub.f32 0.0, %v2375_v31 }
 0x289   :  { %2512 = vst [vmem:[#allocation4 + $0x40] sm:$0x1] %v2511_v35  ;;  %v3118_v27 = vor.u32 %v3117_v7, %v3114_v52  ;;  %v3095_v37 = vrot.slane %v3093_v5, 5  ;;  %v3123_v55 = vrot.slane %v3121_v53, 5  ;;  %v3126_v45 = vshrl.u32 %v2937_v38, 16 }
 0x28a   :  { %v5249_v28 = vpop.eup %5248  ;;  %v2668_v34 = vor.u32 %v2666_v24, %v2665_v32  ;;  %v2669_v57 = vrot.slane %v2665_v32, 4  ;;  %5250 = vrcp.f32 %v2459_v41  ;;  %v2427_v40 = vmul.f32 1.442695, %v2404_v62  ;;  %2572 = vst [vmem:[#allocation4 + $0x44] sm:$0x1] %v2571_v26 }
 0x28b   :  { %5252 = vpow2.f32 %v2443_v44  ;;  %v2451_v0 = vadd.f32 1.0, %v5249_v28  ;;  %v2921_v16 = vld [vmem:[#allocation4 + $0x28] sm:$0xf]  ;;  %2518 = vst [vmem:[#allocation4 + $0x50] sm:$0x1] %v2517_v29  ;;  %v3129_v8 = vshll.u32 %v2937_v38, 16  ;;  %v3096_v5 = vsel %vm5525_vm8, %v3091_v60, %v3095_v37 }
 0x28c   :  { %v2814_v63 = vsel %vm5544_vm9, %v2668_v34, %v2813_v21  ;;  %v2817_v46 = vsel %vm5370_vm4, %v2669_v57, %v2816_v22  ;;  %2578 = vst [vmem:[#allocation4 + $0x54] sm:$0x1] %v2577_v18  ;;  %v3119_v59 = vrot.slane %v3118_v27, 4  ;;  %v3014_v10 = vshrl.u32 %v2921_v16, 16  ;;  %v2938_v4 = vld [vmem:[#allocation4 + $0x7c] sm:$0x1] }
 0x28d   :  { %2815 = vst [vmem:[#allocation4 + $0x30] sm:$0xf] %v2814_v63  ;;  %5254 = vrcp.f32 %v2451_v0  ;;  %v3017_v20 = vshll.u32 %v2921_v16, 16  ;;  %v3128_v15 = vrot.slane %v3126_v45, 4  ;;  %v3131_v14 = vrot.slane %v3129_v8, 5 }
 0x28e   :  { %2818 = vst [vmem:[#allocation4 + $0x34] sm:$0x1] %v2817_v46  ;;  %5256 = vpow2.f32 %v2427_v40  ;;  %v3124_v54 = vsel %vm5525_vm8, %v3119_v59, %v3123_v55  ;;  %v2867_v22 = vld [vmem:[#allocation4 + $0x88] sm:$0xf]  ;;  %v2870_v31 = vld [vmem:[#allocation4 + $0x8c] sm:$0x1]  ;;  %3187 = vrot.lane.b32.xlu0 %v3096_v5, %s5327_s9 }
 0x28f   :  { %3191 = vrot.lane.b32.xlu2 %v3124_v54, %s5327_s9  ;;  %v3132_v30 = vor.u32 %v3131_v14, %v3128_v15  ;;  %v3016_v41 = vrot.slane %v3014_v10, 4  ;;  %v3019_v44 = vrot.slane %v3017_v20, 5  ;;  %v3135_v42 = vshll.u32 %v2938_v4, 16  ;;  %v2819_v9 = vld [vmem:[#allocation4 + $0x38] sm:$0xf] }
 0x290   :  { %v5251_v51 = vpop.eup %5250  ;;  %v2822_v0 = vld [vmem:[#allocation4 + $0x3c] sm:$0x1]  ;;  %v2933_v37 = vld [vmem:[#allocation4 + $0x68] sm:$0xf]  ;;  %v2922_v55 = vld [vmem:[#allocation4 + $0x2c] sm:$0x1] }
 0x291   :  { %v5253_v47 = vpop.eup %5252  ;;  %v2620_v36 = vpack.c.bf16 %v5251_v51, %v5251_v51  ;;  %v3133_v40 = vrot.slane %v3132_v30, 4  ;;  %v3137_v18 = vrot.slane %v3135_v42, 5  ;;  %v3020_v45 = vor.u32 %v3019_v44, %v3016_v41  ;;  %v2873_v14 = vld [vmem:[#allocation4 + $0x90] sm:$0xf]  ;;  %v3236_v44 = vld [vmem:[#allocation4 + $0x14] sm:$0x1] }
 0x292   :  { %v2460_v49 = vadd.f32 1.0, %v5253_v47  ;;  %v2927_v48 = vld [vmem:[#allocation4 + $0x50] sm:$0xf]  ;;  %v3098_v4 = vshrl.u32 %v2933_v37, 16  ;;  %v3101_v15 = vshll.u32 %v2933_v37, 16  ;;  %v3023_v5 = vshll.u32 %v2922_v55, 16 }
 0x293   :  { %v5255_v56 = vpop.eup %5254  ;;  %v2735_v39 = vshrl.u32 %v2620_v36, 16  ;;  %v2738_v21 = vshll.u32 %v2620_v36, 16  ;;  %v2928_v34 = vld [vmem:[#allocation4 + $0x54] sm:$0x1]  ;;  %v3056_v57 = vshrl.u32 %v2927_v48, 16  ;;  %v3059_v35 = vshll.u32 %v2927_v48, 16 }
 0x294   :  { %v5257_v33 = vpop.eup %5256  ;;  %5258 = vrcp.f32 %v2460_v49  ;;  %v2612_v17 = vpack.c.bf16 %v5255_v56, %v5255_v56  ;;  %v2923_v61 = vld [vmem:[#allocation4 + $0x30] sm:$0xf]  ;;  %v3065_v11 = vshll.u32 %v2928_v34, 16  ;;  %v3138_v8 = vsel %vm5525_vm8, %v3133_v40, %v3137_v18  ;;  %v2828_v48 = vld [vmem:[#allocation4 + $0x44] sm:$0x1] }
 0x295   :  { %v2737_v24 = vrot.slane %v2735_v39, 7  ;;  %v2452_v12 = vadd.f32 1.0, %v5257_v33  ;;  %v3028_v52 = vshrl.u32 %v2923_v61, 16  ;;  %v2924_v63 = vld [vmem:[#allocation4 + $0x34] sm:$0x1]  ;;  %v3058_v23 = vrot.slane %v3056_v57, 4 }
 0x296   :  { %v2671_v32 = vshrl.u32 %v2612_v17, 16  ;;  %v2674_v28 = vshll.u32 %v2612_v17, 16  ;;  %v3061_v53 = vrot.slane %v3059_v35, 5  ;;  %v3067_v7 = vrot.slane %v3065_v11, 5  ;;  %3193 = vrot.lane.b32.xlu0 %v3138_v8, %s5327_s9  ;;  %v2876_v33 = vld [vmem:[#allocation4 + $0x94] sm:$0x1] }
 0x297   :  { %v2740_v43 = vor.u32 %v2738_v21, %v2737_v24  ;;  %v2741_v62 = vrot.slane %v2737_v24, 4  ;;  %5260 = vrcp.f32 %v2452_v12  ;;  %v3030_v38 = vrot.slane %v3028_v52, 4  ;;  %v3235_v12 = vld [vmem:[#allocation4 + $0x10] sm:$0xe] }
 0x298   :  { %v2673_v2 = vrot.slane %v2671_v32, 7  ;;  %v3062_v27 = vor.u32 %v3061_v53, %v3058_v23  ;;  %v3031_v60 = vshll.u32 %v2923_v61, 16  ;;  %v3037_v20 = vshll.u32 %v2924_v63, 16 }
 0x299   :  { %v2868_v19 = vsel %vm5544_vm9, %v2740_v43, %v2867_v22  ;;  %v2871_v58 = vsel %vm5370_vm4, %v2741_v62, %v2870_v31  ;;  %v3021_v22 = vrot.slane %v3020_v45, 4  ;;  %v3100_v52 = vrot.slane %v3098_v4, 4  ;;  %v2880_v45 = vld [vmem:[#allocation4 + $0x8] sm:$0xf] }
 0x29a   :  { %v5259_v46 = vpop.eup %5258  ;;  %2869 = vst [vmem:[#allocation4 + $0x88] sm:$0xf] %v2868_v19  ;;  %v2676_v26 = vor.u32 %v2674_v28, %v2673_v2  ;;  %v2677_v25 = vrot.slane %v2673_v2, 4  ;;  %v3063_v59 = vrot.slane %v3062_v27, 4  ;;  %v3033_v10 = vrot.slane %v3031_v60, 5 }
 0x29b   :  { %2872 = vst [vmem:[#allocation4 + $0x8c] sm:$0x1] %v2871_v58  ;;  %v2621_v29 = vpack.c.bf16 %v5259_v46, %v5259_v46  ;;  %v3039_v41 = vrot.slane %v3037_v20, 5  ;;  %v3103_v2 = vrot.slane %v3101_v15, 5  ;;  %v3025_v57 = vrot.slane %v3023_v5, 5 }
 0x29c   :  { %v2820_v16 = vsel %vm5544_vm9, %v2676_v26, %v2819_v9  ;;  %v2823_v51 = vsel %vm5370_vm4, %v2677_v25, %v2822_v0  ;;  %v3068_v54 = vsel %vm5525_vm8, %v3063_v59, %v3067_v7  ;;  %v3034_v61 = vor.u32 %v3033_v10, %v3030_v38  ;;  %v2825_v9 = vld [vmem:[#allocation4 + $0x40] sm:$0xf]  ;;  %v2934_v46 = vld [vmem:[#allocation4 + $0x6c] sm:$0x1]  ;;  %v2881_v20 = vld [vmem:[#allocation4 + $0x10] sm:$0xf] }
 0x29d   :  { %v5261_v47 = vpop.eup %5260  ;;  %v2743_v36 = vshrl.u32 %v2621_v29, 16  ;;  %2821 = vst [vmem:[#allocation4 + $0x38] sm:$0xf] %v2820_v16  ;;  %v2746_v39 = vshll.u32 %v2621_v29, 16  ;;  %3183 = vrot.lane.b32.xlu1 %v3068_v54, %s5327_s9  ;;  %v2939_v19 = vld [vmem:[#allocation4 + $0x80] sm:$0xf]  ;;  %v3026_v63 = vsel %vm5525_vm8, %v3021_v22, %v3025_v57  ;;  %v3104_v25 = vor.u32 %v3103_v2, %v3100_v52 }
 0x29e   :  { %2824 = vst [vmem:[#allocation4 + $0x3c] sm:$0x1] %v2823_v51  ;;  %v2613_v49 = vpack.c.bf16 %v5261_v47, %v5261_v47  ;;  %v3035_v32 = vrot.slane %v3034_v61, 4  ;;  %v5051_v58 = vrot.slane %v3235_v12, 9  ;;  %v3305_v23 = vrot.slane %v3236_v44, 5 }
 0x29f   :  { %v2745_v56 = vrot.slane %v2743_v36, 7  ;;  %v3140_v53 = vshrl.u32 %v2939_v19, 16  ;;  %v3143_v29 = vshll.u32 %v2939_v19, 16  ;;  %v3107_v6 = vshll.u32 %v2934_v46, 16  ;;  %2896 = vst.msk [vmem:[#allocation5 + $0x4] sm:$0xf] %vm21_vm0, %v2880_v45 }
 0x2a0   :  { %v2679_v17 = vshrl.u32 %v2613_v49, 16  ;;  %v2682_v31 = vshll.u32 %v2613_v49, 16  ;;  %v3040_v35 = vsel %vm5525_vm8, %v3035_v32, %v3039_v41  ;;  %v3105_v37 = vrot.slane %v3104_v25, 4  ;;  %2897 = vst.msk [vmem:[#allocation5 + $0x8] sm:$0xf] %vm21_vm0, %v2881_v20 }
 0x2a1   :  { %v2748_v24 = vor.u32 %v2746_v39, %v2745_v56  ;;  %v2749_v21 = vrot.slane %v2745_v56, 4  ;;  %v2941_v42 = vld [vmem:[#allocation4 + $0x88] sm:$0xf]  ;;  %3179 = vrot.lane.b32.xlu2 %v3040_v35, %s5327_s9  ;;  %v3306_v47 = vsel %vm5830_vm12, %v5051_v58, %v3305_v23  ;;  %v3142_v36 = vrot.slane %v3140_v53, 4  ;;  %v3234_v35 = vld [vmem:[#allocation4 + $0xc] sm:$0x1] }
 0x2a2   :  { %v2681_v30 = vrot.slane %v2679_v17, 7  ;;  %v3154_v0 = vshrl.u32 %v2941_v42, 16  ;;  %v3157_v26 = vshll.u32 %v2941_v42, 16  ;;  %v2942_v16 = vld [vmem:[#allocation4 + $0x8c] sm:$0x1]  ;;  %v3145_v55 = vrot.slane %v3143_v29, 5 }
 0x2a3   :  { %v2874_v43 = vsel %vm5544_vm9, %v2748_v24, %v2873_v14  ;;  %v2877_v62 = vsel %vm5370_vm4, %v2749_v21, %v2876_v33  ;;  %v3109_v56 = vrot.slane %v3107_v6, 5  ;;  %v3163_v39 = vshll.u32 %v2942_v16, 16  ;;  %v2940_v14 = vld [vmem:[#allocation4 + $0x84] sm:$0x1]  ;;  %v2888_v33 = vld [vmem:[#allocation4 + $0x58] sm:$0xf] }
 0x2a4   :  { %2875 = vst [vmem:[#allocation4 + $0x90] sm:$0xf] %v2874_v43  ;;  %v2684_v28 = vor.u32 %v2682_v31, %v2681_v30  ;;  %v2685_v34 = vrot.slane %v2681_v30, 4  ;;  %v3156_v7 = vrot.slane %v3154_v0, 4  ;;  %v3159_v18 = vrot.slane %v3157_v26, 5 }
 0x2a5   :  { %2878 = vst [vmem:[#allocation4 + $0x94] sm:$0x1] %v2877_v62  ;;  %3177 = vrot.lane.b32.xlu1 %v3026_v63, %s5327_s9  ;;  %v2925_v38 = vld [vmem:[#allocation4 + $0x38] sm:$0xf]  ;;  %v2926_v51 = vld [vmem:[#allocation4 + $0x3c] sm:$0x1]  ;;  %v3110_v15 = vsel %vm5525_vm8, %v3105_v37, %v3109_v56  ;;  %v3146_v17 = vor.u32 %v3145_v55, %v3142_v36 }
 0x2a6   :  { %v2826_v11 = vsel %vm5544_vm9, %v2684_v28, %v2825_v9  ;;  %v2829_v40 = vsel %vm5370_vm4, %v2685_v34, %v2828_v48  ;;  %v3042_v27 = vshrl.u32 %v2925_v38, 16  ;;  %v3045_v60 = vshll.u32 %v2925_v38, 16  ;;  %2904 = vst.msk [vmem:[#allocation5 + $0x24] sm:$0xf] %vm21_vm0, %v2888_v33  ;;  %v3231_v24 = vld [vmem:[#allocation4] sm:$0xe] }
 0x2a7   :  { %2827 = vst [vmem:[#allocation4 + $0x40] sm:$0xf] %v2826_v11  ;;  %v3160_v8 = vor.u32 %v3159_v18, %v3156_v7  ;;  %v3051_v10 = vshll.u32 %v2926_v51, 16  ;;  %v3232_v21 = vld [vmem:[#allocation4 + $0x4] sm:$0x1]  ;;  %v3149_v22 = vshll.u32 %v2940_v14, 16 }
 0x2a8   :  { %2830 = vst [vmem:[#allocation4 + $0x44] sm:$0x1] %v2829_v40  ;;  %v3044_v49 = vrot.slane %v3042_v27, 4  ;;  %v3047_v59 = vrot.slane %v3045_v60, 5  ;;  %v3165_v12 = vrot.slane %v3163_v39, 5  ;;  %v3147_v32 = vrot.slane %v3146_v17, 4 }
 0x2a9   :  { %3363 = vrot.lane.b32.xlu2 %v3306_v47, %s5328_s22  ;;  %v3161_v54 = vrot.slane %v3160_v8, 4  ;;  %v3053_v61 = vrot.slane %v3051_v10, 5  ;;  %v2882_v31 = vld [vmem:[#allocation4 + $0x18] sm:$0xf]  ;;  %v5049_v44 = vrot.slane %v3231_v24, 9  ;;  %v3297_v42 = vrot.slane %v3232_v21, 5 }
 0x2aa   :  { %v3048_v4 = vor.u32 %v3047_v59, %v3044_v49  ;;  %2898 = vst.msk [vmem:[#allocation5 + $0xc] sm:$0xf] %vm21_vm0, %v2882_v31  ;;  %v3241_v43 = vld [vmem:[#allocation4 + $0x28] sm:$0xe]  ;;  %v3242_v62 = vld [vmem:[#allocation4 + $0x2c] sm:$0x1] }
 0x2ab   :  { %v3166_v41 = vsel %vm5525_vm8, %v3161_v54, %v3165_v12  ;;  %v3151_v9 = vrot.slane %v3149_v22, 5  ;;  %v2891_v48 = vld [vmem:[#allocation4 + $0x70] sm:$0xf]  ;;  %v5054_v2 = vrot.slane %v3241_v43, 9  ;;  %v3317_v28 = vrot.slane %v3242_v62, 5 }
 0x2ac   :  { %v3049_v5 = vrot.slane %v3048_v4, 4  ;;  %2907 = vst.msk [vmem:[#allocation5 + $0x30] sm:$0xf] %vm21_vm0, %v2891_v48  ;;  %v3298_v34 = vsel %vm5830_vm12, %v5049_v44, %v3297_v42  ;;  %v3233_v57 = vld [vmem:[#allocation4 + $0x8] sm:$0xe]  ;;  %v3301_v63 = vrot.slane %v3234_v35, 5 }
 0x2ad   :  { %3189 = vrot.lane.b32.xlu1 %v3110_v15, %s5327_s9  ;;  %v3152_v52 = vsel %vm5525_vm8, %v3147_v32, %v3151_v9  ;;  %v3247_v19 = vld [vmem:[#allocation4 + $0x50] sm:$0xe]  ;;  %v3248_v58 = vld [vmem:[#allocation4 + $0x54] sm:$0x1]  ;;  %v3237_v0 = vld [vmem:[#allocation4 + $0x18] sm:$0xe]  ;;  %v3318_v46 = vsel %vm5830_vm12, %v5054_v2, %v3317_v28 }
 0x2ae   :  { %v3054_v30 = vsel %vm5525_vm8, %v3049_v5, %v3053_v61  ;;  %v3238_v11 = vld [vmem:[#allocation4 + $0x1c] sm:$0x1]  ;;  %v5050_v40 = vrot.slane %v3233_v57, 9  ;;  %v5057_v26 = vrot.slane %v3247_v19, 9  ;;  %v3329_v25 = vrot.slane %v3248_v58, 5 }
 0x2af   :  { %3181 = vrot.lane.b32.xlu0 %v3054_v30, %s5327_s9  ;;  %v5052_v23 = vrot.slane %v3237_v0, 9  ;;  %v3309_v53 = vrot.slane %v3238_v11, 5  ;;  %v2889_v29 = vld [vmem:[#allocation4 + $0x60] sm:$0xf]  ;;  %v3240_v6 = vld [vmem:[#allocation4 + $0x24] sm:$0x1] }
 0x2b0   :  { %2905 = vst.msk [vmem:[#allocation5 + $0x28] sm:$0xf] %vm21_vm0, %v2889_v29  ;;  %v3302_v7 = vsel %vm5830_vm12, %v5050_v40, %v3301_v63  ;;  %v3239_v18 = vld [vmem:[#allocation4 + $0x20] sm:$0xe]  ;;  %v3330_v16 = vsel %vm5830_vm12, %v5057_v26, %v3329_v25  ;;  %v3243_v27 = vld [vmem:[#allocation4 + $0x30] sm:$0xe] }
 0x2b1   :  { %3197 = vrot.lane.b32.xlu2 %v3166_v41, %s5327_s9  ;;  %v2879_v38 = vld [vmem:[#allocation4] sm:$0xf]  ;;  %v3310_v51 = vsel %vm5830_vm12, %v5052_v23, %v3309_v53  ;;  %v3244_v60 = vld [vmem:[#allocation4 + $0x34] sm:$0x1]  ;;  %v5053_v37 = vrot.slane %v3239_v18, 9  ;;  %v3313_v47 = vrot.slane %v3240_v6, 5 }
 0x2b2   :  { %2895 = vst.msk [vmem:[#allocation5] sm:$0xf] %vm21_vm0, %v2879_v38  ;;  %v3253_v36 = vld [vmem:[#allocation4 + $0x68] sm:$0xe]  ;;  %v3254_v55 = vld [vmem:[#allocation4 + $0x6c] sm:$0x1] }
 0x2b3   :  { %v2883_v45 = vld [vmem:[#allocation4 + $0x20] sm:$0xf]  ;;  %v5055_v8 = vrot.slane %v3243_v27, 9  ;;  %v3321_v49 = vrot.slane %v3244_v60, 5  ;;  %v3314_v59 = vsel %vm5830_vm12, %v5053_v37, %v3313_v47  ;;  %v5060_v10 = vrot.slane %v3253_v36, 9 }
 0x2b4   :  { %2899 = vst.msk [vmem:[#allocation5 + $0x10] sm:$0xf] %vm21_vm0, %v2883_v45  ;;  %v3341_v20 = vrot.slane %v3254_v55, 5  ;;  %v2890_v56 = vld [vmem:[#allocation4 + $0x68] sm:$0xf] }
 0x2b5   :  { %3195 = vrot.lane.b32.xlu1 %v3152_v52, %s5327_s9  ;;  %v3245_v39 = vld [vmem:[#allocation4 + $0x38] sm:$0xe]  ;;  %v3246_v4 = vld [vmem:[#allocation4 + $0x3c] sm:$0x1]  ;;  %2906 = vst.msk [vmem:[#allocation5 + $0x2c] sm:$0xf] %vm21_vm0, %v2890_v56  ;;  %v3322_v15 = vsel %vm5830_vm12, %v5055_v8, %v3321_v49 }
 0x2b6   :  { %v3249_v14 = vld [vmem:[#allocation4 + $0x58] sm:$0xe]  ;;  %v3250_v33 = vld [vmem:[#allocation4 + $0x5c] sm:$0x1]  ;;  %v5056_v17 = vrot.slane %v3245_v39, 9  ;;  %v3325_v54 = vrot.slane %v3246_v4, 5  ;;  %v3342_v5 = vsel %vm5830_vm12, %v5060_v10, %v3341_v20 }
 0x2b7   :  { %3359 = vrot.lane.b32.xlu0 %v3298_v34, %s5328_s22  ;;  %v3259_v61 = vld [vmem:[#allocation4 + $0x80] sm:$0xe]  ;;  %v3260_v24 = vld [vmem:[#allocation4 + $0x84] sm:$0x1]  ;;  %v5058_v21 = vrot.slane %v3249_v14, 9  ;;  %v3333_v22 = vrot.slane %v3250_v33, 5 }
 0x2b8   :  { %v3326_v30 = vsel %vm5830_vm12, %v5056_v17, %v3325_v54  ;;  %v5063_v31 = vrot.slane %v3259_v61, 9  ;;  %v3353_v32 = vrot.slane %v3260_v24, 5  ;;  %v3251_v44 = vld [vmem:[#allocation4 + $0x60] sm:$0xe]  ;;  %v3252_v42 = vld [vmem:[#allocation4 + $0x64] sm:$0x1] }
 0x2b9   :  { %3369 = vrot.lane.b32.xlu2 %v3318_v46, %s5328_s22  ;;  %v3334_v43 = vsel %vm5830_vm12, %v5058_v21, %v3333_v22  ;;  %v3255_v62 = vld [vmem:[#allocation4 + $0x70] sm:$0xe]  ;;  %v3256_v9 = vld [vmem:[#allocation4 + $0x74] sm:$0x1]  ;;  %v5059_v48 = vrot.slane %v3251_v44, 9  ;;  %v3337_v52 = vrot.slane %v3252_v42, 5 }
 0x2ba   :  { %v3354_v2 = vsel %vm5830_vm12, %v5063_v31, %v3353_v32  ;;  %v5061_v28 = vrot.slane %v3255_v62, 9  ;;  %v3345_v34 = vrot.slane %v3256_v9, 5  ;;  %v2892_v57 = vld [vmem:[#allocation4 + $0x78] sm:$0xf]  ;;  %v2884_v58 = vld [vmem:[#allocation4 + $0x28] sm:$0xf] }
 0x2bb   :  { %2908 = vst.msk [vmem:[#allocation5 + $0x34] sm:$0xf] %vm21_vm0, %v2892_v57  ;;  %v3338_v19 = vsel %vm5830_vm12, %v5059_v48, %v3337_v52  ;;  %v3257_v0 = vld [vmem:[#allocation4 + $0x78] sm:$0xe]  ;;  %v3258_v11 = vld [vmem:[#allocation4 + $0x7c] sm:$0x1] }
 0x2bc   :  { %2900 = vst.msk [vmem:[#allocation5 + $0x14] sm:$0xf] %vm21_vm0, %v2884_v58  ;;  %v3346_v40 = vsel %vm5830_vm12, %v5061_v28, %v3345_v34  ;;  %v3261_v63 = vld [vmem:[#allocation4 + $0x88] sm:$0xe]  ;;  %v3262_v46 = vld [vmem:[#allocation4 + $0x8c] sm:$0x1] }
 0x2bd   :  { %3361 = vrot.lane.b32.xlu1 %v3302_v7, %s5328_s22  ;;  %v5062_v26 = vrot.slane %v3257_v0, 9  ;;  %v3349_v25 = vrot.slane %v3258_v11, 5  ;;  %v3424_v23 = vld [vmem:[#allocation4 + $0x10] sm:$0xf]  ;;  %v5064_v29 = vrot.slane %v3261_v63, 9  ;;  %v3357_v7 = vrot.slane %v3262_v46, 5 }
 0x2be   :  { %v2885_v53 = vld [vmem:[#allocation4 + $0x30] sm:$0xf]  ;;  %v2893_v38 = vld [vmem:[#allocation4 + $0x80] sm:$0xf]  ;;  %v3427_v60 = vld [vmem:[#allocation4 + $0x28] sm:$0xf] }
 0x2bf   :  { %3365 = vrot.lane.b32.xlu0 %v3310_v51, %s5328_s22  ;;  %2901 = vst.msk [vmem:[#allocation5 + $0x18] sm:$0xf] %vm21_vm0, %v2885_v53  ;;  %v3535_v51 = vld [vmem:[#allocation4 + $0x58] sm:$0xf]  ;;  %v3358_v27 = vsel %vm5830_vm12, %v5064_v29, %v3357_v7  ;;  %v3423_v36 = vld [vmem:[#allocation4 + $0x8] sm:$0xf] }
 0x2c0   :  { %2909 = vst.msk [vmem:[#allocation5 + $0x38] sm:$0xf] %vm21_vm0, %v2893_v38  ;;  %v3664_v37 = vshrl.u32 %v3535_v51, 16  ;;  %v3667_v47 = vshll.u32 %v3535_v51, 16  ;;  %v3536_v8 = vld [vmem:[#allocation4 + $0x5c] sm:$0x1] }
 0x2c1   :  { %3375 = vrot.lane.b32.xlu2 %v3330_v16, %s5328_s22  ;;  %v3350_v16 = vsel %vm5830_vm12, %v5062_v26, %v3349_v25  ;;  %v3425_v49 = vld [vmem:[#allocation4 + $0x18] sm:$0xf]  ;;  %v3673_v20 = vshll.u32 %v3536_v8, 16  ;;  %v2894_v56 = vld [vmem:[#allocation4 + $0x88] sm:$0xf] }
 0x2c2   :  { %v3666_v55 = vrot.slane %v3664_v37, 4  ;;  %v3669_v45 = vrot.slane %v3667_v47, 5  ;;  %v3537_v4 = vld [vmem:[#allocation4 + $0x60] sm:$0xf]  ;;  %2910 = vst.msk [vmem:[#allocation5 + $0x3c] sm:$0xf] %vm21_vm0, %v2894_v56 }
 0x2c3   :  { %v3675_v33 = vrot.slane %v3673_v20, 5  ;;  %v4144_v17 = vld [vmem:[#allocation4 + $0x60] sm:$0xf]  ;;  %v2887_v54 = vld [vmem:[#allocation4 + $0x50] sm:$0xf]  ;;  %v3678_v61 = vshrl.u32 %v3537_v4, 16 }
 0x2c4   :  { %v3670_v10 = vor.u32 %v3669_v45, %v3666_v55  ;;  %2903 = vst.msk [vmem:[#allocation5 + $0x20] sm:$0xf] %vm21_vm0, %v2887_v54  ;;  %v3681_v24 = vshll.u32 %v3537_v4, 16  ;;  %v4273_v22 = vshrl.u32 %v4144_v17, 16  ;;  %v3858_v31 = vld [vmem:[#allocation4 + $0x64] sm:$0x1] }
 0x2c5   :  { %3367 = vrot.lane.b32.xlu1 %v3314_v59, %s5328_s22  ;;  %v3430_v59 = vld [vmem:[#allocation4 + $0x40] sm:$0xf]  ;;  %v3680_v32 = vrot.slane %v3678_v61, 4  ;;  %v3429_v44 = vld [vmem:[#allocation4 + $0x38] sm:$0xf] }
 0x2c6   :  { %v3671_v14 = vrot.slane %v3670_v10, 4  ;;  %v4275_v62 = vrot.slane %v4273_v22, 4  ;;  %v3538_v48 = vld [vmem:[#allocation4 + $0x64] sm:$0x1]  ;;  %v3431_v52 = vld [vmem:[#allocation4 + $0x58] sm:$0xf] }
 0x2c7   :  { %3371 = vrot.lane.b32.xlu0 %v3322_v15, %s5328_s22  ;;  %v3426_v15 = vld [vmem:[#allocation4 + $0x20] sm:$0xf]  ;;  %v4145_v28 = vld [vmem:[#allocation4 + $0x64] sm:$0x1]  ;;  %v4146_v11 = vld [vmem:[#allocation4 + $0x68] sm:$0xf] }
 0x2c8   :  { %v3676_v21 = vsel %vm5525_vm8, %v3671_v14, %v3675_v33  ;;  %v3855_v25 = vld [vmem:[#allocation4 + $0x58] sm:$0xe]  ;;  %v4287_v7 = vshrl.u32 %v4146_v11, 16  ;;  %v3519_v55 = vld [vmem:[#allocation4 + $0x8] sm:$0xf] }
 0x2c9   :  { %3381 = vrot.lane.b32.xlu2 %v3342_v5, %s5328_s22  ;;  %v3168_v12 = vpop.permute.xlu2 %3167  ;;  %v3428_v5 = vld [vmem:[#allocation4 + $0x30] sm:$0xf]  ;;  %v5073_v38 = vrot.slane %v3855_v25, 9  ;;  %v4147_v10 = vld [vmem:[#allocation4 + $0x6c] sm:$0x1]  ;;  %v3555_v4 = vshll.u32 %v3519_v55, 16 }
 0x2ca   :  { %3215 = vst.msk [vmem:[#allocation5] sm:$0xf] %vm787_vm13, %v3168_v12  ;;  %v4276_v12 = vshll.u32 %v4144_v17, 16  ;;  %v4289_v37 = vrot.slane %v4287_v7, 4  ;;  %v4040_v20 = vld [vmem:[#allocation4 + $0x60] sm:$0xf] }
 0x2cb   :  { %v3839_v14 = vld [vmem:[#allocation4 + $0x8] sm:$0xe]  ;;  %v4296_v33 = vshll.u32 %v4147_v10, 16  ;;  %v3840_v17 = vld [vmem:[#allocation4 + $0xc] sm:$0x1] }
 0x2cc   :  { %v4278_v9 = vrot.slane %v4276_v12, 5  ;;  %v3521_v54 = vld [vmem:[#allocation4 + $0x10] sm:$0xf]  ;;  %v4464_v22 = vld [vmem:[#allocation4 + $0x60] sm:$0xe] }
 0x2cd   :  { %3373 = vrot.lane.b32.xlu1 %v3326_v30, %s5328_s22  ;;  %v3857_v30 = vld [vmem:[#allocation4 + $0x60] sm:$0xe]  ;;  %v4465_v12 = vld [vmem:[#allocation4 + $0x64] sm:$0x1] }
 0x2ce   :  { %v5074_v42 = vrot.slane %v3857_v30, 9  ;;  %v4279_v57 = vor.u32 %v4278_v9, %v4275_v62  ;;  %v3520_v62 = vld [vmem:[#allocation4 + $0xc] sm:$0x1] }
 0x2cf   :  { %3377 = vrot.lane.b32.xlu0 %v3334_v43, %s5328_s22  ;;  %v3941_v43 = vrot.slane %v3858_v31, 5  ;;  %v5065_v31 = vrot.slane %v3839_v14, 9 }
 0x2d0   :  { %v3170_v41 = vpop.permute.xlu0 %3169  ;;  %v4280_v46 = vrot.slane %v4279_v57, 4 }
 0x2d1   :  { %3216 = vst.msk [vmem:[#allocation5 + $0x4] sm:$0xf] %vm787_vm13, %v3170_v41  ;;  %3387 = vrot.lane.b32.xlu2 %v3354_v2, %s5328_s22  ;;  %v3174_v35 = vpop.permute.xlu2 %3173  ;;  %v3683_v41 = vrot.slane %v3681_v24, 5  ;;  %v3942_v34 = vsel %vm5830_vm12, %v5074_v42, %v3941_v43  ;;  %v3569_v42 = vshll.u32 %v3521_v54, 16  ;;  %v4298_v43 = vrot.slane %v4296_v33, 5 }
 0x2d2   :  { %3218 = vst.msk [vmem:[#allocation5 + $0xc] sm:$0xf] %vm787_vm13, %v3174_v35  ;;  %v3687_v35 = vshll.u32 %v3538_v48, 16 }
 0x2d3   :  { %v3684_v2 = vor.u32 %v3683_v41, %v3680_v32  ;;  %v3905_v41 = vrot.slane %v3840_v17, 5 }
 0x2d4   :  { %v3689_v26 = vrot.slane %v3687_v35, 5  ;;  %v3571_v35 = vrot.slane %v3569_v42, 5 }
 0x2d5   :  { %3379 = vrot.lane.b32.xlu1 %v3338_v19, %s5328_s22  ;;  %v4282_v19 = vshll.u32 %v4145_v28, 16  ;;  %v3685_v58 = vrot.slane %v3684_v2, 4  ;;  %v5089_v2 = vrot.slane %v4464_v22, 9  ;;  %v4546_v28 = vrot.slane %v4465_v12, 5  ;;  %v3539_v12 = vld [vmem:[#allocation4 + $0x68] sm:$0xf] }
 0x2d7   :  { %3383 = vrot.lane.b32.xlu0 %v3346_v40, %s5328_s22  ;;  %v3432_v40 = vld [vmem:[#allocation4 + $0x60] sm:$0xf]  ;;  %v4284_v53 = vrot.slane %v4282_v19, 5  ;;  %v3690_v29 = vsel %vm5525_vm8, %v3685_v58, %v3689_v26  ;;  %v3561_v19 = vshll.u32 %v3520_v62, 16  ;;  %v3522_v58 = vld [vmem:[#allocation4 + $0x14] sm:$0x1] }
 0x2d8   :  { %v3575_v26 = vshll.u32 %v3522_v58, 16  ;;  %v3695_v62 = vshll.u32 %v3539_v12, 16 }
 0x2d9   :  { %3457 = vrot.lane.b32.xlu2 %v3424_v23, %s5329_s25  ;;  %v3186_v6 = vpop.permute.xlu2 %3185  ;;  %v3856_v23 = vld [vmem:[#allocation4 + $0x5c] sm:$0x1]  ;;  %v4285_v51 = vsel %vm5525_vm8, %v4280_v46, %v4284_v53  ;;  %v3563_v25 = vrot.slane %v3561_v19, 5 }
 0x2da   :  { %v3172_v18 = vpop.permute.xlu1 %3171  ;;  %3224 = vst.msk [vmem:[#allocation5 + $0x24] sm:$0xf] %vm787_vm13, %v3186_v6  ;;  %v2886_v6 = vld [vmem:[#allocation4 + $0x38] sm:$0xf] }
 0x2db   :  { %3217 = vst.msk [vmem:[#allocation5 + $0x8] sm:$0xf] %vm787_vm13, %v3172_v18  ;;  %v4290_v18 = vshll.u32 %v4146_v11, 16 }
 0x2dc   :  { %2902 = vst.msk [vmem:[#allocation5 + $0x1c] sm:$0xf] %vm21_vm0, %v2886_v6  ;;  %v3841_v6 = vld [vmem:[#allocation4 + $0x10] sm:$0xe]  ;;  %vm4924_vm0 = vcmask 64512  }
 0x2dd   :  { %3385 = vrot.lane.b32.xlu1 %v3350_v16, %s5328_s22  ;;  %v3937_v16 = vrot.slane %v3856_v23, 5  ;;  %v4292_v47 = vrot.slane %v4290_v18, 5  ;;  %v4033_v18 = vld [vmem:[#allocation4 + $0x18] sm:$0xf] }
 0x2df   :  { %3389 = vrot.lane.b32.xlu0 %v3358_v27, %s5328_s22  ;;  %v4466_v27 = vld [vmem:[#allocation4 + $0x68] sm:$0xe]  ;;  %v3938_v45 = vsel %vm5830_vm12, %v5073_v38, %v3937_v16  ;;  %v4293_v56 = vor.u32 %v4292_v47, %v4289_v37  ;;  %v3842_v38 = vld [vmem:[#allocation4 + $0x14] sm:$0x1]  ;;  %v4130_v37 = vld [vmem:[#allocation4 + $0x18] sm:$0xf] }
 0x2e0   :  { %v5066_v47 = vrot.slane %v3841_v6, 9 }
 0x2e1   :  { %3463 = vrot.lane.b32.xlu2 %v3427_v60, %s5329_s25  ;;  %v4467_v60 = vld [vmem:[#allocation4 + $0x6c] sm:$0x1]  ;;  %v4294_v61 = vrot.slane %v4293_v56, 4  ;;  %v4178_v56 = vshll.u32 %v4130_v37, 16 }
 0x2e3   :  { %v4299_v9 = vsel %vm5525_vm8, %v4294_v61, %v4298_v43  ;;  %v4131_v61 = vld [vmem:[#allocation4 + $0x1c] sm:$0x1]  ;;  %v3692_v43 = vshrl.u32 %v3539_v12, 16 }
 0x2e5   :  { %3455 = vrot.lane.b32.xlu1 %v3423_v36, %s5329_s25 }
 0x2e7   :  { %3459 = vrot.lane.b32.xlu0 %v3425_v49, %s5329_s25  ;;  %v5090_v49 = vrot.slane %v4466_v27, 9  ;;  %v4448_v27 = vld [vmem:[#allocation4 + $0x10] sm:$0xe] }
 0x2e9   :  { %3469 = vrot.lane.b32.xlu2 %v3430_v59, %s5329_s25  ;;  %v3192_v39 = vpop.permute.xlu2 %3191  ;;  %v4550_v59 = vrot.slane %v4467_v60, 5  ;;  %v4449_v60 = vld [vmem:[#allocation4 + $0x14] sm:$0x1] }
 0x2ea   :  { %3227 = vst.msk [vmem:[#allocation5 + $0x30] sm:$0xf] %vm787_vm13, %v3192_v39  ;;  %v3552_v39 = vshrl.u32 %v3519_v55, 16  ;;  %v4514_v10 = vrot.slane %v4449_v60, 5 }
 0x2ec   :  { %v3554_v24 = vrot.slane %v3552_v39, 4  ;;  %v4129_v39 = vld [vmem:[#allocation4 + $0x14] sm:$0x1] }
 0x2ed   :  { %3461 = vrot.lane.b32.xlu1 %v3426_v15, %s5329_s25  ;;  %v4551_v15 = vsel %vm5830_vm12, %v5090_v49, %v4550_v59  ;;  %v5081_v49 = vrot.slane %v4448_v27, 9 }
 0x2ef   :  { %3465 = vrot.lane.b32.xlu0 %v3428_v5, %s5329_s25  ;;  %v4041_v5 = vld [vmem:[#allocation4 + $0x68] sm:$0xf]  ;;  %v4515_v33 = vsel %vm5830_vm12, %v5081_v49, %v4514_v10  ;;  %v3525_v10 = vld [vmem:[#allocation4 + $0x20] sm:$0xf] }
 0x2f1   :  { %3791 = vrot.lane.b32.xlu2 %v3676_v21, %s5330_s28  ;;  %v3557_v21 = vrot.slane %v3555_v4, 5 }
 0x2f3   :  { %v3558_v48 = vor.u32 %v3557_v21, %v3554_v24 }
 0x2f5   :  { %3467 = vrot.lane.b32.xlu1 %v3429_v44, %s5329_s25  ;;  %v3566_v44 = vshrl.u32 %v3521_v54, 16  ;;  %v4180_v54 = vrot.slane %v4178_v56, 5  ;;  %v4468_v56 = vld [vmem:[#allocation4 + $0x70] sm:$0xe] }
 0x2f7   :  { %3471 = vrot.lane.b32.xlu0 %v3431_v52, %s5329_s25  ;;  %v3568_v57 = vrot.slane %v3566_v44, 4  ;;  %v3541_v44 = vld [vmem:[#allocation4 + $0x70] sm:$0xf] }
 0x2f8   :  { %v3176_v63 = vpop.permute.xlu0 %3175  ;;  %v3706_v19 = vshrl.u32 %v3541_v44, 16  ;;  %v3709_v58 = vshll.u32 %v3541_v44, 16 }
 0x2f9   :  { %3985 = vrot.lane.b32.xlu2 %v3942_v34, %s5331_s29  ;;  %3219 = vst.msk [vmem:[#allocation5 + $0x10] sm:$0xf] %vm787_vm13, %v3176_v63  ;;  %v3906_v34 = vsel %vm5830_vm12, %v5065_v31, %v3905_v41  ;;  %v4547_v63 = vsel %vm5830_vm12, %v5089_v2, %v4546_v28  ;;  %v3572_v46 = vor.u32 %v3571_v35, %v3568_v57  ;;  %v3859_v57 = vld [vmem:[#allocation4 + $0x68] sm:$0xe]  ;;  %v3860_v35 = vld [vmem:[#allocation4 + $0x6c] sm:$0x1] }
 0x2fb   :  { %v3180_v0 = vpop.permute.xlu2 %3179  ;;  %v3573_v16 = vrot.slane %v3572_v46, 4  ;;  %v3697_v46 = vrot.slane %v3695_v62, 5 }
 0x2fc   :  { %3221 = vst.msk [vmem:[#allocation5 + $0x18] sm:$0xf] %vm787_vm13, %v3180_v0  ;;  %v3559_v0 = vrot.slane %v3558_v48, 4  ;;  %v4450_v48 = vld [vmem:[#allocation4 + $0x18] sm:$0xe] }
 0x2fd   :  { %3473 = vrot.lane.b32.xlu1 %v3432_v40, %s5329_s25  ;;  %v4128_v40 = vld [vmem:[#allocation4 + $0x10] sm:$0xf] }
 0x2fe   :  { %v3564_v23 = vsel %vm5525_vm8, %v3559_v0, %v3563_v25  ;;  %v4161_v53 = vshrl.u32 %v4128_v40, 16 }
 0x2ff   :  { %3793 = vrot.lane.b32.xlu0 %v3690_v29, %s5330_s28  ;;  %v4164_v29 = vshll.u32 %v4128_v40, 16 }
 0x300   :  { %v3188_v8 = vpop.permute.xlu0 %3187  ;;  %v4163_v55 = vrot.slane %v4161_v53, 4  ;;  %v3945_v53 = vrot.slane %v3860_v35, 5 }
 0x301   :  { %4400 = vrot.lane.b32.xlu2 %v4285_v51, %s5333_s6  ;;  %3225 = vst.msk [vmem:[#allocation5 + $0x28] sm:$0xf] %vm787_vm13, %v3188_v8  ;;  %v3577_v51 = vrot.slane %v3575_v26, 5 }
 0x303   :  { %v3364_v36 = vpop.permute.xlu2 %3363  ;;  %v3578_v59 = vsel %vm5525_vm8, %v3573_v16, %v3577_v51 }
 0x304   :  { %3409 = vst.msk [vmem:[#allocation5 + $0x8] sm:$0xf] %vm983_vm14, %v3364_v36  ;;  %v3909_v36 = vrot.slane %v3842_v38, 5 }
 0x305   :  { %3983 = vrot.lane.b32.xlu1 %v3938_v45, %s5331_s29  ;;  %v4166_v45 = vrot.slane %v4164_v29, 5  ;;  %v3540_v29 = vld [vmem:[#allocation4 + $0x6c] sm:$0x1] }
 0x306   :  { %v3910_v4 = vsel %vm5830_vm12, %v5066_v47, %v3909_v36  ;;  %v3701_v27 = vshll.u32 %v3540_v29, 16  ;;  %v4151_v29 = vld [vmem:[#allocation4 + $0x7c] sm:$0x1] }
 0x307   :  { %4080 = vrot.lane.b32.xlu0 %v4040_v20, %s5332_s30  ;;  %v4175_v20 = vshrl.u32 %v4130_v37, 16  ;;  %v3542_v37 = vld [vmem:[#allocation4 + $0x74] sm:$0x1] }
 0x308   :  { %v3194_v32 = vpop.permute.xlu0 %3193  ;;  %v3703_v49 = vrot.slane %v3701_v27, 5  ;;  %v4134_v27 = vld [vmem:[#allocation4 + $0x28] sm:$0xf] }
 0x309   :  { %4594 = vrot.lane.b32.xlu2 %v4551_v15, %s5334_s7  ;;  %3228 = vst.msk [vmem:[#allocation5 + $0x34] sm:$0xf] %vm787_vm13, %v3194_v32  ;;  %v4167_v15 = vor.u32 %v4166_v45, %v4163_v55  ;;  %v4177_v17 = vrot.slane %v4175_v20, 4  ;;  %v4184_v32 = vshll.u32 %v4131_v61, 16  ;;  %v4148_v45 = vld [vmem:[#allocation4 + $0x70] sm:$0xf] }
 0x30a   :  { %v3594_v61 = vshrl.u32 %v3525_v10, 16 }
 0x30b   :  { %v3198_v30 = vpop.permute.xlu2 %3197  ;;  %v4168_v21 = vrot.slane %v4167_v15, 4  ;;  %v4181_v31 = vor.u32 %v4180_v54, %v4177_v17  ;;  %v4186_v28 = vrot.slane %v4184_v32, 5  ;;  %v4304_v15 = vshll.u32 %v4148_v45, 16  ;;  %v3861_v17 = vld [vmem:[#allocation4 + $0x70] sm:$0xe] }
 0x30c   :  { %3230 = vst.msk [vmem:[#allocation5 + $0x3c] sm:$0xf] %vm787_vm13, %v3198_v30  ;;  %v4032_v30 = vld [vmem:[#allocation4 + $0x10] sm:$0xf]  ;;  %v3862_v54 = vld [vmem:[#allocation4 + $0x74] sm:$0x1] }
 0x30d   :  { %4082 = vrot.lane.b32.xlu1 %v4041_v5, %s5332_s30  ;;  %v4170_v5 = vshll.u32 %v4129_v39, 16  ;;  %v4182_v2 = vrot.slane %v4181_v31, 4  ;;  %v3949_v31 = vrot.slane %v3862_v54, 5 }
 0x30f   :  { %v3184_v52 = vpop.permute.xlu1 %3183  ;;  %4402 = vrot.lane.b32.xlu0 %v4299_v9, %s5333_s6  ;;  %v4172_v41 = vrot.slane %v4170_v5, 5  ;;  %v4187_v25 = vsel %vm5525_vm8, %v4182_v2, %v4186_v28  ;;  %v4150_v5 = vld [vmem:[#allocation4 + $0x78] sm:$0xf]  ;;  %v4149_v28 = vld [vmem:[#allocation4 + $0x74] sm:$0x1] }
 0x310   :  { %3223 = vst.msk [vmem:[#allocation5 + $0x20] sm:$0xf] %vm787_vm13, %v3184_v52  ;;  %v4451_v52 = vld [vmem:[#allocation4 + $0x1c] sm:$0x1]  ;;  %v4318_v62 = vshll.u32 %v4150_v5, 16 }
 0x311   :  { %3967 = vrot.lane.b32.xlu2 %v3906_v34, %s5331_s29  ;;  %v4173_v42 = vsel %vm5525_vm8, %v4168_v21, %v4172_v41  ;;  %v3434_v34 = vld [vmem:[#allocation4 + $0x70] sm:$0xf]  ;;  %v4518_v40 = vrot.slane %v4451_v52, 5  ;;  %v4306_v41 = vrot.slane %v4304_v15, 5  ;;  %v3596_v52 = vrot.slane %v3594_v61, 4 }
 0x313   :  { %v3370_v11 = vpop.permute.xlu2 %3369 }
 0x315   :  { %4592 = vrot.lane.b32.xlu1 %v4547_v63, %s5334_s7  ;;  %v3694_v63 = vrot.slane %v3692_v43, 4  ;;  %v4315_v43 = vshrl.u32 %v4150_v5, 16 }
 0x317   :  { %v3178_v7 = vpop.permute.xlu1 %3177  ;;  %3775 = vrot.lane.b32.xlu0 %v3564_v23, %s5330_s28  ;;  %v5075_v23 = vrot.slane %v3859_v57, 9  ;;  %v3698_v38 = vor.u32 %v3697_v46, %v3694_v63  ;;  %v3523_v63 = vld [vmem:[#allocation4 + $0x18] sm:$0xf]  ;;  %v4310_v46 = vshll.u32 %v4149_v28, 16 }
 0x318   :  { %3220 = vst.msk [vmem:[#allocation5 + $0x14] sm:$0xf] %vm787_vm13, %v3178_v7  ;;  %v3708_v7 = vrot.slane %v3706_v19, 4  ;;  %v4317_v19 = vrot.slane %v4315_v43, 4  ;;  %v4132_v43 = vld [vmem:[#allocation4 + $0x20] sm:$0xf] }
 0x319   :  { %3412 = vst.msk [vmem:[#allocation5 + $0x14] sm:$0xf] %vm983_vm14, %v3370_v11  ;;  %4066 = vrot.lane.b32.xlu2 %v4033_v18, %s5332_s30  ;;  %v5082_v11 = vrot.slane %v4450_v48, 9  ;;  %v3711_v18 = vrot.slane %v3709_v58, 5  ;;  %v3946_v51 = vsel %vm5830_vm12, %v5075_v23, %v3945_v53  ;;  %v3699_v36 = vrot.slane %v3698_v38, 4 }
 0x31a   :  { %v4320_v58 = vrot.slane %v4318_v62, 5  ;;  %v4042_v53 = vld [vmem:[#allocation4 + $0x70] sm:$0xf] }
 0x31b   :  { %v3376_v8 = vpop.permute.xlu2 %3375  ;;  %v4519_v6 = vsel %vm5830_vm12, %v5082_v11, %v4518_v40  ;;  %v3712_v47 = vor.u32 %v3711_v18, %v3708_v7  ;;  %v3704_v39 = vsel %vm5525_vm8, %v3699_v36, %v3703_v49  ;;  %v4471_v49 = vld [vmem:[#allocation4 + $0x7c] sm:$0x1] }
 0x31c   :  { %3415 = vst.msk [vmem:[#allocation5 + $0x20] sm:$0xf] %vm983_vm14, %v3376_v8  ;;  %v3433_v8 = vld [vmem:[#allocation4 + $0x68] sm:$0xf]  ;;  %v4321_v7 = vor.u32 %v4320_v58, %v4317_v19  ;;  %v3846_v19 = vld [vmem:[#allocation4 + $0x24] sm:$0x1] }
 0x31d   :  { %3777 = vrot.lane.b32.xlu1 %v3578_v59, %s5330_s28  ;;  %v3715_v59 = vshll.u32 %v3542_v37, 16  ;;  %v3713_v20 = vrot.slane %v3712_v47, 4 }
 0x31f   :  { %v3190_v14 = vpop.permute.xlu1 %3189  ;;  %3969 = vrot.lane.b32.xlu0 %v3910_v4, %s5331_s29  ;;  %v4301_v4 = vshrl.u32 %v4148_v45, 16  ;;  %v3717_v21 = vrot.slane %v3715_v59, 5 }
 0x320   :  { %3226 = vst.msk [vmem:[#allocation5 + $0x2c] sm:$0xf] %vm787_vm13, %v3190_v14 }
 0x321   :  { %4576 = vrot.lane.b32.xlu2 %v4515_v33, %s5334_s7  ;;  %v3182_v24 = vpop.permute.xlu0 %3181  ;;  %v4043_v33 = vld [vmem:[#allocation4 + $0x78] sm:$0xf]  ;;  %v4303_v32 = vrot.slane %v4301_v4, 4 }
 0x322   :  { %3222 = vst.msk [vmem:[#allocation5 + $0x1c] sm:$0xf] %vm787_vm13, %v3182_v24  ;;  %v3597_v24 = vshll.u32 %v3525_v10, 16 }
 0x323   :  { %v3382_v22 = vpop.permute.xlu2 %3381  ;;  %v4307_v57 = vor.u32 %v4306_v41, %v4303_v32  ;;  %v3843_v32 = vld [vmem:[#allocation4 + $0x18] sm:$0xe]  ;;  %v3844_v41 = vld [vmem:[#allocation4 + $0x1c] sm:$0x1] }
 0x324   :  { %3418 = vst.msk [vmem:[#allocation5 + $0x2c] sm:$0xf] %vm983_vm14, %v3382_v22  ;;  %v4469_v22 = vld [vmem:[#allocation4 + $0x74] sm:$0x1]  ;;  %v3599_v2 = vrot.slane %v3597_v24, 5 }
 0x325   :  { %4064 = vrot.lane.b32.xlu1 %v4032_v30, %s5332_s30  ;;  %v5076_v30 = vrot.slane %v3861_v17, 9  ;;  %v4554_v48 = vrot.slane %v4469_v22, 5  ;;  %v4308_v23 = vrot.slane %v4307_v57, 4  ;;  %v4034_v22 = vld [vmem:[#allocation4 + $0x20] sm:$0xf] }
 0x326   :  { %v3600_v40 = vor.u32 %v3599_v2, %v3596_v52  ;;  %v5067_v52 = vrot.slane %v3843_v32, 9  ;;  %v3913_v2 = vrot.slane %v3844_v41, 5 }
 0x327   :  { %v3196_v9 = vpop.permute.xlu1 %3195  ;;  %4384 = vrot.lane.b32.xlu0 %v4173_v42, %s5333_s6  ;;  %v5091_v42 = vrot.slane %v4468_v56, 9  ;;  %v4206_v56 = vshll.u32 %v4134_v27, 16 }
 0x328   :  { %3229 = vst.msk [vmem:[#allocation5 + $0x38] sm:$0xf] %vm787_vm13, %v3196_v9  ;;  %v3718_v9 = vsel %vm5525_vm8, %v3713_v20, %v3717_v21  ;;  %v3601_v38 = vrot.slane %v3600_v40, 4  ;;  %v4203_v20 = vshrl.u32 %v4134_v27, 16 }
 0x329   :  { %3477 = vrot.lane.b32.xlu2 %v3434_v34, %s5329_s25  ;;  %v3360_v0 = vpop.permute.xlu0 %3359  ;;  %v3950_v34 = vsel %vm5830_vm12, %v5076_v30, %v3949_v31  ;;  %v4555_v11 = vsel %vm5830_vm12, %v5091_v42, %v4554_v48  ;;  %v4208_v24 = vrot.slane %v4206_v56, 5  ;;  %v4135_v31 = vld [vmem:[#allocation4 + $0x2c] sm:$0x1] }
 0x32a   :  { %3407 = vst.msk [vmem:[#allocation5] sm:$0xf] %vm983_vm14, %v3360_v0  ;;  %v3526_v0 = vld [vmem:[#allocation4 + $0x24] sm:$0x1]  ;;  %v4205_v61 = vrot.slane %v4203_v20, 4  ;;  %v4212_v48 = vshll.u32 %v4135_v31, 16 }
 0x32b   :  { %v3388_v26 = vpop.permute.xlu2 %3387  ;;  %v3435_v20 = vld [vmem:[#allocation4 + $0x78] sm:$0xf] }
 0x32c   :  { %3421 = vst.msk [vmem:[#allocation5 + $0x38] sm:$0xf] %vm983_vm14, %v3388_v26  ;;  %v4209_v42 = vor.u32 %v4208_v24, %v4205_v61  ;;  %v4214_v40 = vrot.slane %v4212_v48, 5 }
 0x32d   :  { %4386 = vrot.lane.b32.xlu1 %v4187_v25, %s5333_s6  ;;  %v3603_v25 = vshll.u32 %v3526_v0, 16  ;;  %v4192_v0 = vshll.u32 %v4132_v43, 16 }
 0x32e   :  { %v4210_v58 = vrot.slane %v4209_v42, 4 }
 0x32f   :  { %v3362_v16 = vpop.permute.xlu1 %3361  ;;  %4578 = vrot.lane.b32.xlu0 %v4519_v6, %s5334_s7  ;;  %v3580_v6 = vshrl.u32 %v3523_v63, 16  ;;  %v3605_v37 = vrot.slane %v3603_v25, 5  ;;  %v3917_v25 = vrot.slane %v3846_v19, 5 }
 0x330   :  { %3408 = vst.msk [vmem:[#allocation5 + $0x4] sm:$0xf] %vm983_vm14, %v3362_v16  ;;  %v3583_v16 = vshll.u32 %v3523_v63, 16  ;;  %v3914_v63 = vsel %vm5830_vm12, %v5067_v52, %v3913_v2 }
 0x331   :  { %3987 = vrot.lane.b32.xlu2 %v3946_v51, %s5331_s29  ;;  %v3366_v60 = vpop.permute.xlu0 %3365  ;;  %v4312_v51 = vrot.slane %v4310_v46, 5  ;;  %v3582_v45 = vrot.slane %v3580_v6, 4  ;;  %v3606_v59 = vsel %vm5525_vm8, %v3601_v38, %v3605_v37  ;;  %v4133_v38 = vld [vmem:[#allocation4 + $0x24] sm:$0x1] }
 0x332   :  { %3410 = vst.msk [vmem:[#allocation5 + $0xc] sm:$0xf] %vm983_vm14, %v3366_v60  ;;  %v4324_v60 = vshll.u32 %v4151_v29, 16  ;;  %v3585_v10 = vrot.slane %v3583_v16, 5  ;;  %v4194_v29 = vrot.slane %v4192_v0, 5 }
 0x333   :  { %v3458_v55 = vpop.permute.xlu2 %3457  ;;  %v4313_v47 = vsel %vm5525_vm8, %v4308_v23, %v4312_v51 }
 0x334   :  { %3504 = vst.msk [vmem:[#allocation5 + $0x4] sm:$0xf] %vm1080_vm15, %v3458_v55  ;;  %v4322_v55 = vrot.slane %v4321_v7, 4  ;;  %v4326_v4 = vrot.slane %v4324_v60, 5  ;;  %v3586_v5 = vor.u32 %v3585_v10, %v3582_v45 }
 0x335   :  { %3475 = vrot.lane.b32.xlu1 %v3433_v8, %s5329_s25  ;;  %v4470_v8 = vld [vmem:[#allocation4 + $0x78] sm:$0xe] }
 0x336   :  { %v5092_v15 = vrot.slane %v4470_v8, 9  ;;  %v4327_v54 = vsel %vm5525_vm8, %v4322_v55, %v4326_v4  ;;  %v4035_v55 = vld [vmem:[#allocation4 + $0x28] sm:$0xf]  ;;  %v3543_v8 = vld [vmem:[#allocation4 + $0x78] sm:$0xf] }
 0x337   :  { %v3368_v14 = vpop.permute.xlu1 %3367  ;;  %3795 = vrot.lane.b32.xlu0 %v3704_v39, %s5330_s28 }
 0x338   :  { %3411 = vst.msk [vmem:[#allocation5 + $0x10] sm:$0xf] %vm983_vm14, %v3368_v14  ;;  %v4558_v14 = vrot.slane %v4471_v49, 5  ;;  %v4452_v49 = vld [vmem:[#allocation4 + $0x20] sm:$0xe] }
 0x339   :  { %4086 = vrot.lane.b32.xlu2 %v4043_v33, %s5332_s30  ;;  %v3372_v12 = vpop.permute.xlu0 %3371  ;;  %v3524_v33 = vld [vmem:[#allocation4 + $0x1c] sm:$0x1] }
 0x33a   :  { %3413 = vst.msk [vmem:[#allocation5 + $0x18] sm:$0xf] %vm983_vm14, %v3372_v12  ;;  %v3589_v21 = vshll.u32 %v3524_v33, 16  ;;  %v4559_v12 = vsel %vm5830_vm12, %v5092_v15, %v4558_v14  ;;  %v3720_v14 = vshrl.u32 %v3543_v8, 16  ;;  %v3723_v33 = vshll.u32 %v3543_v8, 16 }
 0x33b   :  { %v3464_v44 = vpop.permute.xlu2 %3463 }
 0x33c   :  { %3507 = vst.msk [vmem:[#allocation5 + $0x10] sm:$0xf] %vm1080_vm15, %v3464_v44  ;;  %v3587_v44 = vrot.slane %v3586_v5, 4  ;;  %v3722_v32 = vrot.slane %v3720_v14, 4  ;;  %v3725_v41 = vrot.slane %v3723_v33, 5 }
 0x33d   :  { %3797 = vrot.lane.b32.xlu1 %v3718_v9, %s5330_s28  ;;  %v3591_v9 = vrot.slane %v3589_v21, 5  ;;  %v4454_v21 = vld [vmem:[#allocation4 + $0x28] sm:$0xe] }
 0x33f   :  { %v3374_v35 = vpop.permute.xlu1 %3373  ;;  %3989 = vrot.lane.b32.xlu0 %v3950_v34, %s5331_s29  ;;  %v4189_v34 = vshrl.u32 %v4132_v43, 16  ;;  %v3592_v57 = vsel %vm5525_vm8, %v3587_v44, %v3591_v9  ;;  %v5084_v43 = vrot.slane %v4454_v21, 9  ;;  %v3528_v21 = vld [vmem:[#allocation4 + $0x2c] sm:$0x1] }
 0x340   :  { %3414 = vst.msk [vmem:[#allocation5 + $0x1c] sm:$0xf] %vm983_vm14, %v3374_v35  ;;  %v3845_v35 = vld [vmem:[#allocation4 + $0x20] sm:$0xe] }
 0x341   :  { %4596 = vrot.lane.b32.xlu2 %v4555_v11, %s5334_s7  ;;  %v3378_v26 = vpop.permute.xlu0 %3377  ;;  %v3545_v11 = vld [vmem:[#allocation4 + $0x80] sm:$0xf]  ;;  %v4191_v23 = vrot.slane %v4189_v34, 4  ;;  %v3726_v34 = vor.u32 %v3725_v41, %v3722_v32  ;;  %v4153_v41 = vld [vmem:[#allocation4 + $0x84] sm:$0x1] }
 0x342   :  { %3416 = vst.msk [vmem:[#allocation5 + $0x24] sm:$0xf] %vm983_vm14, %v3378_v26  ;;  %v5068_v26 = vrot.slane %v3845_v35, 9  ;;  %v3734_v7 = vshrl.u32 %v3545_v11, 16 }
 0x343   :  { %v3470_v18 = vpop.permute.xlu2 %3469  ;;  %v4195_v27 = vor.u32 %v4194_v29, %v4191_v23  ;;  %v3863_v29 = vld [vmem:[#allocation4 + $0x78] sm:$0xe] }
 0x344   :  { %3510 = vst.msk [vmem:[#allocation5 + $0x1c] sm:$0xf] %vm1080_vm15, %v3470_v18  ;;  %v3737_v18 = vshll.u32 %v3545_v11, 16  ;;  %v3918_v51 = vsel %vm5830_vm12, %v5068_v26, %v3917_v25  ;;  %v3736_v60 = vrot.slane %v3734_v7, 4  ;;  %v3527_v11 = vld [vmem:[#allocation4 + $0x28] sm:$0xf] }
 0x345   :  { %4084 = vrot.lane.b32.xlu1 %v4042_v53, %s5332_s30  ;;  %v4215_v53 = vsel %vm5525_vm8, %v4210_v58, %v4214_v40  ;;  %v4196_v10 = vrot.slane %v4195_v27, 4  ;;  %v3727_v40 = vrot.slane %v3726_v34, 4  ;;  %v4152_v26 = vld [vmem:[#allocation4 + $0x80] sm:$0xf]  ;;  %v3864_v7 = vld [vmem:[#allocation4 + $0x7c] sm:$0x1] }
 0x346   :  { %v3739_v37 = vrot.slane %v3737_v18, 5  ;;  %v3436_v25 = vld [vmem:[#allocation4 + $0x80] sm:$0xf]  ;;  %v3608_v18 = vshrl.u32 %v3527_v11, 16  ;;  %v4332_v8 = vshll.u32 %v4152_v26, 16 }
 0x347   :  { %v3380_v36 = vpop.permute.xlu1 %3379  ;;  %4404 = vrot.lane.b32.xlu0 %v4313_v47, %s5333_s6  ;;  %v4198_v47 = vshll.u32 %v4133_v38, 16  ;;  %v4664_v38 = vld [vmem:[%s7187_s3 + $0x20] sm:$0xf]  ;;  %v4045_v34 = vld [vmem:[#allocation4 + $0x88] sm:$0xf] }
 0x348   :  { %3417 = vst.msk [vmem:[#allocation5 + $0x28] sm:$0xf] %vm983_vm14, %v3380_v36  ;;  %v3546_v36 = vld [vmem:[#allocation4 + $0x84] sm:$0x1]  ;;  %v3740_v56 = vor.u32 %v3739_v37, %v3736_v60  ;;  %v4726_v27 = vunpack.c.l.b16 %v4664_v38 }
 0x349   :  { %3781 = vrot.lane.b32.xlu2 %v3606_v59, %s5330_s28  ;;  %v3384_v39 = vpop.permute.xlu0 %3383  ;;  %v4453_v59 = vld [vmem:[#allocation4 + $0x24] sm:$0x1]  ;;  %v3743_v4 = vshll.u32 %v3546_v36, 16  ;;  %v3953_v36 = vrot.slane %v3864_v7, 5  ;;  %v3850_v7 = vld [vmem:[#allocation4 + $0x34] sm:$0x1] }
 0x34a   :  { %3419 = vst.msk [vmem:[#allocation5 + $0x30] sm:$0xf] %vm983_vm14, %v3384_v39  ;;  %v4200_v39 = vrot.slane %v4198_v47, 5  ;;  %v4522_v5 = vrot.slane %v4453_v59, 5  ;;  %v5077_v47 = vrot.slane %v3863_v29, 9  ;;  %v5173_v38 = vld [vmem:[%s7187_s3] sm:$0xff] }
 0x34b   :  { %v6745_v17 = vpop.permute.xlu2 %3791  ;;  %v3745_v31 = vrot.slane %v3743_v4, 5  ;;  %v3866_v4 = vld [vmem:[#allocation4 + $0x84] sm:$0x1]  ;;  %v3849_v29 = vld [vmem:[#allocation4 + $0x30] sm:$0xe] }
 0x34c   :  { %v4201_v24 = vsel %vm5525_vm8, %v4196_v10, %v4200_v39  ;;  %v3865_v39 = vld [vmem:[#allocation4 + $0x80] sm:$0xe]  ;;  %v3954_v33 = vsel %vm5830_vm12, %v5077_v47, %v3953_v36  ;;  %v5070_v36 = vrot.slane %v3849_v29, 9 }
 0x34d   :  { %4406 = vrot.lane.b32.xlu1 %v4327_v54, %s5333_s6  ;;  %v5083_v54 = vrot.slane %v4452_v49, 9  ;;  %v4731_v49 = vpack.c.b16 %v4726_v27, %v4726_v27 }
 0x34f   :  { %v3386_v30 = vpop.permute.xlu1 %3385  ;;  %4598 = vrot.lane.b32.xlu0 %v4559_v12, %s5334_s7  ;;  %v4455_v12 = vld [vmem:[#allocation4 + $0x2c] sm:$0x1]  ;;  %v4523_v44 = vsel %vm5830_vm12, %v5083_v54, %v4522_v5 }
 0x350   :  { %3420 = vst.msk [vmem:[#allocation5 + $0x34] sm:$0xf] %vm983_vm14, %v3386_v30  ;;  %v4154_v30 = vld [vmem:[#allocation4 + $0x88] sm:$0xf] }
 0x351   :  { %4068 = vrot.lane.b32.xlu2 %v4034_v22, %s5332_s30  ;;  %v3390_v62 = vpop.permute.xlu0 %3389  ;;  %v3741_v22 = vrot.slane %v3740_v56, 4  ;;  %v4343_v48 = vshrl.u32 %v4154_v30, 16  ;;  %v4346_v52 = vshll.u32 %v4154_v30, 16 }
 0x352   :  { %3422 = vst.msk [vmem:[#allocation5 + $0x3c] sm:$0xf] %vm983_vm14, %v3390_v62  ;;  %v4526_v62 = vrot.slane %v4455_v12, 5  ;;  %v3957_v12 = vrot.slane %v3866_v4, 5 }
 0x353   :  { %v6756_v28 = vpop.permute.xlu2 %3985  ;;  %v3746_v9 = vsel %vm5525_vm8, %v3741_v22, %v3745_v31  ;;  %v4345_v58 = vrot.slane %v4343_v48, 4  ;;  %v4348_v0 = vrot.slane %v4346_v52, 5  ;;  %v5078_v22 = vrot.slane %v3865_v39, 9 }
 0x354   :  { %v4527_v19 = vsel %vm5830_vm12, %v5084_v43, %v4526_v62 }
 0x355   :  { %3779 = vrot.lane.b32.xlu1 %v3592_v57, %s5330_s28  ;;  %v3544_v57 = vld [vmem:[#allocation4 + $0x7c] sm:$0x1]  ;;  %v3958_v48 = vsel %vm5830_vm12, %v5078_v22, %v3957_v12  ;;  %v4138_v22 = vld [vmem:[#allocation4 + $0x38] sm:$0xf] }
 0x357   :  { %v3456_v46 = vpop.permute.xlu1 %3455  ;;  %3971 = vrot.lane.b32.xlu0 %v3914_v63, %s5331_s29  ;;  %v3729_v63 = vshll.u32 %v3544_v57, 16  ;;  %v4136_v57 = vld [vmem:[#allocation4 + $0x30] sm:$0xf] }
 0x358   :  { %3503 = vst.msk [vmem:[#allocation5] sm:$0xf] %vm1080_vm15, %v3456_v46  ;;  %v4044_v46 = vld [vmem:[#allocation4 + $0x80] sm:$0xf] }
 0x359   :  { %4390 = vrot.lane.b32.xlu2 %v4215_v53, %s5333_s6  ;;  %v3460_v6 = vpop.permute.xlu0 %3459  ;;  %v4155_v53 = vld [vmem:[#allocation4 + $0x8c] sm:$0x1]  ;;  %v3731_v60 = vrot.slane %v3729_v63, 5 }
 0x35a   :  { %3505 = vst.msk [vmem:[#allocation5 + $0x8] sm:$0xf] %vm1080_vm15, %v3460_v6  ;;  %v3611_v6 = vshll.u32 %v3527_v11, 16  ;;  %v4352_v37 = vshll.u32 %v4155_v53, 16 }
 0x35b   :  { %v6769_v16 = vpop.permute.xlu2 %4400  ;;  %v3732_v59 = vsel %vm5525_vm8, %v3727_v40, %v3731_v60 }
 0x35c   :  { %v3613_v56 = vrot.slane %v3611_v6, 5  ;;  %v4354_v14 = vrot.slane %v4352_v37, 5  ;;  %v4474_v37 = vld [vmem:[#allocation4 + $0x88] sm:$0xe] }
 0x35d   :  { %3973 = vrot.lane.b32.xlu1 %v3918_v51, %s5331_s29  ;;  %v5094_v4 = vrot.slane %v4474_v37, 9 }
 0x35f   :  { %v3462_v45 = vpop.permute.xlu1 %3461  ;;  %4070 = vrot.lane.b32.xlu0 %v4035_v55, %s5332_s30 }
 0x360   :  { %3506 = vst.msk [vmem:[#allocation5 + $0xc] sm:$0xf] %vm1080_vm15, %v3462_v45  ;;  %v4329_v45 = vshrl.u32 %v4152_v26, 16 }
 0x361   :  { %3479 = vrot.lane.b32.xlu2 %v3435_v20, %s5329_s25  ;;  %v3466_v15 = vpop.permute.xlu0 %3465  ;;  %v3610_v20 = vrot.slane %v3608_v18, 4 }
 0x362   :  { %3508 = vst.msk [vmem:[#allocation5 + $0x14] sm:$0xf] %vm1080_vm15, %v3466_v15  ;;  %v4761_v15 = vsel %vm2344_vm3, %v4731_v49, 0  ;;  %v4331_v5 = vrot.slane %v4329_v45, 4  ;;  %v3925_v45 = vrot.slane %v3850_v7, 5 }
 0x363   :  { %v6778_v61 = vpop.permute.xlu2 %4594  ;;  %5182 = vmatpush.bf16.msra.mxu3 %v4761_v15  ;;  %4766 = vmatpush.bf16.msra.mxu1 %v4761_v15  ;;  %v3614_v31 = vor.u32 %v3613_v56, %v3610_v20  ;;  %v4137_v15 = vld [vmem:[#allocation4 + $0x34] sm:$0x1]  ;;  %v4139_v7 = vld [vmem:[#allocation4 + $0x3c] sm:$0x1] }
 0x365   :  { %4388 = vrot.lane.b32.xlu1 %v4201_v24, %s5333_s6  ;;  %v4334_v24 = vrot.slane %v4332_v8, 5  ;;  %v3615_v52 = vrot.slane %v3614_v31, 4  ;;  %v3848_v31 = vld [vmem:[#allocation4 + $0x2c] sm:$0x1] }
 0x367   :  { %v3468_v42 = vpop.permute.xlu1 %3467  ;;  %4580 = vrot.lane.b32.xlu0 %v4523_v44, %s5334_s7  ;;  %v3617_v44 = vshll.u32 %v3528_v21, 16  ;;  %v4335_v43 = vor.u32 %v4334_v24, %v4331_v5  ;;  %v4226_v5 = vshll.u32 %v4137_v15, 16 }
 0x368   :  { %3509 = vst.msk [vmem:[#allocation5 + $0x18] sm:$0xf] %vm1080_vm15, %v3468_v42  ;;  %v5175_v42 = vld [vmem:[%s7187_s3 + $0x10] sm:$0xff] }
 0x369   :  { %3801 = vrot.lane.b32.xlu2 %v3746_v9, %s5330_s28  ;;  %v3472_v2 = vpop.permute.xlu0 %3471  ;;  %v3529_v9 = vld [vmem:[#allocation4 + $0x30] sm:$0xf]  ;;  %v4336_v63 = vrot.slane %v4335_v43, 4 }
 0x36a   :  { %3511 = vst.msk [vmem:[#allocation5 + $0x20] sm:$0xf] %vm1080_vm15, %v3472_v2  ;;  %v4338_v2 = vshll.u32 %v4153_v41, 16  ;;  %v3622_v11 = vshrl.u32 %v3529_v9, 16  ;;  %v3625_v40 = vshll.u32 %v3529_v9, 16  ;;  %v4231_v9 = vshrl.u32 %v4138_v22, 16 }
 0x36b   :  { %v6791_v35 = vpop.permute.xlu2 %3967  ;;  %3831 = vst.msk [vmem:[#allocation5 + $0x20] sm:$0xf] %vm1401_vm1, %v6745_v17  ;;  %v4349_v17 = vor.u32 %v4348_v0, %v4345_v58  ;;  %v5174_v58 = vld [vmem:[%s7187_s3 + $0x8] sm:$0xff]  ;;  %v4472_v0 = vld [vmem:[#allocation4 + $0x80] sm:$0xe] }
 0x36c   :  { %v4340_v53 = vrot.slane %v4338_v2, 5  ;;  %v5093_v18 = vrot.slane %v4472_v0, 9  ;;  %v3627_v27 = vrot.slane %v3625_v40, 5  ;;  %v4458_v0 = vld [vmem:[#allocation4 + $0x38] sm:$0xe] }
 0x36d   :  { %4582 = vrot.lane.b32.xlu1 %v4527_v19, %s5334_s7  ;;  %v4350_v10 = vrot.slane %v4349_v17, 4  ;;  %v3619_v19 = vrot.slane %v3617_v44, 5  ;;  %v3547_v44 = vld [vmem:[#allocation4 + $0x88] sm:$0xf] }
 0x36e   :  { %v4341_v60 = vsel %vm5525_vm8, %v4336_v63, %v4340_v53 }
 0x36f   :  { %v3474_v23 = vpop.permute.xlu1 %3473  ;;  %3481 = vrot.lane.b32.xlu0 %v3436_v25, %s5329_s25  ;;  %v4355_v30 = vsel %vm5525_vm8, %v4350_v10, %v4354_v14  ;;  %v3620_v26 = vsel %vm5525_vm8, %v3615_v52, %v3619_v19  ;;  %v4217_v25 = vshrl.u32 %v4136_v57, 16  ;;  %v3530_v10 = vld [vmem:[#allocation4 + $0x34] sm:$0x1]  ;;  %v3926_v14 = vsel %vm5830_vm12, %v5070_v36, %v3925_v45 }
 0x370   :  { %3512 = vst.msk [vmem:[#allocation5 + $0x24] sm:$0xf] %vm1080_vm15, %v3474_v23  ;;  %v4220_v23 = vshll.u32 %v4136_v57, 16  ;;  %v3748_v19 = vshrl.u32 %v3547_v44, 16 }
 0x371   :  { %4088 = vrot.lane.b32.xlu2 %v4044_v46, %s5332_s30  ;;  %v3794_v51 = vpop.permute.xlu0 %3793  ;;  %v4473_v46 = vld [vmem:[#allocation4 + $0x84] sm:$0x1]  ;;  %v4219_v8 = vrot.slane %v4217_v25, 4  ;;  %v5086_v25 = vrot.slane %v4458_v0, 9  ;;  %v4157_v0 = vld [vmem:[#allocation4 + $0x94] sm:$0x1] }
 0x372   :  { %3832 = vst.msk [vmem:[#allocation5 + $0x24] sm:$0xf] %vm1401_vm1, %v3794_v51  ;;  %v4562_v6 = vrot.slane %v4473_v46, 5  ;;  %v3624_v51 = vrot.slane %v3622_v11, 4  ;;  %v4222_v49 = vrot.slane %v4220_v23, 5  ;;  %v3750_v53 = vrot.slane %v3748_v19, 4 }
 0x373   :  { %v6805_v55 = vpop.permute.xlu2 %4066  ;;  %4024 = vst.msk [vmem:[#allocation5 + $0x24] sm:$0xf] %vm1594_vm2, %v6756_v28  ;;  %v5176_v28 = vld [vmem:[%s7187_s3 + $0x18] sm:$0xff] }
 0x374   :  { %5183 = vmatpush.bf16.msra.mxu3 %v5176_v28  ;;  %4767 = vmatpush.bf16.msra.mxu1 %v5176_v28  ;;  %v4563_v20 = vsel %vm5830_vm12, %v5093_v18, %v4562_v6  ;;  %v3628_v56 = vor.u32 %v3627_v27, %v3624_v51  ;;  %v3631_v28 = vshll.u32 %v3530_v10, 16  ;;  %v4459_v11 = vld [vmem:[#allocation4 + $0x3c] sm:$0x1]  ;;  %v2543_v51 = vld [vmem:[#allocation4 + $0x98] sm:$0x1] }
 0x375   :  { %3799 = vrot.lane.b32.xlu1 %v3732_v59, %s5330_s28  ;;  %v4475_v59 = vld [vmem:[#allocation4 + $0x8c] sm:$0x1]  ;;  %v4534_v23 = vrot.slane %v4459_v11, 5  ;;  %v2544_v37 = vsel %vm5370_vm4, 0, %v2543_v51  ;;  %v4037_v10 = vld [vmem:[#allocation4 + $0x38] sm:$0xf] }
 0x376   :  { %v3629_v24 = vrot.slane %v3628_v56, 4  ;;  %v3633_v41 = vrot.slane %v3631_v28, 5  ;;  %2545 = vst [vmem:[#allocation4 + $0x98] sm:$0x1] %v2544_v37 }
 0x377   :  { %v3984_v54 = vpop.permute.xlu1 %3983  ;;  %3991 = vrot.lane.b32.xlu0 %v3954_v33, %s5331_s29  ;;  %v4223_v33 = vor.u32 %v4222_v49, %v4219_v8  ;;  %v4535_v27 = vsel %vm5830_vm12, %v5086_v25, %v4534_v23  ;;  %v4456_v8 = vld [vmem:[#allocation4 + $0x30] sm:$0xe]  ;;  %v4366_v25 = vshll.u32 %v4157_v0, 16 }
 0x378   :  { %4023 = vst.msk [vmem:[#allocation5 + $0x20] sm:$0xf] %vm1594_vm2, %v3984_v54  ;;  %5184 = vmatpush.bf16.msra.mxu3 %v5175_v42  ;;  %4768 = vmatpush.bf16.msra.mxu1 %v5175_v42  ;;  %v4228_v42 = vrot.slane %v4226_v5, 5  ;;  %v3634_v43 = vsel %vm5525_vm8, %v3629_v24, %v3633_v41  ;;  %v3869_v24 = vld [vmem:[#allocation4 + $0x90] sm:$0xe] }
 0x379   :  { %4410 = vrot.lane.b32.xlu2 %v4355_v30, %s5333_s6  ;;  %v4081_v32 = vpop.permute.xlu0 %4080  ;;  %v3847_v30 = vld [vmem:[#allocation4 + $0x28] sm:$0xe] }
 0x37a   :  { %4120 = vst.msk [vmem:[#allocation5 + $0x20] sm:$0xf] %vm1692_vm6, %v4081_v32  ;;  %v4224_v32 = vrot.slane %v4223_v33, 4  ;;  %v5069_v2 = vrot.slane %v3847_v30, 9 }
 0x37b   :  { %v6827_v62 = vpop.permute.xlu2 %4576  ;;  %4440 = vst.msk [vmem:[#allocation5 + $0x20] sm:$0xf] %vm2013_vm7, %v6769_v16 }
 0x37c   :  { %5185 = vmatpush.bf16.msra.mxu3 %v5174_v58  ;;  %4769 = vmatpush.bf16.msra.mxu1 %v5174_v58  ;;  %v4229_v57 = vsel %vm5525_vm8, %v4224_v32, %v4228_v42  ;;  %v3751_v58 = vshll.u32 %v3547_v44, 16  ;;  %v3870_v32 = vld [vmem:[#allocation4 + $0x94] sm:$0x1] }
 0x37d   :  { %3993 = vrot.lane.b32.xlu1 %v3958_v48, %s5331_s29  ;;  %v4234_v48 = vshll.u32 %v4138_v22, 16 }
 0x37e   :  { %v3753_v29 = vrot.slane %v3751_v58, 5 }
 0x37f   :  { %v4083_v16 = vpop.permute.xlu1 %4082  ;;  %4090 = vrot.lane.b32.xlu0 %v4045_v34, %s5332_s30  ;;  %v4236_v63 = vrot.slane %v4234_v48, 5  ;;  %v5080_v48 = vrot.slane %v3869_v24, 9 }
 0x380   :  { %4121 = vst.msk [vmem:[#allocation5 + $0x24] sm:$0xf] %vm1692_vm6, %v4083_v16  ;;  %5186 = vmatpush.bf16.msra.mxu3 %v5173_v38  ;;  %4770 = vmatpush.bf16.msra.mxu1 %v5173_v38  ;;  %v4233_v16 = vrot.slane %v4231_v9, 4  ;;  %v3548_v38 = vld [vmem:[#allocation4 + $0x8c] sm:$0x1] }
 0x381   :  { %3783 = vrot.lane.b32.xlu2 %v3620_v26, %s5330_s28  ;;  %v4403_v17 = vpop.permute.xlu0 %4402  ;;  %v3757_v36 = vshll.u32 %v3548_v38, 16  ;;  %v4368_v38 = vrot.slane %v4366_v25, 5 }
 0x382   :  { %4441 = vst.msk [vmem:[#allocation5 + $0x24] sm:$0xf] %vm2013_vm7, %v4403_v17  ;;  %v4036_v17 = vld [vmem:[#allocation4 + $0x30] sm:$0xf]  ;;  %v4237_v18 = vor.u32 %v4236_v63, %v4233_v16 }
 0x383   :  { %v3478_v47 = vpop.permute.xlu2 %3477  ;;  %4633 = vst.msk [vmem:[#allocation5 + $0x24] sm:$0xf] %vm2206_vm10, %v6778_v61  ;;  %v4566_v61 = vrot.slane %v4475_v59, 5  ;;  %v3549_v59 = vld [vmem:[#allocation4 + $0x90] sm:$0xf]  ;;  %v3759_v15 = vrot.slane %v3757_v36, 5 }
 0x384   :  { %3514 = vst.msk [vmem:[#allocation5 + $0x2c] sm:$0xf] %vm1080_vm15, %v3478_v47  ;;  %v4238_v45 = vrot.slane %v4237_v18, 4  ;;  %v3765_v33 = vshll.u32 %v3549_v59, 16  ;;  %v3867_v18 = vld [vmem:[#allocation4 + $0x88] sm:$0xe] }
 0x385   :  { %4408 = vrot.lane.b32.xlu1 %v4341_v60, %s5333_s6  ;;  %v4567_v12 = vsel %vm5830_vm12, %v5094_v4, %v4566_v61  ;;  %v4240_v60 = vshll.u32 %v4139_v7, 16  ;;  %v4156_v4 = vld [vmem:[#allocation4 + $0x90] sm:$0xf]  ;;  %v2513_v36 = vld [vmem:[#allocation4 + $0x48] sm:$0x1] }
 0x386   :  { %v4360_v30 = vshll.u32 %v4156_v4, 16  ;;  %v3767_v42 = vrot.slane %v3765_v33, 5  ;;  %v4046_v33 = vld [vmem:[#allocation4 + $0x90] sm:$0xf] }
 0x387   :  { %v4593_v39 = vpop.permute.xlu1 %4592  ;;  %4600 = vrot.lane.b32.xlu0 %v4563_v20, %s5334_s7  ;;  %v4457_v20 = vld [vmem:[#allocation4 + $0x34] sm:$0x1] }
 0x388   :  { %4632 = vst.msk [vmem:[#allocation5 + $0x20] sm:$0xf] %vm2206_vm10, %v4593_v39  ;;  %v4242_v39 = vrot.slane %v4240_v60, 5  ;;  %v4530_v5 = vrot.slane %v4457_v20, 5  ;;  %v3531_v20 = vld [vmem:[#allocation4 + $0x38] sm:$0xf] }
 0x389   :  { %3977 = vrot.lane.b32.xlu2 %v3926_v14, %s5331_s29  ;;  %v3776_v54 = vpop.permute.xlu0 %3775  ;;  %v3762_v14 = vshrl.u32 %v3549_v59, 16  ;;  %v3636_v1 = vshrl.u32 %v3531_v20, 16 }
 0x38a   :  { %3823 = vst.msk [vmem:[#allocation5] sm:$0xf] %vm1401_vm1, %v3776_v54  ;;  %v4243_v61 = vsel %vm5525_vm8, %v4238_v45, %v4242_v39  ;;  %v5085_v54 = vrot.slane %v4456_v8, 9  ;;  %v2514_v8 = vsel %vm5370_vm4, 0, %v2513_v36 }
 0x38b   :  { %v6860_v21 = vpop.permute.xlu2 %3987  ;;  %4015 = vst.msk [vmem:[#allocation5] sm:$0xf] %vm1594_vm2, %v6791_v35  ;;  %v3921_v35 = vrot.slane %v3848_v31, 5  ;;  %v3764_v44 = vrot.slane %v3762_v14, 4 }
 0x38c   :  { %2515 = vst [vmem:[#allocation4 + $0x48] sm:$0x1] %v2514_v8  ;;  %v3853_v8 = vld [vmem:[#allocation4 + $0x40] sm:$0xe] }
 0x38d   :  { %4602 = vrot.lane.b32.xlu1 %v4567_v12, %s5334_s7  ;;  %v3922_v46 = vsel %vm5830_vm12, %v5069_v2, %v3921_v35  ;;  %v4357_v12 = vshrl.u32 %v4156_v4, 16  ;;  %v4362_v35 = vrot.slane %v4360_v30, 5  ;;  %v3768_v19 = vor.u32 %v3767_v42, %v3764_v44  ;;  %v4158_v4 = vld [vmem:[#allocation4 + $0x98] sm:$0xf]  ;;  %v3533_v30 = vld [vmem:[#allocation4 + $0x40] sm:$0xf] }
 0x38e   :  { %v4476_v44 = vld [vmem:[#allocation4 + $0x90] sm:$0xe] }
 0x38f   :  { %v3778_v52 = vpop.permute.xlu1 %3777  ;;  %v5169_v34 = vld [vmem:[#allocation5 + $0x20] sm:$0xff]  ;;  %3785 = vrot.lane.b32.xlu0 %v3634_v43, %s5330_s28  ;;  %v4531_v43 = vsel %vm5830_vm12, %v5085_v54, %v4530_v5  ;;  %v4359_v2 = vrot.slane %v4357_v12, 4  ;;  %v3769_v23 = vrot.slane %v3768_v19, 4  ;;  %v4374_v54 = vshll.u32 %v4158_v4, 16  ;;  %v3852_v12 = vld [vmem:[#allocation4 + $0x3c] sm:$0x1] }
 0x390   :  { %3824 = vst.msk [vmem:[#allocation5 + $0x4] sm:$0xf] %vm1401_vm1, %v3778_v52  ;;  %5149 = vmatmul.msk.bf16.vlgmr.msra.gmra.mxu3 %vm2319_vm11, %v5169_v34  ;;  %v3965_v52 = vrot.slane %v3870_v32, 5  ;;  %v3550_v34 = vld [vmem:[#allocation4 + $0x94] sm:$0x1]  ;;  %v3638_v32 = vrot.slane %v3636_v1, 4 }
 0x391   :  { %4392 = vrot.lane.b32.xlu2 %v4229_v57, %s5333_s6  ;;  %v3970_v40 = vpop.permute.xlu0 %3969  ;;  %v3437_v57 = vld [vmem:[#allocation4 + $0x88] sm:$0xf]  ;;  %v3771_v16 = vshll.u32 %v3550_v34, 16  ;;  %v3650_v34 = vshrl.u32 %v3533_v30, 16  ;;  %v5072_v1 = vrot.slane %v3853_v8, 9 }
 0x392   :  { %4016 = vst.msk [vmem:[#allocation5 + $0x4] sm:$0xf] %vm1594_vm2, %v3970_v40  ;;  %v3966_v11 = vsel %vm5830_vm12, %v5080_v48, %v3965_v52  ;;  %v4363_v40 = vor.u32 %v4362_v35, %v4359_v2  ;;  %v4477_v48 = vld [vmem:[#allocation4 + $0x94] sm:$0x1]  ;;  %v3929_v35 = vrot.slane %v3852_v12, 5 }
 0x393   :  { %v6878_v26 = vpop.permute.xlu2 %4086  ;;  %4113 = vst.msk [vmem:[#allocation5 + $0x4] sm:$0xf] %vm1692_vm6, %v6805_v55  ;;  %v3754_v55 = vor.u32 %v3753_v29, %v3750_v53  ;;  %v3438_v29 = vld [vmem:[#allocation4 + $0x90] sm:$0xf] }
 0x394   :  { %v4364_v7 = vrot.slane %v4363_v40, 4 }
 0x395   :  { %3975 = vrot.lane.b32.xlu1 %v3922_v46, %s5331_s29  ;;  %v3755_v56 = vrot.slane %v3754_v55, 4  ;;  %v4478_v55 = vld [vmem:[#allocation4 + $0x98] sm:$0xe] }
 0x396   :  { %v5096_v59 = vrot.slane %v4478_v55, 9 }
 0x397   :  { %v4065_v6 = vpop.permute.xlu1 %4064  ;;  %4072 = vrot.lane.b32.xlu0 %v4036_v17, %s5332_s30  ;;  %v3760_v22 = vsel %vm5525_vm8, %v3755_v56, %v3759_v15  ;;  %v3773_v17 = vrot.slane %v3771_v16, 5  ;;  %v5095_v16 = vrot.slane %v4476_v44, 9 }
 0x398   :  { %4112 = vst.msk [vmem:[#allocation5] sm:$0xf] %vm1692_vm6, %v4065_v6  ;;  %v3868_v6 = vld [vmem:[#allocation4 + $0x8c] sm:$0x1] }
 0x399   :  { %4586 = vrot.lane.b32.xlu2 %v4535_v27, %s5334_s7  ;;  %v4385_v47 = vpop.permute.xlu0 %4384  ;;  %v3774_v51 = vsel %vm5525_vm8, %v3769_v23, %v3773_v17  ;;  %v3961_v37 = vrot.slane %v3868_v6, 5  ;;  %v4140_v6 = vld [vmem:[#allocation4 + $0x40] sm:$0xf] }
 0x39a   :  { %4432 = vst.msk [vmem:[#allocation5] sm:$0xf] %vm2013_vm7, %v4385_v47  ;;  %v4369_v47 = vsel %vm5525_vm8, %v4364_v7, %v4368_v38  ;;  %v3534_v7 = vld [vmem:[#allocation4 + $0x44] sm:$0x1] }
 0x39b   :  { %v6891_v49 = vpop.permute.xlu2 %4596  ;;  %4624 = vst.msk [vmem:[#allocation5] sm:$0xf] %vm2206_vm10, %v6827_v62  ;;  %v2603_v62 = vld [vmem:[#allocation4 + $0x9c] sm:$0x1]  ;;  %v3659_v55 = vshll.u32 %v3534_v7, 16 }
 0x39c   :  { %v2604_v31 = vsel %vm5378_vm5, 0, %v2603_v62 }
 0x39d   :  { %4074 = vrot.lane.b32.xlu1 %v4037_v10, %s5332_s30  ;;  %2605 = vst [vmem:[#allocation4 + $0x9c] sm:$0x1] %v2604_v31 }
 0x39f   :  { %v4387_v28 = vpop.permute.xlu1 %4386  ;;  %4394 = vrot.lane.b32.xlu0 %v4243_v61, %s5333_s6  ;;  %v3639_v61 = vshll.u32 %v3531_v20, 16  ;;  %v4461_v20 = vld [vmem:[#allocation4 + $0x44] sm:$0x1] }
 0x3a0   :  { %4433 = vst.msk [vmem:[#allocation5 + $0x4] sm:$0xf] %vm2013_vm7, %v4387_v28  ;;  %v4371_v28 = vshrl.u32 %v4158_v4, 16 }
 0x3a1   :  { %3803 = vrot.lane.b32.xlu2 %v3760_v22, %s5330_s28  ;;  %v4579_v41 = vpop.permute.xlu0 %4578  ;;  %v4376_v22 = vrot.slane %v4374_v54, 5 }
 0x3a2   :  { %4625 = vst.msk [vmem:[#allocation5 + $0x4] sm:$0xf] %vm2206_vm10, %v4579_v41  ;;  %v4373_v62 = vrot.slane %v4371_v28, 4  ;;  %v4047_v41 = vld [vmem:[#allocation4 + $0x98] sm:$0xf] }
 0x3a3   :  { %v3782_v9 = vpop.permute.xlu2 %3781 }
 0x3a4   :  { %3826 = vst.msk [vmem:[#allocation5 + $0xc] sm:$0xf] %vm1401_vm1, %v3782_v9  ;;  %v4479_v60 = vld [vmem:[#allocation4 + $0x9c] sm:$0x1]  ;;  %v4377_v42 = vor.u32 %v4376_v22, %v4373_v62  ;;  %v3641_v9 = vrot.slane %v3639_v61, 5 }
 0x3a5   :  { %4584 = vrot.lane.b32.xlu1 %v4531_v43, %s5334_s7  ;;  %v4574_v10 = vrot.slane %v4479_v60, 5  ;;  %v4159_v15 = vld [vmem:[#allocation4 + $0x9c] sm:$0x1]  ;;  %v4039_v60 = vld [vmem:[#allocation4 + $0x48] sm:$0xf] }
 0x3a6   :  { %v4380_v5 = vshll.u32 %v4159_v15, 16  ;;  %v4378_v19 = vrot.slane %v4377_v42, 4 }
 0x3a7   :  { %v3476_v58 = vpop.permute.xlu1 %3475  ;;  %3483 = vrot.lane.b32.xlu0 %v3437_v57, %s5329_s25  ;;  %v4575_v14 = vsel %vm5830_vm12, %v5096_v59, %v4574_v10  ;;  %v3653_v57 = vshll.u32 %v3533_v30, 16  ;;  %v3854_v59 = vld [vmem:[#allocation4 + $0x44] sm:$0x1] }
 0x3a8   :  { %3513 = vst.msk [vmem:[#allocation5 + $0x28] sm:$0xf] %vm1080_vm15, %v3476_v58  ;;  %v4382_v43 = vrot.slane %v4380_v5, 5  ;;  %v3532_v58 = vld [vmem:[#allocation4 + $0x3c] sm:$0x1]  ;;  %v3933_v61 = vrot.slane %v3854_v59, 5 }
 0x3a9   :  { %3997 = vrot.lane.b32.xlu2 %v3966_v11, %s5331_s29  ;;  %v3796_v63 = vpop.permute.xlu0 %3795  ;;  %v5165_v46 = vld [vmem:[#allocation5] sm:$0xff]  ;;  %v3642_v11 = vor.u32 %v3641_v9, %v3638_v32  ;;  %v3655_v25 = vrot.slane %v3653_v57, 5  ;;  %v3645_v23 = vshll.u32 %v3532_v58, 16  ;;  %v4538_v5 = vrot.slane %v4461_v20, 5  ;;  %v4462_v57 = vld [vmem:[#allocation4 + $0x48] sm:$0xe] }
 0x3aa   :  { %3833 = vst.msk [vmem:[#allocation5 + $0x28] sm:$0xf] %vm1401_vm1, %v3796_v63  ;;  %5145 = vmatmul.msk.bf16.vlgmr.msra.gmra.mxu1 %vm2319_vm11, %v5165_v46  ;;  %v4383_v0 = vsel %vm5525_vm8, %v4378_v19, %v4382_v43  ;;  %v4570_v63 = vrot.slane %v4477_v48, 5  ;;  %v3652_v46 = vrot.slane %v3650_v34, 4  ;;  %v3934_v62 = vsel %vm5830_vm12, %v5072_v1, %v3933_v61  ;;  %v7026_v20 = vld [vmem:[%s7188_s4] ss:$0 sm:$0xff] }
 0x3ab   :  { %v6916_v53 = vpop.permute.xlu2 %4068  ;;  %4025 = vst.msk [vmem:[#allocation5 + $0x28] sm:$0xf] %vm1594_vm2, %v6860_v21  ;;  %v5079_v21 = vrot.slane %v3867_v18, 9  ;;  %v3643_v17 = vrot.slane %v3642_v11, 4 }
 0x3ac   :  { %v4571_v38 = vsel %vm5830_vm12, %v5095_v16, %v4570_v63 }
 0x3ad   :  { %3485 = vrot.lane.b32.xlu1 %v3438_v29, %s5329_s25  ;;  %v3962_v39 = vsel %vm5830_vm12, %v5079_v21, %v3961_v37  ;;  %v4245_v37 = vshrl.u32 %v4140_v6, 16 }
 0x3af   :  { %v3798_v27 = vpop.permute.xlu1 %3797  ;;  %3805 = vrot.lane.b32.xlu0 %v3774_v51, %s5330_s28  ;;  %v3656_v51 = vor.u32 %v3655_v25, %v3652_v46 }
 0x3b0   :  { %3834 = vst.msk [vmem:[#allocation5 + $0x2c] sm:$0xf] %vm1401_vm1, %v3798_v27  ;;  %v3647_v27 = vrot.slane %v3645_v23, 5 }
 0x3b1   :  { %4412 = vrot.lane.b32.xlu2 %v4369_v47, %s5333_s6  ;;  %v3990_v45 = vpop.permute.xlu0 %3989  ;;  %v4248_v47 = vshll.u32 %v4140_v6, 16  ;;  %v3657_v10 = vrot.slane %v3656_v51, 4 }
 0x3b2   :  { %4026 = vst.msk [vmem:[#allocation5 + $0x2c] sm:$0xf] %vm1594_vm2, %v3990_v45  ;;  %v3648_v21 = vsel %vm5525_vm8, %v3643_v17, %v3647_v27  ;;  %v4460_v45 = vld [vmem:[#allocation4 + $0x40] sm:$0xe] }
 0x3b3   :  { %v6932_v56 = vpop.permute.xlu2 %4390  ;;  %4123 = vst.msk [vmem:[#allocation5 + $0x2c] sm:$0xf] %vm1692_vm6, %v6878_v26  ;;  %v3851_v26 = vld [vmem:[#allocation4 + $0x38] sm:$0xe]  ;;  %v5087_v54 = vrot.slane %v4460_v45, 9 }
 0x3b4   :  { %v5071_v2 = vrot.slane %v3851_v26, 9  ;;  %v4141_v26 = vld [vmem:[#allocation4 + $0x44] sm:$0x1] }
 0x3b5   :  { %3995 = vrot.lane.b32.xlu1 %v3962_v39, %s5331_s29  ;;  %v3661_v39 = vrot.slane %v3659_v55, 5  ;;  %v4539_v30 = vsel %vm5830_vm12, %v5087_v54, %v4538_v5  ;;  %v4254_v32 = vshll.u32 %v4141_v26, 16  ;;  %v4821_v26 = vld [vmem:[%s7184_s0 + $0x48] sm:$0xff] }
 0x3b7   :  { %v4085_v24 = vpop.permute.xlu1 %4084  ;;  %4092 = vrot.lane.b32.xlu0 %v4046_v33, %s5332_s30  ;;  %v4250_v33 = vrot.slane %v4248_v47, 5  ;;  %v4256_v34 = vrot.slane %v4254_v32, 5 }
 0x3b8   :  { %4122 = vst.msk [vmem:[#allocation5 + $0x28] sm:$0xf] %vm1692_vm6, %v4085_v24  ;;  %v3662_v24 = vsel %vm5525_vm8, %v3657_v10, %v3661_v39 }
 0x3b9   :  { %4606 = vrot.lane.b32.xlu2 %v4575_v14, %s5334_s7  ;;  %v4405_v31 = vpop.permute.xlu0 %4404  ;;  %v4247_v14 = vrot.slane %v4245_v37, 4 }
 0x3ba   :  { %4442 = vst.msk [vmem:[#allocation5 + $0x28] sm:$0xf] %vm2013_vm7, %v4405_v31  ;;  %v2573_v31 = vld [vmem:[#allocation4 + $0x4c] sm:$0x1] }
 0x3bb   :  { %v3480_v52 = vpop.permute.xlu2 %3479  ;;  %4634 = vst.msk [vmem:[#allocation5 + $0x28] sm:$0xf] %vm2206_vm10, %v6891_v49  ;;  %v3930_v49 = vsel %vm5830_vm12, %v5071_v2, %v3929_v35  ;;  %v4251_v22 = vor.u32 %v4250_v33, %v4247_v14  ;;  %v4038_v35 = vld [vmem:[#allocation4 + $0x40] sm:$0xf] }
 0x3bc   :  { %3515 = vst.msk [vmem:[#allocation5 + $0x30] sm:$0xf] %vm1080_vm15, %v3480_v52 }
 0x3bd   :  { %4094 = vrot.lane.b32.xlu1 %v4047_v41, %s5332_s30  ;;  %v2574_v41 = vsel %vm5378_vm5, 0, %v2573_v31  ;;  %v4252_v9 = vrot.slane %v4251_v22, 4 }
 0x3be   :  { %2575 = vst [vmem:[#allocation4 + $0x4c] sm:$0x1] %v2574_v41 }
 0x3bf   :  { %v4407_v40 = vpop.permute.xlu1 %4406  ;;  %4414 = vrot.lane.b32.xlu0 %v4383_v0, %s5333_s6  ;;  %v4257_v19 = vsel %vm5525_vm8, %v4252_v9, %v4256_v34  ;;  %v5088_v0 = vrot.slane %v4462_v57, 9 }
 0x3c0   :  { %4443 = vst.msk [vmem:[#allocation5 + $0x2c] sm:$0xf] %vm2013_vm7, %v4407_v40 }
 0x3c1   :  { %3979 = vrot.lane.b32.xlu2 %v3930_v49, %s5331_s29  ;;  %v4599_v29 = vpop.permute.xlu0 %4598 }
 0x3c2   :  { %4635 = vst.msk [vmem:[#allocation5 + $0x2c] sm:$0xf] %vm2206_vm10, %v4599_v29 }
 0x3c3   :  { %v6957_v18 = vpop.permute.xlu2 %3801 }
 0x3c5   :  { %4604 = vrot.lane.b32.xlu1 %v4571_v38, %s5334_s7  ;;  %v4143_v11 = vld [vmem:[#allocation4 + $0x4c] sm:$0x1] }
 0x3c6   :  { %v4463_v40 = vld [vmem:[#allocation4 + $0x4c] sm:$0x1] }
 0x3c7   :  { %v3780_v36 = vpop.permute.xlu1 %3779  ;;  %3787 = vrot.lane.b32.xlu0 %v3648_v21, %s5330_s28  ;;  %v4542_v49 = vrot.slane %v4463_v40, 5 }
 0x3c8   :  { %3825 = vst.msk [vmem:[#allocation5 + $0x8] sm:$0xf] %vm1401_vm1, %v3780_v36 }
 0x3c9   :  { %4078 = vrot.lane.b32.xlu2 %v4039_v60, %s5332_s30  ;;  %v3972_v4 = vpop.permute.xlu0 %3971  ;;  %v5170_v15 = vld [vmem:[#allocation5 + $0x28] sm:$0xff]  ;;  %v4543_v23 = vsel %vm5830_vm12, %v5088_v0, %v4542_v49 }
 0x3ca   :  { %4017 = vst.msk [vmem:[#allocation5 + $0x8] sm:$0xf] %vm1594_vm2, %v3972_v4  ;;  %5150 = vmatmul.msk.bf16.gmra.mxu3 %vm2319_vm11, %v5170_v15  ;;  %v4820_v15 = vld [vmem:[%s7184_s0 + $0x40] sm:$0xff] }
 0x3cb   :  { %v6968_v28 = vpop.permute.xlu2 %4088  ;;  %4114 = vst.msk [vmem:[#allocation5 + $0x8] sm:$0xf] %vm1692_vm6, %v6916_v53  ;;  %v4142_v53 = vld [vmem:[#allocation4 + $0x48] sm:$0xf] }
 0x3cc   :  { %v4259_v44 = vshrl.u32 %v4142_v53, 16  ;;  %v4262_v42 = vshll.u32 %v4142_v53, 16 }
 0x3cd   :  { %3789 = vrot.lane.b32.xlu1 %v3662_v24, %s5330_s28 }
 0x3ce   :  { %v4261_v48 = vrot.slane %v4259_v44, 4  ;;  %v4264_v52 = vrot.slane %v4262_v42, 5 }
 0x3cf   :  { %v3974_v12 = vpop.permute.xlu1 %3973  ;;  %3981 = vrot.lane.b32.xlu0 %v3934_v62, %s5331_s29 }
 0x3d0   :  { %4018 = vst.msk [vmem:[#allocation5 + $0xc] sm:$0xf] %vm1594_vm2, %v3974_v12  ;;  %v4265_v3 = vor.u32 %v4264_v52, %v4261_v48  ;;  %v4812_v48 = vld [vmem:[%s7184_s0] sm:$0xff] }
 0x3d1   :  { %4588 = vrot.lane.b32.xlu2 %v4539_v30, %s5334_s7  ;;  %v4071_v43 = vpop.permute.xlu0 %4070 }
 0x3d2   :  { %4115 = vst.msk [vmem:[#allocation5 + $0xc] sm:$0xf] %vm1692_vm6, %v4071_v43  ;;  %v4266_v63 = vrot.slane %v4265_v3, 4 }
 0x3d3   :  { %v4411_v2 = vpop.permute.xlu2 %4410  ;;  %4435 = vst.msk [vmem:[#allocation5 + $0xc] sm:$0xf] %vm2013_vm7, %v6932_v56  ;;  %v4268_v56 = vshll.u32 %v4143_v11, 16 }
 0x3d5   :  { %4076 = vrot.lane.b32.xlu1 %v4038_v35, %s5332_s30  ;;  %v4270_v25 = vrot.slane %v4268_v56, 5 }
 0x3d7   :  { %v4389_v58 = vpop.permute.xlu1 %4388  ;;  %4396 = vrot.lane.b32.xlu0 %v4257_v19, %s5333_s6  ;;  %v4271_v29 = vsel %vm5525_vm8, %v4266_v63, %v4270_v25 }
 0x3d8   :  { %4434 = vst.msk [vmem:[#allocation5 + $0x8] sm:$0xf] %vm2013_vm7, %v4389_v58 }
 0x3d9   :  { %v4581_v16 = vpop.permute.xlu0 %4580 }
 0x3da   :  { %4626 = vst.msk [vmem:[#allocation5 + $0x8] sm:$0xf] %vm2206_vm10, %v4581_v16  ;;  %v4813_v16 = vld [vmem:[%s7184_s0 + $0x8] sm:$0xff] }
 0x3db   :  { %v3784_v46 = vpop.permute.xlu2 %3783 }
 0x3dc   :  { %3827 = vst.msk [vmem:[#allocation5 + $0x10] sm:$0xf] %vm1401_vm1, %v3784_v46 }
 0x3dd   :  { %4398 = vrot.lane.b32.xlu1 %v4271_v29, %s5333_s6 }
 0x3df   :  { %v4583_v7 = vpop.permute.xlu1 %4582  ;;  %4590 = vrot.lane.b32.xlu0 %v4543_v23, %s5334_s7 }
 0x3e0   :  { %4627 = vst.msk [vmem:[#allocation5 + $0xc] sm:$0xf] %vm2206_vm10, %v4583_v7 }
 0x3e1   :  { %v3482_v17 = vpop.permute.xlu0 %3481 }
 0x3e2   :  { %3516 = vst.msk [vmem:[#allocation5 + $0x34] sm:$0xf] %vm1080_vm15, %v3482_v17 }
 0x3e3   :  { %3836 = vst.msk [vmem:[#allocation5 + $0x34] sm:$0xf] %vm1401_vm1, %v6957_v18  ;;  %v3978_v51 = vpop.permute.xlu2 %3977 }
 0x3e7   :  { %v3800_v6 = vpop.permute.xlu1 %3799  ;;  %v5166_v38 = vld [vmem:[#allocation5 + $0x8] sm:$0xff] }
 0x3e8   :  { %3835 = vst.msk [vmem:[#allocation5 + $0x30] sm:$0xf] %vm1401_vm1, %v3800_v6  ;;  %5146 = vmatmul.msk.bf16.gmra.mxu1 %vm2319_vm11, %v5166_v38 }
 0x3e9   :  { %v3992_v13 = vpop.permute.xlu0 %3991 }
 0x3ea   :  { %4027 = vst.msk [vmem:[#allocation5 + $0x30] sm:$0xf] %vm1594_vm2, %v3992_v13 }
 0x3eb   :  { %4124 = vst.msk [vmem:[#allocation5 + $0x30] sm:$0xf] %vm1692_vm6, %v6968_v28  ;;  %v4393_v60 = vpop.permute.xlu2 %4392 }
 0x3ef   :  { %v3994_v50 = vpop.permute.xlu1 %3993 }
 0x3f0   :  { %4028 = vst.msk [vmem:[#allocation5 + $0x34] sm:$0xf] %vm1594_vm2, %v3994_v50 }
 0x3f1   :  { %v4091_v27 = vpop.permute.xlu0 %4090 }
 0x3f2   :  { %4125 = vst.msk [vmem:[#allocation5 + $0x34] sm:$0xf] %vm1692_vm6, %v4091_v27 }
 0x3f3   :  { %4445 = vst.msk [vmem:[#allocation5 + $0x34] sm:$0xf] %vm2013_vm7, %v4411_v2  ;;  %v4587_v47 = vpop.permute.xlu2 %4586 }
 0x3f7   :  { %v4409_v18 = vpop.permute.xlu1 %4408 }
 0x3f8   :  { %4444 = vst.msk [vmem:[#allocation5 + $0x30] sm:$0xf] %vm2013_vm7, %v4409_v18 }
 0x3f9   :  { %v4601_v55 = vpop.permute.xlu0 %4600 }
 0x3fa   :  { %4636 = vst.msk [vmem:[#allocation5 + $0x30] sm:$0xf] %vm2206_vm10, %v4601_v55 }
 0x3fb   :  { %v3804_v59 = vpop.permute.xlu2 %3803 }
 0x3ff   :  { %v4603_v21 = vpop.permute.xlu1 %4602 }
 0x400   :  { %4637 = vst.msk [vmem:[#allocation5 + $0x34] sm:$0xf] %vm2206_vm10, %v4603_v21 }
 0x401   :  { %v3786_v37 = vpop.permute.xlu0 %3785 }
 0x402   :  { %3828 = vst.msk [vmem:[#allocation5 + $0x14] sm:$0xf] %vm1401_vm1, %v3786_v37 }
 0x403   :  { %4020 = vst.msk [vmem:[#allocation5 + $0x14] sm:$0xf] %vm1594_vm2, %v3978_v51  ;;  %v3998_v33 = vpop.permute.xlu2 %3997 }
 0x407   :  { %v3976_v36 = vpop.permute.xlu1 %3975  ;;  %v5171_v45 = vld [vmem:[#allocation5 + $0x30] sm:$0xff] }
 0x408   :  { %4019 = vst.msk [vmem:[#allocation5 + $0x10] sm:$0xf] %vm1594_vm2, %v3976_v36  ;;  %5151 = vmatmul.msk.bf16.gmra.mxu3 %vm2319_vm11, %v5171_v45 }
 0x409   :  { %v4073_v8 = vpop.permute.xlu0 %4072 }
 0x40a   :  { %4116 = vst.msk [vmem:[#allocation5 + $0x10] sm:$0xf] %vm1692_vm6, %v4073_v8  ;;  %v4822_v8 = vld [vmem:[%s7184_s0 + $0x50] sm:$0xff] }
 0x40b   :  { %4436 = vst.msk [vmem:[#allocation5 + $0x10] sm:$0xf] %vm2013_vm7, %v4393_v60  ;;  %v4413_v32 = vpop.permute.xlu2 %4412 }
 0x40f   :  { %v4075_v10 = vpop.permute.xlu1 %4074 }
 0x410   :  { %4117 = vst.msk [vmem:[#allocation5 + $0x14] sm:$0xf] %vm1692_vm6, %v4075_v10 }
 0x411   :  { %v4395_v39 = vpop.permute.xlu0 %4394 }
 0x412   :  { %4437 = vst.msk [vmem:[#allocation5 + $0x14] sm:$0xf] %vm2013_vm7, %v4395_v39 }
 0x413   :  { %4629 = vst.msk [vmem:[#allocation5 + $0x14] sm:$0xf] %vm2206_vm10, %v4587_v47  ;;  %v4792_v4 = vpop.f32.mrf.mxu3  ;;  %v4607_v3 = vpop.permute.xlu2 %4606 }
 0x414   :  { %v4793_v1 = vadd.f32 %v7026_v20, %v4792_v4 }
 0x416   :  { %v4836_v14 = vadd.f32 %v4820_v15, %v4793_v1 }
 0x417   :  { %v4585_v61 = vpop.permute.xlu1 %4584 }
 0x418   :  { %4628 = vst.msk [vmem:[#allocation5 + $0x10] sm:$0xf] %vm2206_vm10, %v4585_v61  ;;  %v4852_v28 = vsub.f32 0.0, %v4836_v14  ;;  %v4823_v14 = vld [vmem:[%s7184_s0 + $0x58] sm:$0xff] }
 0x419   :  { %v3484_v54 = vpop.permute.xlu0 %3483 }
 0x41a   :  { %3517 = vst.msk [vmem:[#allocation5 + $0x38] sm:$0xf] %vm1080_vm15, %v3484_v54  ;;  %v4876_v5 = vmul.f32 1.442695, %v4852_v28 }
 0x41b   :  { %3837 = vst.msk [vmem:[#allocation5 + $0x38] sm:$0xf] %vm1401_vm1, %v3804_v59  ;;  %v4794_v24 = vpop.f32.mrf.mxu3  ;;  %v3980_v23 = vpop.permute.xlu2 %3979 }
 0x41c   :  { %5262 = vpow2.f32 %v4876_v5  ;;  %v4795_v62 = vadd.f32 %v7026_v20, %v4794_v24 }
 0x41e   :  { %v4837_v12 = vadd.f32 %v4821_v26, %v4795_v62 }
 0x41f   :  { %v3486_v22 = vpop.permute.xlu1 %3485  ;;  %v5167_v30 = vld [vmem:[#allocation5 + $0x10] sm:$0xff] }
 0x420   :  { %3518 = vst.msk [vmem:[#allocation5 + $0x3c] sm:$0xf] %vm1080_vm15, %v3486_v22  ;;  %v4853_v31 = vsub.f32 0.0, %v4837_v12  ;;  %5147 = vmatmul.msk.bf16.gmra.mxu1 %vm2319_vm11, %v5167_v30 }
 0x421   :  { %v3806_v53 = vpop.permute.xlu0 %3805 }
 0x422   :  { %3838 = vst.msk [vmem:[#allocation5 + $0x3c] sm:$0xf] %vm1401_vm1, %v3806_v53  ;;  %v5263_v41 = vpop.eup %5262  ;;  %v4878_v44 = vmul.f32 1.442695, %v4853_v31  ;;  %v4814_v53 = vld [vmem:[%s7184_s0 + $0x10] sm:$0xff] }
 0x423   :  { %4030 = vst.msk [vmem:[#allocation5 + $0x3c] sm:$0xf] %vm1594_vm2, %v3998_v33  ;;  %v4900_v42 = vadd.f32 1.0, %v5263_v41  ;;  %v4079_v18 = vpop.permute.xlu2 %4078 }
 0x424   :  { %5264 = vpow2.f32 %v4878_v44 }
 0x425   :  { %5266 = vrcp.f32 %v4900_v42 }
 0x427   :  { %v3996_v43 = vpop.permute.xlu1 %3995  ;;  %v4772_v9 = vpop.f32.mrf.mxu1 }
 0x428   :  { %4029 = vst.msk [vmem:[#allocation5 + $0x38] sm:$0xf] %vm1594_vm2, %v3996_v43  ;;  %v4773_v2 = vadd.f32 %v7026_v20, %v4772_v9 }
 0x429   :  { %v4093_v52 = vpop.permute.xlu0 %4092 }
 0x42a   :  { %4126 = vst.msk [vmem:[#allocation5 + $0x38] sm:$0xf] %vm1692_vm6, %v4093_v52  ;;  %v5265_v35 = vpop.eup %5264  ;;  %v4828_v34 = vadd.f32 %v4812_v48, %v4773_v2  ;;  %v4815_v48 = vld [vmem:[%s7184_s0 + $0x18] sm:$0xff] }
 0x42b   :  { %4446 = vst.msk [vmem:[#allocation5 + $0x38] sm:$0xf] %vm2013_vm7, %v4413_v32  ;;  %v5267_v57 = vpop.eup %5266  ;;  %v4901_v19 = vadd.f32 1.0, %v5265_v35  ;;  %v4589_v36 = vpop.permute.xlu2 %4588 }
 0x42c   :  { %4933 = vst.msk [vmem:[%s7189_s5 + $0x40] sm:$0xff] %vm4924_vm0, %v5267_v57  ;;  %v4844_v58 = vsub.f32 0.0, %v4828_v34 }
 0x42d   :  { %5268 = vrcp.f32 %v4901_v19 }
 0x42e   :  { %v4860_v11 = vmul.f32 1.442695, %v4844_v58 }
 0x42f   :  { %v4095_v0 = vpop.permute.xlu1 %4094  ;;  %v4774_v40 = vpop.f32.mrf.mxu1 }
 0x430   :  { %4127 = vst.msk [vmem:[#allocation5 + $0x3c] sm:$0xf] %vm1692_vm6, %v4095_v0  ;;  %5270 = vpow2.f32 %v4860_v11  ;;  %v4775_v56 = vadd.f32 %v7026_v20, %v4774_v40 }
 0x431   :  { %v4415_v63 = vpop.permute.xlu0 %4414 }
 0x432   :  { %4447 = vst.msk [vmem:[#allocation5 + $0x3c] sm:$0xf] %vm2013_vm7, %v4415_v63  ;;  %v4829_v49 = vadd.f32 %v4813_v16, %v4775_v56  ;;  %v4824_v16 = vld [vmem:[%s7184_s0 + $0x60] sm:$0xff] }
 0x433   :  { %4639 = vst.msk [vmem:[#allocation5 + $0x3c] sm:$0xf] %vm2206_vm10, %v4607_v3  ;;  %v5269_v46 = vpop.eup %5268 }
 0x434   :  { %4934 = vst.msk [vmem:[%s7189_s5 + $0x48] sm:$0xff] %vm4924_vm0, %v5269_v46  ;;  %v4845_v25 = vsub.f32 0.0, %v4829_v49 }
 0x436   :  { %v5271_v29 = vpop.eup %5270  ;;  %v4862_v17 = vmul.f32 1.442695, %v4845_v25 }
 0x437   :  { %v4605_v7 = vpop.permute.xlu1 %4604  ;;  %v4892_v6 = vadd.f32 1.0, %v5271_v29 }
 0x438   :  { %4638 = vst.msk [vmem:[#allocation5 + $0x38] sm:$0xf] %vm2206_vm10, %v4605_v7  ;;  %5272 = vpow2.f32 %v4862_v17 }
 0x439   :  { %v3788_v38 = vpop.permute.xlu0 %3787  ;;  %5274 = vrcp.f32 %v4892_v6 }
 0x43a   :  { %3829 = vst.msk [vmem:[#allocation5 + $0x18] sm:$0xf] %vm1401_vm1, %v3788_v38 }
 0x43b   :  { %4021 = vst.msk [vmem:[#allocation5 + $0x18] sm:$0xf] %vm1594_vm2, %v3980_v23  ;;  %v4825_v23 = vld [vmem:[%s7184_s0 + $0x68] sm:$0xff] }
 0x43e   :  { %v5273_v13 = vpop.eup %5272 }
 0x43f   :  { %v3790_v50 = vpop.permute.xlu1 %3789  ;;  %v5172_v51 = vld [vmem:[#allocation5 + $0x38] sm:$0xff]  ;;  %v5275_v27 = vpop.eup %5274  ;;  %v4893_v55 = vadd.f32 1.0, %v5273_v13 }
 0x440   :  { %3830 = vst.msk [vmem:[#allocation5 + $0x1c] sm:$0xf] %vm1401_vm1, %v3790_v50  ;;  %5152 = vmatmul.msk.bf16.gmra.mxu3 %vm2319_vm11, %v5172_v51  ;;  %v4816_v51 = vld [vmem:[%s7184_s0 + $0x20] sm:$0xff] }
 0x441   :  { %4925 = vst.msk [vmem:[%s7189_s5] sm:$0xff] %vm4924_vm0, %v5275_v27  ;;  %v3982_v60 = vpop.permute.xlu0 %3981  ;;  %5276 = vrcp.f32 %v4893_v55 }
 0x442   :  { %4022 = vst.msk [vmem:[#allocation5 + $0x1c] sm:$0xf] %vm1594_vm2, %v3982_v60 }
 0x443   :  { %4119 = vst.msk [vmem:[#allocation5 + $0x1c] sm:$0xf] %vm1692_vm6, %v4079_v18 }
 0x447   :  { %v4077_v21 = vpop.permute.xlu1 %4076  ;;  %v5277_v37 = vpop.eup %5276 }
 0x448   :  { %4118 = vst.msk [vmem:[#allocation5 + $0x18] sm:$0xf] %vm1692_vm6, %v4077_v21 }
 0x449   :  { %4926 = vst.msk [vmem:[%s7189_s5 + $0x8] sm:$0xff] %vm4924_vm0, %v5277_v37  ;;  %v4397_v47 = vpop.permute.xlu0 %4396 }
 0x44a   :  { %4438 = vst.msk [vmem:[#allocation5 + $0x18] sm:$0xf] %vm2013_vm7, %v4397_v47 }
 0x44b   :  { %4630 = vst.msk [vmem:[#allocation5 + $0x18] sm:$0xf] %vm2206_vm10, %v4589_v36 }
 0x44d   :  { %v4797_v45 = vpop.f32.mrf.mxu3 }
 0x44e   :  { %v4798_v59 = vadd.f32 %v7026_v20, %v4797_v45  ;;  %v4817_v45 = vld [vmem:[%s7184_s0 + $0x28] sm:$0xff] }
 0x44f   :  { %v4399_v10 = vpop.permute.xlu1 %4398 }
 0x450   :  { %v4838_v39 = vadd.f32 %v4822_v8, %v4798_v59  ;;  %4439 = vst.msk [vmem:[#allocation5 + $0x1c] sm:$0xf] %vm2013_vm7, %v4399_v10 }
 0x451   :  { %v4591_v4 = vpop.permute.xlu0 %4590 }
 0x452   :  { %4631 = vst.msk [vmem:[#allocation5 + $0x1c] sm:$0xf] %vm2206_vm10, %v4591_v4  ;;  %v4854_v15 = vsub.f32 0.0, %v4838_v39 }
 0x454   :  { %v4880_v1 = vmul.f32 1.442695, %v4854_v15 }
 0x455   :  { %v4799_v61 = vpop.f32.mrf.mxu3 }
 0x456   :  { %5278 = vpow2.f32 %v4880_v1  ;;  %v4800_v33 = vadd.f32 %v7026_v20, %v4799_v61 }
 0x458   :  { %v4839_v28 = vadd.f32 %v4823_v14, %v4800_v33 }
 0x459   :  { %v5168_v54 = vld [vmem:[#allocation5 + $0x18] sm:$0xff] }
 0x45a   :  { %v4855_v5 = vsub.f32 0.0, %v4839_v28  ;;  %5148 = vmatmul.msk.bf16.gmra.mxu1 %vm2319_vm11, %v5168_v54 }
 0x45c   :  { %v5279_v24 = vpop.eup %5278  ;;  %v4882_v26 = vmul.f32 1.442695, %v4855_v5  ;;  %v4826_v5 = vld [vmem:[%s7184_s0 + $0x70] sm:$0xff] }
 0x45d   :  { %v4902_v62 = vadd.f32 1.0, %v5279_v24 }
 0x45e   :  { %5280 = vpow2.f32 %v4882_v26 }
 0x45f   :  { %5282 = vrcp.f32 %v4902_v62 }
 0x464   :  { %v5281_v22 = vpop.eup %5280 }
 0x465   :  { %v5283_v12 = vpop.eup %5282  ;;  %v4903_v30 = vadd.f32 1.0, %v5281_v22  ;;  %v4777_v31 = vpop.f32.mrf.mxu1 }
 0x466   :  { %4935 = vst.msk [vmem:[%s7189_s5 + $0x50] sm:$0xff] %vm4924_vm0, %v5283_v12  ;;  %v4778_v32 = vadd.f32 %v7026_v20, %v4777_v31 }
 0x467   :  { %5284 = vrcp.f32 %v4903_v30  ;;  %v4827_v30 = vld [vmem:[%s7184_s0 + $0x78] sm:$0xff] }
 0x468   :  { %v4830_v41 = vadd.f32 %v4814_v53, %v4778_v32 }
 0x46a   :  { %v4846_v44 = vsub.f32 0.0, %v4830_v41 }
 0x46c   :  { %v4864_v42 = vmul.f32 1.442695, %v4846_v44 }
 0x46d   :  { %v5285_v43 = vpop.eup %5284  ;;  %v4779_v9 = vpop.f32.mrf.mxu1 }
 0x46e   :  { %4936 = vst.msk [vmem:[%s7189_s5 + $0x58] sm:$0xff] %vm4924_vm0, %v5285_v43  ;;  %5286 = vpow2.f32 %v4864_v42  ;;  %v4780_v52 = vadd.f32 %v7026_v20, %v4779_v9  ;;  %v4818_v9 = vld [vmem:[%s7184_s0 + $0x30] sm:$0xff] }
 0x470   :  { %v4831_v2 = vadd.f32 %v4815_v48, %v4780_v52 }
 0x472   :  { %v4847_v35 = vsub.f32 0.0, %v4831_v2 }
 0x474   :  { %v5287_v34 = vpop.eup %5286  ;;  %v4866_v57 = vmul.f32 1.442695, %v4847_v35 }
 0x475   :  { %v4894_v3 = vadd.f32 1.0, %v5287_v34 }
 0x476   :  { %5288 = vpow2.f32 %v4866_v57 }
 0x477   :  { %5290 = vrcp.f32 %v4894_v3 }
 0x47c   :  { %v5289_v19 = vpop.eup %5288 }
 0x47d   :  { %v5291_v58 = vpop.eup %5290  ;;  %v4895_v0 = vadd.f32 1.0, %v5289_v19 }
 0x47e   :  { %4927 = vst.msk [vmem:[%s7189_s5 + $0x10] sm:$0xff] %vm4924_vm0, %v5291_v58  ;;  %v4819_v58 = vld [vmem:[%s7184_s0 + $0x38] sm:$0xff] }
 0x47f   :  { %5292 = vrcp.f32 %v4895_v0 }
 0x485   :  { %v5293_v11 = vpop.eup %5292 }
 0x486   :  { %4928 = vst.msk [vmem:[%s7189_s5 + $0x18] sm:$0xff] %vm4924_vm0, %v5293_v11 }
 0x48b   :  { %v4802_v40 = vpop.f32.mrf.mxu3 }
 0x48c   :  { %v4803_v63 = vadd.f32 %v7026_v20, %v4802_v40 }
 0x48e   :  { %v4840_v56 = vadd.f32 %v4824_v16, %v4803_v63 }
 0x490   :  { %v4856_v49 = vsub.f32 0.0, %v4840_v56 }
 0x492   :  { %v4884_v46 = vmul.f32 1.442695, %v4856_v49 }
 0x493   :  { %v4804_v25 = vpop.f32.mrf.mxu3 }
 0x494   :  { %5294 = vpow2.f32 %v4884_v46  ;;  %v4805_v29 = vadd.f32 %v7026_v20, %v4804_v25 }
 0x496   :  { %v4841_v7 = vadd.f32 %v4825_v23, %v4805_v29 }
 0x498   :  { %v4857_v17 = vsub.f32 0.0, %v4841_v7 }
 0x49a   :  { %v5295_v6 = vpop.eup %5294  ;;  %v4886_v38 = vmul.f32 1.442695, %v4857_v17 }
 0x49b   :  { %v4904_v13 = vadd.f32 1.0, %v5295_v6 }
 0x49c   :  { %5296 = vpow2.f32 %v4886_v38 }
 0x49d   :  { %5298 = vrcp.f32 %v4904_v13  ;;  %v4782_v50 = vpop.f32.mrf.mxu1 }
 0x49e   :  { %v4783_v27 = vadd.f32 %v7026_v20, %v4782_v50 }
 0x4a0   :  { %v4832_v18 = vadd.f32 %v4816_v51, %v4783_v27 }
 0x4a2   :  { %v5297_v55 = vpop.eup %5296  ;;  %v4848_v60 = vsub.f32 0.0, %v4832_v18 }
 0x4a3   :  { %v5299_v21 = vpop.eup %5298  ;;  %v4905_v37 = vadd.f32 1.0, %v5297_v55 }
 0x4a4   :  { %4937 = vst.msk [vmem:[%s7189_s5 + $0x60] sm:$0xff] %vm4924_vm0, %v5299_v21  ;;  %v4868_v47 = vmul.f32 1.442695, %v4848_v60 }
 0x4a5   :  { %5300 = vrcp.f32 %v4905_v37  ;;  %v4784_v36 = vpop.f32.mrf.mxu1 }
 0x4a6   :  { %5302 = vpow2.f32 %v4868_v47  ;;  %v4785_v8 = vadd.f32 %v7026_v20, %v4784_v36 }
 0x4a8   :  { %v4833_v59 = vadd.f32 %v4817_v45, %v4785_v8 }
 0x4aa   :  { %v4849_v10 = vsub.f32 0.0, %v4833_v59 }
 0x4ab   :  { %v5301_v39 = vpop.eup %5300 }
 0x4ac   :  { %v5303_v4 = vpop.eup %5302  ;;  %4938 = vst.msk [vmem:[%s7189_s5 + $0x68] sm:$0xff] %vm4924_vm0, %v5301_v39  ;;  %v4870_v15 = vmul.f32 1.442695, %v4849_v10 }
 0x4ad   :  { %v4896_v1 = vadd.f32 1.0, %v5303_v4 }
 0x4ae   :  { %5304 = vpow2.f32 %v4870_v15 }
 0x4af   :  { %5306 = vrcp.f32 %v4896_v1 }
 0x4b4   :  { %v5305_v61 = vpop.eup %5304 }
 0x4b5   :  { %v5307_v14 = vpop.eup %5306  ;;  %v4897_v33 = vadd.f32 1.0, %v5305_v61 }
 0x4b6   :  { %4929 = vst.msk [vmem:[%s7189_s5 + $0x20] sm:$0xff] %vm4924_vm0, %v5307_v14 }
 0x4b7   :  { %5308 = vrcp.f32 %v4897_v33 }
 0x4bd   :  { %v5309_v28 = vpop.eup %5308 }
 0x4be   :  { %4930 = vst.msk [vmem:[%s7189_s5 + $0x28] sm:$0xff] %vm4924_vm0, %v5309_v28 }
 0x4c3   :  { %v4807_v54 = vpop.f32.mrf.mxu3 }
 0x4c4   :  { %v4808_v24 = vadd.f32 %v7026_v20, %v4807_v54 }
 0x4c6   :  { %v4842_v26 = vadd.f32 %v4826_v5, %v4808_v24 }
 0x4c8   :  { %v4858_v62 = vsub.f32 0.0, %v4842_v26 }
 0x4ca   :  { %v4888_v22 = vmul.f32 1.442695, %v4858_v62 }
 0x4cb   :  { %v4809_v12 = vpop.f32.mrf.mxu3 }
 0x4cc   :  { %5310 = vpow2.f32 %v4888_v22  ;;  %v4810_v31 = vadd.f32 %v7026_v20, %v4809_v12 }
 0x4ce   :  { %v4843_v53 = vadd.f32 %v4827_v30, %v4810_v31 }
 0x4d0   :  { %v4859_v32 = vsub.f32 0.0, %v4843_v53 }
 0x4d2   :  { %v5311_v41 = vpop.eup %5310  ;;  %v4890_v44 = vmul.f32 1.442695, %v4859_v32 }
 0x4d3   :  { %v4906_v42 = vadd.f32 1.0, %v5311_v41 }
 0x4d4   :  { %5312 = vpow2.f32 %v4890_v44 }
 0x4d5   :  { %5314 = vrcp.f32 %v4906_v42 }
 0x4d7   :  { %v4787_v43 = vpop.f32.mrf.mxu1 }
 0x4d8   :  { %v4788_v48 = vadd.f32 %v7026_v20, %v4787_v43 }
 0x4da   :  { %v5313_v52 = vpop.eup %5312  ;;  %v4834_v2 = vadd.f32 %v4818_v9, %v4788_v48 }
 0x4db   :  { %v5315_v35 = vpop.eup %5314  ;;  %v4907_v34 = vadd.f32 1.0, %v5313_v52 }
 0x4dc   :  { %4939 = vst.msk [vmem:[%s7189_s5 + $0x70] sm:$0xff] %vm4924_vm0, %v5315_v35  ;;  %v4850_v57 = vsub.f32 0.0, %v4834_v2 }
 0x4dd   :  { %5316 = vrcp.f32 %v4907_v34 }
 0x4de   :  { %v4872_v3 = vmul.f32 1.442695, %v4850_v57 }
 0x4df   :  { %v4789_v19 = vpop.f32.mrf.mxu1 }
 0x4e0   :  { %5318 = vpow2.f32 %v4872_v3  ;;  %v4790_v0 = vadd.f32 %v7026_v20, %v4789_v19 }
 0x4e2   :  { %v4835_v11 = vadd.f32 %v4819_v58, %v4790_v0 }
 0x4e3   :  { %v5317_v40 = vpop.eup %5316 }
 0x4e4   :  { %4940 = vst.msk [vmem:[%s7189_s5 + $0x78] sm:$0xff] %vm4924_vm0, %v5317_v40  ;;  %v4851_v16 = vsub.f32 0.0, %v4835_v11 }
 0x4e6   :  { %v5319_v63 = vpop.eup %5318  ;;  %v4874_v56 = vmul.f32 1.442695, %v4851_v16 }
 0x4e7   :  { %v4898_v49 = vadd.f32 1.0, %v5319_v63 }
 0x4e8   :  { %5320 = vpow2.f32 %v4874_v56 }
 0x4e9   :  { %5322 = vrcp.f32 %v4898_v49 }
 0x4ee   :  { %v5321_v46 = vpop.eup %5320 }
 0x4ef   :  { %v5323_v25 = vpop.eup %5322  ;;  %v4899_v23 = vadd.f32 1.0, %v5321_v46 }
 0x4f0   :  { %4931 = vst.msk [vmem:[%s7189_s5 + $0x30] sm:$0xff] %vm4924_vm0, %v5323_v25 }
 0x4f1   :  { %5324 = vrcp.f32 %v4899_v23 }
 0x4f7   :  { %v5325_v20 = vpop.eup %5324 }
 0x4f8   :  { %4932 = vst.msk [vmem:[%s7189_s5 + $0x38] sm:$0xff] %vm4924_vm0, %v5325_v20 }

</bundles_post_ra>
